<compile_context>
chip_gen: v5e
topology: v5e:2x2
jax: 0.10.0
libtpu: 0.0.40
codegen_flags: <defaults>
</compile_context>

<pallas_src>
import math

import jax
import jax.numpy as jnp
from jax import lax
from jax.experimental import pallas as pl
from jax.experimental.pallas import tpu as pltpu

NUM_HEADS = 12
HEAD_DIM = 64
HIDDEN = NUM_HEADS * HEAD_DIM   # 768
QKV = 3 * HIDDEN                # 2304


def _make_msa_kernel(seq_len: int, tq: int):
    """Kernel body for a given sequence length / query-tile size."""

    def kernel(x_ref, wqkv_ref, bqkv_ref, wo_ref, bo_ref, o_ref,
               qkv_ref, ctx_ref):
        qi = pl.program_id(1)

        # --- QKV projection: once per batch element.  The q grid axis is
        # "arbitrary", so this scratch legally persists across query tiles.
        @pl.when(qi == 0)
        def _():
            x = x_ref[0].astype(jnp.bfloat16)                        # (S, H)
            qkv = (jnp.dot(x, wqkv_ref[...],
                           preferred_element_type=jnp.float32)
                   + bqkv_ref[...])                                   # (S, 3H) f32
            qkv_ref[...] = qkv.astype(jnp.bfloat16)

        row0 = pl.multiple_of(qi * tq, tq)

        # --- Per-head attention, processed in head PAIRS so every ref access
        # (loads from the QKV scratch, stores to the ctx scratch) is a
        # 128-lane-aligned slice.  The 1/sqrt(d) scale is already folded into
        # W_q / b_q host-side.
        for hp in range(NUM_HEADS // 2):
            lo = 2 * hp * HEAD_DIM                                    # 0,128,...
            q2 = qkv_ref[pl.ds(row0, tq), lo:lo + 2 * HEAD_DIM]       # (tq, 128)
            k2 = qkv_ref[:, HIDDEN + lo:HIDDEN + lo + 2 * HEAD_DIM]   # (S, 128)
            v2 = qkv_ref[:, 2 * HIDDEN + lo:
                         2 * HIDDEN + lo + 2 * HEAD_DIM]              # (S, 128)

            pair = []
            for j in (0, 1):
                c0, c1 = j * HEAD_DIM, (j + 1) * HEAD_DIM
                qh = q2[:, c0:c1]                                     # (tq, 64)
                kh = k2[:, c0:c1]                                     # (S, 64)
                vh = v2[:, c0:c1]                                     # (S, 64)

                # q_h @ k_h^T via trans-B dot_general (no materialized k^T).
                s = lax.dot_general(
                    qh, kh, (((1,), (1,)), ((), ())),
                    preferred_element_type=jnp.float32)               # (tq, S)

                # Numerically stable softmax in f32; reciprocal on the EUP.
                s = s - jnp.max(s, axis=-1, keepdims=True)
                p = jnp.exp(s)
                p = p * pl.reciprocal(
                    jnp.sum(p, axis=-1, keepdims=True), approx=True)

                ctx_h = jnp.dot(p.astype(jnp.bfloat16), vh,
                                preferred_element_type=jnp.float32)   # (tq, 64)
                pair.append(ctx_h.astype(jnp.bfloat16))

            # Lane-dense 128-wide store of the head pair's context.
            ctx_ref[:, lo:lo + 2 * HEAD_DIM] = jnp.concatenate(pair, axis=1)

        # --- Single K=768 output projection + bias.
        out = (jnp.dot(ctx_ref[...], wo_ref[...],
                       preferred_element_type=jnp.float32)
               + bo_ref[...])                                         # (tq, H)
        o_ref[0] = out.astype(o_ref.dtype)

    return kernel


def _pick_tq(seq_len: int) -> int:
    """Largest query tile <= 128 that divides S (multiple of 8), else S."""
    if seq_len <= 128:
        return seq_len
    for t in range(128, 7, -8):
        if seq_len % t == 0:
            return t
    return seq_len


def msa_forward(x, params, *, tq=None):
    """MSA forward pass.

    x: (B, S, 768) float32.
    params: dict of f32 weights/biases; wq/wk/wv/wo are pre-transposed to
            (in_features, out_features), biases are (1, out_features).
    tq: query-tile size (defaults to min(S, 128)-ish divisor of S).
    """
    B, S, H = x.shape
    assert H == HIDDEN

    if tq is None:
        tq = _pick_tq(S)
    tq = min(tq, S)
    assert S % tq == 0, "sequence length must be divisible by the query tile"
    assert tq == S or tq % 8 == 0, "query tile must be a multiple of 8"
    n_q_tiles = S // tq

    scale = 1.0 / math.sqrt(HEAD_DIM)
    # Fold the 1/sqrt(d) score scale into the Q projection (free host-side),
    # fuse QKV into a single weight/bias block, and cast weights to bf16 for
    # the MXU (biases stay f32, added to the f32 accumulator).
    w_qkv = jnp.concatenate(
        [params["wq"] * scale, params["wk"], params["wv"]],
        axis=1).astype(jnp.bfloat16)
    b_qkv = jnp.concatenate(
        [params["bq"] * scale, params["bk"], params["bv"]], axis=1)
    w_o = params["wo"].astype(jnp.bfloat16)
    b_o = params["bo"]

    kernel = _make_msa_kernel(S, tq)

    flops = int(B * (2 * S * HIDDEN * QKV          # QKV projection
                     + 4 * S * S * HIDDEN          # scores + PV, all heads
                     + 2 * S * HIDDEN * HIDDEN))   # output projection
    transcendentals = int(B * NUM_HEADS * S * S)
    bytes_accessed = int(2 * B * S * HIDDEN * 4
                         + (HIDDEN * QKV + HIDDEN * HIDDEN) * 2
                         + (QKV + HIDDEN) * 4)

    # Weights/biases have constant index maps (fetched exactly once) ->
    # single-buffer them to halve their VMEM footprint.
    def wspec(shape):
        return pl.BlockSpec(shape, lambda b, q: (0, 0),
                            pipeline_mode=pl.Buffered(buffer_count=1))

    return pl.pallas_call(
        kernel,
        out_shape=jax.ShapeDtypeStruct((B, S, H), x.dtype),
        grid_spec=pltpu.PrefetchScalarGridSpec(
            num_scalar_prefetch=0,
            grid=(B, n_q_tiles),
            in_specs=[
                pl.BlockSpec((1, S, H), lambda b, q: (b, 0, 0)),  # x
                wspec((H, QKV)),                                   # W_qkv (bf16)
                wspec((1, QKV)),                                   # b_qkv (f32)
                wspec((H, H)),                                     # W_out (bf16)
                wspec((1, H)),                                     # b_out (f32)
            ],
            out_specs=pl.BlockSpec((1, tq, H), lambda b, q: (b, q, 0)),
            scratch_shapes=[
                pltpu.VMEM((S, QKV), jnp.bfloat16),      # QKV, reused per batch
                pltpu.VMEM((tq, HIDDEN), jnp.bfloat16),  # ctx, per q-tile
            ],
        ),
        compiler_params=pltpu.CompilerParams(
            # The q axis carries the QKV scratch -> must be "arbitrary";
            # batch stays "parallel" so v7x megacore can shard it safely.
            dimension_semantics=("parallel", "arbitrary"),
            vmem_limit_bytes=32 * 1024 * 1024,
        ),
        cost_estimate=pl.CostEstimate(
            flops=flops,
            transcendentals=transcendentals,
            bytes_accessed=bytes_accessed),
    )(x, w_qkv, b_qkv, w_o, b_o)


def _reference(x, params):
    """Pure-JAX f32 reference matching the PyTorch forward (dropout = id)."""
    B, S, H = x.shape
    q = x @ params["wq"] + params["bq"][0]
    k = x @ params["wk"] + params["bk"][0]
    v = x @ params["wv"] + params["bv"][0]

    def split(t):  # (B, S, H) -> (B, heads, S, Dh)
        return t.reshape(B, S, NUM_HEADS, HEAD_DIM).transpose(0, 2, 1, 3)

    qh, kh, vh = split(q), split(k), split(v)
    scores = jnp.einsum("bhqd,bhkd->bhqk", qh, kh) / math.sqrt(HEAD_DIM)
    probs = jax.nn.softmax(scores, axis=-1)
    ctx = jnp.einsum("bhqk,bhkd->bhqd", probs, vh)
    ctx = ctx.transpose(0, 2, 1, 3).reshape(B, S, H)
    return ctx @ params["wo"] + params["bo"][0]


def _init_params(key):
    ks = jax.random.split(key, 8)

    def linear(kw, kb):
        w = jax.random.normal(kw, (HIDDEN, HIDDEN), jnp.float32) * 0.02
        b = jax.random.normal(kb, (1, HIDDEN), jnp.float32) * 0.02
        return w, b

    wq, bq = linear(ks[0], ks[1])
    wk, bk = linear(ks[2], ks[3])
    wv, bv = linear(ks[4], ks[5])
    wo, bo = linear(ks[6], ks[7])
    return dict(wq=wq, bq=bq, wk=wk, bk=bk, wv=wv, bv=bv, wo=wo, bo=bo)


if __name__ == "__main__":
    key = jax.random.PRNGKey(0)
    k_param, k_x1, k_x2 = jax.random.split(key, 3)
    params = _init_params(k_param)

    # Case 1: single query tile (n_q_tiles == 1).
    B, S = 2, 8
    x1 = jax.random.normal(k_x1, (B, S, HIDDEN), jnp.float32)
    out1 = jax.block_until_ready(msa_forward(x1, params))
    ref1 = _reference(x1, params)
    assert out1.shape == (B, S, HIDDEN)
    # bf16 matmul inputs (f32 accumulation) -> slightly looser tolerance.
    assert jnp.allclose(out1, ref1, atol=2e-2, rtol=2e-2), "case1 mismatch"

    # Case 2: query-tiled path, QKV scratch reused across q tiles.
    S2, TQ = 16, 8
    x2 = jax.random.normal(k_x2, (B, S2, HIDDEN), jnp.float32)
    out2 = jax.block_until_ready(msa_forward(x2, params, tq=TQ))
    ref2 = _reference(x2, params)
    assert out2.shape == (B, S2, HIDDEN)
    assert jnp.allclose(out2, ref2, atol=2e-2, rtol=2e-2), "case2 mismatch"

    print("KERNEL_OK")
</pallas_src>

<mosaic_0001>
module attributes {stable_mosaic.version = 11 : i64} {
  func.func @kernel(%arg0: i32, %arg1: i32, %arg2: memref<1x8x768xf32, #tpu.memory_space<vmem>>, %arg3: memref<768x2304xbf16, #tpu.memory_space<vmem>>, %arg4: memref<1x2304xf32, #tpu.memory_space<vmem>>, %arg5: memref<768x768xbf16, #tpu.memory_space<vmem>>, %arg6: memref<1x768xf32, #tpu.memory_space<vmem>>, %arg7: memref<1x8x768xf32, #tpu.memory_space<vmem>>, %arg8: memref<8x2304xbf16, #tpu.memory_space<vmem>>, %arg9: memref<8x768xbf16, #tpu.memory_space<vmem>>) attributes {dimension_semantics = [#tpu.dimension_semantics<parallel>, #tpu.dimension_semantics<arbitrary>], iteration_bounds = array<i64: 2, 1>, scalar_prefetch = 0 : i64, scratch_operands = 2 : i64, tpu.core_type = #tpu.core_type<tc>, window_params = [{transform_indices = @transform_0, window_bounds = array<i64: 1, 8, 768>}, {pipeline_mode = #tpu.pipeline_mode<synchronous>, transform_indices = @transform_1, window_bounds = array<i64: 768, 2304>}, {pipeline_mode = #tpu.pipeline_mode<synchronous>, transform_indices = @transform_2, window_bounds = array<i64: 1, 2304>}, {pipeline_mode = #tpu.pipeline_mode<synchronous>, transform_indices = @transform_3, window_bounds = array<i64: 768, 768>}, {pipeline_mode = #tpu.pipeline_mode<synchronous>, transform_indices = @transform_4, window_bounds = array<i64: 1, 768>}, {transform_indices = @transform_5, window_bounds = array<i64: 1, 8, 768>}]} {
    %c0_i32 = arith.constant 0 : i32
    %0 = arith.cmpi eq, %arg1, %c0_i32 : i32
    %1 = arith.extui %0 : i1 to i32
    %c0_i32_0 = arith.constant 0 : i32
    %2 = arith.cmpi ne, %1, %c0_i32_0 : i32
    scf.if %2 {
      %c0_82 = arith.constant 0 : index
      %c0_83 = arith.constant 0 : index
      %c0_84 = arith.constant 0 : index
      %254 = vector.load %arg2[%c0_82, %c0_83, %c0_84] : memref<1x8x768xf32, #tpu.memory_space<vmem>>, vector<1x8x768xf32>
      %255 = vector.shape_cast %254 : vector<1x8x768xf32> to vector<8x768xf32>
      %256 = arith.truncf %255 : vector<8x768xf32> to vector<8x768xbf16>
      %c0_85 = arith.constant 0 : index
      %c0_86 = arith.constant 0 : index
      %257 = vector.load %arg3[%c0_85, %c0_86] : memref<768x2304xbf16, #tpu.memory_space<vmem>>, vector<768x2304xbf16>
      %cst_87 = arith.constant dense<0.000000e+00> : vector<8x2304xf32>
      %258 = tpu.matmul %256, %257, %cst_87 {dimension_numbers = #tpu.dot_dimension_numbers<[1], [0], [0], [1], [0, 0, 1, 1], [], []>} : vector<8x768xbf16>, vector<768x2304xbf16>, vector<8x2304xf32> -> vector<8x2304xf32>
      %c0_88 = arith.constant 0 : index
      %c0_89 = arith.constant 0 : index
      %259 = vector.load %arg4[%c0_88, %c0_89] : memref<1x2304xf32, #tpu.memory_space<vmem>>, vector<1x2304xf32>
      %260 = vector.broadcast %259 : vector<1x2304xf32> to vector<8x2304xf32>
      %261 = arith.addf %258, %260 : vector<8x2304xf32>
      %262 = arith.truncf %261 : vector<8x2304xf32> to vector<8x2304xbf16>
      %c0_90 = arith.constant 0 : index
      %c0_91 = arith.constant 0 : index
      %263 = vector.load %arg8[%c0_90, %c0_91] : memref<8x2304xbf16, #tpu.memory_space<vmem>>, vector<8x2304xbf16>
      tpu.vector_store %arg8[%c0_90, %c0_91], %262 {strides = array<i32>} : memref<8x2304xbf16, #tpu.memory_space<vmem>>, vector<8x2304xbf16>,
    } else {
    }
    %c8_i32 = arith.constant 8 : i32
    %3 = arith.muli %arg1, %c8_i32 : i32
    %4 = tpu.assume_multiple %3, 8 : i32
    %5 = arith.index_cast %4 : i32 to index
    %c0 = arith.constant 0 : index
    %6 = vector.load %arg8[%5, %c0] : memref<8x2304xbf16, #tpu.memory_space<vmem>>, vector<8x128xbf16>
    %c0_1 = arith.constant 0 : index
    %c768 = arith.constant 768 : index
    %7 = vector.load %arg8[%c0_1, %c768] : memref<8x2304xbf16, #tpu.memory_space<vmem>>, vector<8x128xbf16>
    %c0_2 = arith.constant 0 : index
    %c1536 = arith.constant 1536 : index
    %8 = vector.load %arg8[%c0_2, %c1536] : memref<8x2304xbf16, #tpu.memory_space<vmem>>, vector<8x128xbf16>
    %9 = vector.extract_strided_slice %6 {offsets = [0, 0], sizes = [8, 64], strides = [1, 1]} : vector<8x128xbf16> to vector<8x64xbf16>
    %10 = vector.extract_strided_slice %7 {offsets = [0, 0], sizes = [8, 64], strides = [1, 1]} : vector<8x128xbf16> to vector<8x64xbf16>
    %11 = vector.extract_strided_slice %8 {offsets = [0, 0], sizes = [8, 64], strides = [1, 1]} : vector<8x128xbf16> to vector<8x64xbf16>
    %cst = arith.constant dense<0.000000e+00> : vector<8x8xf32>
    %12 = tpu.matmul %9, %10, %cst {dimension_numbers = #tpu.dot_dimension_numbers<[1], [1], [0], [0], [0, 0, 1, 0], [], []>} : vector<8x64xbf16>, vector<8x64xbf16>, vector<8x8xf32> -> vector<8x8xf32>
    %cst_3 = arith.constant dense<0xFF800000> : vector<8xf32>
    %13 = vector.multi_reduction <maximumf>, %12, %cst_3 [1] : vector<8x8xf32> to vector<8xf32>
    %14 = vector.shape_cast %13 : vector<8xf32> to vector<8x1xf32>
    %15 = vector.broadcast %14 : vector<8x1xf32> to vector<8x8xf32>
    %16 = arith.subf %12, %15 : vector<8x8xf32>
    %17 = math.exp %16 : vector<8x8xf32>
    %cst_4 = arith.constant dense<0.000000e+00> : vector<8xf32>
    %18 = vector.multi_reduction <add>, %17, %cst_4 [1] : vector<8x8xf32> to vector<8xf32>
    %19 = vector.shape_cast %18 : vector<8xf32> to vector<8x1xf32>
    %20 = tpu.reciprocal %19 {approx = true} : vector<8x1xf32> -> vector<8x1xf32>
    %21 = vector.broadcast %20 : vector<8x1xf32> to vector<8x8xf32>
    %22 = arith.mulf %17, %21 : vector<8x8xf32>
    %23 = arith.truncf %22 : vector<8x8xf32> to vector<8x8xbf16>
    %cst_5 = arith.constant dense<0.000000e+00> : vector<8x64xf32>
    %24 = tpu.matmul %23, %11, %cst_5 {dimension_numbers = #tpu.dot_dimension_numbers<[1], [0], [0], [1], [0, 0, 1, 1], [], []>} : vector<8x8xbf16>, vector<8x64xbf16>, vector<8x64xf32> -> vector<8x64xf32>
    %25 = arith.truncf %24 : vector<8x64xf32> to vector<8x64xbf16>
    %26 = vector.extract_strided_slice %6 {offsets = [0, 64], sizes = [8, 64], strides = [1, 1]} : vector<8x128xbf16> to vector<8x64xbf16>
    %27 = vector.extract_strided_slice %7 {offsets = [0, 64], sizes = [8, 64], strides = [1, 1]} : vector<8x128xbf16> to vector<8x64xbf16>
    %28 = vector.extract_strided_slice %8 {offsets = [0, 64], sizes = [8, 64], strides = [1, 1]} : vector<8x128xbf16> to vector<8x64xbf16>
    %cst_6 = arith.constant dense<0.000000e+00> : vector<8x8xf32>
    %29 = tpu.matmul %26, %27, %cst_6 {dimension_numbers = #tpu.dot_dimension_numbers<[1], [1], [0], [0], [0, 0, 1, 0], [], []>} : vector<8x64xbf16>, vector<8x64xbf16>, vector<8x8xf32> -> vector<8x8xf32>
    %cst_7 = arith.constant dense<0xFF800000> : vector<8xf32>
    %30 = vector.multi_reduction <maximumf>, %29, %cst_7 [1] : vector<8x8xf32> to vector<8xf32>
    %31 = vector.shape_cast %30 : vector<8xf32> to vector<8x1xf32>
    %32 = vector.broadcast %31 : vector<8x1xf32> to vector<8x8xf32>
    %33 = arith.subf %29, %32 : vector<8x8xf32>
    %34 = math.exp %33 : vector<8x8xf32>
    %cst_8 = arith.constant dense<0.000000e+00> : vector<8xf32>
    %35 = vector.multi_reduction <add>, %34, %cst_8 [1] : vector<8x8xf32> to vector<8xf32>
    %36 = vector.shape_cast %35 : vector<8xf32> to vector<8x1xf32>
    %37 = tpu.reciprocal %36 {approx = true} : vector<8x1xf32> -> vector<8x1xf32>
    %38 = vector.broadcast %37 : vector<8x1xf32> to vector<8x8xf32>
    %39 = arith.mulf %34, %38 : vector<8x8xf32>
    %40 = arith.truncf %39 : vector<8x8xf32> to vector<8x8xbf16>
    %cst_9 = arith.constant dense<0.000000e+00> : vector<8x64xf32>
    %41 = tpu.matmul %40, %28, %cst_9 {dimension_numbers = #tpu.dot_dimension_numbers<[1], [0], [0], [1], [0, 0, 1, 1], [], []>} : vector<8x8xbf16>, vector<8x64xbf16>, vector<8x64xf32> -> vector<8x64xf32>
    %42 = arith.truncf %41 : vector<8x64xf32> to vector<8x64xbf16>
    %43 = tpu.concatenate %25, %42 in 1 : vector<8x64xbf16>, vector<8x64xbf16> -> vector<8x128xbf16>
    %c0_10 = arith.constant 0 : index
    %c0_11 = arith.constant 0 : index
    %44 = vector.load %arg9[%c0_10, %c0_11] : memref<8x768xbf16, #tpu.memory_space<vmem>>, vector<8x128xbf16>
    tpu.vector_store %arg9[%c0_10, %c0_11], %43 {strides = array<i32>} : memref<8x768xbf16, #tpu.memory_space<vmem>>, vector<8x128xbf16>,
    %45 = arith.index_cast %4 : i32 to index
    %c128 = arith.constant 128 : index
    %46 = vector.load %arg8[%45, %c128] : memref<8x2304xbf16, #tpu.memory_space<vmem>>, vector<8x128xbf16>
    %c0_12 = arith.constant 0 : index
    %c896 = arith.constant 896 : index
    %47 = vector.load %arg8[%c0_12, %c896] : memref<8x2304xbf16, #tpu.memory_space<vmem>>, vector<8x128xbf16>
    %c0_13 = arith.constant 0 : index
    %c1664 = arith.constant 1664 : index
    %48 = vector.load %arg8[%c0_13, %c1664] : memref<8x2304xbf16, #tpu.memory_space<vmem>>, vector<8x128xbf16>
    %49 = vector.extract_strided_slice %46 {offsets = [0, 0], sizes = [8, 64], strides = [1, 1]} : vector<8x128xbf16> to vector<8x64xbf16>
    %50 = vector.extract_strided_slice %47 {offsets = [0, 0], sizes = [8, 64], strides = [1, 1]} : vector<8x128xbf16> to vector<8x64xbf16>
    %51 = vector.extract_strided_slice %48 {offsets = [0, 0], sizes = [8, 64], strides = [1, 1]} : vector<8x128xbf16> to vector<8x64xbf16>
    %cst_14 = arith.constant dense<0.000000e+00> : vector<8x8xf32>
    %52 = tpu.matmul %49, %50, %cst_14 {dimension_numbers = #tpu.dot_dimension_numbers<[1], [1], [0], [0], [0, 0, 1, 0], [], []>} : vector<8x64xbf16>, vector<8x64xbf16>, vector<8x8xf32> -> vector<8x8xf32>
    %cst_15 = arith.constant dense<0xFF800000> : vector<8xf32>
    %53 = vector.multi_reduction <maximumf>, %52, %cst_15 [1] : vector<8x8xf32> to vector<8xf32>
    %54 = vector.shape_cast %53 : vector<8xf32> to vector<8x1xf32>
    %55 = vector.broadcast %54 : vector<8x1xf32> to vector<8x8xf32>
    %56 = arith.subf %52, %55 : vector<8x8xf32>
    %57 = math.exp %56 : vector<8x8xf32>
    %cst_16 = arith.constant dense<0.000000e+00> : vector<8xf32>
    %58 = vector.multi_reduction <add>, %57, %cst_16 [1] : vector<8x8xf32> to vector<8xf32>
    %59 = vector.shape_cast %58 : vector<8xf32> to vector<8x1xf32>
    %60 = tpu.reciprocal %59 {approx = true} : vector<8x1xf32> -> vector<8x1xf32>
    %61 = vector.broadcast %60 : vector<8x1xf32> to vector<8x8xf32>
    %62 = arith.mulf %57, %61 : vector<8x8xf32>
    %63 = arith.truncf %62 : vector<8x8xf32> to vector<8x8xbf16>
    %cst_17 = arith.constant dense<0.000000e+00> : vector<8x64xf32>
    %64 = tpu.matmul %63, %51, %cst_17 {dimension_numbers = #tpu.dot_dimension_numbers<[1], [0], [0], [1], [0, 0, 1, 1], [], []>} : vector<8x8xbf16>, vector<8x64xbf16>, vector<8x64xf32> -> vector<8x64xf32>
    %65 = arith.truncf %64 : vector<8x64xf32> to vector<8x64xbf16>
    %66 = vector.extract_strided_slice %46 {offsets = [0, 64], sizes = [8, 64], strides = [1, 1]} : vector<8x128xbf16> to vector<8x64xbf16>
    %67 = vector.extract_strided_slice %47 {offsets = [0, 64], sizes = [8, 64], strides = [1, 1]} : vector<8x128xbf16> to vector<8x64xbf16>
    %68 = vector.extract_strided_slice %48 {offsets = [0, 64], sizes = [8, 64], strides = [1, 1]} : vector<8x128xbf16> to vector<8x64xbf16>
    %cst_18 = arith.constant dense<0.000000e+00> : vector<8x8xf32>
    %69 = tpu.matmul %66, %67, %cst_18 {dimension_numbers = #tpu.dot_dimension_numbers<[1], [1], [0], [0], [0, 0, 1, 0], [], []>} : vector<8x64xbf16>, vector<8x64xbf16>, vector<8x8xf32> -> vector<8x8xf32>
    %cst_19 = arith.constant dense<0xFF800000> : vector<8xf32>
    %70 = vector.multi_reduction <maximumf>, %69, %cst_19 [1] : vector<8x8xf32> to vector<8xf32>
    %71 = vector.shape_cast %70 : vector<8xf32> to vector<8x1xf32>
    %72 = vector.broadcast %71 : vector<8x1xf32> to vector<8x8xf32>
    %73 = arith.subf %69, %72 : vector<8x8xf32>
    %74 = math.exp %73 : vector<8x8xf32>
    %cst_20 = arith.constant dense<0.000000e+00> : vector<8xf32>
    %75 = vector.multi_reduction <add>, %74, %cst_20 [1] : vector<8x8xf32> to vector<8xf32>
    %76 = vector.shape_cast %75 : vector<8xf32> to vector<8x1xf32>
    %77 = tpu.reciprocal %76 {approx = true} : vector<8x1xf32> -> vector<8x1xf32>
    %78 = vector.broadcast %77 : vector<8x1xf32> to vector<8x8xf32>
    %79 = arith.mulf %74, %78 : vector<8x8xf32>
    %80 = arith.truncf %79 : vector<8x8xf32> to vector<8x8xbf16>
    %cst_21 = arith.constant dense<0.000000e+00> : vector<8x64xf32>
    %81 = tpu.matmul %80, %68, %cst_21 {dimension_numbers = #tpu.dot_dimension_numbers<[1], [0], [0], [1], [0, 0, 1, 1], [], []>} : vector<8x8xbf16>, vector<8x64xbf16>, vector<8x64xf32> -> vector<8x64xf32>
    %82 = arith.truncf %81 : vector<8x64xf32> to vector<8x64xbf16>
    %83 = tpu.concatenate %65, %82 in 1 : vector<8x64xbf16>, vector<8x64xbf16> -> vector<8x128xbf16>
    %c0_22 = arith.constant 0 : index
    %c128_23 = arith.constant 128 : index
    %84 = vector.load %arg9[%c0_22, %c128_23] : memref<8x768xbf16, #tpu.memory_space<vmem>>, vector<8x128xbf16>
    tpu.vector_store %arg9[%c0_22, %c128_23], %83 {strides = array<i32>} : memref<8x768xbf16, #tpu.memory_space<vmem>>, vector<8x128xbf16>,
    %85 = arith.index_cast %4 : i32 to index
    %c256 = arith.constant 256 : index
    %86 = vector.load %arg8[%85, %c256] : memref<8x2304xbf16, #tpu.memory_space<vmem>>, vector<8x128xbf16>
    %c0_24 = arith.constant 0 : index
    %c1024 = arith.constant 1024 : index
    %87 = vector.load %arg8[%c0_24, %c1024] : memref<8x2304xbf16, #tpu.memory_space<vmem>>, vector<8x128xbf16>
    %c0_25 = arith.constant 0 : index
    %c1792 = arith.constant 1792 : index
    %88 = vector.load %arg8[%c0_25, %c1792] : memref<8x2304xbf16, #tpu.memory_space<vmem>>, vector<8x128xbf16>
    %89 = vector.extract_strided_slice %86 {offsets = [0, 0], sizes = [8, 64], strides = [1, 1]} : vector<8x128xbf16> to vector<8x64xbf16>
    %90 = vector.extract_strided_slice %87 {offsets = [0, 0], sizes = [8, 64], strides = [1, 1]} : vector<8x128xbf16> to vector<8x64xbf16>
    %91 = vector.extract_strided_slice %88 {offsets = [0, 0], sizes = [8, 64], strides = [1, 1]} : vector<8x128xbf16> to vector<8x64xbf16>
    %cst_26 = arith.constant dense<0.000000e+00> : vector<8x8xf32>
    %92 = tpu.matmul %89, %90, %cst_26 {dimension_numbers = #tpu.dot_dimension_numbers<[1], [1], [0], [0], [0, 0, 1, 0], [], []>} : vector<8x64xbf16>, vector<8x64xbf16>, vector<8x8xf32> -> vector<8x8xf32>
    %cst_27 = arith.constant dense<0xFF800000> : vector<8xf32>
    %93 = vector.multi_reduction <maximumf>, %92, %cst_27 [1] : vector<8x8xf32> to vector<8xf32>
    %94 = vector.shape_cast %93 : vector<8xf32> to vector<8x1xf32>
    %95 = vector.broadcast %94 : vector<8x1xf32> to vector<8x8xf32>
    %96 = arith.subf %92, %95 : vector<8x8xf32>
    %97 = math.exp %96 : vector<8x8xf32>
    %cst_28 = arith.constant dense<0.000000e+00> : vector<8xf32>
    %98 = vector.multi_reduction <add>, %97, %cst_28 [1] : vector<8x8xf32> to vector<8xf32>
    %99 = vector.shape_cast %98 : vector<8xf32> to vector<8x1xf32>
    %100 = tpu.reciprocal %99 {approx = true} : vector<8x1xf32> -> vector<8x1xf32>
    %101 = vector.broadcast %100 : vector<8x1xf32> to vector<8x8xf32>
    %102 = arith.mulf %97, %101 : vector<8x8xf32>
    %103 = arith.truncf %102 : vector<8x8xf32> to vector<8x8xbf16>
    %cst_29 = arith.constant dense<0.000000e+00> : vector<8x64xf32>
    %104 = tpu.matmul %103, %91, %cst_29 {dimension_numbers = #tpu.dot_dimension_numbers<[1], [0], [0], [1], [0, 0, 1, 1], [], []>} : vector<8x8xbf16>, vector<8x64xbf16>, vector<8x64xf32> -> vector<8x64xf32>
    %105 = arith.truncf %104 : vector<8x64xf32> to vector<8x64xbf16>
    %106 = vector.extract_strided_slice %86 {offsets = [0, 64], sizes = [8, 64], strides = [1, 1]} : vector<8x128xbf16> to vector<8x64xbf16>
    %107 = vector.extract_strided_slice %87 {offsets = [0, 64], sizes = [8, 64], strides = [1, 1]} : vector<8x128xbf16> to vector<8x64xbf16>
    %108 = vector.extract_strided_slice %88 {offsets = [0, 64], sizes = [8, 64], strides = [1, 1]} : vector<8x128xbf16> to vector<8x64xbf16>
    %cst_30 = arith.constant dense<0.000000e+00> : vector<8x8xf32>
    %109 = tpu.matmul %106, %107, %cst_30 {dimension_numbers = #tpu.dot_dimension_numbers<[1], [1], [0], [0], [0, 0, 1, 0], [], []>} : vector<8x64xbf16>, vector<8x64xbf16>, vector<8x8xf32> -> vector<8x8xf32>
    %cst_31 = arith.constant dense<0xFF800000> : vector<8xf32>
    %110 = vector.multi_reduction <maximumf>, %109, %cst_31 [1] : vector<8x8xf32> to vector<8xf32>
    %111 = vector.shape_cast %110 : vector<8xf32> to vector<8x1xf32>
    %112 = vector.broadcast %111 : vector<8x1xf32> to vector<8x8xf32>
    %113 = arith.subf %109, %112 : vector<8x8xf32>
    %114 = math.exp %113 : vector<8x8xf32>
    %cst_32 = arith.constant dense<0.000000e+00> : vector<8xf32>
    %115 = vector.multi_reduction <add>, %114, %cst_32 [1] : vector<8x8xf32> to vector<8xf32>
    %116 = vector.shape_cast %115 : vector<8xf32> to vector<8x1xf32>
    %117 = tpu.reciprocal %116 {approx = true} : vector<8x1xf32> -> vector<8x1xf32>
    %118 = vector.broadcast %117 : vector<8x1xf32> to vector<8x8xf32>
    %119 = arith.mulf %114, %118 : vector<8x8xf32>
    %120 = arith.truncf %119 : vector<8x8xf32> to vector<8x8xbf16>
    %cst_33 = arith.constant dense<0.000000e+00> : vector<8x64xf32>
    %121 = tpu.matmul %120, %108, %cst_33 {dimension_numbers = #tpu.dot_dimension_numbers<[1], [0], [0], [1], [0, 0, 1, 1], [], []>} : vector<8x8xbf16>, vector<8x64xbf16>, vector<8x64xf32> -> vector<8x64xf32>
    %122 = arith.truncf %121 : vector<8x64xf32> to vector<8x64xbf16>
    %123 = tpu.concatenate %105, %122 in 1 : vector<8x64xbf16>, vector<8x64xbf16> -> vector<8x128xbf16>
    %c0_34 = arith.constant 0 : index
    %c256_35 = arith.constant 256 : index
    %124 = vector.load %arg9[%c0_34, %c256_35] : memref<8x768xbf16, #tpu.memory_space<vmem>>, vector<8x128xbf16>
    tpu.vector_store %arg9[%c0_34, %c256_35], %123 {strides = array<i32>} : memref<8x768xbf16, #tpu.memory_space<vmem>>, vector<8x128xbf16>,
    %125 = arith.index_cast %4 : i32 to index
    %c384 = arith.constant 384 : index
    %126 = vector.load %arg8[%125, %c384] : memref<8x2304xbf16, #tpu.memory_space<vmem>>, vector<8x128xbf16>
    %c0_36 = arith.constant 0 : index
    %c1152 = arith.constant 1152 : index
    %127 = vector.load %arg8[%c0_36, %c1152] : memref<8x2304xbf16, #tpu.memory_space<vmem>>, vector<8x128xbf16>
    %c0_37 = arith.constant 0 : index
    %c1920 = arith.constant 1920 : index
    %128 = vector.load %arg8[%c0_37, %c1920] : memref<8x2304xbf16, #tpu.memory_space<vmem>>, vector<8x128xbf16>
    %129 = vector.extract_strided_slice %126 {offsets = [0, 0], sizes = [8, 64], strides = [1, 1]} : vector<8x128xbf16> to vector<8x64xbf16>
    %130 = vector.extract_strided_slice %127 {offsets = [0, 0], sizes = [8, 64], strides = [1, 1]} : vector<8x128xbf16> to vector<8x64xbf16>
    %131 = vector.extract_strided_slice %128 {offsets = [0, 0], sizes = [8, 64], strides = [1, 1]} : vector<8x128xbf16> to vector<8x64xbf16>
    %cst_38 = arith.constant dense<0.000000e+00> : vector<8x8xf32>
    %132 = tpu.matmul %129, %130, %cst_38 {dimension_numbers = #tpu.dot_dimension_numbers<[1], [1], [0], [0], [0, 0, 1, 0], [], []>} : vector<8x64xbf16>, vector<8x64xbf16>, vector<8x8xf32> -> vector<8x8xf32>
    %cst_39 = arith.constant dense<0xFF800000> : vector<8xf32>
    %133 = vector.multi_reduction <maximumf>, %132, %cst_39 [1] : vector<8x8xf32> to vector<8xf32>
    %134 = vector.shape_cast %133 : vector<8xf32> to vector<8x1xf32>
    %135 = vector.broadcast %134 : vector<8x1xf32> to vector<8x8xf32>
    %136 = arith.subf %132, %135 : vector<8x8xf32>
    %137 = math.exp %136 : vector<8x8xf32>
    %cst_40 = arith.constant dense<0.000000e+00> : vector<8xf32>
    %138 = vector.multi_reduction <add>, %137, %cst_40 [1] : vector<8x8xf32> to vector<8xf32>
    %139 = vector.shape_cast %138 : vector<8xf32> to vector<8x1xf32>
    %140 = tpu.reciprocal %139 {approx = true} : vector<8x1xf32> -> vector<8x1xf32>
    %141 = vector.broadcast %140 : vector<8x1xf32> to vector<8x8xf32>
    %142 = arith.mulf %137, %141 : vector<8x8xf32>
    %143 = arith.truncf %142 : vector<8x8xf32> to vector<8x8xbf16>
    %cst_41 = arith.constant dense<0.000000e+00> : vector<8x64xf32>
    %144 = tpu.matmul %143, %131, %cst_41 {dimension_numbers = #tpu.dot_dimension_numbers<[1], [0], [0], [1], [0, 0, 1, 1], [], []>} : vector<8x8xbf16>, vector<8x64xbf16>, vector<8x64xf32> -> vector<8x64xf32>
    %145 = arith.truncf %144 : vector<8x64xf32> to vector<8x64xbf16>
    %146 = vector.extract_strided_slice %126 {offsets = [0, 64], sizes = [8, 64], strides = [1, 1]} : vector<8x128xbf16> to vector<8x64xbf16>
    %147 = vector.extract_strided_slice %127 {offsets = [0, 64], sizes = [8, 64], strides = [1, 1]} : vector<8x128xbf16> to vector<8x64xbf16>
    %148 = vector.extract_strided_slice %128 {offsets = [0, 64], sizes = [8, 64], strides = [1, 1]} : vector<8x128xbf16> to vector<8x64xbf16>
    %cst_42 = arith.constant dense<0.000000e+00> : vector<8x8xf32>
    %149 = tpu.matmul %146, %147, %cst_42 {dimension_numbers = #tpu.dot_dimension_numbers<[1], [1], [0], [0], [0, 0, 1, 0], [], []>} : vector<8x64xbf16>, vector<8x64xbf16>, vector<8x8xf32> -> vector<8x8xf32>
    %cst_43 = arith.constant dense<0xFF800000> : vector<8xf32>
    %150 = vector.multi_reduction <maximumf>, %149, %cst_43 [1] : vector<8x8xf32> to vector<8xf32>
    %151 = vector.shape_cast %150 : vector<8xf32> to vector<8x1xf32>
    %152 = vector.broadcast %151 : vector<8x1xf32> to vector<8x8xf32>
    %153 = arith.subf %149, %152 : vector<8x8xf32>
    %154 = math.exp %153 : vector<8x8xf32>
    %cst_44 = arith.constant dense<0.000000e+00> : vector<8xf32>
    %155 = vector.multi_reduction <add>, %154, %cst_44 [1] : vector<8x8xf32> to vector<8xf32>
    %156 = vector.shape_cast %155 : vector<8xf32> to vector<8x1xf32>
    %157 = tpu.reciprocal %156 {approx = true} : vector<8x1xf32> -> vector<8x1xf32>
    %158 = vector.broadcast %157 : vector<8x1xf32> to vector<8x8xf32>
    %159 = arith.mulf %154, %158 : vector<8x8xf32>
    %160 = arith.truncf %159 : vector<8x8xf32> to vector<8x8xbf16>
    %cst_45 = arith.constant dense<0.000000e+00> : vector<8x64xf32>
    %161 = tpu.matmul %160, %148, %cst_45 {dimension_numbers = #tpu.dot_dimension_numbers<[1], [0], [0], [1], [0, 0, 1, 1], [], []>} : vector<8x8xbf16>, vector<8x64xbf16>, vector<8x64xf32> -> vector<8x64xf32>
    %162 = arith.truncf %161 : vector<8x64xf32> to vector<8x64xbf16>
    %163 = tpu.concatenate %145, %162 in 1 : vector<8x64xbf16>, vector<8x64xbf16> -> vector<8x128xbf16>
    %c0_46 = arith.constant 0 : index
    %c384_47 = arith.constant 384 : index
    %164 = vector.load %arg9[%c0_46, %c384_47] : memref<8x768xbf16, #tpu.memory_space<vmem>>, vector<8x128xbf16>
    tpu.vector_store %arg9[%c0_46, %c384_47], %163 {strides = array<i32>} : memref<8x768xbf16, #tpu.memory_space<vmem>>, vector<8x128xbf16>,
    %165 = arith.index_cast %4 : i32 to index
    %c512 = arith.constant 512 : index
    %166 = vector.load %arg8[%165, %c512] : memref<8x2304xbf16, #tpu.memory_space<vmem>>, vector<8x128xbf16>
    %c0_48 = arith.constant 0 : index
    %c1280 = arith.constant 1280 : index
    %167 = vector.load %arg8[%c0_48, %c1280] : memref<8x2304xbf16, #tpu.memory_space<vmem>>, vector<8x128xbf16>
    %c0_49 = arith.constant 0 : index
    %c2048 = arith.constant 2048 : index
    %168 = vector.load %arg8[%c0_49, %c2048] : memref<8x2304xbf16, #tpu.memory_space<vmem>>, vector<8x128xbf16>
    %169 = vector.extract_strided_slice %166 {offsets = [0, 0], sizes = [8, 64], strides = [1, 1]} : vector<8x128xbf16> to vector<8x64xbf16>
    %170 = vector.extract_strided_slice %167 {offsets = [0, 0], sizes = [8, 64], strides = [1, 1]} : vector<8x128xbf16> to vector<8x64xbf16>
    %171 = vector.extract_strided_slice %168 {offsets = [0, 0], sizes = [8, 64], strides = [1, 1]} : vector<8x128xbf16> to vector<8x64xbf16>
    %cst_50 = arith.constant dense<0.000000e+00> : vector<8x8xf32>
    %172 = tpu.matmul %169, %170, %cst_50 {dimension_numbers = #tpu.dot_dimension_numbers<[1], [1], [0], [0], [0, 0, 1, 0], [], []>} : vector<8x64xbf16>, vector<8x64xbf16>, vector<8x8xf32> -> vector<8x8xf32>
    %cst_51 = arith.constant dense<0xFF800000> : vector<8xf32>
    %173 = vector.multi_reduction <maximumf>, %172, %cst_51 [1] : vector<8x8xf32> to vector<8xf32>
    %174 = vector.shape_cast %173 : vector<8xf32> to vector<8x1xf32>
    %175 = vector.broadcast %174 : vector<8x1xf32> to vector<8x8xf32>
    %176 = arith.subf %172, %175 : vector<8x8xf32>
    %177 = math.exp %176 : vector<8x8xf32>
    %cst_52 = arith.constant dense<0.000000e+00> : vector<8xf32>
    %178 = vector.multi_reduction <add>, %177, %cst_52 [1] : vector<8x8xf32> to vector<8xf32>
    %179 = vector.shape_cast %178 : vector<8xf32> to vector<8x1xf32>
    %180 = tpu.reciprocal %179 {approx = true} : vector<8x1xf32> -> vector<8x1xf32>
    %181 = vector.broadcast %180 : vector<8x1xf32> to vector<8x8xf32>
    %182 = arith.mulf %177, %181 : vector<8x8xf32>
    %183 = arith.truncf %182 : vector<8x8xf32> to vector<8x8xbf16>
    %cst_53 = arith.constant dense<0.000000e+00> : vector<8x64xf32>
    %184 = tpu.matmul %183, %171, %cst_53 {dimension_numbers = #tpu.dot_dimension_numbers<[1], [0], [0], [1], [0, 0, 1, 1], [], []>} : vector<8x8xbf16>, vector<8x64xbf16>, vector<8x64xf32> -> vector<8x64xf32>
    %185 = arith.truncf %184 : vector<8x64xf32> to vector<8x64xbf16>
    %186 = vector.extract_strided_slice %166 {offsets = [0, 64], sizes = [8, 64], strides = [1, 1]} : vector<8x128xbf16> to vector<8x64xbf16>
    %187 = vector.extract_strided_slice %167 {offsets = [0, 64], sizes = [8, 64], strides = [1, 1]} : vector<8x128xbf16> to vector<8x64xbf16>
    %188 = vector.extract_strided_slice %168 {offsets = [0, 64], sizes = [8, 64], strides = [1, 1]} : vector<8x128xbf16> to vector<8x64xbf16>
    %cst_54 = arith.constant dense<0.000000e+00> : vector<8x8xf32>
    %189 = tpu.matmul %186, %187, %cst_54 {dimension_numbers = #tpu.dot_dimension_numbers<[1], [1], [0], [0], [0, 0, 1, 0], [], []>} : vector<8x64xbf16>, vector<8x64xbf16>, vector<8x8xf32> -> vector<8x8xf32>
    %cst_55 = arith.constant dense<0xFF800000> : vector<8xf32>
    %190 = vector.multi_reduction <maximumf>, %189, %cst_55 [1] : vector<8x8xf32> to vector<8xf32>
    %191 = vector.shape_cast %190 : vector<8xf32> to vector<8x1xf32>
    %192 = vector.broadcast %191 : vector<8x1xf32> to vector<8x8xf32>
    %193 = arith.subf %189, %192 : vector<8x8xf32>
    %194 = math.exp %193 : vector<8x8xf32>
    %cst_56 = arith.constant dense<0.000000e+00> : vector<8xf32>
    %195 = vector.multi_reduction <add>, %194, %cst_56 [1] : vector<8x8xf32> to vector<8xf32>
    %196 = vector.shape_cast %195 : vector<8xf32> to vector<8x1xf32>
    %197 = tpu.reciprocal %196 {approx = true} : vector<8x1xf32> -> vector<8x1xf32>
    %198 = vector.broadcast %197 : vector<8x1xf32> to vector<8x8xf32>
    %199 = arith.mulf %194, %198 : vector<8x8xf32>
    %200 = arith.truncf %199 : vector<8x8xf32> to vector<8x8xbf16>
    %cst_57 = arith.constant dense<0.000000e+00> : vector<8x64xf32>
    %201 = tpu.matmul %200, %188, %cst_57 {dimension_numbers = #tpu.dot_dimension_numbers<[1], [0], [0], [1], [0, 0, 1, 1], [], []>} : vector<8x8xbf16>, vector<8x64xbf16>, vector<8x64xf32> -> vector<8x64xf32>
    %202 = arith.truncf %201 : vector<8x64xf32> to vector<8x64xbf16>
    %203 = tpu.concatenate %185, %202 in 1 : vector<8x64xbf16>, vector<8x64xbf16> -> vector<8x128xbf16>
    %c0_58 = arith.constant 0 : index
    %c512_59 = arith.constant 512 : index
    %204 = vector.load %arg9[%c0_58, %c512_59] : memref<8x768xbf16, #tpu.memory_space<vmem>>, vector<8x128xbf16>
    tpu.vector_store %arg9[%c0_58, %c512_59], %203 {strides = array<i32>} : memref<8x768xbf16, #tpu.memory_space<vmem>>, vector<8x128xbf16>,
    %205 = arith.index_cast %4 : i32 to index
    %c640 = arith.constant 640 : index
    %206 = vector.load %arg8[%205, %c640] : memref<8x2304xbf16, #tpu.memory_space<vmem>>, vector<8x128xbf16>
    %c0_60 = arith.constant 0 : index
    %c1408 = arith.constant 1408 : index
    %207 = vector.load %arg8[%c0_60, %c1408] : memref<8x2304xbf16, #tpu.memory_space<vmem>>, vector<8x128xbf16>
    %c0_61 = arith.constant 0 : index
    %c2176 = arith.constant 2176 : index
    %208 = vector.load %arg8[%c0_61, %c2176] : memref<8x2304xbf16, #tpu.memory_space<vmem>>, vector<8x128xbf16>
    %209 = vector.extract_strided_slice %206 {offsets = [0, 0], sizes = [8, 64], strides = [1, 1]} : vector<8x128xbf16> to vector<8x64xbf16>
    %210 = vector.extract_strided_slice %207 {offsets = [0, 0], sizes = [8, 64], strides = [1, 1]} : vector<8x128xbf16> to vector<8x64xbf16>
    %211 = vector.extract_strided_slice %208 {offsets = [0, 0], sizes = [8, 64], strides = [1, 1]} : vector<8x128xbf16> to vector<8x64xbf16>
    %cst_62 = arith.constant dense<0.000000e+00> : vector<8x8xf32>
    %212 = tpu.matmul %209, %210, %cst_62 {dimension_numbers = #tpu.dot_dimension_numbers<[1], [1], [0], [0], [0, 0, 1, 0], [], []>} : vector<8x64xbf16>, vector<8x64xbf16>, vector<8x8xf32> -> vector<8x8xf32>
    %cst_63 = arith.constant dense<0xFF800000> : vector<8xf32>
    %213 = vector.multi_reduction <maximumf>, %212, %cst_63 [1] : vector<8x8xf32> to vector<8xf32>
    %214 = vector.shape_cast %213 : vector<8xf32> to vector<8x1xf32>
    %215 = vector.broadcast %214 : vector<8x1xf32> to vector<8x8xf32>
    %216 = arith.subf %212, %215 : vector<8x8xf32>
    %217 = math.exp %216 : vector<8x8xf32>
    %cst_64 = arith.constant dense<0.000000e+00> : vector<8xf32>
    %218 = vector.multi_reduction <add>, %217, %cst_64 [1] : vector<8x8xf32> to vector<8xf32>
    %219 = vector.shape_cast %218 : vector<8xf32> to vector<8x1xf32>
    %220 = tpu.reciprocal %219 {approx = true} : vector<8x1xf32> -> vector<8x1xf32>
    %221 = vector.broadcast %220 : vector<8x1xf32> to vector<8x8xf32>
    %222 = arith.mulf %217, %221 : vector<8x8xf32>
    %223 = arith.truncf %222 : vector<8x8xf32> to vector<8x8xbf16>
    %cst_65 = arith.constant dense<0.000000e+00> : vector<8x64xf32>
    %224 = tpu.matmul %223, %211, %cst_65 {dimension_numbers = #tpu.dot_dimension_numbers<[1], [0], [0], [1], [0, 0, 1, 1], [], []>} : vector<8x8xbf16>, vector<8x64xbf16>, vector<8x64xf32> -> vector<8x64xf32>
    %225 = arith.truncf %224 : vector<8x64xf32> to vector<8x64xbf16>
    %226 = vector.extract_strided_slice %206 {offsets = [0, 64], sizes = [8, 64], strides = [1, 1]} : vector<8x128xbf16> to vector<8x64xbf16>
    %227 = vector.extract_strided_slice %207 {offsets = [0, 64], sizes = [8, 64], strides = [1, 1]} : vector<8x128xbf16> to vector<8x64xbf16>
    %228 = vector.extract_strided_slice %208 {offsets = [0, 64], sizes = [8, 64], strides = [1, 1]} : vector<8x128xbf16> to vector<8x64xbf16>
    %cst_66 = arith.constant dense<0.000000e+00> : vector<8x8xf32>
    %229 = tpu.matmul %226, %227, %cst_66 {dimension_numbers = #tpu.dot_dimension_numbers<[1], [1], [0], [0], [0, 0, 1, 0], [], []>} : vector<8x64xbf16>, vector<8x64xbf16>, vector<8x8xf32> -> vector<8x8xf32>
    %cst_67 = arith.constant dense<0xFF800000> : vector<8xf32>
    %230 = vector.multi_reduction <maximumf>, %229, %cst_67 [1] : vector<8x8xf32> to vector<8xf32>
    %231 = vector.shape_cast %230 : vector<8xf32> to vector<8x1xf32>
    %232 = vector.broadcast %231 : vector<8x1xf32> to vector<8x8xf32>
    %233 = arith.subf %229, %232 : vector<8x8xf32>
    %234 = math.exp %233 : vector<8x8xf32>
    %cst_68 = arith.constant dense<0.000000e+00> : vector<8xf32>
    %235 = vector.multi_reduction <add>, %234, %cst_68 [1] : vector<8x8xf32> to vector<8xf32>
    %236 = vector.shape_cast %235 : vector<8xf32> to vector<8x1xf32>
    %237 = tpu.reciprocal %236 {approx = true} : vector<8x1xf32> -> vector<8x1xf32>
    %238 = vector.broadcast %237 : vector<8x1xf32> to vector<8x8xf32>
    %239 = arith.mulf %234, %238 : vector<8x8xf32>
    %240 = arith.truncf %239 : vector<8x8xf32> to vector<8x8xbf16>
    %cst_69 = arith.constant dense<0.000000e+00> : vector<8x64xf32>
    %241 = tpu.matmul %240, %228, %cst_69 {dimension_numbers = #tpu.dot_dimension_numbers<[1], [0], [0], [1], [0, 0, 1, 1], [], []>} : vector<8x8xbf16>, vector<8x64xbf16>, vector<8x64xf32> -> vector<8x64xf32>
    %242 = arith.truncf %241 : vector<8x64xf32> to vector<8x64xbf16>
    %243 = tpu.concatenate %225, %242 in 1 : vector<8x64xbf16>, vector<8x64xbf16> -> vector<8x128xbf16>
    %c0_70 = arith.constant 0 : index
    %c640_71 = arith.constant 640 : index
    %244 = vector.load %arg9[%c0_70, %c640_71] : memref<8x768xbf16, #tpu.memory_space<vmem>>, vector<8x128xbf16>
    tpu.vector_store %arg9[%c0_70, %c640_71], %243 {strides = array<i32>} : memref<8x768xbf16, #tpu.memory_space<vmem>>, vector<8x128xbf16>,
    %c0_72 = arith.constant 0 : index
    %c0_73 = arith.constant 0 : index
    %245 = vector.load %arg9[%c0_72, %c0_73] : memref<8x768xbf16, #tpu.memory_space<vmem>>, vector<8x768xbf16>
    %c0_74 = arith.constant 0 : index
    %c0_75 = arith.constant 0 : index
    %246 = vector.load %arg5[%c0_74, %c0_75] : memref<768x768xbf16, #tpu.memory_space<vmem>>, vector<768x768xbf16>
    %cst_76 = arith.constant dense<0.000000e+00> : vector<8x768xf32>
    %247 = tpu.matmul %245, %246, %cst_76 {dimension_numbers = #tpu.dot_dimension_numbers<[1], [0], [0], [1], [0, 0, 1, 1], [], []>} : vector<8x768xbf16>, vector<768x768xbf16>, vector<8x768xf32> -> vector<8x768xf32>
    %c0_77 = arith.constant 0 : index
    %c0_78 = arith.constant 0 : index
    %248 = vector.load %arg6[%c0_77, %c0_78] : memref<1x768xf32, #tpu.memory_space<vmem>>, vector<1x768xf32>
    %249 = vector.broadcast %248 : vector<1x768xf32> to vector<8x768xf32>
    %250 = arith.addf %247, %249 : vector<8x768xf32>
    %c0_79 = arith.constant 0 : index
    %c0_80 = arith.constant 0 : index
    %c0_81 = arith.constant 0 : index
    %251 = vector.load %arg7[%c0_79, %c0_80, %c0_81] : memref<1x8x768xf32, #tpu.memory_space<vmem>>, vector<1x8x768xf32>
    %252 = vector.shape_cast %251 : vector<1x8x768xf32> to vector<8x768xf32>
    %253 = vector.shape_cast %250 : vector<8x768xf32> to vector<1x8x768xf32>
    tpu.vector_store %arg7[%c0_79, %c0_80, %c0_81], %253 {strides = array<i32>} : memref<1x8x768xf32, #tpu.memory_space<vmem>>, vector<1x8x768xf32>,
    return
  }
  func.func @transform_0(%arg0: i32, %arg1: i32) -> (i32, i32, i32) {
    %c0_i32 = arith.constant 0 : i32
    %c0_i32_0 = arith.constant 0 : i32
    %c0_i32_1 = arith.constant 0 : i32
    return %arg0, %c0_i32, %c0_i32_0 : i32, i32, i32
  }
  func.func @transform_1(%arg0: i32, %arg1: i32) -> (i32, i32) {
    %c0_i32 = arith.constant 0 : i32
    %c0_i32_0 = arith.constant 0 : i32
    %c0_i32_1 = arith.constant 0 : i32
    return %c0_i32, %c0_i32_0 : i32, i32
  }
  func.func @transform_2(%arg0: i32, %arg1: i32) -> (i32, i32) {
    %c0_i32 = arith.constant 0 : i32
    %c0_i32_0 = arith.constant 0 : i32
    %c0_i32_1 = arith.constant 0 : i32
    return %c0_i32, %c0_i32_0 : i32, i32
  }
  func.func @transform_3(%arg0: i32, %arg1: i32) -> (i32, i32) {
    %c0_i32 = arith.constant 0 : i32
    %c0_i32_0 = arith.constant 0 : i32
    %c0_i32_1 = arith.constant 0 : i32
    return %c0_i32, %c0_i32_0 : i32, i32
  }
  func.func @transform_4(%arg0: i32, %arg1: i32) -> (i32, i32) {
    %c0_i32 = arith.constant 0 : i32
    %c0_i32_0 = arith.constant 0 : i32
    %c0_i32_1 = arith.constant 0 : i32
    return %c0_i32, %c0_i32_0 : i32, i32
  }
  func.func @transform_5(%arg0: i32, %arg1: i32) -> (i32, i32, i32) {
    %c0_i32 = arith.constant 0 : i32
    %c0_i32_0 = arith.constant 0 : i32
    return %arg0, %arg1, %c0_i32 : i32, i32, i32
  }
}

</mosaic_0001>

<bundles_post_ra>
// kernel: tpu_custom_call.1
= control target key start
LH: loop header
LB: loop body
LE: loop exit
PB: predicated region body
PF: predicated region fallthrough
CT: control target
= control target key end

     0   :  { %10 = vsyncpa [#allocation5], 0  ;;  %s17237_s0 = inlined_call_operand.hbm [shape: f32[2,8,768], index: 0, kind: input, shape index: {}]   ;;  %s17238_s1 = inlined_call_operand.hbm [shape: bf16[768,2304], index: 1, kind: input, shape index: {}]   ;;  %s17239_s2 = inlined_call_operand.hbm [shape: f32[1,2304], index: 2, kind: input, shape index: {}]   ;;  %s17240_s3 = inlined_call_operand.hbm [shape: bf16[768,768], index: 3, kind: input, shape index: {}]   ;;  %s17241_s4 = inlined_call_operand.hbm [shape: f32[1,768], index: 4, kind: input, shape index: {}]   ;;  %s17242_s5 = inlined_call_operand.hbm [shape: f32[2,8,768], index: 5, kind: output, shape index: {}]  }
   0x1   :  { %12 = vsyncpa [#allocation5 + $0x1], 0 }
   0x2   :  { %13 = vsyncpa [#allocation8], 0 }
   0x3   :  { %14 = vsyncpa [#allocation11], 0 }
   0x4   :  { %15 = vsyncpa [#allocation6], 0 }
   0x5   :  { %17 = vsyncpa [#allocation6 + $0x1], 0  ;;  %s16410_s18 = smov 0   ;;  %s16412_s19 = smov 0  }
   0x6   :  { %s16414_s20 = smov 0   ;;  %s16416_s21 = smov 0  }
   0x7   :  { %s16418_s22 = smov 0   ;;  %s16420_s23 = smov 0  }
   0x8 LB: > { %s10153_s24 = sadd.s32 4294967295, %s16369_s23   ;;  %p10155_p0 = scmp.ge.s32.totalorder %s16369_s23, 1  ;;  %s16369_s23 = sphi %s16420_s23, %s23_s23   ;;  %s16365_s22 = sphi %s16418_s22, %s17254_s22   ;;  %s16361_s21 = sphi %s16416_s21, %s17253_s21   ;;  %s16357_s20 = sphi %s16414_s20, %s17252_s20   ;;  %s16353_s19 = sphi %s16412_s19, %s17251_s19   ;;  %s16349_s18 = sphi %s16410_s18, %s17250_s18  }
   0x9   : > { %p16444_p1 = scmp.eq.s32.totalorder %s10153_s24, 0  ;;  %p178_p2 = scmp.lt.s32.totalorder %s16369_s23, 3 }
   0xa   : > { %s189_s28 = sshll.u32 %s17238_s1, 4  ;;  %s16371_s30 = smov [#allocation7]   ;;  %s190_s28 = int_to_ptr.hbm [resolvable:$true] %s189_s28 }
   0xb   : > { %p16452_p3 = pnand %p10155_p0, %p178_p2  ;;  %s191_s6 = sshll.u32 %s16371_s30, 4  ;;  %s192_s6 = int_to_ptr.vmem [resolvable:$true] %s191_s6 }
   0xc   : > { %p10160_p6 = scmp.ge.s32.totalorder %s16369_s23, 2  ;;  %s215_s10 = sshll.u32 %s17240_s3, 4  ;;  %s216_s10 = int_to_ptr.hbm [resolvable:$true] %s215_s10 }
   0xd   : > { %p15978_p4 = pneg %p16452_p3  ;;  %s16372_s11 = smov 1152  }
   0xe   : > { %s16373_s12 = smov 72   ;;  %s16374_s13 = smov [#allocation10]  }
   0xf   : > { %p16460_p5 = pnand %p15978_p4, %p16444_p1  ;;  %s217_s14 = sshll.u32 %s16374_s13, 4  ;;  %s218_s14 = int_to_ptr.vmem [resolvable:$true] %s217_s14 }
  0x10   : > { %s16375_s15 = smov 384   ;;  %s16376_s16 = smov 24  }
  0x11   : > { %15981 = dma.hbm_to_vmem [thread:$0]  (!%p16460_p5), %s190_s28, 110592, %s192_s6, [#allocation8], %s16372_s11, %s16372_s11, %s16373_s12  }
  0x12   : > { %15987 = dma.hbm_to_vmem [thread:$0]  (!%p16460_p5), %s216_s10, 36864, %s218_s14, [#allocation11], %s16375_s15, %s16375_s15, %s16376_s16  }
  0x13   : > { %s204_s27 = sshll.u32 %s17239_s2, 4  ;;  %s16377_s28 = smov [#allocation9]   ;;  %s205_s27 = int_to_ptr.hbm [resolvable:$true] %s204_s27 }
  0x14   : > { %s206_s30 = sshll.u32 %s16377_s28, 4  ;;  %s230_s9 = sshll.u32 %s17241_s4, 4  ;;  %s207_s30 = int_to_ptr.vmem [resolvable:$true] %s206_s30  ;;  %s231_s9 = int_to_ptr.hbm [resolvable:$true] %s230_s9 }
  0x15   : > { %15984 = dma.hbm_to_vmem [thread:$0]  (!%p16460_p5), %s205_s27, 288, %s207_s30, [#allocation8]  }
  0x16   : > { %s16378_s10 = smov [#allocation12]   ;;  %s10154_s12 = sadd.s32 4294967294, %s16369_s23  }
  0x17   : > { %s232_s11 = sshll.u32 %s16378_s10, 4  ;;  %s35_s13 = sadd.s32 1, %s16365_s22  ;;  %s233_s11 = int_to_ptr.vmem [resolvable:$true] %s232_s11 }
  0x18   : > { %15990 = dma.hbm_to_vmem [thread:$0]  (!%p16460_p5), %s231_s9, 96, %s233_s11, [#allocation11]  }
  0x19   : > { %p37_p7 = scmp.ge.s32.totalorder %s35_s13, 2  ;;  %s42_s14 = sadd.s32 1, %s16357_s20 }
  0x1a   : > { %p49_p8 = scmp.ne.s32.totalorder %s16357_s20, %s16353_s19  ;;  %p50_p9 = scmp.eq.s32.totalorder %s16369_s23, 0 }
  0x1b   : > { %s17256_s13 = smov (%p37_p7, %s35_s13), 0  ;;  %p55_p11 = scmp.ne.s32.totalorder %s16353_s19, %s16349_s18 }
  0x1c   : > { %p16490_p10 = por %p50_p9, %p49_p8  ;;  %s39_s7 = ssub.s32 %s16365_s22, %s17256_s13 }
  0x1d   : > { %p165_p12 = scmp.eq.s32.totalorder %s10153_s24, 1  ;;  %p40_p13 = scmp.eq.s32.totalorder %s39_s7, 0 }
  0x1e   : > { %p16502_p0 = por %p16444_p1, %p55_p11  ;;  %p171_p4 = scmp.eq.s32.totalorder %s10154_s12, 1 }
  0x1f   : > { %p16506_p2 = por %p165_p12, %p49_p8  ;;  %p16003_p7 = scmp.lt.s32.totalorder %s16369_s23, 2 }
  0x20   : > { %s16511_s26 = scalar_select %p40_p13, %s16357_s20, %s42_s14  }
  0x21   : > { %p16513_p5 = por %p171_p4, %p55_p11  ;;  %s243_s28 = sand.u32 1, %s16357_s20  }
  0x22   : > { %s15955_s24 = smul.u32 48, %s16365_s22  ;;  %p15992_p8 = pnand %p16003_p7, %p16490_p10 }
  0x23   : > { %s15954_s30 = smul.u32 48, %s243_s28  ;;  %s244_s14 = scalar_lea.sflag [#allocation5], %s243_s28 }
  0x24   : > { %s252_s9 = scalar_lea.hbm %s17237_s0, %s15955_s24  ;;  %265 = sbr.rel (%p16452_p3) target bundleno = 2046 (0x7fe), region = 40 }
  0x25   : > { %s254_s10 = sshll.u32 %s252_s9, 4  ;;  %s247_s11 = scalar_lea.vmem [#allocation4], %s15954_s30  ;;  %s255_s10 = int_to_ptr.hbm [resolvable:$true] %s254_s10 }
  0x26   : > { %s256_s12 = sshll.u32 %s247_s11, 4  ;;  %s16528_s7 = sand.u32 (!%p16452_p3), 1, %s16353_s19   ;;  %s257_s12 = int_to_ptr.vmem [resolvable:$true] %s256_s12 }
  0x27   : > { %15994 = dma.hbm_to_vmem [thread:$0]  (!%p15992_p8), %s255_s10, 768, %s257_s12, %s244_s14  }
  0x28   : > { %s15956_s24 = smul.u32 (!%p16452_p3), 48, %s16528_s7  ;;  %s268_s15 = scalar_lea.sflag (!%p16452_p3), [#allocation5], %s16528_s7 }
  0x2a   : > { %s16534_s6 = scalar_lea.vmem [#allocation4], %s15956_s24 }
  0x2b   : > { %16332 = dma.done.wait (%p16502_p0), %s268_s15, 768  }
  0x2c   : > { %16334 = vsyncadd (%p16502_p0), %s268_s15, 4294966528 }
  0x2d   : > { %16336 = dma.done.wait (%p16444_p1), [#allocation8], 110880  }
  0x2e   : > { %16338 = vsyncadd (%p16444_p1), [#allocation8], 4294856416 }
  0x2f   : > { %16340 = dma.done.wait (%p16444_p1), [#allocation11], 36960  }
  0x30   : > { %16342 = vsyncadd (%p16444_p1), [#allocation11], 4294930336  ;;  %v10673_v0 = vld [vmem:[#allocation7 + $0x3f0] sm:$0xf]  ;;  %v14937_v1 = vld [vmem:[#allocation7 + $0x434] sm:$0xf0] }
  0x31   : > { %v11249_v2 = vld [vmem:[#allocation7 + $0x870] sm:$0xf]  ;;  %v10674_v3 = vor.u32 %v14937_v1, %v10673_v0  ;;  %v15081_v4 = vld [vmem:[#allocation7 + $0x8b4] sm:$0xf0]  ;;  %v10601_v11 = vld [vmem:[#allocation7 + $0x360] sm:$0xf] }
  0x32   : > { %v11825_v5 = vld [vmem:[#allocation7 + $0xcf0] sm:$0xf]  ;;  %v15225_v6 = vld [vmem:[#allocation7 + $0xd34] sm:$0xf0]  ;;  %v11250_v7 = vor.u32 %v15081_v4, %v11249_v2  ;;  %v14919_v13 = vld [vmem:[#allocation7 + $0x3a4] sm:$0xf0] }
  0x33   : > { %v11826_v8 = vor.u32 %v15225_v6, %v11825_v5  ;;  %v12401_v9 = vld [vmem:[#allocation7 + $0x1170] sm:$0xf]  ;;  %v15369_v10 = vld [vmem:[#allocation7 + $0x11b4] sm:$0xf0]  ;;  %5562 = vmatpush.bf16.msra.mxu0 %v10674_v3  ;;  %v11177_v14 = vld [vmem:[#allocation7 + $0x7e0] sm:$0xf]  ;;  %v10602_v16 = vor.u32 %v14919_v13, %v10601_v11 }
  0x34   : > { %v12402_v12 = vor.u32 %v15369_v10, %v12401_v9  ;;  %v15063_v15 = vld [vmem:[#allocation7 + $0x824] sm:$0xf0]  ;;  %5575 = vmatpush.bf16.msra.mxu1 %v11250_v7  ;;  %v11753_v18 = vld [vmem:[#allocation7 + $0xc60] sm:$0xf]  ;;  %v10529_v23 = vld [vmem:[#allocation7 + $0x2d0] sm:$0xf] }
  0x35   : > { %5588 = vmatpush.bf16.msra.mxu2 %v11826_v8  ;;  %v11178_v17 = vor.u32 %v15063_v15, %v11177_v14  ;;  %v15207_v19 = vld [vmem:[#allocation7 + $0xca4] sm:$0xf0]  ;;  %v12329_v20 = vld [vmem:[#allocation7 + $0x10e0] sm:$0xf]  ;;  %v14901_v24 = vld [vmem:[#allocation7 + $0x314] sm:$0xf0] }
  0x36   : > { %5601 = vmatpush.bf16.msra.mxu3 %v12402_v12  ;;  %v11754_v21 = vor.u32 %v15207_v19, %v11753_v18  ;;  %v15351_v22 = vld [vmem:[#allocation7 + $0x1124] sm:$0xf0]  ;;  %v11105_v26 = vld [vmem:[#allocation7 + $0x750] sm:$0xf]  ;;  %v15045_v27 = vld [vmem:[#allocation7 + $0x794] sm:$0xf0]  ;;  %v10530_v29 = vor.u32 %v14901_v24, %v10529_v23 }
  0x37   : > { %v12330_v25 = vor.u32 %v15351_v22, %v12329_v20  ;;  %v11681_v28 = vld [vmem:[#allocation7 + $0xbd0] sm:$0xf]  ;;  %5563 = vmatpush.bf16.msra.mxu0 %v10602_v16  ;;  %v15189_v30 = vld [vmem:[#allocation7 + $0xc14] sm:$0xf0]  ;;  %v11106_v33 = vor.u32 %v15045_v27, %v11105_v26  ;;  %v10457_v35 = vld [vmem:[#allocation7 + $0x240] sm:$0xf] }
  0x38   : > { %v12257_v31 = vld [vmem:[#allocation7 + $0x1050] sm:$0xf]  ;;  %v15333_v32 = vld [vmem:[#allocation7 + $0x1094] sm:$0xf0]  ;;  %5576 = vmatpush.bf16.msra.mxu1 %v11178_v17  ;;  %v11682_v34 = vor.u32 %v15189_v30, %v11681_v28  ;;  %v14883_v36 = vld [vmem:[#allocation7 + $0x284] sm:$0xf0] }
  0x39   : > { %5589 = vmatpush.bf16.msra.mxu2 %v11754_v21  ;;  %v11033_v37 = vld [vmem:[#allocation7 + $0x6c0] sm:$0xf]  ;;  %v12258_v38 = vor.u32 %v15333_v32, %v12257_v31  ;;  %v15027_v39 = vld [vmem:[#allocation7 + $0x704] sm:$0xf0]  ;;  %v10458_v44 = vor.u32 %v14883_v36, %v10457_v35  ;;  %v10385_v47 = vld [vmem:[#allocation7 + $0x1b0] sm:$0xf] }
  0x3a   : > { %5602 = vmatpush.bf16.msra.mxu3 %v12330_v25  ;;  %v11609_v40 = vld [vmem:[#allocation7 + $0xb40] sm:$0xf]  ;;  %v15171_v41 = vld [vmem:[#allocation7 + $0xb84] sm:$0xf0]  ;;  %v11034_v45 = vor.u32 %v15027_v39, %v11033_v37  ;;  %v14865_v48 = vld [vmem:[#allocation7 + $0x1f4] sm:$0xf0] }
  0x3b   : > { %v12185_v42 = vld [vmem:[#allocation7 + $0xfc0] sm:$0xf]  ;;  %v15315_v43 = vld [vmem:[#allocation7 + $0x1004] sm:$0xf0]  ;;  %5564 = vmatpush.bf16.msra.mxu0 %v10530_v29  ;;  %v11610_v46 = vor.u32 %v15171_v41, %v11609_v40  ;;  %v10961_v49 = vld [vmem:[#allocation7 + $0x630] sm:$0xf]  ;;  %v10386_v56 = vor.u32 %v14865_v48, %v10385_v47 }
  0x3c   : > { %5577 = vmatpush.bf16.msra.mxu1 %v11106_v33  ;;  %v12186_v50 = vor.u32 %v15315_v43, %v12185_v42  ;;  %v15009_v51 = vld [vmem:[#allocation7 + $0x674] sm:$0xf0]  ;;  %v11537_v52 = vld [vmem:[#allocation7 + $0xab0] sm:$0xf]  ;;  %v10313_v59 = vld [vmem:[#allocation7 + $0x120] sm:$0xf] }
  0x3d   : > { %5590 = vmatpush.bf16.msra.mxu2 %v11682_v34  ;;  %v15153_v53 = vld [vmem:[#allocation7 + $0xaf4] sm:$0xf0]  ;;  %v12113_v54 = vld [vmem:[#allocation7 + $0xf30] sm:$0xf]  ;;  %v10962_v57 = vor.u32 %v15009_v51, %v10961_v49  ;;  %v14847_v60 = vld [vmem:[#allocation7 + $0x164] sm:$0xf0] }
  0x3e   : > { %5603 = vmatpush.bf16.msra.mxu3 %v12258_v38  ;;  %v15297_v55 = vld [vmem:[#allocation7 + $0xf74] sm:$0xf0]  ;;  %v11538_v58 = vor.u32 %v15153_v53, %v11537_v52  ;;  %v10889_v61 = vld [vmem:[#allocation7 + $0x5a0] sm:$0xf]  ;;  %v14991_v63 = vld [vmem:[#allocation7 + $0x5e4] sm:$0xf0]  ;;  %v10314_v4 = vor.u32 %v14847_v60, %v10313_v59 }
  0x3f   : > { %5565 = vmatpush.bf16.msra.mxu0 %v10458_v44  ;;  %v12114_v62 = vor.u32 %v15297_v55, %v12113_v54  ;;  %v11465_v0 = vld [vmem:[#allocation7 + $0xa20] sm:$0xf]  ;;  %v15135_v1 = vld [vmem:[#allocation7 + $0xa64] sm:$0xf0]  ;;  %v10890_v5 = vor.u32 %v14991_v63, %v10889_v61  ;;  %v10241_v7 = vld [vmem:[#allocation7 + $0x90] sm:$0xf] }
  0x40   : > { %5578 = vmatpush.bf16.msra.mxu1 %v11034_v45  ;;  %v12041_v2 = vld [vmem:[#allocation7 + $0xea0] sm:$0xf]  ;;  %v15279_v3 = vld [vmem:[#allocation7 + $0xee4] sm:$0xf0]  ;;  %v11466_v6 = vor.u32 %v15135_v1, %v11465_v0  ;;  %v14829_v8 = vld [vmem:[#allocation7 + $0xd4] sm:$0xf0] }
  0x41   : > { %5591 = vmatpush.bf16.msra.mxu2 %v11610_v46  ;;  %v10817_v9 = vld [vmem:[#allocation7 + $0x510] sm:$0xf]  ;;  %v12042_v10 = vor.u32 %v15279_v3, %v12041_v2  ;;  %v14973_v11 = vld [vmem:[#allocation7 + $0x554] sm:$0xf0]  ;;  %v10242_v16 = vor.u32 %v14829_v8, %v10241_v7  ;;  %v10169_v17 = vld [vmem:[#allocation7] sm:$0xf] }
  0x42   : > { %5604 = vmatpush.bf16.msra.mxu3 %v12186_v50  ;;  %v11393_v12 = vld [vmem:[#allocation7 + $0x990] sm:$0xf]  ;;  %v15117_v13 = vld [vmem:[#allocation7 + $0x9d4] sm:$0xf0]  ;;  %v14811_v18 = vld [vmem:[#allocation7 + $0x44] sm:$0xf0]  ;;  %v10818_v19 = vor.u32 %v14973_v11, %v10817_v9 }
  0x43   : > { %5566 = vmatpush.bf16.msra.mxu0 %v10386_v56  ;;  %v11969_v14 = vld [vmem:[#allocation7 + $0xe10] sm:$0xf]  ;;  %v15261_v15 = vld [vmem:[#allocation7 + $0xe54] sm:$0xf0]  ;;  %v11394_v20 = vor.u32 %v15117_v13, %v11393_v12  ;;  %v10745_v21 = vld [vmem:[#allocation7 + $0x480] sm:$0xf]  ;;  %v10170_v31 = vor.u32 %v14811_v18, %v10169_v17 }
  0x44   : > { %5579 = vmatpush.bf16.msra.mxu1 %v10962_v57  ;;  %v14955_v22 = vld [vmem:[#allocation7 + $0x4c4] sm:$0xf0]  ;;  %v11321_v23 = vld [vmem:[#allocation7 + $0x900] sm:$0xf]  ;;  %v11970_v24 = vor.u32 %v15261_v15, %v11969_v14  ;;  %v12977_v26 = vld [vmem:[#allocation7 + $0x15f0] sm:$0xf] }
  0x45   : > { %5592 = vmatpush.bf16.msra.mxu2 %v11538_v58  ;;  %v15099_v25 = vld [vmem:[#allocation7 + $0x944] sm:$0xf0]  ;;  %v15513_v27 = vld [vmem:[#allocation7 + $0x1634] sm:$0xf0]  ;;  %v13553_v28 = vld [vmem:[#allocation7 + $0x1a70] sm:$0xf]  ;;  %v10746_v35 = vor.u32 %v14955_v22, %v10745_v21 }
  0x46   : > { %5605 = vmatpush.bf16.msra.mxu3 %v12114_v62  ;;  %v15657_v29 = vld [vmem:[#allocation7 + $0x1ab4] sm:$0xf0]  ;;  %v14928_v30 = vld [vmem:[#allocation7 + $0x3f4] sm:$0xf]  ;;  %v10675_v32 = vld [vmem:[#allocation7 + $0x438] sm:$0xf0]  ;;  %v11322_v36 = vor.u32 %v15099_v25, %v11321_v23  ;;  %v12978_v39 = vor.u32 %v15513_v27, %v12977_v26 }
  0x47   : > { %5567 = vmatpush.bf16.msra.mxu0 %v10314_v4  ;;  %v11897_v33 = vld [vmem:[#allocation7 + $0xd80] sm:$0xf]  ;;  %v15243_v34 = vld [vmem:[#allocation7 + $0xdc4] sm:$0xf0]  ;;  %v15072_v37 = vld [vmem:[#allocation7 + $0x874] sm:$0xf]  ;;  %v13554_v40 = vor.u32 %v15657_v29, %v13553_v28  ;;  %v10678_v42 = vor.u32 %v14928_v30, %v10675_v32 }
  0x48   : > { %5580 = vmatpush.bf16.msra.mxu1 %v10890_v5  ;;  %v11251_v38 = vld [vmem:[#allocation7 + $0x8b8] sm:$0xf0]  ;;  %v12905_v41 = vld [vmem:[#allocation7 + $0x1560] sm:$0xf]  ;;  %v11898_v43 = vor.u32 %v15243_v34, %v11897_v33  ;;  %v15495_v44 = vld [vmem:[#allocation7 + $0x15a4] sm:$0xf0] }
  0x49   : > { %5593 = vmatpush.bf16.msra.mxu2 %v11466_v6  ;;  %v13481_v45 = vld [vmem:[#allocation7 + $0x19e0] sm:$0xf]  ;;  %v15639_v46 = vld [vmem:[#allocation7 + $0x1a24] sm:$0xf0]  ;;  %v11254_v47 = vor.u32 %v15072_v37, %v11251_v38  ;;  %v14910_v48 = vld [vmem:[#allocation7 + $0x364] sm:$0xf]  ;;  %v12906_v52 = vor.u32 %v15495_v44, %v12905_v41 }
  0x4a   : > { %5606 = vmatpush.bf16.msra.mxu3 %v12042_v10  ;;  %v10603_v49 = vld [vmem:[#allocation7 + $0x3a8] sm:$0xf0]  ;;  %v15054_v50 = vld [vmem:[#allocation7 + $0x7e4] sm:$0xf]  ;;  %v13482_v53 = vor.u32 %v15639_v46, %v13481_v45  ;;  %v12833_v54 = vld [vmem:[#allocation7 + $0x14d0] sm:$0xf] }
  0x4b   : > { %5568 = vmatpush.bf16.msra.mxu0 %v10242_v16  ;;  %v11179_v51 = vld [vmem:[#allocation7 + $0x828] sm:$0xf0]  ;;  %v10606_v55 = vor.u32 %v14910_v48, %v10603_v49  ;;  %v15477_v56 = vld [vmem:[#allocation7 + $0x1514] sm:$0xf0]  ;;  %v13409_v57 = vld [vmem:[#allocation7 + $0x1950] sm:$0xf] }
  0x4c   : > { %5581 = vmatpush.bf16.msra.mxu1 %v10818_v19  ;;  %v15621_v58 = vld [vmem:[#allocation7 + $0x1994] sm:$0xf0]  ;;  %v11182_v59 = vor.u32 %v15054_v50, %v11179_v51  ;;  %v14892_v60 = vld [vmem:[#allocation7 + $0x2d4] sm:$0xf]  ;;  %v10531_v61 = vld [vmem:[#allocation7 + $0x318] sm:$0xf0]  ;;  %v12834_v1 = vor.u32 %v15477_v56, %v12833_v54 }
  0x4d   : > { %5594 = vmatpush.bf16.msra.mxu2 %v11394_v20  ;;  %v15036_v62 = vld [vmem:[#allocation7 + $0x754] sm:$0xf]  ;;  %v11107_v63 = vld [vmem:[#allocation7 + $0x798] sm:$0xf0]  ;;  %v13410_v2 = vor.u32 %v15621_v58, %v13409_v57  ;;  %v12761_v3 = vld [vmem:[#allocation7 + $0x1440] sm:$0xf]  ;;  %v10534_v6 = vor.u32 %v14892_v60, %v10531_v61 }
  0x4e   : > { %5607 = vmatpush.bf16.msra.mxu3 %v11970_v24  ;;  %v326_v0 = vld [vmem:[%s16534_s6 + $0x10] sm:$0xff]  ;;  %v324_v5 = vld [vmem:[%s16534_s6] sm:$0xff]  ;;  %v15459_v7 = vld [vmem:[#allocation7 + $0x1484] sm:$0xf0]  ;;  %v11110_v11 = vor.u32 %v15036_v62, %v11107_v63  ;;  %s16379_s25 = smov 64   ;;  %vm6993_vm0 = vcmask 523264  }
  0x4f   : > { %5569 = vmatpush.bf16.msra.mxu0 %v10170_v31  ;;  %v16549_v4 = vpack.c.bf16 %v326_v0, %v326_v0  ;;  %v13337_v8 = vld [vmem:[#allocation7 + $0x18c0] sm:$0xf]  ;;  %v15603_v9 = vld [vmem:[#allocation7 + $0x1904] sm:$0xf0]  ;;  %v16552_v10 = vpack.c.bf16 %v324_v5, %v324_v5  ;;  %v14874_v12 = vld [vmem:[#allocation7 + $0x244] sm:$0xf]  ;;  %v12762_v17 = vor.u32 %v15459_v7, %v12761_v3 }
  0x50   : > { %5582 = vmatpush.bf16.msra.mxu1 %v10746_v35  ;;  %v10459_v13 = vld [vmem:[#allocation7 + $0x288] sm:$0xf0]  ;;  %v15018_v14 = vld [vmem:[#allocation7 + $0x6c4] sm:$0xf]  ;;  %v13338_v18 = vor.u32 %v15603_v9, %v13337_v8  ;;  %v12689_v19 = vld [vmem:[#allocation7 + $0x13b0] sm:$0xf] }
  0x51   : > { %5595 = vmatpush.bf16.msra.mxu2 %v11322_v36  ;;  %v11035_v15 = vld [vmem:[#allocation7 + $0x708] sm:$0xf0]  ;;  %v10462_v21 = vor.u32 %v14874_v12, %v10459_v13  ;;  %v15441_v22 = vld [vmem:[#allocation7 + $0x13f4] sm:$0xf0]  ;;  %v13265_v23 = vld [vmem:[#allocation7 + $0x1830] sm:$0xf] }
  0x52   : > { %5608 = vmatpush.bf16.msra.mxu3 %v11898_v43  ;;  %5570 = vmatmul.bf16.vlgmr.msra.gmra.mxu0 %v16552_v10  ;;  %v325_v16 = vld [vmem:[%s16534_s6 + $0x8] sm:$0xff]  ;;  %v11038_v25 = vor.u32 %v15018_v14, %v11035_v15  ;;  %v14856_v26 = vld [vmem:[#allocation7 + $0x1b4] sm:$0xf]  ;;  %v12690_v30 = vor.u32 %v15441_v22, %v12689_v19  ;;  %v12617_v32 = vld [vmem:[#allocation7 + $0x1320] sm:$0xf]  ;;  %vm7029_vm1 = vcmask 1043456  }
  0x53   : > { %5614 = vmatpush.bf16.msrb.mxu0 %v12978_v39  ;;  %v16557_v20 = vpack.c.bf16 %v325_v16, %v325_v16  ;;  %v15585_v24 = vld [vmem:[#allocation7 + $0x1874] sm:$0xf0]  ;;  %v10387_v27 = vld [vmem:[#allocation7 + $0x1f8] sm:$0xf0]  ;;  %v15000_v28 = vld [vmem:[#allocation7 + $0x634] sm:$0xf] }
  0x54   : > { %5627 = vmatpush.bf16.msrb.mxu1 %v13554_v40  ;;  %5596 = vmatmul.bf16.vlgmr.msra.gmra.mxu2 %v16549_v4  ;;  %v10963_v29 = vld [vmem:[#allocation7 + $0x678] sm:$0xf0]  ;;  %v13266_v31 = vor.u32 %v15585_v24, %v13265_v23  ;;  %v10390_v34 = vor.u32 %v14856_v26, %v10387_v27  ;;  %v15423_v35 = vld [vmem:[#allocation7 + $0x1364] sm:$0xf0]  ;;  %v13193_v36 = vld [vmem:[#allocation7 + $0x17a0] sm:$0xf] }
  0x55   : > { %5640 = vmatpush.bf16.msrb.mxu2 %v10678_v42  ;;  %5583 = vmatmul.bf16.vlgmr.msra.gmra.mxu1 %v16557_v20  ;;  %v327_v33 = vld [vmem:[%s16534_s6 + $0x18] sm:$0xff]  ;;  %v10966_v39 = vor.u32 %v15000_v28, %v10963_v29  ;;  %v14838_v40 = vld [vmem:[#allocation7 + $0x124] sm:$0xf]  ;;  %v12618_v44 = vor.u32 %v15423_v35, %v12617_v32  ;;  %v12545_v46 = vld [vmem:[#allocation7 + $0x1290] sm:$0xf]  ;;  %vm7013_vm2 = vcmask 64512  }
  0x56   : > { %5653 = vmatpush.bf16.msrb.mxu3 %v11254_v47  ;;  %v15567_v37 = vld [vmem:[#allocation7 + $0x17e4] sm:$0xf0]  ;;  %v16561_v38 = vpack.c.bf16 %v327_v33, %v327_v33  ;;  %v10315_v41 = vld [vmem:[#allocation7 + $0x168] sm:$0xf0]  ;;  %v14982_v42 = vld [vmem:[#allocation7 + $0x5a4] sm:$0xf] }
  0x57   : > { %5615 = vmatpush.bf16.msrb.mxu0 %v12906_v52  ;;  %v10891_v43 = vld [vmem:[#allocation7 + $0x5e8] sm:$0xf0]  ;;  %v13194_v45 = vor.u32 %v15567_v37, %v13193_v36  ;;  %v10318_v47 = vor.u32 %v14838_v40, %v10315_v41  ;;  %v15405_v48 = vld [vmem:[#allocation7 + $0x12d4] sm:$0xf0]  ;;  %v13121_v49 = vld [vmem:[#allocation7 + $0x1710] sm:$0xf] }
  0x58   : > { %5628 = vmatpush.bf16.msrb.mxu1 %v13482_v53  ;;  %5609 = vmatmul.bf16.vlgmr.msra.gmra.mxu3 %v16561_v38  ;;  %v15549_v50 = vld [vmem:[#allocation7 + $0x1754] sm:$0xf0]  ;;  %v10894_v51 = vor.u32 %v14982_v42, %v10891_v43  ;;  %v14820_v52 = vld [vmem:[#allocation7 + $0x94] sm:$0xf]  ;;  %v10243_v53 = vld [vmem:[#allocation7 + $0xd8] sm:$0xf0]  ;;  %v12546_v56 = vor.u32 %v15405_v48, %v12545_v46 }
  0x59   : > { %5641 = vmatpush.bf16.msrb.mxu2 %v10606_v55  ;;  %v14964_v54 = vld [vmem:[#allocation7 + $0x514] sm:$0xf]  ;;  %v10819_v55 = vld [vmem:[#allocation7 + $0x558] sm:$0xf0]  ;;  %v13122_v57 = vor.u32 %v15549_v50, %v13121_v49  ;;  %v12473_v58 = vld [vmem:[#allocation7 + $0x1200] sm:$0xf]  ;;  %v10246_v61 = vor.u32 %v14820_v52, %v10243_v53 }
  0x5a   : > { %5654 = vmatpush.bf16.msrb.mxu3 %v11182_v59  ;;  %v15387_v59 = vld [vmem:[#allocation7 + $0x1244] sm:$0xf0]  ;;  %v13049_v60 = vld [vmem:[#allocation7 + $0x1680] sm:$0xf]  ;;  %v14802_v63 = vld [vmem:[#allocation7 + $0x4] sm:$0xf] }
  0x5b   : > { %5616 = vmatpush.bf16.msrb.mxu0 %v12834_v1  ;;  %v15531_v62 = vld [vmem:[#allocation7 + $0x16c4] sm:$0xf0]  ;;  %v10171_v0 = vld [vmem:[#allocation7 + $0x48] sm:$0xf0]  ;;  %v10822_v1 = vor.u32 %v14964_v54, %v10819_v55  ;;  %v11827_v3 = vld [vmem:[#allocation7 + $0xd38] sm:$0xf0]  ;;  %v12474_v9 = vor.u32 %v15387_v59, %v12473_v58 }
  0x5c   : > { %5629 = vmatpush.bf16.msrb.mxu1 %v13410_v2  ;;  %v15216_v2 = vld [vmem:[#allocation7 + $0xcf4] sm:$0xf]  ;;  %v12979_v8 = vld [vmem:[#allocation7 + $0x1638] sm:$0xf0]  ;;  %v14946_v12 = vld [vmem:[#allocation7 + $0x484] sm:$0xf]  ;;  %v10174_v15 = vor.u32 %v14802_v63, %v10171_v0 }
  0x5d   : > { %5642 = vmatpush.bf16.msrb.mxu2 %v10534_v6  ;;  %v15360_v5 = vld [vmem:[#allocation7 + $0x1174] sm:$0xf]  ;;  %v12403_v6 = vld [vmem:[#allocation7 + $0x11b8] sm:$0xf0]  ;;  %v10747_v13 = vld [vmem:[#allocation7 + $0x4c8] sm:$0xf0]  ;;  %v11830_v16 = vor.u32 %v15216_v2, %v11827_v3 }
  0x5e   : > { %5655 = vmatpush.bf16.msrb.mxu3 %v11110_v11  ;;  %v15504_v7 = vld [vmem:[#allocation7 + $0x15f4] sm:$0xf]  ;;  %v13050_v11 = vor.u32 %v15531_v62, %v13049_v60  ;;  %v329_v19 = vld [vmem:[%s16534_s6 + $0x28] sm:$0xff]  ;;  %v15198_v23 = vld [vmem:[#allocation7 + $0xc64] sm:$0xf]  ;;  %v10750_v26 = vor.u32 %v14946_v12, %v10747_v13  ;;  %s17165_s29 = scalar_lea.vmem [#allocation13], %s15956_s24 }
  0x5f   : > { %5617 = vmatpush.bf16.msrb.mxu0 %v12762_v17  ;;  %v328_v14 = vld [vmem:[%s16534_s6 + $0x20] sm:$0xff]  ;;  %v12982_v22 = vor.u32 %v15504_v7, %v12979_v8  ;;  %v11755_v24 = vld [vmem:[#allocation7 + $0xca8] sm:$0xf0]  ;;  %v16568_v32 = vpack.c.bf16 %v329_v19, %v329_v19  ;;  %v11683_v40 = vld [vmem:[#allocation7 + $0xc18] sm:$0xf0]  ;;  %s15957_s16 = smul.u32 48, %s16361_s21 }
  0x60   : > { %5630 = vmatpush.bf16.msrb.mxu1 %v13338_v18  ;;  %v15648_v17 = vld [vmem:[#allocation7 + $0x1a74] sm:$0xf]  ;;  %v13555_v18 = vld [vmem:[#allocation7 + $0x1ab8] sm:$0xf0]  ;;  %v12331_v27 = vld [vmem:[#allocation7 + $0x1128] sm:$0xf0]  ;;  %v11758_v33 = vor.u32 %v15198_v23, %v11755_v24 }
  0x61   : > { %5643 = vmatpush.bf16.msrb.mxu2 %v10462_v21  ;;  %v12406_v21 = vor.u32 %v15360_v5, %v12403_v6  ;;  %v15486_v28 = vld [vmem:[#allocation7 + $0x1564] sm:$0xf]  ;;  %v12907_v29 = vld [vmem:[#allocation7 + $0x15a8] sm:$0xf0]  ;;  %v15324_v41 = vld [vmem:[#allocation7 + $0x1054] sm:$0xf]  ;;  %s10027_s8 = scalar_lea.hbm %s17242_s5, %s15957_s16 }
  0x62   : > { %5656 = vmatpush.bf16.msrb.mxu3 %v11038_v25  ;;  %v15342_v25 = vld [vmem:[#allocation7 + $0x10e4] sm:$0xf]  ;;  %v13483_v35 = vld [vmem:[#allocation7 + $0x1a28] sm:$0xf0]  ;;  %v12910_v37 = vor.u32 %v15486_v28, %v12907_v29  ;;  %v12259_v42 = vld [vmem:[#allocation7 + $0x1098] sm:$0xf0] }
  0x63   : > { %5618 = vmatpush.bf16.msrb.mxu0 %v12690_v30  ;;  %v16566_v30 = vpack.c.bf16 %v328_v14, %v328_v14  ;;  %v12334_v36 = vor.u32 %v15342_v25, %v12331_v27  ;;  %v15468_v43 = vld [vmem:[#allocation7 + $0x14d4] sm:$0xf]  ;;  %v13411_v48 = vld [vmem:[#allocation7 + $0x1998] sm:$0xf0]  ;;  %v12262_v49 = vor.u32 %v15324_v41, %v12259_v42  ;;  %v11611_v52 = vld [vmem:[#allocation7 + $0xb88] sm:$0xf0] }
  0x64   : > { %5631 = vmatpush.bf16.msrb.mxu1 %v13266_v31  ;;  %v13558_v31 = vor.u32 %v15648_v17, %v13555_v18  ;;  %v15306_v53 = vld [vmem:[#allocation7 + $0xfc4] sm:$0xf]  ;;  %v12187_v54 = vld [vmem:[#allocation7 + $0x1008] sm:$0xf0]  ;;  %v15144_v63 = vld [vmem:[#allocation7 + $0xab4] sm:$0xf] }
  0x65   : > { %5644 = vmatpush.bf16.msrb.mxu2 %v10390_v34  ;;  %v15630_v34 = vld [vmem:[#allocation7 + $0x19e4] sm:$0xf]  ;;  %v13339_v60 = vld [vmem:[#allocation7 + $0x1908] sm:$0xf0]  ;;  %v11539_v0 = vld [vmem:[#allocation7 + $0xaf8] sm:$0xf0] }
  0x66   : > { %5657 = vmatpush.bf16.msrb.mxu3 %v10966_v39  ;;  %v15180_v39 = vld [vmem:[#allocation7 + $0xbd4] sm:$0xf]  ;;  %v15450_v55 = vld [vmem:[#allocation7 + $0x1444] sm:$0xf]  ;;  %v12115_v2 = vld [vmem:[#allocation7 + $0xf78] sm:$0xf0]  ;;  %v11542_v7 = vor.u32 %v15144_v63, %v11539_v0 }
  0x67   : > { %5619 = vmatpush.bf16.msrb.mxu0 %v12618_v44  ;;  %v12835_v44 = vld [vmem:[#allocation7 + $0x1518] sm:$0xf0]  ;;  %v11686_v46 = vor.u32 %v15180_v39, %v11683_v40  ;;  %v15594_v59 = vld [vmem:[#allocation7 + $0x18c4] sm:$0xf]  ;;  %v15432_v3 = vld [vmem:[#allocation7 + $0x13b4] sm:$0xf] }
  0x68   : > { %5632 = vmatpush.bf16.msrb.mxu1 %v13194_v45  ;;  %v13486_v45 = vor.u32 %v15630_v34, %v13483_v35  ;;  %v12838_v50 = vor.u32 %v15468_v43, %v12835_v44  ;;  %v12691_v5 = vld [vmem:[#allocation7 + $0x13f8] sm:$0xf0]  ;;  %v13342_v6 = vor.u32 %v15594_v59, %v13339_v60  ;;  %v15576_v8 = vld [vmem:[#allocation7 + $0x1834] sm:$0xf]  ;;  %v15126_v13 = vld [vmem:[#allocation7 + $0xa24] sm:$0xf] }
  0x69   : > { %5645 = vmatpush.bf16.msrb.mxu2 %v10318_v47  ;;  %v15612_v47 = vld [vmem:[#allocation7 + $0x1954] sm:$0xf]  ;;  %v12694_v12 = vor.u32 %v15432_v3, %v12691_v5  ;;  %v11467_v14 = vld [vmem:[#allocation7 + $0xa68] sm:$0xf0]  ;;  %v15414_v17 = vld [vmem:[#allocation7 + $0x1324] sm:$0xf] }
  0x6a   : > { %5658 = vmatpush.bf16.msrb.mxu3 %v10894_v51  ;;  %v15162_v51 = vld [vmem:[#allocation7 + $0xb44] sm:$0xf]  ;;  %v12619_v18 = vld [vmem:[#allocation7 + $0x1368] sm:$0xf0]  ;;  %v11395_v27 = vld [vmem:[#allocation7 + $0x9d8] sm:$0xf0] }
  0x6b   : > { %5620 = vmatpush.bf16.msrb.mxu0 %v12546_v56  ;;  %v12763_v56 = vld [vmem:[#allocation7 + $0x1488] sm:$0xf0]  ;;  %v11614_v58 = vor.u32 %v15162_v51, %v11611_v52  ;;  %v12622_v25 = vor.u32 %v15414_v17, %v12619_v18  ;;  %v15252_v28 = vld [vmem:[#allocation7 + $0xe14] sm:$0xf]  ;;  %v11971_v29 = vld [vmem:[#allocation7 + $0xe58] sm:$0xf0] }
  0x6c   : > { %5633 = vmatpush.bf16.msrb.mxu1 %v13122_v57  ;;  %v13414_v57 = vor.u32 %v15612_v47, %v13411_v48  ;;  %v12766_v62 = vor.u32 %v15450_v55, %v12763_v56  ;;  %v13195_v23 = vld [vmem:[#allocation7 + $0x17e8] sm:$0xf0]  ;;  %v15540_v35 = vld [vmem:[#allocation7 + $0x1714] sm:$0xf]  ;;  %v15090_v39 = vld [vmem:[#allocation7 + $0x904] sm:$0xf]  ;;  %v11974_v41 = vor.u32 %v15252_v28, %v11971_v29 }
  0x6d   : > { %5646 = vmatpush.bf16.msrb.mxu2 %v10246_v61  ;;  %v12190_v61 = vor.u32 %v15306_v53, %v12187_v54  ;;  %v11323_v40 = vld [vmem:[#allocation7 + $0x948] sm:$0xf0]  ;;  %v15234_v43 = vld [vmem:[#allocation7 + $0xd84] sm:$0xf]  ;;  %v10681_v47 = vld [vmem:[#allocation7 + $0x3f8] sm:$0xf] }
  0x6e   : > { %5659 = vmatpush.bf16.msrb.mxu3 %v10822_v1  ;;  %v15288_v1 = vld [vmem:[#allocation7 + $0xf34] sm:$0xf]  ;;  %v11899_v44 = vld [vmem:[#allocation7 + $0xdc8] sm:$0xf0]  ;;  %v14938_v48 = vld [vmem:[#allocation7 + $0x43c] sm:$0xf0]  ;;  %v11326_v53 = vor.u32 %v15090_v39, %v11323_v40 }
  0x6f   : > { %5621 = vmatpush.bf16.msrb.mxu0 %v12474_v9  ;;  %v13267_v9 = vld [vmem:[#allocation7 + $0x1878] sm:$0xf0]  ;;  %v15082_v51 = vld [vmem:[#allocation7 + $0x8bc] sm:$0xf0]  ;;  %v11833_v52 = vld [vmem:[#allocation7 + $0xcf8] sm:$0xf] }
  0x70   : > { %5634 = vmatpush.bf16.msrb.mxu1 %v13050_v11  ;;  %v12118_v11 = vor.u32 %v15288_v1, %v12115_v2  ;;  %v13270_v19 = vor.u32 %v15576_v8, %v13267_v9  ;;  %v15226_v54 = vld [vmem:[#allocation7 + $0xd3c] sm:$0xf0]  ;;  %v15522_v55 = vld [vmem:[#allocation7 + $0x1684] sm:$0xf]  ;;  %v13051_v56 = vld [vmem:[#allocation7 + $0x16c8] sm:$0xf0] }
  0x71   : > { %5647 = vmatpush.bf16.msrb.mxu2 %v10174_v15  ;;  %v15270_v15 = vld [vmem:[#allocation7 + $0xea4] sm:$0xf]  ;;  %v12409_v59 = vld [vmem:[#allocation7 + $0x1178] sm:$0xf]  ;;  %v15370_v60 = vld [vmem:[#allocation7 + $0x11bc] sm:$0xf0]  ;;  %v11834_v63 = vor.u32 %v15226_v54, %v11833_v52  ;;  %v13054_v0 = vor.u32 %v15522_v55, %v13051_v56 }
  0x72   : > { %5660 = vmatpush.bf16.msrb.mxu3 %v10750_v26  ;;  %5622 = vmatmul.bf16.vlgmr.msrb.gmra.mxu0 %v16566_v30  ;;  %v15108_v26 = vld [vmem:[#allocation7 + $0x994] sm:$0xf]  ;;  %v10609_v1 = vld [vmem:[#allocation7 + $0x368] sm:$0xf]  ;;  %v14920_v2 = vld [vmem:[#allocation7 + $0x3ac] sm:$0xf0]  ;;  %v12410_v5 = vor.u32 %v15370_v60, %v12409_v59 }
  0x73   : > { %5666 = vmatpush.bf16.msra.mxu0 %v11830_v16  ;;  %5635 = vmatmul.bf16.vlgmr.msrb.gmra.mxu1 %v16568_v32  ;;  %v12043_v16 = vld [vmem:[#allocation7 + $0xee8] sm:$0xf0]  ;;  %v11185_v3 = vld [vmem:[#allocation7 + $0x7e8] sm:$0xf]  ;;  %v15208_v8 = vld [vmem:[#allocation7 + $0xcac] sm:$0xf0] }
  0x74   : > { %5679 = vmatpush.bf16.msra.mxu1 %v12406_v21  ;;  %5648 = vmatmul.bf16.vlgmr.msrb.gmra.mxu2 %v16552_v10  ;;  %v11470_v21 = vor.u32 %v15126_v13, %v11467_v14  ;;  %v12046_v24 = vor.u32 %v15270_v15, %v12043_v16  ;;  %v12337_v9 = vld [vmem:[#allocation7 + $0x10e8] sm:$0xf]  ;;  %v10537_v15 = vld [vmem:[#allocation7 + $0x2d8] sm:$0xf]  ;;  %v14902_v16 = vld [vmem:[#allocation7 + $0x31c] sm:$0xf0] }
  0x75   : > { %5692 = vmatpush.bf16.msra.mxu2 %v12982_v22  ;;  %5661 = vmatmul.bf16.vlgmr.msrb.gmra.mxu3 %v16557_v20  ;;  %v15558_v22 = vld [vmem:[#allocation7 + $0x17a4] sm:$0xf]  ;;  %v11113_v17 = vld [vmem:[#allocation7 + $0x758] sm:$0xf]  ;;  %v10465_v28 = vld [vmem:[#allocation7 + $0x248] sm:$0xf] }
  0x76   : > { %5705 = vmatpush.bf16.msra.mxu3 %v13558_v31  ;;  %v15396_v31 = vld [vmem:[#allocation7 + $0x1294] sm:$0xf]  ;;  %v13198_v34 = vor.u32 %v15558_v22, %v13195_v23  ;;  %v15190_v22 = vld [vmem:[#allocation7 + $0xc1c] sm:$0xf0]  ;;  %v12265_v23 = vld [vmem:[#allocation7 + $0x1058] sm:$0xf] }
  0x77   : > { %5667 = vmatpush.bf16.msra.mxu0 %v11758_v33  ;;  %v12547_v33 = vld [vmem:[#allocation7 + $0x12d8] sm:$0xf0]  ;;  %v14884_v29 = vld [vmem:[#allocation7 + $0x28c] sm:$0xf0]  ;;  %v10321_v55 = vld [vmem:[#allocation7 + $0x128] sm:$0xf] }
  0x78   : > { %5680 = vmatpush.bf16.msra.mxu1 %v12334_v36  ;;  %v11398_v36 = vor.u32 %v15108_v26, %v11395_v27  ;;  %v12550_v42 = vor.u32 %v15396_v31, %v12547_v33  ;;  %v11041_v31 = vld [vmem:[#allocation7 + $0x6c8] sm:$0xf]  ;;  %v15316_v39 = vld [vmem:[#allocation7 + $0x100c] sm:$0xf0]  ;;  %v10466_v40 = vor.u32 %v14884_v29, %v10465_v28  ;;  %v15658_v28 = vld [vmem:[#allocation7 + $0x1abc] sm:$0xf0] }
  0x79   : > { %5693 = vmatpush.bf16.msra.mxu2 %v12910_v37  ;;  %v13123_v37 = vld [vmem:[#allocation7 + $0x1758] sm:$0xf0]  ;;  %v14848_v56 = vld [vmem:[#allocation7 + $0x16c] sm:$0xf0]  ;;  %v11473_v60 = vld [vmem:[#allocation7 + $0xa28] sm:$0xf] }
  0x7a   : > { %5706 = vmatpush.bf16.msra.mxu3 %v13486_v45  ;;  %v15378_v45 = vld [vmem:[#allocation7 + $0x1204] sm:$0xf]  ;;  %v14992_v59 = vld [vmem:[#allocation7 + $0x5ec] sm:$0xf0]  ;;  %v14929_v29 = vld [vmem:[#allocation7 + $0x3fc] sm:$0xf] }
  0x7b   : > { %5668 = vmatpush.bf16.msra.mxu0 %v11686_v46  ;;  %v12475_v46 = vld [vmem:[#allocation7 + $0x1248] sm:$0xf0]  ;;  %s10029_s9 = sshll.u32 %s17165_s29, 4  ;;  %s10031_s10 = sshll.u32 %s10027_s8, 4  ;;  %s10030_s9 = int_to_ptr.vmem [resolvable:$true] %s10029_s9  ;;  %s10032_s10 = int_to_ptr.hbm [resolvable:$true] %s10031_s10 }
  0x7c   : > { %5681 = vmatpush.bf16.msra.mxu1 %v12262_v49  ;;  %v13126_v49 = vor.u32 %v15540_v35, %v13123_v37  ;;  %v11617_v35 = vld [vmem:[#allocation7 + $0xb48] sm:$0xf]  ;;  %s10014_s21 = scalar_lea.sflag [#allocation6], %s16528_s7  ;;  %s16293_s11 = sshra.s32 %s10032_s10, 4  ;;  %s16294_s11 = int_to_ptr.hbm [resolvable:$true] %s16293_s11 }
  0x7d   : > { %5694 = vmatpush.bf16.msra.mxu2 %v12838_v50  ;;  %v11257_v50 = vld [vmem:[#allocation7 + $0x878] sm:$0xf]  ;;  %v12193_v37 = vld [vmem:[#allocation7 + $0xfc8] sm:$0xf]  ;;  %s16295_s12 = scalar_lea.hbm %s16294_s11, 48  ;;  %s16299_s15 = scalar_lea.hbm %s17242_s5, 96 }
  0x7e   : > { %5707 = vmatpush.bf16.msra.mxu3 %v13414_v57  ;;  %v11902_v57 = vor.u32 %v15234_v43, %v11899_v44  ;;  %v10393_v43 = vld [vmem:[#allocation7 + $0x1b8] sm:$0xf]  ;;  %v14866_v44 = vld [vmem:[#allocation7 + $0x1fc] sm:$0xf0]  ;;  %p16296_p1 = scmp.ne.s32.totalorder %s16294_s11, %s16295_s12  ;;  %p16300_p10 = scmp.lt.s32.totalorder %s16294_s11, %s17242_s5 }
  0x7f   : > { %5669 = vmatpush.bf16.msra.mxu0 %v11614_v58  ;;  %v12478_v58 = vor.u32 %v15378_v45, %v12475_v46  ;;  %v10969_v45 = vld [vmem:[#allocation7 + $0x638] sm:$0xf]  ;;  %v12194_v46 = vor.u32 %v15316_v39, %v12193_v37  ;;  %v10394_v52 = vor.u32 %v14866_v44, %v10393_v43  ;;  %v15073_v39 = vld [vmem:[#allocation7 + $0x87c] sm:$0xf]  ;;  %v12913_v43 = vld [vmem:[#allocation7 + $0x1568] sm:$0xf]  ;;  %p16301_p11 = scmp.lt.s32.totalorder %s16299_s15, %s16295_s12 }
  0x80   : > { %5682 = vmatpush.bf16.msra.mxu1 %v12190_v61  ;;  %v10682_v61 = vor.u32 %v14938_v48, %v10681_v47  ;;  %v15010_v47 = vld [vmem:[#allocation7 + $0x67c] sm:$0xf0]  ;;  %v11545_v48 = vld [vmem:[#allocation7 + $0xab8] sm:$0xf]  ;;  %p16297_p3 = pnand %p16296_p1, %p16506_p2 }
  0x81   : > { %5695 = vmatpush.bf16.msra.mxu2 %v12766_v62  ;;  %v11258_v62 = vor.u32 %v15082_v51, %v11257_v50  ;;  %v12121_v50 = vld [vmem:[#allocation7 + $0xf38] sm:$0xf]  ;;  %v15298_v51 = vld [vmem:[#allocation7 + $0xf7c] sm:$0xf0]  ;;  %p16302_p12 = por %p16301_p11, %p16300_p10 }
  0x82   : > { %5708 = vmatpush.bf16.msra.mxu3 %v13342_v6  ;;  %v15064_v6 = vld [vmem:[#allocation7 + $0x82c] sm:$0xf0]  ;;  %p16298_p9 = pneg %p16297_p3 }
  0x83   : > { %5670 = vmatpush.bf16.msra.mxu0 %v11542_v7  ;;  %v11761_v7 = vld [vmem:[#allocation7 + $0xc68] sm:$0xf]  ;;  %v11186_v13 = vor.u32 %v15064_v6, %v11185_v3  ;;  %v10249_v3 = vld [vmem:[#allocation7 + $0x98] sm:$0xf] }
  0x84   : > { %5683 = vmatpush.bf16.msra.mxu1 %v12118_v11  ;;  %v15352_v11 = vld [vmem:[#allocation7 + $0x112c] sm:$0xf0]  ;;  %v11762_v14 = vor.u32 %v15208_v8, %v11761_v7  ;;  %v10825_v6 = vld [vmem:[#allocation7 + $0x518] sm:$0xf]  ;;  %v14974_v8 = vld [vmem:[#allocation7 + $0x55c] sm:$0xf0]  ;;  %p16303_p13 = pnand %p16302_p12, %p16298_p9 }
  0x85   : > { %5696 = vmatpush.bf16.msra.mxu2 %v12694_v12  ;;  %v10610_v12 = vor.u32 %v14920_v2, %v10609_v1  ;;  %v12338_v18 = vor.u32 %v15352_v11, %v12337_v9  ;;  %v11401_v9 = vld [vmem:[#allocation7 + $0x998] sm:$0xf]  ;;  %v15118_v11 = vld [vmem:[#allocation7 + $0x9dc] sm:$0xf0] }
  0x86   : > { %5709 = vmatpush.bf16.msra.mxu3 %v13270_v19  ;;  %v15046_v19 = vld [vmem:[#allocation7 + $0x79c] sm:$0xf0] }
  0x87   : > { %5671 = vmatpush.bf16.msra.mxu0 %v11470_v21  ;;  %v11689_v21 = vld [vmem:[#allocation7 + $0xbd8] sm:$0xf]  ;;  %v11114_v26 = vor.u32 %v15046_v19, %v11113_v17  ;;  %v10826_v17 = vor.u32 %v14974_v8, %v10825_v6  ;;  %v10753_v19 = vld [vmem:[#allocation7 + $0x488] sm:$0xf] }
  0x88   : > { %5684 = vmatpush.bf16.msra.mxu1 %v12046_v24  ;;  %v15334_v24 = vld [vmem:[#allocation7 + $0x109c] sm:$0xf0]  ;;  %v11690_v27 = vor.u32 %v15190_v22, %v11689_v21  ;;  %v14956_v21 = vld [vmem:[#allocation7 + $0x4cc] sm:$0xf0]  ;;  %v11329_v22 = vld [vmem:[#allocation7 + $0x908] sm:$0xf] }
  0x89   : > { %5697 = vmatpush.bf16.msra.mxu2 %v12622_v25  ;;  %v10538_v25 = vor.u32 %v14902_v16, %v10537_v15  ;;  %v12266_v33 = vor.u32 %v15334_v24, %v12265_v23  ;;  %v10177_v15 = vld [vmem:[#allocation7 + $0x8] sm:$0xf]  ;;  %v14812_v16 = vld [vmem:[#allocation7 + $0x4c] sm:$0xf0] }
  0x8a   : > { %5710 = vmatpush.bf16.msra.mxu3 %v13198_v34  ;;  %v15028_v34 = vld [vmem:[#allocation7 + $0x70c] sm:$0xf0]  ;;  %v13345_v8 = vld [vmem:[#allocation7 + $0x18c8] sm:$0xf] }
  0x8b   : > { %5672 = vmatpush.bf16.msra.mxu0 %v11398_v36  ;;  %v15172_v36 = vld [vmem:[#allocation7 + $0xb8c] sm:$0xf0] }
  0x8c   : > { %5685 = vmatpush.bf16.msra.mxu1 %v11974_v41  ;;  %v11042_v41 = vor.u32 %v15028_v34, %v11041_v31  ;;  %v15100_v24 = vld [vmem:[#allocation7 + $0x94c] sm:$0xf0]  ;;  %v10178_v31 = vor.u32 %v14812_v16, %v10177_v15  ;;  %v11905_v34 = vld [vmem:[#allocation7 + $0xd88] sm:$0xf]  ;;  %v11043_v15 = vld [vmem:[#allocation7 + $0x710] sm:$0xf0] }
  0x8d   : > { %5698 = vmatpush.bf16.msra.mxu2 %v12550_v42  ;;  %v11618_v42 = vor.u32 %v15172_v36, %v11617_v35  ;;  %v15244_v35 = vld [vmem:[#allocation7 + $0xdcc] sm:$0xf0]  ;;  %v10754_v36 = vor.u32 %v14956_v21, %v10753_v19  ;;  %v11330_v37 = vor.u32 %v15100_v24, %v11329_v22  ;;  %v15442_v21 = vld [vmem:[#allocation7 + $0x13fc] sm:$0xf0]  ;;  %v13273_v22 = vld [vmem:[#allocation7 + $0x1838] sm:$0xf] }
  0x8e   : > { %5711 = vmatpush.bf16.msra.mxu3 %v13126_v49  ;;  %v15154_v49 = vld [vmem:[#allocation7 + $0xafc] sm:$0xf0] }
  0x8f   : > { %5673 = vmatpush.bf16.msra.mxu0 %v11326_v53  ;;  %v10970_v53 = vor.u32 %v15010_v47, %v10969_v45  ;;  %v11546_v54 = vor.u32 %v15154_v49, %v11545_v48  ;;  %v11906_v45 = vor.u32 %v15244_v35, %v11905_v34  ;;  %v13489_v47 = vld [vmem:[#allocation7 + $0x19e8] sm:$0xf]  ;;  %v15640_v48 = vld [vmem:[#allocation7 + $0x1a2c] sm:$0xf0] }
  0x90   : > { %5686 = vmatpush.bf16.msra.mxu1 %v11902_v57  ;;  %v10897_v57 = vld [vmem:[#allocation7 + $0x5a8] sm:$0xf]  ;;  %v15424_v35 = vld [vmem:[#allocation7 + $0x136c] sm:$0xf0] }
  0x91   : > { %5699 = vmatpush.bf16.msra.mxu2 %v12478_v58  ;;  %v12122_v58 = vor.u32 %v15298_v51, %v12121_v50  ;;  %v10898_v1 = vor.u32 %v14992_v59, %v10897_v57  ;;  %v14911_v50 = vld [vmem:[#allocation7 + $0x36c] sm:$0xf]  ;;  %v10611_v51 = vld [vmem:[#allocation7 + $0x3b0] sm:$0xf0]  ;;  %v13417_v59 = vld [vmem:[#allocation7 + $0x1958] sm:$0xf] }
  0x92   : > { %5712 = vmatpush.bf16.msra.mxu3 %v13054_v0  ;;  %5674 = vmatmul.bf16.vlgmr.msra.gmra.mxu0 %v16549_v4  ;;  %v10322_v0 = vor.u32 %v14848_v56, %v10321_v55  ;;  %v13490_v55 = vor.u32 %v15640_v48, %v13489_v47  ;;  %v12841_v56 = vld [vmem:[#allocation7 + $0x14d8] sm:$0xf]  ;;  %v10614_v57 = vor.u32 %v14911_v50, %v10611_v51  ;;  %v15406_v48 = vld [vmem:[#allocation7 + $0x12dc] sm:$0xf0] }
  0x93   : > { %5718 = vmatpush.bf16.msrb.mxu0 %v10682_v61  ;;  %5687 = vmatmul.bf16.vlgmr.msra.gmra.mxu1 %v16561_v38  ;;  %v15136_v61 = vld [vmem:[#allocation7 + $0xa6c] sm:$0xf0]  ;;  %v15550_v50 = vld [vmem:[#allocation7 + $0x175c] sm:$0xf0] }
  0x94   : > { %5731 = vmatpush.bf16.msrb.mxu1 %v11258_v62  ;;  %5700 = vmatmul.bf16.vlgmr.msra.gmra.mxu2 %v16566_v30  ;;  %v12049_v62 = vld [vmem:[#allocation7 + $0xea8] sm:$0xf]  ;;  %v11474_v2 = vor.u32 %v15136_v61, %v11473_v60  ;;  %v15622_v60 = vld [vmem:[#allocation7 + $0x199c] sm:$0xf0] }
  0x95   : > { %5744 = vmatpush.bf16.msrb.mxu2 %v11834_v63  ;;  %5713 = vmatmul.bf16.vlgmr.msra.gmra.mxu3 %v16568_v32  ;;  %v15280_v63 = vld [vmem:[#allocation7 + $0xeec] sm:$0xf0] }
  0x96   : > { %5757 = vmatpush.bf16.msrb.mxu3 %v12410_v5  ;;  %v14830_v5 = vld [vmem:[#allocation7 + $0xdc] sm:$0xf0]  ;;  %v12050_v7 = vor.u32 %v15280_v63, %v12049_v62  ;;  %v14893_v62 = vld [vmem:[#allocation7 + $0x2dc] sm:$0xf]  ;;  %v10539_v63 = vld [vmem:[#allocation7 + $0x320] sm:$0xf0] }
  0x97   : > { %5719 = vmatpush.bf16.msrb.mxu0 %v10610_v12  ;;  %v11977_v12 = vld [vmem:[#allocation7 + $0xe18] sm:$0xf]  ;;  %v10542_v6 = vor.u32 %v14893_v62, %v10539_v63  ;;  %v15532_v62 = vld [vmem:[#allocation7 + $0x16cc] sm:$0xf0]  ;;  %v14803_v63 = vld [vmem:[#allocation7 + $0xc] sm:$0xf] }
  0x98   : > { %5732 = vmatpush.bf16.msrb.mxu1 %v11186_v13  ;;  %v15262_v13 = vld [vmem:[#allocation7 + $0xe5c] sm:$0xf0] }
  0x99   : > { %5745 = vmatpush.bf16.msrb.mxu2 %v11762_v14  ;;  %v10250_v14 = vor.u32 %v14830_v5, %v10249_v3  ;;  %v11978_v23 = vor.u32 %v15262_v13, %v11977_v12  ;;  %v13418_v3 = vor.u32 %v15622_v60, %v13417_v59  ;;  %v12769_v5 = vld [vmem:[#allocation7 + $0x1448] sm:$0xf]  ;;  %v14875_v12 = vld [vmem:[#allocation7 + $0x24c] sm:$0xf]  ;;  %v10467_v13 = vld [vmem:[#allocation7 + $0x290] sm:$0xf0] }
  0x9a   : > { %5758 = vmatpush.bf16.msrb.mxu3 %v12338_v18  ;;  %v11402_v18 = vor.u32 %v15118_v11, %v11401_v9  ;;  %v15604_v9 = vld [vmem:[#allocation7 + $0x190c] sm:$0xf0]  ;;  %v10470_v19 = vor.u32 %v14875_v12, %v10467_v13  ;;  %v13057_v60 = vld [vmem:[#allocation7 + $0x1688] sm:$0xf]  ;;  %v14947_v12 = vld [vmem:[#allocation7 + $0x48c] sm:$0xf] }
  0x9b   : > { %5720 = vmatpush.bf16.msrb.mxu0 %v10538_v25  ;;  %v12985_v25 = vld [vmem:[#allocation7 + $0x15f8] sm:$0xf]  ;;  %v15388_v59 = vld [vmem:[#allocation7 + $0x124c] sm:$0xf0]  ;;  %v10755_v13 = vld [vmem:[#allocation7 + $0x4d0] sm:$0xf0] }
  0x9c   : > { %5733 = vmatpush.bf16.msrb.mxu1 %v11114_v26  ;;  %v15514_v26 = vld [vmem:[#allocation7 + $0x163c] sm:$0xf0] }
  0x9d   : > { %5746 = vmatpush.bf16.msrb.mxu2 %v11690_v27  ;;  %v13561_v27 = vld [vmem:[#allocation7 + $0x1a78] sm:$0xf] }
  0x9e   : > { %5759 = vmatpush.bf16.msrb.mxu3 %v12266_v33  ;;  %v10683_v33 = vld [vmem:[#allocation7 + $0x440] sm:$0xf0] }
  0x9f   : > { %5721 = vmatpush.bf16.msrb.mxu0 %v10466_v40  ;;  %v11259_v40 = vld [vmem:[#allocation7 + $0x8c0] sm:$0xf0]  ;;  %v10686_v44 = vor.u32 %v14929_v29, %v10683_v33  ;;  %v12625_v33 = vld [vmem:[#allocation7 + $0x1328] sm:$0xf] }
  0xa0   : > { %5734 = vmatpush.bf16.msrb.mxu1 %v11042_v41  ;;  %v12986_v41 = vor.u32 %v15514_v26, %v12985_v25  ;;  %v11262_v49 = vor.u32 %v15073_v39, %v11259_v40  ;;  %v14857_v25 = vld [vmem:[#allocation7 + $0x1bc] sm:$0xf]  ;;  %v10395_v26 = vld [vmem:[#allocation7 + $0x200] sm:$0xf0]  ;;  %v14839_v40 = vld [vmem:[#allocation7 + $0x12c] sm:$0xf] }
  0xa1   : > { %5747 = vmatpush.bf16.msrb.mxu2 %v11618_v42  ;;  %v13562_v42 = vor.u32 %v15658_v28, %v13561_v27  ;;  %v15001_v27 = vld [vmem:[#allocation7 + $0x63c] sm:$0xf]  ;;  %v10971_v28 = vld [vmem:[#allocation7 + $0x680] sm:$0xf0]  ;;  %v10398_v34 = vor.u32 %v14857_v25, %v10395_v26  ;;  %v12339_v25 = vld [vmem:[#allocation7 + $0x1130] sm:$0xf0] }
  0xa2   : > { %5760 = vmatpush.bf16.msrb.mxu3 %v12194_v46  ;;  %v15496_v46 = vld [vmem:[#allocation7 + $0x15ac] sm:$0xf0]  ;;  %v10974_v39 = vor.u32 %v15001_v27, %v10971_v28  ;;  %v15487_v26 = vld [vmem:[#allocation7 + $0x156c] sm:$0xf]  ;;  %v12915_v27 = vld [vmem:[#allocation7 + $0x15b0] sm:$0xf0] }
  0xa3   : > { %5722 = vmatpush.bf16.msrb.mxu0 %v10394_v52  ;;  %v15055_v52 = vld [vmem:[#allocation7 + $0x7ec] sm:$0xf] }
  0xa4   : > { %5735 = vmatpush.bf16.msrb.mxu1 %v10970_v53  ;;  %v11187_v53 = vld [vmem:[#allocation7 + $0x830] sm:$0xf0] }
  0xa5   : > { %5748 = vmatpush.bf16.msrb.mxu2 %v11546_v54  ;;  %v12914_v54 = vor.u32 %v15496_v46, %v12913_v43  ;;  %v11190_v61 = vor.u32 %v15055_v52, %v11187_v53  ;;  %v10899_v43 = vld [vmem:[#allocation7 + $0x5f0] sm:$0xf0]  ;;  %v12553_v46 = vld [vmem:[#allocation7 + $0x1298] sm:$0xf]  ;;  %v14821_v52 = vld [vmem:[#allocation7 + $0x9c] sm:$0xf] }
  0xa6   : > { %5761 = vmatpush.bf16.msrb.mxu3 %v12122_v58  ;;  %v15478_v58 = vld [vmem:[#allocation7 + $0x151c] sm:$0xf0]  ;;  %v10251_v53 = vld [vmem:[#allocation7 + $0xe0] sm:$0xf0] }
  0xa7   : > { %5723 = vmatpush.bf16.msrb.mxu0 %v10322_v0  ;;  %v15037_v0 = vld [vmem:[#allocation7 + $0x75c] sm:$0xf] }
  0xa8   : > { %5736 = vmatpush.bf16.msrb.mxu1 %v10898_v1  ;;  %v11115_v1 = vld [vmem:[#allocation7 + $0x7a0] sm:$0xf0] }
  0xa9   : > { %5749 = vmatpush.bf16.msrb.mxu2 %v11474_v2  ;;  %v12842_v2 = vor.u32 %v15478_v58, %v12841_v56  ;;  %v11118_v11 = vor.u32 %v15037_v0, %v11115_v1  ;;  %v12554_v56 = vor.u32 %v15406_v48, %v12553_v46  ;;  %v12481_v58 = vld [vmem:[#allocation7 + $0x1208] sm:$0xf]  ;;  %v10179_v0 = vld [vmem:[#allocation7 + $0x50] sm:$0xf0]  ;;  %v13419_v46 = vld [vmem:[#allocation7 + $0x19a0] sm:$0xf0] }
  0xaa   : > { %5762 = vmatpush.bf16.msrb.mxu3 %v12050_v7  ;;  %v15460_v7 = vld [vmem:[#allocation7 + $0x148c] sm:$0xf0] }
  0xab   : > { %5724 = vmatpush.bf16.msrb.mxu0 %v10250_v14  ;;  %v15019_v14 = vld [vmem:[#allocation7 + $0x6cc] sm:$0xf]  ;;  %v12770_v16 = vor.u32 %v15460_v7, %v12769_v5  ;;  %v15361_v5 = vld [vmem:[#allocation7 + $0x117c] sm:$0xf] }
  0xac   : > { %5737 = vmatpush.bf16.msrb.mxu1 %v10826_v17  ;;  %v13346_v17 = vor.u32 %v15604_v9, %v13345_v8  ;;  %v11046_v24 = vor.u32 %v15019_v14, %v11043_v15  ;;  %v15505_v7 = vld [vmem:[#allocation7 + $0x15fc] sm:$0xf]  ;;  %v12987_v8 = vld [vmem:[#allocation7 + $0x1640] sm:$0xf0]  ;;  %v12482_v9 = vor.u32 %v15388_v59, %v12481_v58  ;;  %v10182_v14 = vor.u32 %v14803_v63, %v10179_v0  ;;  %v13347_v58 = vld [vmem:[#allocation7 + $0x1910] sm:$0xf0] }
  0xad   : > { %5750 = vmatpush.bf16.msrb.mxu2 %v11402_v18  ;;  %v12697_v18 = vld [vmem:[#allocation7 + $0x13b8] sm:$0xf]  ;;  %v15289_v63 = vld [vmem:[#allocation7 + $0xf3c] sm:$0xf]  ;;  %v12123_v0 = vld [vmem:[#allocation7 + $0xf80] sm:$0xf0] }
  0xae   : > { %5763 = vmatpush.bf16.msrb.mxu3 %v11978_v23  ;;  %v15586_v23 = vld [vmem:[#allocation7 + $0x187c] sm:$0xf0]  ;;  %v12698_v29 = vor.u32 %v15442_v21, %v12697_v18  ;;  %v15199_v21 = vld [vmem:[#allocation7 + $0xc6c] sm:$0xf] }
  0xaf   : > { %5725 = vmatpush.bf16.msrb.mxu0 %v10178_v31  ;;  %v13274_v31 = vor.u32 %v15586_v23, %v13273_v22  ;;  %v11763_v22 = vld [vmem:[#allocation7 + $0xcb0] sm:$0xf0]  ;;  %v15343_v23 = vld [vmem:[#allocation7 + $0x10ec] sm:$0xf] }
  0xb0   : > { %5738 = vmatpush.bf16.msrb.mxu1 %v10754_v36  ;;  %v13201_v36 = vld [vmem:[#allocation7 + $0x17a8] sm:$0xf] }
  0xb1   : > { %5751 = vmatpush.bf16.msrb.mxu2 %v11330_v37  ;;  %v15568_v37 = vld [vmem:[#allocation7 + $0x17ec] sm:$0xf0] }
  0xb2   : > { %5764 = vmatpush.bf16.msrb.mxu3 %v11906_v45  ;;  %5726 = vmatmul.bf16.vlgmr.msrb.gmra.mxu0 %v16552_v10  ;;  %v13202_v45 = vor.u32 %v15568_v37, %v13201_v36  ;;  %v15181_v36 = vld [vmem:[#allocation7 + $0xbdc] sm:$0xf]  ;;  %v11691_v37 = vld [vmem:[#allocation7 + $0xc20] sm:$0xf0] }
  0xb3   : > { %5770 = vmatpush.bf16.msra.mxu0 %v12986_v41  ;;  %5739 = vmatmul.bf16.vlgmr.msrb.gmra.mxu1 %v16557_v20  ;;  %v10323_v41 = vld [vmem:[#allocation7 + $0x170] sm:$0xf0] }
  0xb4   : > { %5783 = vmatpush.bf16.msra.mxu1 %v13562_v42  ;;  %5752 = vmatmul.bf16.vlgmr.msrb.gmra.mxu2 %v16549_v4  ;;  %v14983_v42 = vld [vmem:[#allocation7 + $0x5ac] sm:$0xf]  ;;  %v10326_v47 = vor.u32 %v14839_v40, %v10323_v41  ;;  %v12267_v40 = vld [vmem:[#allocation7 + $0x10a0] sm:$0xf0]  ;;  %v15469_v41 = vld [vmem:[#allocation7 + $0x14dc] sm:$0xf] }
  0xb5   : > { %5796 = vmatpush.bf16.msra.mxu2 %v10686_v44  ;;  %5765 = vmatmul.bf16.vlgmr.msrb.gmra.mxu3 %v16561_v38  ;;  %v12626_v44 = vor.u32 %v15424_v35, %v12625_v33  ;;  %v10902_v51 = vor.u32 %v14983_v42, %v10899_v43  ;;  %v13491_v33 = vld [vmem:[#allocation7 + $0x1a30] sm:$0xf0]  ;;  %v12918_v35 = vor.u32 %v15487_v26, %v12915_v27  ;;  %v12843_v42 = vld [vmem:[#allocation7 + $0x1520] sm:$0xf0]  ;;  %v15253_v27 = vld [vmem:[#allocation7 + $0xe1c] sm:$0xf] }
  0xb6   : > { %5809 = vmatpush.bf16.msra.mxu3 %v11262_v49  ;;  %v13129_v49 = vld [vmem:[#allocation7 + $0x1718] sm:$0xf]  ;;  %v12846_v48 = vor.u32 %v15469_v41, %v12843_v42  ;;  %v11403_v26 = vld [vmem:[#allocation7 + $0x9e0] sm:$0xf0]  ;;  %v11331_v41 = vld [vmem:[#allocation7 + $0x950] sm:$0xf0] }
  0xb7   : > { %5771 = vmatpush.bf16.msra.mxu0 %v12914_v54  ;;  %v14965_v54 = vld [vmem:[#allocation7 + $0x51c] sm:$0xf] }
  0xb8   : > { %5784 = vmatpush.bf16.msra.mxu1 %v13490_v55  ;;  %v10827_v55 = vld [vmem:[#allocation7 + $0x560] sm:$0xf0] }
  0xb9   : > { %5797 = vmatpush.bf16.msra.mxu2 %v10614_v57  ;;  %v13130_v57 = vor.u32 %v15550_v50, %v13129_v49  ;;  %v10830_v1 = vor.u32 %v14965_v54, %v10827_v55  ;;  %v15163_v49 = vld [vmem:[#allocation7 + $0xb4c] sm:$0xf]  ;;  %v11619_v50 = vld [vmem:[#allocation7 + $0xb90] sm:$0xf0] }
  0xba   : > { %5810 = vmatpush.bf16.msra.mxu3 %v11190_v61  ;;  %v10254_v61 = vor.u32 %v14821_v52, %v10251_v53  ;;  %v12195_v52 = vld [vmem:[#allocation7 + $0x1010] sm:$0xf0]  ;;  %v15451_v53 = vld [vmem:[#allocation7 + $0x144c] sm:$0xf] }
  0xbb   : > { %5772 = vmatpush.bf16.msra.mxu0 %v12842_v2  ;;  %v15217_v2 = vld [vmem:[#allocation7 + $0xcfc] sm:$0xf]  ;;  %v12771_v54 = vld [vmem:[#allocation7 + $0x1490] sm:$0xf0] }
  0xbc   : > { %5785 = vmatpush.bf16.msra.mxu1 %v13418_v3  ;;  %v11835_v3 = vld [vmem:[#allocation7 + $0xd40] sm:$0xf0] }
  0xbd   : > { %5798 = vmatpush.bf16.msra.mxu2 %v10542_v6  ;;  %v12411_v6 = vld [vmem:[#allocation7 + $0x11c0] sm:$0xf0]  ;;  %v11838_v15 = vor.u32 %v15217_v2, %v11835_v3 }
  0xbe   : > { %5811 = vmatpush.bf16.msra.mxu3 %v11118_v11  ;;  %v13058_v11 = vor.u32 %v15532_v62, %v13057_v60  ;;  %v12414_v18 = vor.u32 %v15361_v5, %v12411_v6  ;;  %v12774_v60 = vor.u32 %v15451_v53, %v12771_v54  ;;  %v11547_v62 = vld [vmem:[#allocation7 + $0xb00] sm:$0xf0]  ;;  %v15577_v6 = vld [vmem:[#allocation7 + $0x183c] sm:$0xf]  ;;  %v15083_v53 = vld [vmem:[#allocation7 + $0x8c4] sm:$0xf0] }
  0xbf   : > { %5773 = vmatpush.bf16.msra.mxu0 %v12770_v16  ;;  %v15649_v16 = vld [vmem:[#allocation7 + $0x1a7c] sm:$0xf]  ;;  %v12699_v2 = vld [vmem:[#allocation7 + $0x1400] sm:$0xf0]  ;;  %v11841_v54 = vld [vmem:[#allocation7 + $0xd00] sm:$0xf] }
  0xc0   : > { %5786 = vmatpush.bf16.msra.mxu1 %v13346_v17  ;;  %v13563_v17 = vld [vmem:[#allocation7 + $0x1ac0] sm:$0xf0] }
  0xc1   : > { %5799 = vmatpush.bf16.msra.mxu2 %v10470_v19  ;;  %v12990_v19 = vor.u32 %v15505_v7, %v12987_v8  ;;  %v13566_v28 = vor.u32 %v15649_v16, %v13563_v17  ;;  %v13275_v7 = vld [vmem:[#allocation7 + $0x1880] sm:$0xf0]  ;;  %v12126_v8 = vor.u32 %v15289_v63, %v12123_v0  ;;  %v12627_v16 = vld [vmem:[#allocation7 + $0x1370] sm:$0xf0] }
  0xc2   : > { %5812 = vmatpush.bf16.msra.mxu3 %v11046_v24  ;;  %v10758_v24 = vor.u32 %v14947_v12, %v10755_v13  ;;  %v11475_v12 = vld [vmem:[#allocation7 + $0xa70] sm:$0xf0]  ;;  %v15271_v13 = vld [vmem:[#allocation7 + $0xeac] sm:$0xf] }
  0xc3   : > { %5774 = vmatpush.bf16.msra.mxu0 %v12698_v29  ;;  %v11766_v29 = vor.u32 %v15199_v21, %v11763_v22  ;;  %v15559_v21 = vld [vmem:[#allocation7 + $0x17ac] sm:$0xf]  ;;  %v13203_v22 = vld [vmem:[#allocation7 + $0x17f0] sm:$0xf0] }
  0xc4   : > { %5787 = vmatpush.bf16.msra.mxu1 %v13274_v31  ;;  %v15631_v31 = vld [vmem:[#allocation7 + $0x19ec] sm:$0xf] }
  0xc5   : > { %5800 = vmatpush.bf16.msra.mxu2 %v10398_v34  ;;  %v12342_v34 = vor.u32 %v15343_v23, %v12339_v25  ;;  %v13494_v43 = vor.u32 %v15631_v31, %v13491_v33  ;;  %v15109_v25 = vld [vmem:[#allocation7 + $0x99c] sm:$0xf]  ;;  %v12555_v33 = vld [vmem:[#allocation7 + $0x12e0] sm:$0xf0] }
  0xc6   : > { %5813 = vmatpush.bf16.msra.mxu3 %v10974_v39  ;;  %v15325_v39 = vld [vmem:[#allocation7 + $0x105c] sm:$0xf] }
  0xc7   : > { %5775 = vmatpush.bf16.msra.mxu0 %v12626_v44  ;;  %v11694_v44 = vor.u32 %v15181_v36, %v11691_v37  ;;  %v15397_v31 = vld [vmem:[#allocation7 + $0x129c] sm:$0xf]  ;;  %v11406_v37 = vor.u32 %v15109_v25, %v11403_v26  ;;  %v15047_v26 = vld [vmem:[#allocation7 + $0x7a4] sm:$0xf0] }
  0xc8   : > { %5788 = vmatpush.bf16.msra.mxu1 %v13202_v45  ;;  %v15613_v45 = vld [vmem:[#allocation7 + $0x195c] sm:$0xf] }
  0xc9   : > { %5801 = vmatpush.bf16.msra.mxu2 %v10326_v47  ;;  %v12270_v47 = vor.u32 %v15325_v39, %v12267_v40  ;;  %v13422_v55 = vor.u32 %v15613_v45, %v13419_v46  ;;  %v13131_v39 = vld [vmem:[#allocation7 + $0x1760] sm:$0xf0]  ;;  %v15091_v40 = vld [vmem:[#allocation7 + $0x90c] sm:$0xf]  ;;  %v11907_v45 = vld [vmem:[#allocation7 + $0xdd0] sm:$0xf0] }
  0xca   : > { %5814 = vmatpush.bf16.msra.mxu3 %v10902_v51  ;;  %v15307_v51 = vld [vmem:[#allocation7 + $0xfcc] sm:$0xf] }
  0xcb   : > { %5776 = vmatpush.bf16.msra.mxu0 %v12554_v56  ;;  %v11622_v56 = vor.u32 %v15163_v49, %v11619_v50  ;;  %v12198_v59 = vor.u32 %v15307_v51, %v12195_v52  ;;  %v15379_v46 = vld [vmem:[#allocation7 + $0x120c] sm:$0xf]  ;;  %v14939_v49 = vld [vmem:[#allocation7 + $0x444] sm:$0xf0]  ;;  %v11265_v52 = vld [vmem:[#allocation7 + $0x880] sm:$0xf] }
  0xcc   : > { %5789 = vmatpush.bf16.msra.mxu1 %v13130_v57  ;;  %v15595_v57 = vld [vmem:[#allocation7 + $0x18cc] sm:$0xf] }
  0xcd   : > { %5802 = vmatpush.bf16.msra.mxu2 %v10254_v61  ;;  %v15145_v61 = vld [vmem:[#allocation7 + $0xabc] sm:$0xf]  ;;  %v13350_v3 = vor.u32 %v15595_v57, %v13347_v58  ;;  %v15523_v57 = vld [vmem:[#allocation7 + $0x168c] sm:$0xf]  ;;  %v13059_v58 = vld [vmem:[#allocation7 + $0x16d0] sm:$0xf0] }
  0xce   : > { %5815 = vmatpush.bf16.msra.mxu3 %v10830_v1  ;;  %v15433_v1 = vld [vmem:[#allocation7 + $0x13bc] sm:$0xf]  ;;  %v11550_v5 = vor.u32 %v15145_v61, %v11547_v62  ;;  %v12417_v61 = vld [vmem:[#allocation7 + $0x1180] sm:$0xf]  ;;  %v15371_v62 = vld [vmem:[#allocation7 + $0x11c4] sm:$0xf0] }
  0xcf   : > { %5777 = vmatpush.bf16.msra.mxu0 %v12482_v9  ;;  %v12702_v9 = vor.u32 %v15433_v1, %v12699_v2  ;;  %v16586_v17 = vpop.f32.mrf.mxu0  ;;  %v11266_v1 = vor.u32 %v15083_v53, %v11265_v52  ;;  %v10401_v53 = vld [vmem:[#allocation7 + $0x1c0] sm:$0xf] }
  0xd0   : > { %5790 = vmatpush.bf16.msra.mxu1 %v13058_v11  ;;  %v15127_v11 = vld [vmem:[#allocation7 + $0xa2c] sm:$0xf] }
  0xd1   : > { %5803 = vmatpush.bf16.msra.mxu2 %v10182_v14  ;;  %v12051_v14 = vld [vmem:[#allocation7 + $0xef0] sm:$0xf0] }
  0xd2   : > { %5816 = vmatpush.bf16.msra.mxu3 %v10758_v24  ;;  %5778 = vmatmul.bf16.vlgmr.msra.gmra.mxu0 %v16566_v30  ;;  %v12054_v23 = vor.u32 %v15271_v13, %v12051_v14  ;;  %v15209_v13 = vld [vmem:[#allocation7 + $0xcb4] sm:$0xf0] }
  0xd3   : > { %5822 = vmatpush.bf16.msrb.mxu0 %v11838_v15  ;;  %5791 = vmatmul.bf16.vlgmr.msra.gmra.mxu1 %v16568_v32  ;;  %v15415_v15 = vld [vmem:[#allocation7 + $0x132c] sm:$0xf] }
  0xd4   : > { %5835 = vmatpush.bf16.msrb.mxu1 %v12414_v18  ;;  %5804 = vmatmul.bf16.vlgmr.msra.gmra.mxu2 %v16552_v10  ;;  %v13278_v18 = vor.u32 %v15577_v6, %v13275_v7  ;;  %v12630_v24 = vor.u32 %v15415_v15, %v12627_v16  ;;  %v14921_v6 = vld [vmem:[#allocation7 + $0x3b4] sm:$0xf0]  ;;  %v11193_v7 = vld [vmem:[#allocation7 + $0x7f0] sm:$0xf] }
  0xd5   : > { %5848 = vmatpush.bf16.msrb.mxu2 %v12990_v19  ;;  %5817 = vmatmul.bf16.vlgmr.msra.gmra.mxu3 %v16557_v20  ;;  %v11478_v19 = vor.u32 %v15127_v11, %v11475_v12  ;;  %v15065_v11 = vld [vmem:[#allocation7 + $0x834] sm:$0xf0]  ;;  %v11769_v12 = vld [vmem:[#allocation7 + $0xc70] sm:$0xf] }
  0xd6   : > { %5861 = vmatpush.bf16.msrb.mxu3 %v13566_v28  ;;  %v16588_v28 = vpop.f32.mrf.mxu1  ;;  %v12345_v15 = vld [vmem:[#allocation7 + $0x10f0] sm:$0xf]  ;;  %v15353_v16 = vld [vmem:[#allocation7 + $0x1134] sm:$0xf0] }
  0xd7   : > { %5823 = vmatpush.bf16.msrb.mxu0 %v11766_v29  ;;  %v11979_v29 = vld [vmem:[#allocation7 + $0xe60] sm:$0xf0]  ;;  %v16590_v36 = vpop.f32.mrf.mxu2  ;;  %v5573_v50 = vpop.f32.mrf.mxu0  ;;  %v12346_v25 = vor.u32 %v15353_v16, %v12345_v15 }
  0xd8   : > { %5836 = vmatpush.bf16.msrb.mxu1 %v12342_v34  ;;  %v13206_v34 = vor.u32 %v15559_v21, %v13203_v22  ;;  %v11982_v42 = vor.u32 %v15253_v27, %v11979_v29  ;;  %v11770_v21 = vor.u32 %v15209_v13, %v11769_v12  ;;  %v10545_v22 = vld [vmem:[#allocation7 + $0x2e0] sm:$0xf]  ;;  %v15191_v29 = vld [vmem:[#allocation7 + $0xc24] sm:$0xf0]  ;;  %v15281_v12 = vld [vmem:[#allocation7 + $0xef4] sm:$0xf0] }
  0xd9   : > { %5849 = vmatpush.bf16.msrb.mxu2 %v12918_v35  ;;  %v15541_v35 = vld [vmem:[#allocation7 + $0x171c] sm:$0xf]  ;;  %v11697_v27 = vld [vmem:[#allocation7 + $0xbe0] sm:$0xf] }
  0xda   : > { %5862 = vmatpush.bf16.msrb.mxu3 %v13494_v43  ;;  %v12558_v43 = vor.u32 %v15397_v31, %v12555_v33  ;;  %v13134_v51 = vor.u32 %v15541_v35, %v13131_v39  ;;  %v12273_v31 = vld [vmem:[#allocation7 + $0x1060] sm:$0xf]  ;;  %v15335_v33 = vld [vmem:[#allocation7 + $0x10a4] sm:$0xf0]  ;;  %v10473_v39 = vld [vmem:[#allocation7 + $0x250] sm:$0xf] }
  0xdb   : > { %5824 = vmatpush.bf16.msrb.mxu0 %v11694_v44  ;;  %v15235_v44 = vld [vmem:[#allocation7 + $0xd8c] sm:$0xf]  ;;  %v16592_v14 = vpop.f32.mrf.mxu3  ;;  %v16602_v13 = vld [vmem:[#allocation9] sm:$0xff] }
  0xdc   : > { %5837 = vmatpush.bf16.msrb.mxu1 %v12270_v47  ;;  %v12483_v47 = vld [vmem:[#allocation7 + $0x1250] sm:$0xf0] }
  0xdd   : > { %5850 = vmatpush.bf16.msrb.mxu2 %v12846_v48  ;;  %v10689_v48 = vld [vmem:[#allocation7 + $0x400] sm:$0xf] }
  0xde   : > { %5863 = vmatpush.bf16.msrb.mxu3 %v13422_v55  ;;  %v11334_v55 = vor.u32 %v15091_v40, %v11331_v41  ;;  %v5586_v63 = vpop.f32.mrf.mxu1  ;;  %v10690_v0 = vor.u32 %v14939_v49, %v10689_v48  ;;  %v14885_v40 = vld [vmem:[#allocation7 + $0x294] sm:$0xf0]  ;;  %v11049_v41 = vld [vmem:[#allocation7 + $0x6d0] sm:$0xf] }
  0xdf   : > { %5825 = vmatpush.bf16.msrb.mxu0 %v11622_v56  ;;  %v15227_v56 = vld [vmem:[#allocation7 + $0xd44] sm:$0xf0]  ;;  %v15317_v48 = vld [vmem:[#allocation7 + $0x1014] sm:$0xf0]  ;;  %v10474_v49 = vor.u32 %v14885_v40, %v10473_v39  ;;  %v10185_v40 = vld [vmem:[#allocation7 + $0x10] sm:$0xf] }
  0xe0   : > { %5838 = vmatpush.bf16.msrb.mxu1 %v12198_v59  ;;  %v11910_v59 = vor.u32 %v15235_v44, %v11907_v45  ;;  %v11842_v2 = vor.u32 %v15227_v56, %v11841_v54  ;;  %v11625_v44 = vld [vmem:[#allocation7 + $0xb50] sm:$0xf]  ;;  %v15173_v45 = vld [vmem:[#allocation7 + $0xb94] sm:$0xf0]  ;;  %v14867_v54 = vld [vmem:[#allocation7 + $0x204] sm:$0xf0] }
  0xe1   : > { %5851 = vmatpush.bf16.msrb.mxu2 %v12774_v60  ;;  %v12486_v60 = vor.u32 %v15379_v46, %v12483_v47  ;;  %v12201_v47 = vld [vmem:[#allocation7 + $0xfd0] sm:$0xf]  ;;  %v11626_v52 = vor.u32 %v15173_v45, %v11625_v44  ;;  %v10402_v63 = vor.u32 %v14867_v54, %v10401_v53  ;;  %v14957_v45 = vld [vmem:[#allocation7 + $0x4d4] sm:$0xf0]  ;;  %v15659_v53 = vld [vmem:[#allocation7 + $0x1ac4] sm:$0xf0] }
  0xe2   : > { %5864 = vmatpush.bf16.msrb.mxu3 %v13350_v3  ;;  %v13062_v3 = vor.u32 %v15523_v57, %v13059_v58  ;;  %v12202_v57 = vor.u32 %v15317_v48, %v12201_v47  ;;  %v15011_v58 = vld [vmem:[#allocation7 + $0x684] sm:$0xf0]  ;;  %v10761_v44 = vld [vmem:[#allocation7 + $0x490] sm:$0xf]  ;;  %v15101_v48 = vld [vmem:[#allocation7 + $0x954] sm:$0xf0] }
  0xe3   : > { %5826 = vmatpush.bf16.msrb.mxu0 %v11550_v5  ;;  %v10617_v5 = vld [vmem:[#allocation7 + $0x370] sm:$0xf]  ;;  %v5612_v46 = vpop.f32.mrf.mxu3  ;;  %v14930_v54 = vld [vmem:[#allocation7 + $0x404] sm:$0xf] }
  0xe4   : > { %5839 = vmatpush.bf16.msrb.mxu1 %v12126_v8  ;;  %v5599_v8 = vpop.f32.mrf.mxu2  ;;  %v11337_v46 = vld [vmem:[#allocation7 + $0x910] sm:$0xf] }
  0xe5   : > { %5852 = vmatpush.bf16.msrb.mxu2 %v12702_v9  ;;  %v12418_v9 = vor.u32 %v15371_v62, %v12417_v61  ;;  %v12129_v61 = vld [vmem:[#allocation7 + $0xf40] sm:$0xf]  ;;  %v15299_v62 = vld [vmem:[#allocation7 + $0xf84] sm:$0xf0]  ;;  %v11481_v8 = vld [vmem:[#allocation7 + $0xa30] sm:$0xf] }
  0xe6   : > { %5865 = vmatpush.bf16.msrb.mxu3 %v13278_v18  ;;  %v10618_v18 = vor.u32 %v14921_v6, %v10617_v5  ;;  %v10905_v5 = vld [vmem:[#allocation7 + $0x5b0] sm:$0xf]  ;;  %v12130_v6 = vor.u32 %v15299_v62, %v12129_v61  ;;  %v10762_v61 = vor.u32 %v14957_v45, %v10761_v44  ;;  %v11338_v62 = vor.u32 %v15101_v48, %v11337_v46  ;;  %v15461_v46 = vld [vmem:[#allocation7 + $0x1494] sm:$0xf0] }
  0xe7   : > { %5827 = vmatpush.bf16.msrb.mxu0 %v11478_v19  ;;  %v11194_v19 = vor.u32 %v15065_v11, %v11193_v7  ;;  %v14993_v7 = vld [vmem:[#allocation7 + $0x5f4] sm:$0xf0]  ;;  %v12057_v11 = vld [vmem:[#allocation7 + $0xeb0] sm:$0xf] }
  0xe8   : > { %5840 = vmatpush.bf16.msrb.mxu1 %v12054_v23  ;;  %v14903_v23 = vld [vmem:[#allocation7 + $0x324] sm:$0xf0]  ;;  %v12777_v44 = vld [vmem:[#allocation7 + $0x1450] sm:$0xf]  ;;  %v15605_v48 = vld [vmem:[#allocation7 + $0x1914] sm:$0xf0] }
  0xe9   : > { %5853 = vmatpush.bf16.msrb.mxu2 %v12630_v24  ;;  %v11121_v24 = vld [vmem:[#allocation7 + $0x760] sm:$0xf] }
  0xea   : > { %5866 = vmatpush.bf16.msrb.mxu3 %v13206_v34  ;;  %v10546_v34 = vor.u32 %v14903_v23, %v10545_v22  ;;  %v11122_v35 = vor.u32 %v15047_v26, %v11121_v24  ;;  %v10257_v22 = vld [vmem:[#allocation7 + $0xa0] sm:$0xf]  ;;  %v14831_v23 = vld [vmem:[#allocation7 + $0xe4] sm:$0xf0]  ;;  %v12058_v26 = vor.u32 %v15281_v12, %v12057_v11  ;;  %v13497_v11 = vld [vmem:[#allocation7 + $0x19f0] sm:$0xf] }
  0xeb   : > { %5828 = vmatpush.bf16.msrb.mxu0 %v11406_v37  ;;  %v11698_v37 = vor.u32 %v15191_v29, %v11697_v27  ;;  %v10833_v24 = vld [vmem:[#allocation7 + $0x520] sm:$0xf]  ;;  %v14975_v27 = vld [vmem:[#allocation7 + $0x564] sm:$0xf0]  ;;  %v10258_v39 = vor.u32 %v14831_v23, %v10257_v22  ;;  %v15641_v12 = vld [vmem:[#allocation7 + $0x1a34] sm:$0xf0] }
  0xec   : > { %5841 = vmatpush.bf16.msrb.mxu1 %v11982_v42  ;;  %v12274_v42 = vor.u32 %v15335_v33, %v12273_v31  ;;  %v11409_v29 = vld [vmem:[#allocation7 + $0x9a0] sm:$0xf]  ;;  %v15119_v31 = vld [vmem:[#allocation7 + $0x9e4] sm:$0xf0]  ;;  %v15056_v22 = vld [vmem:[#allocation7 + $0x7f4] sm:$0xf] }
  0xed   : > { %5854 = vmatpush.bf16.msrb.mxu2 %v12558_v43  ;;  %v15029_v43 = vld [vmem:[#allocation7 + $0x714] sm:$0xf0]  ;;  %v11195_v23 = vld [vmem:[#allocation7 + $0x838] sm:$0xf0] }
  0xee   : > { %5867 = vmatpush.bf16.msrb.mxu3 %v13134_v51  ;;  %v11050_v51 = vor.u32 %v15029_v43, %v11049_v41  ;;  %v14813_v41 = vld [vmem:[#allocation7 + $0x54] sm:$0xf0]  ;;  %v11410_v43 = vor.u32 %v15119_v31, %v11409_v29  ;;  %v15479_v29 = vld [vmem:[#allocation7 + $0x1524] sm:$0xf0]  ;;  %v13425_v31 = vld [vmem:[#allocation7 + $0x1960] sm:$0xf] }
  0xef   : > { %5829 = vmatpush.bf16.msrb.mxu0 %v11334_v55  ;;  %v16598_v50 = vpop.f32.mrf.mxu0  ;;  %v10977_v55 = vld [vmem:[#allocation7 + $0x640] sm:$0xf] }
  0xf0   : > { %5842 = vmatpush.bf16.msrb.mxu1 %v11910_v59  ;;  %v16600_v56 = vpop.f32.mrf.mxu1  ;;  %v11553_v59 = vld [vmem:[#allocation7 + $0xac0] sm:$0xf] }
  0xf1   : > { %5855 = vmatpush.bf16.msrb.mxu2 %v12486_v60  ;;  %v15155_v60 = vld [vmem:[#allocation7 + $0xb04] sm:$0xf0] }
  0xf2   : > { %5868 = vmatpush.bf16.msrb.mxu3 %v13062_v3  ;;  %5830 = vmatmul.bf16.vlgmr.msrb.gmra.mxu0 %v16549_v4  ;;  %v14849_v3 = vld [vmem:[#allocation7 + $0x174] sm:$0xf0] }
  0xf3   : > { %5874 = vmatpush.bf16.msra.mxu0 %v10690_v0  ;;  %5843 = vmatmul.bf16.vlgmr.msrb.gmra.mxu1 %v16561_v38  ;;  %v10978_v0 = vor.u32 %v15011_v58, %v10977_v55  ;;  %v10186_v55 = vor.u32 %v14813_v41, %v10185_v40  ;;  %v11913_v58 = vld [vmem:[#allocation7 + $0xd90] sm:$0xf]  ;;  %v10547_v40 = vld [vmem:[#allocation7 + $0x328] sm:$0xf0]  ;;  %v15038_v41 = vld [vmem:[#allocation7 + $0x764] sm:$0xf] }
  0xf4   : > { %5887 = vmatpush.bf16.msra.mxu1 %v11266_v1  ;;  %5856 = vmatmul.bf16.vlgmr.msrb.gmra.mxu2 %v16566_v30  ;;  %v11554_v1 = vor.u32 %v15155_v60, %v11553_v59  ;;  %v15245_v59 = vld [vmem:[#allocation7 + $0xdd4] sm:$0xf0] }
  0xf5   : > { %5900 = vmatpush.bf16.msra.mxu2 %v11842_v2  ;;  %5869 = vmatmul.bf16.vlgmr.msrb.gmra.mxu3 %v16568_v32  ;;  %v10329_v2 = vld [vmem:[#allocation7 + $0x130] sm:$0xf] }
  0xf6   : > { %5913 = vmatpush.bf16.msra.mxu3 %v12418_v9  ;;  %v15137_v9 = vld [vmem:[#allocation7 + $0xa74] sm:$0xf0]  ;;  %v10330_v15 = vor.u32 %v14849_v3, %v10329_v2  ;;  %v12921_v3 = vld [vmem:[#allocation7 + $0x1570] sm:$0xf] }
  0xf7   : > { %5875 = vmatpush.bf16.msra.mxu0 %v10618_v18  ;;  %v16604_v16 = vpop.f32.mrf.mxu2  ;;  %v5625_v18 = vpop.f32.mrf.mxu0 }
  0xf8   : > { %5888 = vmatpush.bf16.msra.mxu1 %v11194_v19  ;;  %v10906_v19 = vor.u32 %v14993_v7, %v10905_v5  ;;  %v16606_v33 = vpop.f32.mrf.mxu3 }
  0xf9   : > { %5901 = vmatpush.bf16.msra.mxu2 %v11770_v21  ;;  %v11482_v21 = vor.u32 %v15137_v9, %v11481_v8  ;;  %v11914_v8 = vor.u32 %v15245_v59, %v11913_v58  ;;  %v15497_v9 = vld [vmem:[#allocation7 + $0x15b4] sm:$0xf0] }
  0xfa   : > { %5914 = vmatpush.bf16.msra.mxu3 %v12346_v25  ;;  %v5638_v25 = vpop.f32.mrf.mxu1 }
  0xfb   : > { %5876 = vmatpush.bf16.msra.mxu0 %v10546_v34  ;;  %v11985_v34 = vld [vmem:[#allocation7 + $0xe20] sm:$0xf]  ;;  %v13498_v25 = vor.u32 %v15641_v12, %v13497_v11 }
  0xfc   : > { %5889 = vmatpush.bf16.msra.mxu1 %v11122_v35  ;;  %v15263_v35 = vld [vmem:[#allocation7 + $0xe64] sm:$0xf0] }
  0xfd   : > { %5902 = vmatpush.bf16.msra.mxu2 %v11698_v37  ;;  %v1206_v37 = vperm.slane %v16602_v13, 0  ;;  %v11986_v47 = vor.u32 %v15263_v35, %v11985_v34  ;;  %v15623_v34 = vld [vmem:[#allocation7 + $0x19a4] sm:$0xf0] }
  0xfe   : > { %5915 = vmatpush.bf16.msra.mxu3 %v12274_v42  ;;  %v10834_v42 = vor.u32 %v14975_v27, %v10833_v24  ;;  %v12922_v24 = vor.u32 %v15497_v9, %v12921_v3  ;;  %v14858_v3 = vld [vmem:[#allocation7 + $0x1c4] sm:$0xf] }
  0xff   : > { %5877 = vmatpush.bf16.msra.mxu0 %v10474_v49  ;;  %v12993_v49 = vld [vmem:[#allocation7 + $0x1600] sm:$0xf]  ;;  %v5651_v60 = vpop.f32.mrf.mxu2 }
 0x100   : > { %5890 = vmatpush.bf16.msra.mxu1 %v11050_v51  ;;  %v15515_v51 = vld [vmem:[#allocation7 + $0x1644] sm:$0xf0]  ;;  %v5664_v5 = vpop.f32.mrf.mxu3 }
 0x101   : > { %5903 = vmatpush.bf16.msra.mxu2 %v11626_v52  ;;  %v13569_v52 = vld [vmem:[#allocation7 + $0x1a80] sm:$0xf]  ;;  %v10403_v5 = vld [vmem:[#allocation7 + $0x208] sm:$0xf0] }
 0x102   : > { %5916 = vmatpush.bf16.msra.mxu3 %v12202_v57  ;;  %v10691_v57 = vld [vmem:[#allocation7 + $0x448] sm:$0xf0]  ;;  %v13570_v2 = vor.u32 %v15659_v53, %v13569_v52  ;;  %v14876_v52 = vld [vmem:[#allocation7 + $0x254] sm:$0xf]  ;;  %v10475_v53 = vld [vmem:[#allocation7 + $0x298] sm:$0xf0] }
 0x103   : > { %5878 = vmatpush.bf16.msra.mxu0 %v10402_v63  ;;  %v15074_v63 = vld [vmem:[#allocation7 + $0x884] sm:$0xf]  ;;  %v10694_v7 = vor.u32 %v14930_v54, %v10691_v57  ;;  %v15020_v54 = vld [vmem:[#allocation7 + $0x6d4] sm:$0xf]  ;;  %v12778_v57 = vor.u32 %v15461_v46, %v12777_v44  ;;  %v10478_v60 = vor.u32 %v14876_v52, %v10475_v53  ;;  %v15389_v52 = vld [vmem:[#allocation7 + $0x1254] sm:$0xf0] }
 0x104   : > { %5891 = vmatpush.bf16.msra.mxu1 %v10978_v0  ;;  %v11267_v0 = vld [vmem:[#allocation7 + $0x8c8] sm:$0xf0]  ;;  %v13065_v53 = vld [vmem:[#allocation7 + $0x1690] sm:$0xf] }
 0x105   : > { %5904 = vmatpush.bf16.msra.mxu2 %v11554_v1  ;;  %v12994_v1 = vor.u32 %v15515_v51, %v12993_v49  ;;  %v11270_v18 = vor.u32 %v15074_v63, %v11267_v0  ;;  %v15443_v63 = vld [vmem:[#allocation7 + $0x1404] sm:$0xf0]  ;;  %v13281_v0 = vld [vmem:[#allocation7 + $0x1840] sm:$0xf] }
 0x106   : > { %5917 = vmatpush.bf16.msra.mxu3 %v12130_v6  ;;  %v5572_v6 = vadd.f32 %v16586_v17, %v1206_v37  ;;  %v12849_v17 = vld [vmem:[#allocation7 + $0x14e0] sm:$0xf]  ;;  %v11198_v37 = vor.u32 %v15056_v22, %v11195_v23 }
 0x107   : > { %5879 = vmatpush.bf16.msra.mxu0 %v10330_v15  ;;  %v1207_v15 = vperm.slane %v16602_v13, 1 }
 0x108   : > { %5892 = vmatpush.bf16.msra.mxu1 %v10906_v19  ;;  %v14912_v19 = vld [vmem:[#allocation7 + $0x374] sm:$0xf] }
 0x109   : > { %5905 = vmatpush.bf16.msra.mxu2 %v11482_v21  ;;  %v10619_v21 = vld [vmem:[#allocation7 + $0x3b8] sm:$0xf0]  ;;  %v5650_v35 = vadd.f32 %v16604_v16, %v1207_v15  ;;  %v10406_v15 = vor.u32 %v14858_v3, %v10403_v5  ;;  %v14948_v3 = vld [vmem:[#allocation7 + $0x494] sm:$0xf] }
 0x10a   : > { %5918 = vmatpush.bf16.msra.mxu3 %v12058_v26  ;;  %v5585_v26 = vadd.f32 %v16588_v28, %v5572_v6  ;;  %v10622_v27 = vor.u32 %v14912_v19, %v10619_v21  ;;  %v12850_v28 = vor.u32 %v15479_v29, %v12849_v17  ;;  %v15002_v6 = vld [vmem:[#allocation7 + $0x644] sm:$0xf]  ;;  %v13209_v19 = vld [vmem:[#allocation7 + $0x17b0] sm:$0xf]  ;;  %v15569_v21 = vld [vmem:[#allocation7 + $0x17f4] sm:$0xf0] }
 0x10b   : > { %5880 = vmatpush.bf16.msra.mxu0 %v10258_v39  ;;  %v14894_v39 = vld [vmem:[#allocation7 + $0x2e4] sm:$0xf]  ;;  %v5663_v49 = vadd.f32 %v16606_v33, %v5650_v35  ;;  %v15587_v33 = vld [vmem:[#allocation7 + $0x1884] sm:$0xf0]  ;;  %v12561_v35 = vld [vmem:[#allocation7 + $0x12a0] sm:$0xf] }
 0x10c   : > { %5893 = vmatpush.bf16.msra.mxu1 %v10834_v42  ;;  %v11123_v42 = vld [vmem:[#allocation7 + $0x7a8] sm:$0xf0]  ;;  %v5598_v45 = vadd.f32 %v16590_v36, %v5585_v26  ;;  %v10550_v16 = vor.u32 %v14894_v39, %v10547_v40  ;;  %v12705_v36 = vld [vmem:[#allocation7 + $0x13c0] sm:$0xf]  ;;  %v13282_v11 = vor.u32 %v15587_v33, %v13281_v0  ;;  %v14984_v26 = vld [vmem:[#allocation7 + $0x5b4] sm:$0xf] }
 0x10d   : > { %5906 = vmatpush.bf16.msra.mxu2 %v11410_v43  ;;  %v13426_v43 = vor.u32 %v15623_v34, %v13425_v31  ;;  %v11126_v51 = vor.u32 %v15038_v41, %v11123_v42  ;;  %v12706_v9 = vor.u32 %v15443_v63, %v12705_v36  ;;  %v13210_v34 = vor.u32 %v15569_v21, %v13209_v19  ;;  %v15407_v40 = vld [vmem:[#allocation7 + $0x12e4] sm:$0xf0]  ;;  %v13137_v41 = vld [vmem:[#allocation7 + $0x1720] sm:$0xf]  ;;  %v12419_v63 = vld [vmem:[#allocation7 + $0x11c8] sm:$0xf0] }
 0x10e   : > { %5919 = vmatpush.bf16.msra.mxu3 %v11986_v47  ;;  %v13353_v47 = vld [vmem:[#allocation7 + $0x18d0] sm:$0xf]  ;;  %v5611_v59 = vadd.f32 %v16592_v14, %v5598_v45  ;;  %v15551_v42 = vld [vmem:[#allocation7 + $0x1764] sm:$0xf0]  ;;  %v14822_v45 = vld [vmem:[#allocation7 + $0xa4] sm:$0xf] }
 0x10f   : > { %5881 = vmatpush.bf16.msra.mxu0 %v10186_v55  ;;  %v11051_v55 = vld [vmem:[#allocation7 + $0x718] sm:$0xf0]  ;;  %v13354_v58 = vor.u32 %v15605_v48, %v13353_v47  ;;  %v12633_v14 = vld [vmem:[#allocation7 + $0x1330] sm:$0xf]  ;;  %v14966_v47 = vld [vmem:[#allocation7 + $0x524] sm:$0xf] }
 0x110   : > { %5894 = vmatpush.bf16.msra.mxu1 %v10762_v61  ;;  %v5675_v61 = vpop.f32.mrf.mxu0  ;;  %v5624_v12 = vadd.f32 %v16598_v50, %v5611_v59  ;;  %v10835_v48 = vld [vmem:[#allocation7 + $0x568] sm:$0xf0]  ;;  %v15218_v59 = vld [vmem:[#allocation7 + $0xd04] sm:$0xf]  ;;  %v10763_v5 = vld [vmem:[#allocation7 + $0x4d8] sm:$0xf0] }
 0x111   : > { %5907 = vmatpush.bf16.msra.mxu2 %v11338_v62  ;;  %v5688_v62 = vpop.f32.mrf.mxu1  ;;  %v10838_v36 = vor.u32 %v14966_v47, %v10835_v48  ;;  %v15506_v0 = vld [vmem:[#allocation7 + $0x1604] sm:$0xf]  ;;  %v12995_v33 = vld [vmem:[#allocation7 + $0x1648] sm:$0xf0]  ;;  %v15344_v19 = vld [vmem:[#allocation7 + $0x10f4] sm:$0xf]  ;;  %v10766_v21 = vor.u32 %v14948_v3, %v10763_v5 }
 0x112   : > { %5920 = vmatpush.bf16.msra.mxu3 %v11914_v8  ;;  %5882 = vmatmul.bf16.vlgmr.msra.gmra.mxu0 %v16552_v10  ;;  %v5637_v50 = vadd.f32 %v16600_v56, %v5624_v12  ;;  %v13138_v56 = vor.u32 %v15551_v42, %v13137_v41  ;;  %v12998_v12 = vor.u32 %v15506_v0, %v12995_v33  ;;  %v15308_v47 = vld [vmem:[#allocation7 + $0xfd4] sm:$0xf]  ;;  %v12203_v48 = vld [vmem:[#allocation7 + $0x1018] sm:$0xf0]  ;;  %v13283_v3 = vld [vmem:[#allocation7 + $0x1888] sm:$0xf0] }
 0x113   : > { %5926 = vmatpush.bf16.msrb.mxu0 %v12994_v1  ;;  %5895 = vmatmul.bf16.vlgmr.msra.gmra.mxu1 %v16557_v20  ;;  %v5676_v1 = vadd.f32 %v5675_v61, %v5663_v49  ;;  %v12489_v49 = vld [vmem:[#allocation7 + $0x1210] sm:$0xf]  ;;  %v15362_v61 = vld [vmem:[#allocation7 + $0x1184] sm:$0xf] }
 0x114   : > { %5939 = vmatpush.bf16.msrb.mxu1 %v13570_v2  ;;  %5908 = vmatmul.bf16.vlgmr.msra.gmra.mxu2 %v16549_v4  ;;  %v11054_v2 = vor.u32 %v15020_v54, %v11051_v55  ;;  %v15533_v54 = vld [vmem:[#allocation7 + $0x16d4] sm:$0xf0] }
 0x115   : > { %5952 = vmatpush.bf16.msrb.mxu2 %v10694_v7  ;;  %5921 = vmatmul.bf16.vlgmr.msra.gmra.mxu3 %v16561_v38  ;;  %v10979_v7 = vld [vmem:[#allocation7 + $0x688] sm:$0xf0]  ;;  %v5689_v8 = vadd.f32 %v5688_v62, %v5676_v1  ;;  %v12490_v1 = vor.u32 %v15389_v52, %v12489_v49  ;;  %v15452_v49 = vld [vmem:[#allocation7 + $0x1454] sm:$0xf] }
 0x116   : > { %5965 = vmatpush.bf16.msrb.mxu3 %v11270_v18  ;;  %v15425_v18 = vld [vmem:[#allocation7 + $0x1374] sm:$0xf0]  ;;  %v10982_v23 = vor.u32 %v15002_v6, %v10979_v7 }
 0x117   : > { %5927 = vmatpush.bf16.msrb.mxu0 %v12922_v24  ;;  %v5701_v22 = vpop.f32.mrf.mxu2  ;;  %v14840_v24 = vld [vmem:[#allocation7 + $0x134] sm:$0xf]  ;;  %v12634_v31 = vor.u32 %v15425_v18, %v12633_v14  ;;  %v12422_v14 = vor.u32 %v15362_v61, %v12419_v63  ;;  %v11771_v18 = vld [vmem:[#allocation7 + $0xcb8] sm:$0xf0]  ;;  %v15434_v61 = vld [vmem:[#allocation7 + $0x13c4] sm:$0xf] }
 0x118   : > { %5940 = vmatpush.bf16.msrb.mxu1 %v13498_v25  ;;  %v10331_v25 = vld [vmem:[#allocation7 + $0x178] sm:$0xf0]  ;;  %v5702_v17 = vadd.f32 %v5701_v22, %v5689_v8  ;;  %v5714_v29 = vpop.f32.mrf.mxu3 }
 0x119   : > { %5953 = vmatpush.bf16.msrb.mxu2 %v10622_v27  ;;  %v10907_v27 = vld [vmem:[#allocation7 + $0x5f8] sm:$0xf0]  ;;  %v10334_v39 = vor.u32 %v14840_v24, %v10331_v25 }
 0x11a   : > { %5966 = vmatpush.bf16.msrb.mxu3 %v11198_v37  ;;  %v5715_v37 = vadd.f32 %v5714_v29, %v5702_v17  ;;  %v10910_v44 = vor.u32 %v14984_v26, %v10907_v27  ;;  %v12347_v22 = vld [vmem:[#allocation7 + $0x1138] sm:$0xf0]  ;;  %v15632_v26 = vld [vmem:[#allocation7 + $0x19f4] sm:$0xf] }
 0x11b   : > { %5928 = vmatpush.bf16.msrb.mxu0 %v12850_v28  ;;  %v5677_v28 = vpop.f32.mrf.mxu0  ;;  %v12923_v24 = vld [vmem:[#allocation7 + $0x15b8] sm:$0xf0]  ;;  %v12350_v29 = vor.u32 %v15344_v19, %v12347_v22 }
 0x11c   : > { %5941 = vmatpush.bf16.msrb.mxu1 %v13426_v43  ;;  %v5690_v43 = vpop.f32.mrf.mxu1  ;;  %v6966_v46 = vpack.c.bf16 %v5715_v37, %v5637_v50  ;;  %v13499_v27 = vld [vmem:[#allocation7 + $0x1a38] sm:$0xf0]  ;;  %v15326_v50 = vld [vmem:[#allocation7 + $0x1064] sm:$0xf]  ;;  %v12275_v37 = vld [vmem:[#allocation7 + $0x10a8] sm:$0xf0] }
 0x11d   : > { %5954 = vmatpush.bf16.msrb.mxu2 %v10550_v16  ;;  %v10259_v16 = vld [vmem:[#allocation7 + $0xe8] sm:$0xf0]  ;;  %v13502_v41 = vor.u32 %v15632_v26, %v13499_v27  ;;  %v15614_v28 = vld [vmem:[#allocation7 + $0x1964] sm:$0xf]  ;;  %v13211_v22 = vld [vmem:[#allocation7 + $0x17f8] sm:$0xf0] }
 0x11e   : > { %5967 = vmatpush.bf16.msrb.mxu3 %v11126_v51  ;;  %v12562_v51 = vor.u32 %v15407_v40, %v12561_v35  ;;  %6975 = vst [vmem:[#allocation2] sm:$0xff] %v6966_v46  ;;  %v10262_v55 = vor.u32 %v14822_v45, %v10259_v16  ;;  %v11699_v35 = vld [vmem:[#allocation7 + $0xc28] sm:$0xf0]  ;;  %v15164_v16 = vld [vmem:[#allocation7 + $0xb54] sm:$0xf] }
 0x11f   : > { %5929 = vmatpush.bf16.msrb.mxu0 %v12778_v57  ;;  %v14804_v57 = vld [vmem:[#allocation7 + $0x14] sm:$0xf]  ;;  %v5703_v62 = vpop.f32.mrf.mxu2  ;;  %v12851_v40 = vld [vmem:[#allocation7 + $0x1528] sm:$0xf0]  ;;  %v11627_v46 = vld [vmem:[#allocation7 + $0xb98] sm:$0xf0] }
 0x120   : > { %5942 = vmatpush.bf16.msrb.mxu1 %v13354_v58  ;;  %v10187_v58 = vld [vmem:[#allocation7 + $0x58] sm:$0xf0]  ;;  %v5716_v6 = vpop.f32.mrf.mxu3  ;;  %v13427_v43 = vld [vmem:[#allocation7 + $0x19a8] sm:$0xf0]  ;;  %v11630_v52 = vor.u32 %v15164_v16, %v11627_v46  ;;  %v15254_v26 = vld [vmem:[#allocation7 + $0xe24] sm:$0xf] }
 0x121   : > { %5955 = vmatpush.bf16.msrb.mxu2 %v10478_v60  ;;  %v11843_v60 = vld [vmem:[#allocation7 + $0xd48] sm:$0xf0]  ;;  %v10190_v7 = vor.u32 %v14804_v57, %v10187_v58  ;;  %v15146_v58 = vld [vmem:[#allocation7 + $0xac4] sm:$0xf]  ;;  %v11915_v16 = vld [vmem:[#allocation7 + $0xdd8] sm:$0xf0] }
 0x122   : > { %5968 = vmatpush.bf16.msrb.mxu3 %v11054_v2  ;;  %v13066_v2 = vor.u32 %v15533_v54, %v13065_v53  ;;  %v11846_v8 = vor.u32 %v15218_v59, %v11843_v60  ;;  %v15596_v53 = vld [vmem:[#allocation7 + $0x18d4] sm:$0xf]  ;;  %v13355_v54 = vld [vmem:[#allocation7 + $0x1918] sm:$0xf0]  ;;  %v15290_v59 = vld [vmem:[#allocation7 + $0xf44] sm:$0xf] }
 0x123   : > { %5930 = vmatpush.bf16.msrb.mxu0 %v12706_v9  ;;  %v15650_v9 = vld [vmem:[#allocation7 + $0x1a84] sm:$0xf]  ;;  %v12131_v60 = vld [vmem:[#allocation7 + $0xf88] sm:$0xf0]  ;;  %v13358_v33 = vor.u32 %v15596_v53, %v13355_v54  ;;  %v15380_v46 = vld [vmem:[#allocation7 + $0x1214] sm:$0xf] }
 0x124   : > { %5943 = vmatpush.bf16.msrb.mxu1 %v13282_v11  ;;  %v13571_v11 = vld [vmem:[#allocation7 + $0x1ac8] sm:$0xf0]  ;;  %v12134_v5 = vor.u32 %v15290_v59, %v12131_v60  ;;  %v11849_v53 = vld [vmem:[#allocation7 + $0xd08] sm:$0xf] }
 0x125   : > { %5956 = vmatpush.bf16.msrb.mxu2 %v10406_v15  ;;  %v15200_v15 = vld [vmem:[#allocation7 + $0xc74] sm:$0xf]  ;;  %v13574_v25 = vor.u32 %v15650_v9, %v13571_v11  ;;  %v12707_v62 = vld [vmem:[#allocation7 + $0x1408] sm:$0xf0]  ;;  %v12059_v11 = vld [vmem:[#allocation7 + $0xef8] sm:$0xf0] }
 0x126   : > { %5969 = vmatpush.bf16.msrb.mxu3 %v10982_v23  ;;  %v15488_v23 = vld [vmem:[#allocation7 + $0x1574] sm:$0xf]  ;;  %v11774_v17 = vor.u32 %v15200_v15, %v11771_v18  ;;  %v12710_v6 = vor.u32 %v15434_v61, %v12707_v62  ;;  %v11987_v27 = vld [vmem:[#allocation7 + $0xe68] sm:$0xf0]  ;;  %v12425_v61 = vld [vmem:[#allocation7 + $0x1188] sm:$0xf] }
 0x127   : > { %5931 = vmatpush.bf16.msrb.mxu0 %v12634_v31  ;;  %v12926_v31 = vor.u32 %v15488_v23, %v12923_v24  ;;  %v15272_v9 = vld [vmem:[#allocation7 + $0xeb4] sm:$0xf]  ;;  %v15372_v62 = vld [vmem:[#allocation7 + $0x11cc] sm:$0xf0] }
 0x128   : > { %5944 = vmatpush.bf16.msrb.mxu1 %v13210_v34  ;;  %v15182_v34 = vld [vmem:[#allocation7 + $0xbe4] sm:$0xf]  ;;  %v12062_v23 = vor.u32 %v15272_v9, %v12059_v11  ;;  %v12426_v9 = vor.u32 %v15372_v62, %v12425_v61  ;;  %v15066_v11 = vld [vmem:[#allocation7 + $0x83c] sm:$0xf0]  ;;  %v15300_v61 = vld [vmem:[#allocation7 + $0xf8c] sm:$0xf0] }
 0x129   : > { %5957 = vmatpush.bf16.msrb.mxu2 %v10334_v39  ;;  %v15470_v39 = vld [vmem:[#allocation7 + $0x14e4] sm:$0xf]  ;;  %v11702_v42 = vor.u32 %v15182_v34, %v11699_v35 }
 0x12a   : > { %5970 = vmatpush.bf16.msrb.mxu3 %v10910_v44  ;;  %v12278_v44 = vor.u32 %v15326_v50, %v12275_v37  ;;  %v12854_v45 = vor.u32 %v15470_v39, %v12851_v40  ;;  %v15542_v37 = vld [vmem:[#allocation7 + $0x1724] sm:$0xf] }
 0x12b   : > { %5932 = vmatpush.bf16.msrb.mxu0 %v12562_v51  ;;  %v12779_v51 = vld [vmem:[#allocation7 + $0x1498] sm:$0xf0] }
 0x12c   : > { %5945 = vmatpush.bf16.msrb.mxu1 %v13138_v56  ;;  %v13430_v56 = vor.u32 %v15614_v28, %v13427_v43  ;;  %v12782_v57 = vor.u32 %v15452_v49, %v12779_v51  ;;  %v11339_v28 = vld [vmem:[#allocation7 + $0x958] sm:$0xf0]  ;;  %v11990_v43 = vor.u32 %v15254_v26, %v11987_v27  ;;  %v14940_v49 = vld [vmem:[#allocation7 + $0x44c] sm:$0xf0] }
 0x12d   : > { %5958 = vmatpush.bf16.msrb.mxu2 %v10262_v55  ;;  %v12206_v55 = vor.u32 %v15308_v47, %v12203_v48  ;;  %v12491_v47 = vld [vmem:[#allocation7 + $0x1258] sm:$0xf0]  ;;  %v10697_v48 = vld [vmem:[#allocation7 + $0x408] sm:$0xf]  ;;  %v15048_v27 = vld [vmem:[#allocation7 + $0x7ac] sm:$0xf0] }
 0x12e   : > { %5971 = vmatpush.bf16.msrb.mxu3 %v10838_v36  ;;  %v11555_v36 = vld [vmem:[#allocation7 + $0xb08] sm:$0xf0]  ;;  %v12494_v60 = vor.u32 %v15380_v46, %v12491_v47  ;;  %v12209_v46 = vld [vmem:[#allocation7 + $0xfd8] sm:$0xf]  ;;  %v15318_v47 = vld [vmem:[#allocation7 + $0x101c] sm:$0xf0] }
 0x12f   : > { %5933 = vmatpush.bf16.msrb.mxu0 %v12490_v1  ;;  %v16626_v63 = vpop.f32.mrf.mxu0  ;;  %v11558_v1 = vor.u32 %v15146_v58, %v11555_v36  ;;  %v15524_v58 = vld [vmem:[#allocation7 + $0x1694] sm:$0xf]  ;;  %v13067_v36 = vld [vmem:[#allocation7 + $0x16d8] sm:$0xf0] }
 0x130   : > { %5946 = vmatpush.bf16.msrb.mxu1 %v13066_v2  ;;  %v16628_v0 = vpop.f32.mrf.mxu1  ;;  %v15578_v2 = vld [vmem:[#allocation7 + $0x1844] sm:$0xf] }
 0x131   : > { %5959 = vmatpush.bf16.msrb.mxu2 %v10190_v7  ;;  %v15128_v7 = vld [vmem:[#allocation7 + $0xa34] sm:$0xf]  ;;  %v13286_v15 = vor.u32 %v15578_v2, %v13283_v3  ;;  %v13070_v3 = vor.u32 %v15524_v58, %v13067_v36  ;;  %v15012_v58 = vld [vmem:[#allocation7 + $0x68c] sm:$0xf0]  ;;  %v11561_v36 = vld [vmem:[#allocation7 + $0xac8] sm:$0xf] }
 0x132   : > { %5972 = vmatpush.bf16.msrb.mxu3 %v10766_v21  ;;  %5934 = vmatmul.bf16.vlgmr.msrb.gmra.mxu0 %v16566_v30  ;;  %v15560_v21 = vld [vmem:[#allocation7 + $0x17b4] sm:$0xf] }
 0x133   : > { %5978 = vmatpush.bf16.msra.mxu0 %v11846_v8  ;;  %5947 = vmatmul.bf16.vlgmr.msrb.gmra.mxu1 %v16568_v32  ;;  %v11483_v8 = vld [vmem:[#allocation7 + $0xa78] sm:$0xf0]  ;;  %v13214_v50 = vor.u32 %v15560_v21, %v13211_v22 }
 0x134   : > { %5991 = vmatpush.bf16.msra.mxu1 %v12422_v14  ;;  %5960 = vmatmul.bf16.vlgmr.msrb.gmra.mxu2 %v16552_v10  ;;  %v15416_v14 = vld [vmem:[#allocation7 + $0x1334] sm:$0xf]  ;;  %v11486_v19 = vor.u32 %v15128_v7, %v11483_v8  ;;  %v11201_v7 = vld [vmem:[#allocation7 + $0x7f8] sm:$0xf] }
 0x135   : > { %6004 = vmatpush.bf16.msra.mxu2 %v12998_v12  ;;  %5973 = vmatmul.bf16.vlgmr.msrb.gmra.mxu3 %v16557_v20  ;;  %v12635_v12 = vld [vmem:[#allocation7 + $0x1378] sm:$0xf0]  ;;  %v11202_v22 = vor.u32 %v15066_v11, %v11201_v7  ;;  %v14994_v7 = vld [vmem:[#allocation7 + $0x5fc] sm:$0xf0]  ;;  %v12065_v11 = vld [vmem:[#allocation7 + $0xeb8] sm:$0xf] }
 0x136   : > { %6017 = vmatpush.bf16.msra.mxu3 %v13574_v25  ;;  %v12638_v24 = vor.u32 %v15416_v14, %v12635_v12  ;;  %v15110_v25 = vld [vmem:[#allocation7 + $0x9a4] sm:$0xf]  ;;  %v11777_v14 = vld [vmem:[#allocation7 + $0xc78] sm:$0xf]  ;;  %v15210_v12 = vld [vmem:[#allocation7 + $0xcbc] sm:$0xf0] }
 0x137   : > { %5979 = vmatpush.bf16.msra.mxu0 %v11774_v17  ;;  %v16630_v18 = vpop.f32.mrf.mxu2  ;;  %v11411_v17 = vld [vmem:[#allocation7 + $0x9e8] sm:$0xf0]  ;;  %v5729_v34 = vpop.f32.mrf.mxu0 }
 0x138   : > { %5992 = vmatpush.bf16.msra.mxu1 %v12350_v29  ;;  %v15398_v29 = vld [vmem:[#allocation7 + $0x12a4] sm:$0xf]  ;;  %v5742_v35 = vpop.f32.mrf.mxu1  ;;  %v16632_v39 = vpop.f32.mrf.mxu3  ;;  %v11414_v40 = vor.u32 %v15110_v25, %v11411_v17  ;;  %v14904_v25 = vld [vmem:[#allocation7 + $0x32c] sm:$0xf0]  ;;  %v11129_v17 = vld [vmem:[#allocation7 + $0x768] sm:$0xf] }
 0x139   : > { %6005 = vmatpush.bf16.msra.mxu2 %v12926_v31  ;;  %v12563_v31 = vld [vmem:[#allocation7 + $0x12e8] sm:$0xf0]  ;;  %v12281_v34 = vld [vmem:[#allocation7 + $0x1068] sm:$0xf]  ;;  %v15336_v35 = vld [vmem:[#allocation7 + $0x10ac] sm:$0xf0] }
 0x13a   : > { %6018 = vmatpush.bf16.msra.mxu3 %v13502_v41  ;;  %v13139_v41 = vld [vmem:[#allocation7 + $0x1768] sm:$0xf0] }
 0x13b   : > { %5980 = vmatpush.bf16.msra.mxu0 %v11702_v42  ;;  %v15092_v42 = vld [vmem:[#allocation7 + $0x914] sm:$0xf]  ;;  %v13142_v51 = vor.u32 %v15542_v37, %v13139_v41  ;;  %v11130_v37 = vor.u32 %v15048_v27, %v11129_v17  ;;  %v10481_v41 = vld [vmem:[#allocation7 + $0x258] sm:$0xf]  ;;  %v14976_v27 = vld [vmem:[#allocation7 + $0x56c] sm:$0xf0] }
 0x13c   : > { %5993 = vmatpush.bf16.msra.mxu1 %v12278_v44  ;;  %v12566_v44 = vor.u32 %v15398_v29, %v12563_v31  ;;  %v11705_v29 = vld [vmem:[#allocation7 + $0xbe8] sm:$0xf]  ;;  %v15192_v31 = vld [vmem:[#allocation7 + $0xc2c] sm:$0xf0] }
 0x13d   : > { %6006 = vmatpush.bf16.msra.mxu2 %v12854_v45  ;;  %v15236_v45 = vld [vmem:[#allocation7 + $0xd94] sm:$0xf] }
 0x13e   : > { %6019 = vmatpush.bf16.msra.mxu3 %v13430_v56  ;;  %v11273_v56 = vld [vmem:[#allocation7 + $0x888] sm:$0xf]  ;;  %v11918_v59 = vor.u32 %v15236_v45, %v11915_v16  ;;  %v11633_v45 = vld [vmem:[#allocation7 + $0xb58] sm:$0xf]  ;;  %v15174_v16 = vld [vmem:[#allocation7 + $0xb9c] sm:$0xf0] }
 0x13f   : > { %5981 = vmatpush.bf16.msra.mxu0 %v11630_v52  ;;  %v15084_v52 = vld [vmem:[#allocation7 + $0x8cc] sm:$0xf0]  ;;  %v5755_v54 = vpop.f32.mrf.mxu2 }
 0x140   : > { %5994 = vmatpush.bf16.msra.mxu1 %v12206_v55  ;;  %v11342_v55 = vor.u32 %v15092_v42, %v11339_v28  ;;  %v5768_v8 = vpop.f32.mrf.mxu3  ;;  %v14886_v42 = vld [vmem:[#allocation7 + $0x29c] sm:$0xf0]  ;;  %v11057_v28 = vld [vmem:[#allocation7 + $0x6d8] sm:$0xf]  ;;  %v10985_v54 = vld [vmem:[#allocation7 + $0x648] sm:$0xf] }
 0x141   : > { %6007 = vmatpush.bf16.msra.mxu2 %v12782_v57  ;;  %v15228_v57 = vld [vmem:[#allocation7 + $0xd4c] sm:$0xf0]  ;;  %v11489_v8 = vld [vmem:[#allocation7 + $0xa38] sm:$0xf] }
 0x142   : > { %6020 = vmatpush.bf16.msra.mxu3 %v13358_v33  ;;  %v10698_v33 = vor.u32 %v14940_v49, %v10697_v48  ;;  %v11850_v2 = vor.u32 %v15228_v57, %v11849_v53  ;;  %v10482_v48 = vor.u32 %v14886_v42, %v10481_v41  ;;  %v14868_v53 = vld [vmem:[#allocation7 + $0x20c] sm:$0xf0]  ;;  %v12210_v57 = vor.u32 %v15318_v47, %v12209_v46  ;;  %v10193_v41 = vld [vmem:[#allocation7 + $0x18] sm:$0xf]  ;;  %v14814_v42 = vld [vmem:[#allocation7 + $0x5c] sm:$0xf0] }
 0x143   : > { %5982 = vmatpush.bf16.msra.mxu0 %v11558_v1  ;;  %v11274_v1 = vor.u32 %v15084_v52, %v11273_v56  ;;  %v11634_v56 = vor.u32 %v15174_v16, %v11633_v45  ;;  %v10409_v52 = vld [vmem:[#allocation7 + $0x1c8] sm:$0xf]  ;;  %v14958_v45 = vld [vmem:[#allocation7 + $0x4dc] sm:$0xf0]  ;;  %v11345_v16 = vld [vmem:[#allocation7 + $0x918] sm:$0xf] }
 0x144   : > { %5995 = vmatpush.bf16.msra.mxu1 %v12134_v5  ;;  %v10625_v5 = vld [vmem:[#allocation7 + $0x378] sm:$0xf]  ;;  %v10410_v62 = vor.u32 %v14868_v53, %v10409_v52  ;;  %v15102_v47 = vld [vmem:[#allocation7 + $0x95c] sm:$0xf0]  ;;  %v15660_v52 = vld [vmem:[#allocation7 + $0x1acc] sm:$0xf0] }
 0x145   : > { %6008 = vmatpush.bf16.msra.mxu2 %v12710_v6  ;;  %v14922_v6 = vld [vmem:[#allocation7 + $0x3bc] sm:$0xf0]  ;;  %v14931_v53 = vld [vmem:[#allocation7 + $0x40c] sm:$0xf] }
 0x146   : > { %6021 = vmatpush.bf16.msra.mxu3 %v13286_v15  ;;  %v12353_v15 = vld [vmem:[#allocation7 + $0x10f8] sm:$0xf]  ;;  %v10626_v21 = vor.u32 %v14922_v6, %v10625_v5 }
 0x147   : > { %5983 = vmatpush.bf16.msra.mxu0 %v11486_v19  ;;  %v15354_v19 = vld [vmem:[#allocation7 + $0x113c] sm:$0xf0]  ;;  %v10913_v5 = vld [vmem:[#allocation7 + $0x5b8] sm:$0xf] }
 0x148   : > { %5996 = vmatpush.bf16.msra.mxu1 %v12062_v23  ;;  %v11778_v23 = vor.u32 %v15210_v12, %v11777_v14  ;;  %v12354_v26 = vor.u32 %v15354_v19, %v12353_v15  ;;  %v15282_v14 = vld [vmem:[#allocation7 + $0xefc] sm:$0xf0] }
 0x149   : > { %6009 = vmatpush.bf16.msra.mxu2 %v12638_v24  ;;  %v10553_v24 = vld [vmem:[#allocation7 + $0x2e8] sm:$0xf] }
 0x14a   : > { %6022 = vmatpush.bf16.msra.mxu3 %v13214_v50  ;;  %v10554_v50 = vor.u32 %v14904_v25, %v10553_v24  ;;  %v14832_v24 = vld [vmem:[#allocation7 + $0xec] sm:$0xf0]  ;;  %v10841_v25 = vld [vmem:[#allocation7 + $0x528] sm:$0xf] }
 0x14b   : > { %5984 = vmatpush.bf16.msra.mxu0 %v11414_v40  ;;  %v11706_v40 = vor.u32 %v15192_v31, %v11705_v29  ;;  %v11417_v29 = vld [vmem:[#allocation7 + $0x9a8] sm:$0xf]  ;;  %v15120_v31 = vld [vmem:[#allocation7 + $0x9ec] sm:$0xf0] }
 0x14c   : > { %5997 = vmatpush.bf16.msra.mxu1 %v11990_v43  ;;  %v12282_v43 = vor.u32 %v15336_v35, %v12281_v34  ;;  %v11993_v35 = vld [vmem:[#allocation7 + $0xe28] sm:$0xf] }
 0x14d   : > { %6010 = vmatpush.bf16.msra.mxu2 %v12566_v44  ;;  %v15030_v44 = vld [vmem:[#allocation7 + $0x71c] sm:$0xf0] }
 0x14e   : > { %6023 = vmatpush.bf16.msra.mxu3 %v13142_v51  ;;  %v11058_v51 = vor.u32 %v15030_v44, %v11057_v28  ;;  %v10842_v28 = vor.u32 %v14976_v27, %v10841_v25  ;;  %v10769_v44 = vld [vmem:[#allocation7 + $0x498] sm:$0xf] }
 0x14f   : > { %5985 = vmatpush.bf16.msra.mxu0 %v11342_v55  ;;  %v16638_v49 = vpop.f32.mrf.mxu0 }
 0x150   : > { %5998 = vmatpush.bf16.msra.mxu1 %v11918_v59  ;;  %v16640_v55 = vpop.f32.mrf.mxu1  ;;  %v15156_v59 = vld [vmem:[#allocation7 + $0xb0c] sm:$0xf0] }
 0x151   : > { %6011 = vmatpush.bf16.msra.mxu2 %v12494_v60  ;;  %v12137_v60 = vld [vmem:[#allocation7 + $0xf48] sm:$0xf] }
 0x152   : > { %6024 = vmatpush.bf16.msra.mxu3 %v13070_v3  ;;  %5986 = vmatmul.bf16.vlgmr.msra.gmra.mxu0 %v16549_v4  ;;  %v14850_v3 = vld [vmem:[#allocation7 + $0x17c] sm:$0xf0]  ;;  %v12138_v6 = vor.u32 %v15300_v61, %v12137_v60  ;;  %v10770_v60 = vor.u32 %v14958_v45, %v10769_v44  ;;  %v11346_v61 = vor.u32 %v15102_v47, %v11345_v16  ;;  %v13361_v16 = vld [vmem:[#allocation7 + $0x18d8] sm:$0xf] }
 0x153   : > { %6030 = vmatpush.bf16.msrb.mxu0 %v10698_v33  ;;  %5999 = vmatmul.bf16.vlgmr.msra.gmra.mxu1 %v16561_v38  ;;  %v10986_v33 = vor.u32 %v15012_v58, %v10985_v54  ;;  %v10194_v54 = vor.u32 %v14814_v42, %v10193_v41  ;;  %v11921_v58 = vld [vmem:[#allocation7 + $0xd98] sm:$0xf]  ;;  %v15039_v41 = vld [vmem:[#allocation7 + $0x76c] sm:$0xf]  ;;  %v11131_v42 = vld [vmem:[#allocation7 + $0x7b0] sm:$0xf0] }
 0x154   : > { %6043 = vmatpush.bf16.msrb.mxu1 %v11274_v1  ;;  %6012 = vmatmul.bf16.vlgmr.msra.gmra.mxu2 %v16566_v30  ;;  %v11562_v1 = vor.u32 %v15156_v59, %v11561_v36  ;;  %v15246_v36 = vld [vmem:[#allocation7 + $0xddc] sm:$0xf0] }
 0x155   : > { %6056 = vmatpush.bf16.msrb.mxu2 %v11850_v2  ;;  %6025 = vmatmul.bf16.vlgmr.msra.gmra.mxu3 %v16568_v32  ;;  %v10337_v2 = vld [vmem:[#allocation7 + $0x138] sm:$0xf]  ;;  %v15462_v45 = vld [vmem:[#allocation7 + $0x149c] sm:$0xf0] }
 0x156   : > { %6069 = vmatpush.bf16.msrb.mxu3 %v12426_v9  ;;  %v15138_v9 = vld [vmem:[#allocation7 + $0xa7c] sm:$0xf0]  ;;  %v10338_v12 = vor.u32 %v14850_v3, %v10337_v2  ;;  %v12929_v3 = vld [vmem:[#allocation7 + $0x1578] sm:$0xf] }
 0x157   : > { %6031 = vmatpush.bf16.msrb.mxu0 %v10626_v21  ;;  %v16642_v15 = vpop.f32.mrf.mxu2  ;;  %v5781_v19 = vpop.f32.mrf.mxu0  ;;  %v10914_v21 = vor.u32 %v14994_v7, %v10913_v5 }
 0x158   : > { %6044 = vmatpush.bf16.msrb.mxu1 %v11202_v22  ;;  %v11490_v22 = vor.u32 %v15138_v9, %v11489_v8  ;;  %v5794_v17 = vpop.f32.mrf.mxu1  ;;  %v16644_v34 = vpop.f32.mrf.mxu3  ;;  %v11922_v8 = vor.u32 %v15246_v36, %v11921_v58  ;;  %v15498_v9 = vld [vmem:[#allocation7 + $0x15bc] sm:$0xf0] }
 0x159   : > { %6057 = vmatpush.bf16.msrb.mxu2 %v11778_v23  ;;  %v10265_v23 = vld [vmem:[#allocation7 + $0xa8] sm:$0xf]  ;;  %v12930_v25 = vor.u32 %v15498_v9, %v12929_v3  ;;  %v10411_v3 = vld [vmem:[#allocation7 + $0x210] sm:$0xf0] }
 0x15a   : > { %6070 = vmatpush.bf16.msrb.mxu3 %v12354_v26  ;;  %v12066_v26 = vor.u32 %v15282_v14, %v12065_v11  ;;  %v13505_v11 = vld [vmem:[#allocation7 + $0x19f8] sm:$0xf]  ;;  %v15642_v14 = vld [vmem:[#allocation7 + $0x1a3c] sm:$0xf0] }
 0x15b   : > { %6032 = vmatpush.bf16.msrb.mxu0 %v10554_v50  ;;  %v15264_v50 = vld [vmem:[#allocation7 + $0xe6c] sm:$0xf0]  ;;  %v13506_v17 = vor.u32 %v15642_v14, %v13505_v11 }
 0x15c   : > { %6045 = vmatpush.bf16.msrb.mxu1 %v11130_v37  ;;  %v1208_v37 = vperm.slane %v16602_v13, 2  ;;  %v11994_v46 = vor.u32 %v15264_v50, %v11993_v35 }
 0x15d   : > { %6058 = vmatpush.bf16.msrb.mxu2 %v11706_v40  ;;  %v10266_v40 = vor.u32 %v14832_v24, %v10265_v23  ;;  %v15057_v23 = vld [vmem:[#allocation7 + $0x7fc] sm:$0xf]  ;;  %v11203_v24 = vld [vmem:[#allocation7 + $0x840] sm:$0xf0] }
 0x15e   : > { %6071 = vmatpush.bf16.msrb.mxu3 %v12282_v43  ;;  %v11418_v43 = vor.u32 %v15120_v31, %v11417_v29  ;;  %v15480_v29 = vld [vmem:[#allocation7 + $0x152c] sm:$0xf0]  ;;  %v13433_v31 = vld [vmem:[#allocation7 + $0x1968] sm:$0xf]  ;;  %v11206_v50 = vor.u32 %v15057_v23, %v11203_v24  ;;  %v14841_v24 = vld [vmem:[#allocation7 + $0x13c] sm:$0xf] }
 0x15f   : > { %6033 = vmatpush.bf16.msrb.mxu0 %v10482_v48  ;;  %v13001_v48 = vld [vmem:[#allocation7 + $0x1608] sm:$0xf]  ;;  %v5807_v59 = vpop.f32.mrf.mxu2 }
 0x160   : > { %6046 = vmatpush.bf16.msrb.mxu1 %v11058_v51  ;;  %v15516_v51 = vld [vmem:[#allocation7 + $0x164c] sm:$0xf0]  ;;  %v5820_v5 = vpop.f32.mrf.mxu3 }
 0x161   : > { %6059 = vmatpush.bf16.msrb.mxu2 %v11634_v56  ;;  %v13577_v56 = vld [vmem:[#allocation7 + $0x1a88] sm:$0xf]  ;;  %v15003_v5 = vld [vmem:[#allocation7 + $0x64c] sm:$0xf] }
 0x162   : > { %6072 = vmatpush.bf16.msrb.mxu3 %v12210_v57  ;;  %v10699_v57 = vld [vmem:[#allocation7 + $0x450] sm:$0xf0]  ;;  %v13578_v2 = vor.u32 %v15660_v52, %v13577_v56  ;;  %v10483_v56 = vld [vmem:[#allocation7 + $0x2a0] sm:$0xf0]  ;;  %v15021_v52 = vld [vmem:[#allocation7 + $0x6dc] sm:$0xf] }
 0x163   : > { %6034 = vmatpush.bf16.msrb.mxu0 %v10410_v62  ;;  %v15075_v62 = vld [vmem:[#allocation7 + $0x88c] sm:$0xf]  ;;  %v10702_v7 = vor.u32 %v14931_v53, %v10699_v57  ;;  %v11059_v53 = vld [vmem:[#allocation7 + $0x720] sm:$0xf0] }
 0x164   : > { %6047 = vmatpush.bf16.msrb.mxu1 %v10986_v33  ;;  %v11275_v33 = vld [vmem:[#allocation7 + $0x8d0] sm:$0xf0] }
 0x165   : > { %6060 = vmatpush.bf16.msrb.mxu2 %v11562_v1  ;;  %v13002_v1 = vor.u32 %v15516_v51, %v13001_v48  ;;  %v11278_v19 = vor.u32 %v15075_v62, %v11275_v33  ;;  %v11134_v48 = vor.u32 %v15039_v41, %v11131_v42  ;;  %v14877_v51 = vld [vmem:[#allocation7 + $0x25c] sm:$0xf]  ;;  %v13289_v62 = vld [vmem:[#allocation7 + $0x1848] sm:$0xf]  ;;  %v15552_v41 = vld [vmem:[#allocation7 + $0x176c] sm:$0xf0] }
 0x166   : > { %6073 = vmatpush.bf16.msrb.mxu3 %v12138_v6  ;;  %v5728_v6 = vadd.f32 %v16626_v63, %v1208_v37  ;;  %v12857_v63 = vld [vmem:[#allocation7 + $0x14e8] sm:$0xf]  ;;  %v14895_v37 = vld [vmem:[#allocation7 + $0x2ec] sm:$0xf]  ;;  %v10486_v36 = vor.u32 %v14877_v51, %v10483_v56  ;;  %v13073_v51 = vld [vmem:[#allocation7 + $0x1698] sm:$0xf] }
 0x167   : > { %6035 = vmatpush.bf16.msrb.mxu0 %v10338_v12  ;;  %v1209_v12 = vperm.slane %v16602_v13, 3  ;;  %v15624_v13 = vld [vmem:[#allocation7 + $0x19ac] sm:$0xf0]  ;;  %v15534_v56 = vld [vmem:[#allocation7 + $0x16dc] sm:$0xf0] }
 0x168   : > { %6048 = vmatpush.bf16.msrb.mxu1 %v10914_v21  ;;  %v14913_v21 = vld [vmem:[#allocation7 + $0x37c] sm:$0xf] }
 0x169   : > { %6061 = vmatpush.bf16.msrb.mxu2 %v11490_v22  ;;  %v10627_v22 = vld [vmem:[#allocation7 + $0x3c0] sm:$0xf0]  ;;  %v5806_v35 = vadd.f32 %v16642_v15, %v1209_v12  ;;  %v15426_v12 = vld [vmem:[#allocation7 + $0x137c] sm:$0xf0] }
 0x16a   : > { %6074 = vmatpush.bf16.msrb.mxu3 %v12066_v26  ;;  %v5741_v26 = vadd.f32 %v16628_v0, %v5728_v6  ;;  %v10630_v27 = vor.u32 %v14913_v21, %v10627_v22  ;;  %v12858_v0 = vor.u32 %v15480_v29, %v12857_v63  ;;  %v10987_v6 = vld [vmem:[#allocation7 + $0x690] sm:$0xf0]  ;;  %v15570_v21 = vld [vmem:[#allocation7 + $0x17fc] sm:$0xf0]  ;;  %v14985_v63 = vld [vmem:[#allocation7 + $0x5bc] sm:$0xf] }
 0x16b   : > { %6036 = vmatpush.bf16.msrb.mxu0 %v10266_v40  ;;  %v10555_v40 = vld [vmem:[#allocation7 + $0x330] sm:$0xf0]  ;;  %v5819_v47 = vadd.f32 %v16644_v34, %v5806_v35  ;;  %v15588_v34 = vld [vmem:[#allocation7 + $0x188c] sm:$0xf0]  ;;  %v10990_v23 = vor.u32 %v15003_v5, %v10987_v6 }
 0x16c   : > { %6049 = vmatpush.bf16.msrb.mxu1 %v10842_v28  ;;  %v13434_v28 = vor.u32 %v15624_v13, %v13433_v31  ;;  %v5754_v44 = vadd.f32 %v16630_v18, %v5741_v26  ;;  %v10558_v15 = vor.u32 %v14895_v37, %v10555_v40  ;;  %v12713_v18 = vld [vmem:[#allocation7 + $0x13c8] sm:$0xf]  ;;  %v13290_v9 = vor.u32 %v15588_v34, %v13289_v62  ;;  %v10915_v26 = vld [vmem:[#allocation7 + $0x600] sm:$0xf0]  ;;  %v15408_v37 = vld [vmem:[#allocation7 + $0x12ec] sm:$0xf0] }
 0x16d   : > { %6062 = vmatpush.bf16.msrb.mxu2 %v11418_v43  ;;  %v12785_v43 = vld [vmem:[#allocation7 + $0x1458] sm:$0xf]  ;;  %v12569_v13 = vld [vmem:[#allocation7 + $0x12a8] sm:$0xf]  ;;  %v13003_v62 = vld [vmem:[#allocation7 + $0x1650] sm:$0xf0] }
 0x16e   : > { %6075 = vmatpush.bf16.msrb.mxu3 %v11994_v46  ;;  %v15606_v46 = vld [vmem:[#allocation7 + $0x191c] sm:$0xf0]  ;;  %v5767_v58 = vadd.f32 %v16632_v39, %v5754_v44  ;;  %v12641_v39 = vld [vmem:[#allocation7 + $0x1338] sm:$0xf]  ;;  %v13145_v40 = vld [vmem:[#allocation7 + $0x1728] sm:$0xf] }
 0x16f   : > { %6037 = vmatpush.bf16.msrb.mxu0 %v10194_v54  ;;  %v12786_v54 = vor.u32 %v15462_v45, %v12785_v43  ;;  %v13362_v57 = vor.u32 %v15606_v46, %v13361_v16  ;;  %v5831_v59 = vpop.f32.mrf.mxu0  ;;  %v12642_v29 = vor.u32 %v15426_v12, %v12641_v39  ;;  %v14823_v43 = vld [vmem:[#allocation7 + $0xac] sm:$0xf]  ;;  %v10267_v44 = vld [vmem:[#allocation7 + $0xf0] sm:$0xf0]  ;;  %v12497_v46 = vld [vmem:[#allocation7 + $0x1218] sm:$0xf] }
 0x170   : > { %6050 = vmatpush.bf16.msrb.mxu1 %v10770_v60  ;;  %v5844_v60 = vpop.f32.mrf.mxu1  ;;  %v5832_v33 = vadd.f32 %v5831_v59, %v5819_v47  ;;  %v5780_v11 = vadd.f32 %v16638_v49, %v5767_v58  ;;  %v14967_v45 = vld [vmem:[#allocation7 + $0x52c] sm:$0xf]  ;;  %v10843_v16 = vld [vmem:[#allocation7 + $0x570] sm:$0xf0]  ;;  %v12570_v47 = vor.u32 %v15408_v37, %v12569_v13  ;;  %v15345_v12 = vld [vmem:[#allocation7 + $0x10fc] sm:$0xf] }
 0x171   : > { %6063 = vmatpush.bf16.msrb.mxu2 %v11346_v61  ;;  %v15444_v61 = vld [vmem:[#allocation7 + $0x140c] sm:$0xf0]  ;;  %v11851_v58 = vld [vmem:[#allocation7 + $0xd50] sm:$0xf0]  ;;  %v15327_v13 = vld [vmem:[#allocation7 + $0x106c] sm:$0xf] }
 0x172   : > { %6076 = vmatpush.bf16.msrb.mxu3 %v11922_v8  ;;  %6038 = vmatmul.bf16.vlgmr.msrb.gmra.mxu0 %v16552_v10  ;;  %v12714_v8 = vor.u32 %v15444_v61, %v12713_v18  ;;  %v5793_v49 = vadd.f32 %v16640_v55, %v5780_v11  ;;  %v13146_v55 = vor.u32 %v15552_v41, %v13145_v40  ;;  %v15219_v18 = vld [vmem:[#allocation7 + $0xd0c] sm:$0xf]  ;;  %v15201_v11 = vld [vmem:[#allocation7 + $0xc7c] sm:$0xf] }
 0x173   : > { %6082 = vmatpush.bf16.msra.mxu0 %v13002_v1  ;;  %6051 = vmatmul.bf16.vlgmr.msrb.gmra.mxu1 %v16557_v20  ;;  %v11062_v1 = vor.u32 %v15021_v52, %v11059_v53  ;;  %v10270_v52 = vor.u32 %v14823_v43, %v10267_v44  ;;  %v14805_v53 = vld [vmem:[#allocation7 + $0x1c] sm:$0xf]  ;;  %v15507_v61 = vld [vmem:[#allocation7 + $0x160c] sm:$0xf]  ;;  %v11854_v6 = vor.u32 %v15219_v18, %v11851_v58  ;;  %v11635_v44 = vld [vmem:[#allocation7 + $0xba0] sm:$0xf0] }
 0x174   : > { %6095 = vmatpush.bf16.msra.mxu1 %v13578_v2  ;;  %6064 = vmatmul.bf16.vlgmr.msrb.gmra.mxu2 %v16549_v4  ;;  %v14859_v2 = vld [vmem:[#allocation7 + $0x1cc] sm:$0xf]  ;;  %v13006_v39 = vor.u32 %v15507_v61, %v13003_v62  ;;  %v15165_v43 = vld [vmem:[#allocation7 + $0xb5c] sm:$0xf]  ;;  %v12139_v18 = vld [vmem:[#allocation7 + $0xf90] sm:$0xf0] }
 0x175   : > { %6108 = vmatpush.bf16.msra.mxu2 %v10702_v7  ;;  %6077 = vmatmul.bf16.vlgmr.msrb.gmra.mxu3 %v16561_v38  ;;  %v5845_v7 = vadd.f32 %v5844_v60, %v5832_v33  ;;  %v10414_v14 = vor.u32 %v14859_v2, %v10411_v3  ;;  %v12427_v60 = vld [vmem:[#allocation7 + $0x11d0] sm:$0xf0]  ;;  %v13074_v33 = vor.u32 %v15534_v56, %v13073_v51  ;;  %v10771_v2 = vld [vmem:[#allocation7 + $0x4e0] sm:$0xf0]  ;;  %v15615_v41 = vld [vmem:[#allocation7 + $0x196c] sm:$0xf] }
 0x176   : > { %6121 = vmatpush.bf16.msra.mxu3 %v11278_v19  ;;  %v13217_v19 = vld [vmem:[#allocation7 + $0x17b8] sm:$0xf]  ;;  %v13363_v51 = vld [vmem:[#allocation7 + $0x1920] sm:$0xf0]  ;;  %v15435_v58 = vld [vmem:[#allocation7 + $0x13cc] sm:$0xf] }
 0x177   : > { %6083 = vmatpush.bf16.msra.mxu0 %v12930_v25  ;;  %v5857_v22 = vpop.f32.mrf.mxu2  ;;  %v10339_v25 = vld [vmem:[#allocation7 + $0x180] sm:$0xf0]  ;;  %v13218_v31 = vor.u32 %v15570_v21, %v13217_v19  ;;  %v5833_v42 = vpop.f32.mrf.mxu0 }
 0x178   : > { %6096 = vmatpush.bf16.msra.mxu1 %v13506_v17  ;;  %v5858_v17 = vadd.f32 %v5857_v22, %v5845_v7  ;;  %v15651_v7 = vld [vmem:[#allocation7 + $0x1a8c] sm:$0xf]  ;;  %v12355_v21 = vld [vmem:[#allocation7 + $0x1140] sm:$0xf0]  ;;  %v15489_v22 = vld [vmem:[#allocation7 + $0x157c] sm:$0xf] }
 0x179   : > { %6109 = vmatpush.bf16.msra.mxu2 %v10630_v27  ;;  %v5870_v27 = vpop.f32.mrf.mxu3  ;;  %v13435_v42 = vld [vmem:[#allocation7 + $0x19b0] sm:$0xf0] }
 0x17a   : > { %6122 = vmatpush.bf16.msra.mxu3 %v11206_v50  ;;  %v5871_v35 = vadd.f32 %v5870_v27, %v5858_v17  ;;  %v10342_v50 = vor.u32 %v14841_v24, %v10339_v25  ;;  %v15633_v17 = vld [vmem:[#allocation7 + $0x19fc] sm:$0xf] }
 0x17b   : > { %6084 = vmatpush.bf16.msra.mxu0 %v12858_v0  ;;  %v5846_v0 = vpop.f32.mrf.mxu1 }
 0x17c   : > { %6097 = vmatpush.bf16.msra.mxu1 %v13434_v28  ;;  %v10918_v28 = vor.u32 %v14985_v63, %v10915_v26  ;;  %v13507_v63 = vld [vmem:[#allocation7 + $0x1a40] sm:$0xf0]  ;;  %v12358_v26 = vor.u32 %v15345_v12, %v12355_v21  ;;  %v15561_v12 = vld [vmem:[#allocation7 + $0x17bc] sm:$0xf] }
 0x17d   : > { %6110 = vmatpush.bf16.msra.mxu2 %v10558_v15  ;;  %v6967_v15 = vpack.c.bf16 %v5871_v35, %v5793_v49  ;;  %v12283_v49 = vld [vmem:[#allocation7 + $0x10b0] sm:$0xf0]  ;;  %v15471_v35 = vld [vmem:[#allocation7 + $0x14ec] sm:$0xf]  ;;  %v13510_v37 = vor.u32 %v15633_v17, %v13507_v63 }
 0x17e   : > { %6123 = vmatpush.bf16.msra.mxu3 %v11134_v48  ;;  %v15390_v48 = vld [vmem:[#allocation7 + $0x125c] sm:$0xf0]  ;;  %v12286_v0 = vor.u32 %v15327_v13, %v12283_v49  ;;  %v11995_v17 = vld [vmem:[#allocation7 + $0xe70] sm:$0xf0]  ;;  %v15399_v63 = vld [vmem:[#allocation7 + $0x12ac] sm:$0xf] }
 0x17f   : > { %6085 = vmatpush.bf16.msra.mxu0 %v12786_v54  ;;  %6976 = vst [vmem:[#allocation2 + $0x8] sm:$0xff] %v6967_v15  ;;  %v10195_v54 = vld [vmem:[#allocation7 + $0x60] sm:$0xf0]  ;;  %v5859_v59 = vpop.f32.mrf.mxu2  ;;  %v12498_v34 = vor.u32 %v15390_v48, %v12497_v46  ;;  %v15309_v15 = vld [vmem:[#allocation7 + $0xfdc] sm:$0xf] }
 0x180   : > { %6098 = vmatpush.bf16.msra.mxu1 %v13362_v57  ;;  %v10846_v57 = vor.u32 %v14967_v45, %v10843_v16  ;;  %v10198_v5 = vor.u32 %v14805_v53, %v10195_v54  ;;  %v12211_v45 = vld [vmem:[#allocation7 + $0x1020] sm:$0xf0]  ;;  %v15453_v16 = vld [vmem:[#allocation7 + $0x145c] sm:$0xf]  ;;  %v15147_v53 = vld [vmem:[#allocation7 + $0xacc] sm:$0xf] }
 0x181   : > { %6111 = vmatpush.bf16.msra.mxu2 %v10486_v36  ;;  %v15363_v36 = vld [vmem:[#allocation7 + $0x118c] sm:$0xf]  ;;  %v5872_v3 = vpop.f32.mrf.mxu3  ;;  %v12787_v46 = vld [vmem:[#allocation7 + $0x14a0] sm:$0xf0]  ;;  %v15597_v48 = vld [vmem:[#allocation7 + $0x18dc] sm:$0xf]  ;;  %v12214_v56 = vor.u32 %v15309_v15, %v12211_v45 }
 0x182   : > { %6124 = vmatpush.bf16.msra.mxu3 %v11062_v1  ;;  %v14949_v1 = vld [vmem:[#allocation7 + $0x49c] sm:$0xf]  ;;  %v11563_v54 = vld [vmem:[#allocation7 + $0xb10] sm:$0xf0]  ;;  %v13366_v61 = vor.u32 %v15597_v48, %v13363_v51  ;;  %v15543_v13 = vld [vmem:[#allocation7 + $0x172c] sm:$0xf] }
 0x183   : > { %6086 = vmatpush.bf16.msra.mxu0 %v12714_v8  ;;  %v13579_v8 = vld [vmem:[#allocation7 + $0x1ad0] sm:$0xf0]  ;;  %v10774_v19 = vor.u32 %v14949_v1, %v10771_v2  ;;  %v11566_v62 = vor.u32 %v15147_v53, %v11563_v54  ;;  %v15129_v3 = vld [vmem:[#allocation7 + $0xa3c] sm:$0xf]  ;;  %v10705_v15 = vld [vmem:[#allocation7 + $0x410] sm:$0xf] }
 0x184   : > { %6099 = vmatpush.bf16.msra.mxu1 %v13290_v9  ;;  %v12430_v9 = vor.u32 %v15363_v36, %v12427_v60  ;;  %v13582_v24 = vor.u32 %v15651_v7, %v13579_v8  ;;  %v12715_v36 = vld [vmem:[#allocation7 + $0x1410] sm:$0xf0]  ;;  %v12067_v7 = vld [vmem:[#allocation7 + $0xf00] sm:$0xf0]  ;;  %v15417_v8 = vld [vmem:[#allocation7 + $0x133c] sm:$0xf] }
 0x185   : > { %6112 = vmatpush.bf16.msra.mxu2 %v10414_v14  ;;  %v11779_v14 = vld [vmem:[#allocation7 + $0xcc0] sm:$0xf0]  ;;  %v12718_v2 = vor.u32 %v15435_v58, %v12715_v36  ;;  %v14941_v45 = vld [vmem:[#allocation7 + $0x454] sm:$0xf0] }
 0x186   : > { %6125 = vmatpush.bf16.msra.mxu3 %v10990_v23  ;;  %v12931_v23 = vld [vmem:[#allocation7 + $0x15c0] sm:$0xf0]  ;;  %v11782_v25 = vor.u32 %v15201_v11, %v11779_v14  ;;  %v15373_v58 = vld [vmem:[#allocation7 + $0x11d4] sm:$0xf0]  ;;  %v10706_v36 = vor.u32 %v14941_v45, %v10705_v15 }
 0x187   : > { %6087 = vmatpush.bf16.msra.mxu0 %v12642_v29  ;;  %v12934_v27 = vor.u32 %v15489_v22, %v12931_v23  ;;  %v15183_v29 = vld [vmem:[#allocation7 + $0xbec] sm:$0xf]  ;;  %v13075_v53 = vld [vmem:[#allocation7 + $0x16e0] sm:$0xf0] }
 0x188   : > { %6100 = vmatpush.bf16.msra.mxu1 %v13218_v31  ;;  %v11707_v31 = vld [vmem:[#allocation7 + $0xc30] sm:$0xf0]  ;;  %v15111_v23 = vld [vmem:[#allocation7 + $0x9ac] sm:$0xf] }
 0x189   : > { %6113 = vmatpush.bf16.msra.mxu2 %v10342_v50  ;;  %v12859_v50 = vld [vmem:[#allocation7 + $0x1530] sm:$0xf0]  ;;  %v11710_v40 = vor.u32 %v15183_v29, %v11707_v31 }
 0x18a   : > { %6126 = vmatpush.bf16.msra.mxu3 %v10918_v28  ;;  %v12862_v28 = vor.u32 %v15471_v35, %v12859_v50  ;;  %v13147_v50 = vld [vmem:[#allocation7 + $0x1770] sm:$0xf0] }
 0x18b   : > { %6088 = vmatpush.bf16.msra.mxu0 %v12570_v47  ;;  %v13438_v47 = vor.u32 %v15615_v41, %v13435_v42 }
 0x18c   : > { %6101 = vmatpush.bf16.msra.mxu1 %v13146_v55  ;;  %v11638_v55 = vor.u32 %v15165_v43, %v11635_v44  ;;  %v15381_v43 = vld [vmem:[#allocation7 + $0x121c] sm:$0xf]  ;;  %v12499_v44 = vld [vmem:[#allocation7 + $0x1260] sm:$0xf0] }
 0x18d   : > { %6114 = vmatpush.bf16.msra.mxu2 %v10270_v52  ;;  %v12790_v52 = vor.u32 %v15453_v16, %v12787_v46  ;;  %v13150_v16 = vor.u32 %v15543_v13, %v13147_v50  ;;  %v11281_v46 = vld [vmem:[#allocation7 + $0x890] sm:$0xf]  ;;  %v14887_v50 = vld [vmem:[#allocation7 + $0x2a4] sm:$0xf0] }
 0x18e   : > { %6127 = vmatpush.bf16.msra.mxu3 %v10846_v57  ;;  %v15291_v57 = vld [vmem:[#allocation7 + $0xf4c] sm:$0xf] }
 0x18f   : > { %6089 = vmatpush.bf16.msra.mxu0 %v12498_v34  ;;  %v16664_v59 = vpop.f32.mrf.mxu0  ;;  %v15579_v34 = vld [vmem:[#allocation7 + $0x184c] sm:$0xf]  ;;  %v12142_v1 = vor.u32 %v15291_v57, %v12139_v18  ;;  %v12502_v57 = vor.u32 %v15381_v43, %v12499_v44  ;;  %v12433_v18 = vld [vmem:[#allocation7 + $0x1190] sm:$0xf]  ;;  %v15319_v43 = vld [vmem:[#allocation7 + $0x1024] sm:$0xf0] }
 0x190   : > { %6102 = vmatpush.bf16.msra.mxu1 %v13074_v33  ;;  %v16666_v60 = vpop.f32.mrf.mxu1  ;;  %v13291_v33 = vld [vmem:[#allocation7 + $0x1890] sm:$0xf0] }
 0x191   : > { %6115 = vmatpush.bf16.msra.mxu2 %v10198_v5  ;;  %v11491_v5 = vld [vmem:[#allocation7 + $0xa80] sm:$0xf0] }
 0x192   : > { %6128 = vmatpush.bf16.msra.mxu3 %v10774_v19  ;;  %6090 = vmatmul.bf16.vlgmr.msra.gmra.mxu0 %v16566_v30  ;;  %v11494_v14 = vor.u32 %v15129_v3, %v11491_v5  ;;  %v13219_v19 = vld [vmem:[#allocation7 + $0x1800] sm:$0xf0]  ;;  %v12434_v5 = vor.u32 %v15373_v58, %v12433_v18 }
 0x193   : > { %6134 = vmatpush.bf16.msrb.mxu0 %v11854_v6  ;;  %6103 = vmatmul.bf16.vlgmr.msra.gmra.mxu1 %v16568_v32  ;;  %v15273_v6 = vld [vmem:[#allocation7 + $0xebc] sm:$0xf]  ;;  %v13222_v31 = vor.u32 %v15561_v12, %v13219_v19 }
 0x194   : > { %6147 = vmatpush.bf16.msrb.mxu1 %v12430_v9  ;;  %6116 = vmatmul.bf16.vlgmr.msra.gmra.mxu2 %v16552_v10  ;;  %v12643_v9 = vld [vmem:[#allocation7 + $0x1380] sm:$0xf0]  ;;  %v12070_v21 = vor.u32 %v15273_v6, %v12067_v7  ;;  %v15067_v6 = vld [vmem:[#allocation7 + $0x844] sm:$0xf0]  ;;  %v11785_v7 = vld [vmem:[#allocation7 + $0xc80] sm:$0xf] }
 0x195   : > { %6160 = vmatpush.bf16.msrb.mxu2 %v13006_v39  ;;  %6129 = vmatmul.bf16.vlgmr.msra.gmra.mxu3 %v16557_v20  ;;  %v13294_v39 = vor.u32 %v15579_v34, %v13291_v33  ;;  %v12646_v22 = vor.u32 %v15417_v8, %v12643_v9  ;;  %v10633_v33 = vld [vmem:[#allocation7 + $0x380] sm:$0xf]  ;;  %v15211_v8 = vld [vmem:[#allocation7 + $0xcc4] sm:$0xf0] }
 0x196   : > { %6173 = vmatpush.bf16.msrb.mxu3 %v13582_v24  ;;  %v11419_v24 = vld [vmem:[#allocation7 + $0x9f0] sm:$0xf0]  ;;  %v12361_v9 = vld [vmem:[#allocation7 + $0x1100] sm:$0xf]  ;;  %v11786_v19 = vor.u32 %v15211_v8, %v11785_v7 }
 0x197   : > { %6135 = vmatpush.bf16.msrb.mxu0 %v11782_v25  ;;  %v16668_v11 = vpop.f32.mrf.mxu2  ;;  %v15255_v25 = vld [vmem:[#allocation7 + $0xe2c] sm:$0xf]  ;;  %v11422_v35 = vor.u32 %v15111_v23, %v11419_v24  ;;  %v11137_v23 = vld [vmem:[#allocation7 + $0x770] sm:$0xf] }
 0x198   : > { %6148 = vmatpush.bf16.msrb.mxu1 %v12358_v26  ;;  %v12571_v26 = vld [vmem:[#allocation7 + $0x12f0] sm:$0xf0]  ;;  %v5898_v29 = vpop.f32.mrf.mxu1  ;;  %v16670_v49 = vpop.f32.mrf.mxu3  ;;  %v11998_v41 = vor.u32 %v15255_v25, %v11995_v17  ;;  %v15049_v25 = vld [vmem:[#allocation7 + $0x7b4] sm:$0xf0]  ;;  %v11713_v17 = vld [vmem:[#allocation7 + $0xbf0] sm:$0xf] }
 0x199   : > { %6161 = vmatpush.bf16.msrb.mxu2 %v12934_v27  ;;  %v5885_v27 = vpop.f32.mrf.mxu0  ;;  %v12574_v42 = vor.u32 %v15399_v63, %v12571_v26  ;;  %v15193_v63 = vld [vmem:[#allocation7 + $0xc34] sm:$0xf0]  ;;  %v12289_v26 = vld [vmem:[#allocation7 + $0x1070] sm:$0xf] }
 0x19a   : > { %6174 = vmatpush.bf16.msrb.mxu3 %v13510_v37  ;;  %v15093_v37 = vld [vmem:[#allocation7 + $0x91c] sm:$0xf]  ;;  %v15337_v27 = vld [vmem:[#allocation7 + $0x10b4] sm:$0xf0]  ;;  %v11714_v13 = vor.u32 %v15193_v63, %v11713_v17 }
 0x19b   : > { %6136 = vmatpush.bf16.msrb.mxu0 %v11710_v40  ;;  %v11347_v40 = vld [vmem:[#allocation7 + $0x960] sm:$0xf0]  ;;  %v15121_v17 = vld [vmem:[#allocation7 + $0x9f4] sm:$0xf0] }
 0x19c   : > { %6149 = vmatpush.bf16.msrb.mxu1 %v12286_v0  ;;  %v15237_v0 = vld [vmem:[#allocation7 + $0xd9c] sm:$0xf]  ;;  %v11350_v51 = vor.u32 %v15093_v37, %v11347_v40  ;;  %v11065_v37 = vld [vmem:[#allocation7 + $0x6e0] sm:$0xf]  ;;  %v12290_v40 = vor.u32 %v15337_v27, %v12289_v26  ;;  %v12001_v26 = vld [vmem:[#allocation7 + $0xe30] sm:$0xf] }
 0x19d   : > { %6162 = vmatpush.bf16.msrb.mxu2 %v12862_v28  ;;  %v11923_v28 = vld [vmem:[#allocation7 + $0xde0] sm:$0xf0]  ;;  %v15265_v27 = vld [vmem:[#allocation7 + $0xe74] sm:$0xf0] }
 0x19e   : > { %6175 = vmatpush.bf16.msrb.mxu3 %v13438_v47  ;;  %v15085_v47 = vld [vmem:[#allocation7 + $0x8d4] sm:$0xf0]  ;;  %v11926_v54 = vor.u32 %v15237_v0, %v11923_v28  ;;  %v15175_v0 = vld [vmem:[#allocation7 + $0xba4] sm:$0xf0]  ;;  %v12217_v28 = vld [vmem:[#allocation7 + $0xfe0] sm:$0xf] }
 0x19f   : > { %6137 = vmatpush.bf16.msrb.mxu0 %v11638_v55  ;;  %v11857_v55 = vld [vmem:[#allocation7 + $0xd10] sm:$0xf]  ;;  %v5911_v48 = vpop.f32.mrf.mxu2 }
 0x1a0   : > { %6150 = vmatpush.bf16.msrb.mxu1 %v12214_v56  ;;  %v15229_v56 = vld [vmem:[#allocation7 + $0xd54] sm:$0xf0]  ;;  %v5924_v3 = vpop.f32.mrf.mxu3 }
 0x1a1   : > { %6163 = vmatpush.bf16.msrb.mxu2 %v12790_v52  ;;  %v15525_v52 = vld [vmem:[#allocation7 + $0x169c] sm:$0xf]  ;;  %v15139_v3 = vld [vmem:[#allocation7 + $0xa84] sm:$0xf0] }
 0x1a2   : > { %6176 = vmatpush.bf16.msrb.mxu3 %v13366_v61  ;;  %v11282_v61 = vor.u32 %v15085_v47, %v11281_v46  ;;  %v13078_v34 = vor.u32 %v15525_v52, %v13075_v53  ;;  %v10417_v46 = vld [vmem:[#allocation7 + $0x1d0] sm:$0xf]  ;;  %v14869_v47 = vld [vmem:[#allocation7 + $0x214] sm:$0xf0] }
 0x1a3   : > { %6138 = vmatpush.bf16.msrb.mxu0 %v11566_v62  ;;  %v11858_v62 = vor.u32 %v15229_v56, %v11857_v55  ;;  %v10993_v55 = vld [vmem:[#allocation7 + $0x650] sm:$0xf]  ;;  %v15013_v56 = vld [vmem:[#allocation7 + $0x694] sm:$0xf0]  ;;  %v10418_v18 = vor.u32 %v14869_v47, %v10417_v46  ;;  %v14932_v47 = vld [vmem:[#allocation7 + $0x414] sm:$0xf] }
 0x1a4   : > { %6151 = vmatpush.bf16.msrb.mxu1 %v12142_v1  ;;  %v14923_v1 = vld [vmem:[#allocation7 + $0x3c4] sm:$0xf0]  ;;  %v11569_v52 = vld [vmem:[#allocation7 + $0xad0] sm:$0xf]  ;;  %v15157_v53 = vld [vmem:[#allocation7 + $0xb14] sm:$0xf0]  ;;  %v10994_v58 = vor.u32 %v15013_v56, %v10993_v55 }
 0x1a5   : > { %6164 = vmatpush.bf16.msrb.mxu2 %v12718_v2  ;;  %v11209_v2 = vld [vmem:[#allocation7 + $0x800] sm:$0xf]  ;;  %v15661_v46 = vld [vmem:[#allocation7 + $0x1ad4] sm:$0xf0] }
 0x1a6   : > { %6177 = vmatpush.bf16.msrb.mxu3 %v13294_v39  ;;  %v15355_v39 = vld [vmem:[#allocation7 + $0x1144] sm:$0xf0]  ;;  %v11210_v12 = vor.u32 %v15067_v6, %v11209_v2  ;;  %v11497_v2 = vld [vmem:[#allocation7 + $0xa40] sm:$0xf] }
 0x1a7   : > { %6139 = vmatpush.bf16.msrb.mxu0 %v11494_v14  ;;  %v10634_v14 = vor.u32 %v14923_v1, %v10633_v33  ;;  %v12362_v24 = vor.u32 %v15355_v39, %v12361_v9  ;;  %v14995_v1 = vld [vmem:[#allocation7 + $0x604] sm:$0xf0]  ;;  %v11929_v56 = vld [vmem:[#allocation7 + $0xda0] sm:$0xf] }
 0x1a8   : > { %6152 = vmatpush.bf16.msrb.mxu1 %v12070_v21  ;;  %v10561_v21 = vld [vmem:[#allocation7 + $0x2f0] sm:$0xf]  ;;  %v15283_v6 = vld [vmem:[#allocation7 + $0xf04] sm:$0xf0] }
 0x1a9   : > { %6165 = vmatpush.bf16.msrb.mxu2 %v12646_v22  ;;  %v14905_v22 = vld [vmem:[#allocation7 + $0x334] sm:$0xf0] }
 0x1aa   : > { %6178 = vmatpush.bf16.msrb.mxu3 %v13222_v31  ;;  %v10562_v29 = vor.u32 %v14905_v22, %v10561_v21  ;;  %v11138_v31 = vor.u32 %v15049_v25, %v11137_v23  ;;  %v10849_v21 = vld [vmem:[#allocation7 + $0x530] sm:$0xf] }
 0x1ab   : > { %6140 = vmatpush.bf16.msrb.mxu0 %v11422_v35  ;;  %v10489_v35 = vld [vmem:[#allocation7 + $0x260] sm:$0xf]  ;;  %v11425_v25 = vld [vmem:[#allocation7 + $0x9b0] sm:$0xf] }
 0x1ac   : > { %6153 = vmatpush.bf16.msrb.mxu1 %v11998_v41  ;;  %v15031_v41 = vld [vmem:[#allocation7 + $0x724] sm:$0xf0]  ;;  %v10490_v44 = vor.u32 %v14887_v50, %v10489_v35  ;;  %v10201_v35 = vld [vmem:[#allocation7 + $0x20] sm:$0xf] }
 0x1ad   : > { %6166 = vmatpush.bf16.msrb.mxu2 %v12574_v42  ;;  %v11641_v42 = vld [vmem:[#allocation7 + $0xb60] sm:$0xf]  ;;  %v11066_v45 = vor.u32 %v15031_v41, %v11065_v37  ;;  %v14815_v50 = vld [vmem:[#allocation7 + $0x64] sm:$0xf0] }
 0x1ae   : > { %6179 = vmatpush.bf16.msrb.mxu3 %v13150_v16  ;;  %v11642_v16 = vor.u32 %v15175_v0, %v11641_v42  ;;  %v10777_v41 = vld [vmem:[#allocation7 + $0x4a0] sm:$0xf]  ;;  %v14959_v42 = vld [vmem:[#allocation7 + $0x4e4] sm:$0xf0]  ;;  %v10202_v55 = vor.u32 %v14815_v50, %v10201_v35  ;;  %v10563_v35 = vld [vmem:[#allocation7 + $0x338] sm:$0xf0] }
 0x1af   : > { %6141 = vmatpush.bf16.msrb.mxu0 %v11350_v51  ;;  %v16676_v15 = vpop.f32.mrf.mxu0  ;;  %v12218_v51 = vor.u32 %v15319_v43, %v12217_v28  ;;  %v11353_v0 = vld [vmem:[#allocation7 + $0x920] sm:$0xf]  ;;  %v12002_v28 = vor.u32 %v15265_v27, %v12001_v26  ;;  %v15103_v43 = vld [vmem:[#allocation7 + $0x964] sm:$0xf0]  ;;  %v15625_v26 = vld [vmem:[#allocation7 + $0x19b4] sm:$0xf0] }
 0x1b0   : > { %6154 = vmatpush.bf16.msrb.mxu1 %v11926_v54  ;;  %v16678_v48 = vpop.f32.mrf.mxu1  ;;  %v12145_v54 = vld [vmem:[#allocation7 + $0xf50] sm:$0xf]  ;;  %v15040_v50 = vld [vmem:[#allocation7 + $0x774] sm:$0xf] }
 0x1b1   : > { %6167 = vmatpush.bf16.msrb.mxu2 %v12502_v57  ;;  %v15301_v57 = vld [vmem:[#allocation7 + $0xf94] sm:$0xf0] }
 0x1b2   : > { %6180 = vmatpush.bf16.msrb.mxu3 %v13078_v34  ;;  %6142 = vmatmul.bf16.vlgmr.msrb.gmra.mxu0 %v16549_v4  ;;  %v10921_v34 = vld [vmem:[#allocation7 + $0x5c0] sm:$0xf]  ;;  %v12146_v33 = vor.u32 %v15301_v57, %v12145_v54  ;;  %v10778_v54 = vor.u32 %v14959_v42, %v10777_v41  ;;  %v11354_v57 = vor.u32 %v15103_v43, %v11353_v0  ;;  %v15463_v0 = vld [vmem:[#allocation7 + $0x14a4] sm:$0xf0] }
 0x1b3   : > { %6186 = vmatpush.bf16.msra.mxu0 %v10706_v36  ;;  %6155 = vmatmul.bf16.vlgmr.msrb.gmra.mxu1 %v16561_v38  ;;  %v11570_v36 = vor.u32 %v15157_v53, %v11569_v52  ;;  %v10922_v39 = vor.u32 %v14995_v1, %v10921_v34  ;;  %v15247_v52 = vld [vmem:[#allocation7 + $0xde4] sm:$0xf0]  ;;  %v12793_v41 = vld [vmem:[#allocation7 + $0x1460] sm:$0xf] }
 0x1b4   : > { %6199 = vmatpush.bf16.msra.mxu1 %v11282_v61  ;;  %6168 = vmatmul.bf16.vlgmr.msrb.gmra.mxu2 %v16566_v30  ;;  %v10345_v61 = vld [vmem:[#allocation7 + $0x140] sm:$0xf]  ;;  %v15607_v43 = vld [vmem:[#allocation7 + $0x1924] sm:$0xf0] }
 0x1b5   : > { %6212 = vmatpush.bf16.msra.mxu2 %v11858_v62  ;;  %6181 = vmatmul.bf16.vlgmr.msrb.gmra.mxu3 %v16568_v32  ;;  %v14851_v62 = vld [vmem:[#allocation7 + $0x184] sm:$0xf0] }
 0x1b6   : > { %6225 = vmatpush.bf16.msra.mxu3 %v12434_v5  ;;  %v12073_v5 = vld [vmem:[#allocation7 + $0xec0] sm:$0xf]  ;;  %v10346_v7 = vor.u32 %v14851_v62, %v10345_v61 }
 0x1b7   : > { %6187 = vmatpush.bf16.msra.mxu0 %v10634_v14  ;;  %v16680_v8 = vpop.f32.mrf.mxu2  ;;  %v5937_v9 = vpop.f32.mrf.mxu0  ;;  %v11498_v14 = vor.u32 %v15139_v3, %v11497_v2  ;;  %v12074_v23 = vor.u32 %v15283_v6, %v12073_v5  ;;  %v12937_v62 = vld [vmem:[#allocation7 + $0x1580] sm:$0xf]  ;;  %v11930_v2 = vor.u32 %v15247_v52, %v11929_v56  ;;  %v15499_v3 = vld [vmem:[#allocation7 + $0x15c4] sm:$0xf0] }
 0x1b8   : > { %6200 = vmatpush.bf16.msra.mxu1 %v11210_v12  ;;  %v10273_v12 = vld [vmem:[#allocation7 + $0xb0] sm:$0xf]  ;;  %v5950_v22 = vpop.f32.mrf.mxu1  ;;  %v16682_v63 = vpop.f32.mrf.mxu3  ;;  %v13513_v5 = vld [vmem:[#allocation7 + $0x1a00] sm:$0xf]  ;;  %v15643_v6 = vld [vmem:[#allocation7 + $0x1a44] sm:$0xf0] }
 0x1b9   : > { %6213 = vmatpush.bf16.msra.mxu2 %v11786_v19  ;;  %v14833_v19 = vld [vmem:[#allocation7 + $0xf4] sm:$0xf0]  ;;  %v13514_v22 = vor.u32 %v15643_v6, %v13513_v5 }
 0x1ba   : > { %6226 = vmatpush.bf16.msra.mxu3 %v12362_v24  ;;  %v14977_v24 = vld [vmem:[#allocation7 + $0x574] sm:$0xf0] }
 0x1bb   : > { %6188 = vmatpush.bf16.msra.mxu0 %v10562_v29  ;;  %v16684_v29 = vld [vmem:[#allocation9] sm:$0xff]  ;;  %v10850_v37 = vor.u32 %v14977_v24, %v10849_v21  ;;  %v12938_v21 = vor.u32 %v15499_v3, %v12937_v62  ;;  %v14860_v62 = vld [vmem:[#allocation7 + $0x1d4] sm:$0xf] }
 0x1bc   : > { %6201 = vmatpush.bf16.msra.mxu1 %v11138_v31  ;;  %v1210_v31 = vperm.slane %v16684_v29, 4 }
 0x1bd   : > { %6214 = vmatpush.bf16.msra.mxu2 %v11714_v13  ;;  %v10274_v13 = vor.u32 %v14833_v19, %v10273_v12  ;;  %v15058_v12 = vld [vmem:[#allocation7 + $0x804] sm:$0xf]  ;;  %v11211_v19 = vld [vmem:[#allocation7 + $0x848] sm:$0xf0] }
 0x1be   : > { %6227 = vmatpush.bf16.msra.mxu3 %v12290_v40  ;;  %v11426_v40 = vor.u32 %v15121_v17, %v11425_v25  ;;  %v15481_v25 = vld [vmem:[#allocation7 + $0x1534] sm:$0xf0]  ;;  %v13441_v17 = vld [vmem:[#allocation7 + $0x1970] sm:$0xf] }
 0x1bf   : > { %6189 = vmatpush.bf16.msra.mxu0 %v10490_v44  ;;  %v13009_v44 = vld [vmem:[#allocation7 + $0x1610] sm:$0xf]  ;;  %v5963_v53 = vpop.f32.mrf.mxu2 }
 0x1c0   : > { %6202 = vmatpush.bf16.msra.mxu1 %v11066_v45  ;;  %v15517_v45 = vld [vmem:[#allocation7 + $0x1654] sm:$0xf0]  ;;  %v5976_v34 = vpop.f32.mrf.mxu3 }
 0x1c1   : > { %6215 = vmatpush.bf16.msra.mxu2 %v11642_v16  ;;  %v13585_v16 = vld [vmem:[#allocation7 + $0x1a90] sm:$0xf]  ;;  %v10419_v34 = vld [vmem:[#allocation7 + $0x218] sm:$0xf0] }
 0x1c2   : > { %6228 = vmatpush.bf16.msra.mxu3 %v12218_v51  ;;  %v10707_v51 = vld [vmem:[#allocation7 + $0x458] sm:$0xf0]  ;;  %v13586_v61 = vor.u32 %v15661_v46, %v13585_v16  ;;  %v14878_v16 = vld [vmem:[#allocation7 + $0x264] sm:$0xf]  ;;  %v10491_v46 = vld [vmem:[#allocation7 + $0x2a8] sm:$0xf0] }
 0x1c3   : > { %6190 = vmatpush.bf16.msra.mxu0 %v10418_v18  ;;  %v15076_v18 = vld [vmem:[#allocation7 + $0x894] sm:$0xf]  ;;  %v10710_v1 = vor.u32 %v14932_v47, %v10707_v51  ;;  %v15022_v47 = vld [vmem:[#allocation7 + $0x6e4] sm:$0xf]  ;;  %v12794_v51 = vor.u32 %v15463_v0, %v12793_v41  ;;  %v10494_v53 = vor.u32 %v14878_v16, %v10491_v46  ;;  %v15391_v16 = vld [vmem:[#allocation7 + $0x1264] sm:$0xf0] }
 0x1c4   : > { %6203 = vmatpush.bf16.msra.mxu1 %v10994_v58  ;;  %v11283_v58 = vld [vmem:[#allocation7 + $0x8d8] sm:$0xf0]  ;;  %v13081_v46 = vld [vmem:[#allocation7 + $0x16a0] sm:$0xf] }
 0x1c5   : > { %6216 = vmatpush.bf16.msra.mxu2 %v11570_v36  ;;  %v13010_v36 = vor.u32 %v15517_v45, %v13009_v44  ;;  %v11286_v9 = vor.u32 %v15076_v18, %v11283_v58  ;;  %v15445_v18 = vld [vmem:[#allocation7 + $0x1414] sm:$0xf0]  ;;  %v13297_v58 = vld [vmem:[#allocation7 + $0x1850] sm:$0xf] }
 0x1c6   : > { %6229 = vmatpush.bf16.msra.mxu3 %v12146_v33  ;;  %v5884_v33 = vadd.f32 %v16664_v59, %v1210_v31  ;;  %v12865_v59 = vld [vmem:[#allocation7 + $0x14f0] sm:$0xf]  ;;  %v11214_v31 = vor.u32 %v15058_v12, %v11211_v19 }
 0x1c7   : > { %6191 = vmatpush.bf16.msra.mxu0 %v10346_v7  ;;  %v1211_v7 = vperm.slane %v16684_v29, 5 }
 0x1c8   : > { %6204 = vmatpush.bf16.msra.mxu1 %v10922_v39  ;;  %v14914_v39 = vld [vmem:[#allocation7 + $0x384] sm:$0xf] }
 0x1c9   : > { %6217 = vmatpush.bf16.msra.mxu2 %v11498_v14  ;;  %v10635_v14 = vld [vmem:[#allocation7 + $0x3c8] sm:$0xf0]  ;;  %v5962_v27 = vadd.f32 %v16680_v8, %v1211_v7  ;;  %v10422_v7 = vor.u32 %v14860_v62, %v10419_v34  ;;  %v14950_v62 = vld [vmem:[#allocation7 + $0x4a4] sm:$0xf] }
 0x1ca   : > { %6230 = vmatpush.bf16.msra.mxu3 %v12074_v23  ;;  %v5897_v23 = vadd.f32 %v16666_v60, %v5884_v33  ;;  %v10638_v24 = vor.u32 %v14914_v39, %v10635_v14  ;;  %v12866_v60 = vor.u32 %v15481_v25, %v12865_v59  ;;  %v15004_v33 = vld [vmem:[#allocation7 + $0x654] sm:$0xf]  ;;  %v13225_v39 = vld [vmem:[#allocation7 + $0x17c0] sm:$0xf]  ;;  %v15571_v14 = vld [vmem:[#allocation7 + $0x1804] sm:$0xf0] }
 0x1cb   : > { %6192 = vmatpush.bf16.msra.mxu0 %v10274_v13  ;;  %v14896_v13 = vld [vmem:[#allocation7 + $0x2f4] sm:$0xf]  ;;  %v5975_v44 = vadd.f32 %v16682_v63, %v5962_v27  ;;  %v15589_v63 = vld [vmem:[#allocation7 + $0x1894] sm:$0xf0]  ;;  %v12577_v27 = vld [vmem:[#allocation7 + $0x12b0] sm:$0xf] }
 0x1cc   : > { %6205 = vmatpush.bf16.msra.mxu1 %v10850_v37  ;;  %v11139_v37 = vld [vmem:[#allocation7 + $0x7b8] sm:$0xf0]  ;;  %v5910_v42 = vadd.f32 %v16668_v11, %v5897_v23  ;;  %v10566_v8 = vor.u32 %v14896_v13, %v10563_v35  ;;  %v12721_v11 = vld [vmem:[#allocation7 + $0x13d0] sm:$0xf]  ;;  %v13298_v5 = vor.u32 %v15589_v63, %v13297_v58  ;;  %v14986_v23 = vld [vmem:[#allocation7 + $0x5c4] sm:$0xf] }
 0x1cd   : > { %6218 = vmatpush.bf16.msra.mxu2 %v11426_v40  ;;  %v13442_v40 = vor.u32 %v15625_v26, %v13441_v17  ;;  %v11142_v45 = vor.u32 %v15040_v50, %v11139_v37  ;;  %v12722_v3 = vor.u32 %v15445_v18, %v12721_v11  ;;  %v13226_v26 = vor.u32 %v15571_v14, %v13225_v39  ;;  %v15409_v35 = vld [vmem:[#allocation7 + $0x12f4] sm:$0xf0]  ;;  %v13153_v50 = vld [vmem:[#allocation7 + $0x1730] sm:$0xf]  ;;  %v12435_v18 = vld [vmem:[#allocation7 + $0x11d8] sm:$0xf0] }
 0x1ce   : > { %6231 = vmatpush.bf16.msra.mxu3 %v12002_v28  ;;  %v13369_v28 = vld [vmem:[#allocation7 + $0x18e0] sm:$0xf]  ;;  %v5923_v52 = vadd.f32 %v16670_v49, %v5910_v42  ;;  %v15553_v37 = vld [vmem:[#allocation7 + $0x1774] sm:$0xf0]  ;;  %v14824_v42 = vld [vmem:[#allocation7 + $0xb4] sm:$0xf] }
 0x1cf   : > { %6193 = vmatpush.bf16.msra.mxu0 %v10202_v55  ;;  %v11067_v55 = vld [vmem:[#allocation7 + $0x728] sm:$0xf0]  ;;  %v13370_v56 = vor.u32 %v15607_v43, %v13369_v28  ;;  %v12649_v49 = vld [vmem:[#allocation7 + $0x1340] sm:$0xf]  ;;  %v14968_v28 = vld [vmem:[#allocation7 + $0x534] sm:$0xf] }
 0x1d0   : > { %6206 = vmatpush.bf16.msra.mxu1 %v10778_v54  ;;  %v5987_v54 = vpop.f32.mrf.mxu0  ;;  %v5936_v6 = vadd.f32 %v16676_v15, %v5923_v52  ;;  %v10851_v43 = vld [vmem:[#allocation7 + $0x578] sm:$0xf0]  ;;  %v15220_v52 = vld [vmem:[#allocation7 + $0xd14] sm:$0xf]  ;;  %v10779_v34 = vld [vmem:[#allocation7 + $0x4e8] sm:$0xf0] }
 0x1d1   : > { %6219 = vmatpush.bf16.msra.mxu2 %v11354_v57  ;;  %v6000_v57 = vpop.f32.mrf.mxu1  ;;  %v10854_v11 = vor.u32 %v14968_v28, %v10851_v43  ;;  %v15508_v58 = vld [vmem:[#allocation7 + $0x1614] sm:$0xf]  ;;  %v13011_v63 = vld [vmem:[#allocation7 + $0x1658] sm:$0xf0]  ;;  %v15346_v39 = vld [vmem:[#allocation7 + $0x1104] sm:$0xf]  ;;  %v10782_v14 = vor.u32 %v14950_v62, %v10779_v34 }
 0x1d2   : > { %6232 = vmatpush.bf16.msra.mxu3 %v11930_v2  ;;  %6194 = vmatmul.bf16.vlgmr.msra.gmra.mxu0 %v16552_v10  ;;  %v5949_v15 = vadd.f32 %v16678_v48, %v5936_v6  ;;  %v13154_v48 = vor.u32 %v15553_v37, %v13153_v50  ;;  %v13014_v6 = vor.u32 %v15508_v58, %v13011_v63  ;;  %v15310_v28 = vld [vmem:[#allocation7 + $0xfe4] sm:$0xf]  ;;  %v12219_v43 = vld [vmem:[#allocation7 + $0x1028] sm:$0xf0]  ;;  %v13299_v62 = vld [vmem:[#allocation7 + $0x1898] sm:$0xf0] }
 0x1d3   : > { %6238 = vmatpush.bf16.msrb.mxu0 %v13010_v36  ;;  %6207 = vmatmul.bf16.vlgmr.msra.gmra.mxu1 %v16557_v20  ;;  %v5988_v36 = vadd.f32 %v5987_v54, %v5975_v44  ;;  %v12505_v44 = vld [vmem:[#allocation7 + $0x1220] sm:$0xf]  ;;  %v15364_v54 = vld [vmem:[#allocation7 + $0x1194] sm:$0xf] }
 0x1d4   : > { %6251 = vmatpush.bf16.msrb.mxu1 %v13586_v61  ;;  %6220 = vmatmul.bf16.vlgmr.msra.gmra.mxu2 %v16549_v4  ;;  %v11070_v61 = vor.u32 %v15022_v47, %v11067_v55  ;;  %v15535_v47 = vld [vmem:[#allocation7 + $0x16e4] sm:$0xf0] }
 0x1d5   : > { %6264 = vmatpush.bf16.msrb.mxu2 %v10710_v1  ;;  %6233 = vmatmul.bf16.vlgmr.msra.gmra.mxu3 %v16561_v38  ;;  %v10995_v1 = vld [vmem:[#allocation7 + $0x698] sm:$0xf0]  ;;  %v6001_v2 = vadd.f32 %v6000_v57, %v5988_v36  ;;  %v12506_v36 = vor.u32 %v15391_v16, %v12505_v44  ;;  %v15454_v44 = vld [vmem:[#allocation7 + $0x1464] sm:$0xf] }
 0x1d6   : > { %6277 = vmatpush.bf16.msrb.mxu3 %v11286_v9  ;;  %v15427_v9 = vld [vmem:[#allocation7 + $0x1384] sm:$0xf0]  ;;  %v10998_v19 = vor.u32 %v15004_v33, %v10995_v1 }
 0x1d7   : > { %6239 = vmatpush.bf16.msrb.mxu0 %v12938_v21  ;;  %v6013_v12 = vpop.f32.mrf.mxu2  ;;  %v14842_v21 = vld [vmem:[#allocation7 + $0x144] sm:$0xf]  ;;  %v12650_v17 = vor.u32 %v15427_v9, %v12649_v49  ;;  %v12438_v49 = vor.u32 %v15364_v54, %v12435_v18  ;;  %v11787_v9 = vld [vmem:[#allocation7 + $0xcc8] sm:$0xf0]  ;;  %v15436_v54 = vld [vmem:[#allocation7 + $0x13d4] sm:$0xf] }
 0x1d8   : > { %6252 = vmatpush.bf16.msrb.mxu1 %v13514_v22  ;;  %v10347_v22 = vld [vmem:[#allocation7 + $0x188] sm:$0xf0]  ;;  %v6014_v59 = vadd.f32 %v6013_v12, %v6001_v2  ;;  %v6026_v25 = vpop.f32.mrf.mxu3 }
 0x1d9   : > { %6265 = vmatpush.bf16.msrb.mxu2 %v10638_v24  ;;  %v10923_v24 = vld [vmem:[#allocation7 + $0x608] sm:$0xf0]  ;;  %v10350_v13 = vor.u32 %v14842_v21, %v10347_v22 }
 0x1da   : > { %6278 = vmatpush.bf16.msrb.mxu3 %v11214_v31  ;;  %v6027_v31 = vadd.f32 %v6026_v25, %v6014_v59  ;;  %v10926_v41 = vor.u32 %v14986_v23, %v10923_v24  ;;  %v12363_v12 = vld [vmem:[#allocation7 + $0x1148] sm:$0xf0]  ;;  %v15634_v23 = vld [vmem:[#allocation7 + $0x1a04] sm:$0xf] }
 0x1db   : > { %6240 = vmatpush.bf16.msrb.mxu0 %v12866_v60  ;;  %v5989_v60 = vpop.f32.mrf.mxu0  ;;  %v12939_v21 = vld [vmem:[#allocation7 + $0x15c8] sm:$0xf0]  ;;  %v12366_v25 = vor.u32 %v15346_v39, %v12363_v12 }
 0x1dc   : > { %6253 = vmatpush.bf16.msrb.mxu1 %v13442_v40  ;;  %v6002_v40 = vpop.f32.mrf.mxu1  ;;  %v6968_v0 = vpack.c.bf16 %v6027_v31, %v5949_v15  ;;  %v13515_v24 = vld [vmem:[#allocation7 + $0x1a48] sm:$0xf0]  ;;  %v15328_v15 = vld [vmem:[#allocation7 + $0x1074] sm:$0xf]  ;;  %v12291_v31 = vld [vmem:[#allocation7 + $0x10b8] sm:$0xf0] }
 0x1dd   : > { %6266 = vmatpush.bf16.msrb.mxu2 %v10566_v8  ;;  %v10275_v8 = vld [vmem:[#allocation7 + $0xf8] sm:$0xf0]  ;;  %v13518_v50 = vor.u32 %v15634_v23, %v13515_v24  ;;  %v15616_v60 = vld [vmem:[#allocation7 + $0x1974] sm:$0xf]  ;;  %v13227_v12 = vld [vmem:[#allocation7 + $0x1808] sm:$0xf0] }
 0x1de   : > { %6279 = vmatpush.bf16.msrb.mxu3 %v11142_v45  ;;  %v12578_v45 = vor.u32 %v15409_v35, %v12577_v27  ;;  %6977 = vst [vmem:[#allocation2 + $0x10] sm:$0xff] %v6968_v0  ;;  %v10278_v55 = vor.u32 %v14824_v42, %v10275_v8  ;;  %v11715_v27 = vld [vmem:[#allocation7 + $0xc38] sm:$0xf0]  ;;  %v15166_v8 = vld [vmem:[#allocation7 + $0xb64] sm:$0xf] }
 0x1df   : > { %6241 = vmatpush.bf16.msrb.mxu0 %v12794_v51  ;;  %v14806_v51 = vld [vmem:[#allocation7 + $0x24] sm:$0xf]  ;;  %v6015_v57 = vpop.f32.mrf.mxu2  ;;  %v12867_v35 = vld [vmem:[#allocation7 + $0x1538] sm:$0xf0]  ;;  %v11643_v0 = vld [vmem:[#allocation7 + $0xba8] sm:$0xf0] }
 0x1e0   : > { %6254 = vmatpush.bf16.msrb.mxu1 %v13370_v56  ;;  %v10203_v56 = vld [vmem:[#allocation7 + $0x68] sm:$0xf0]  ;;  %v6028_v33 = vpop.f32.mrf.mxu3  ;;  %v13443_v40 = vld [vmem:[#allocation7 + $0x19b8] sm:$0xf0]  ;;  %v11646_v16 = vor.u32 %v15166_v8, %v11643_v0  ;;  %v15256_v23 = vld [vmem:[#allocation7 + $0xe34] sm:$0xf] }
 0x1e1   : > { %6267 = vmatpush.bf16.msrb.mxu2 %v10494_v53  ;;  %v11859_v53 = vld [vmem:[#allocation7 + $0xd58] sm:$0xf0]  ;;  %v10206_v1 = vor.u32 %v14806_v51, %v10203_v56  ;;  %v15148_v56 = vld [vmem:[#allocation7 + $0xad4] sm:$0xf]  ;;  %v11931_v8 = vld [vmem:[#allocation7 + $0xde8] sm:$0xf0] }
 0x1e2   : > { %6280 = vmatpush.bf16.msrb.mxu3 %v11070_v61  ;;  %v13082_v61 = vor.u32 %v15535_v47, %v13081_v46  ;;  %v11862_v2 = vor.u32 %v15220_v52, %v11859_v53  ;;  %v15598_v46 = vld [vmem:[#allocation7 + $0x18e4] sm:$0xf]  ;;  %v13371_v47 = vld [vmem:[#allocation7 + $0x1928] sm:$0xf0]  ;;  %v15292_v52 = vld [vmem:[#allocation7 + $0xf54] sm:$0xf] }
 0x1e3   : > { %6242 = vmatpush.bf16.msrb.mxu0 %v12722_v3  ;;  %v15652_v3 = vld [vmem:[#allocation7 + $0x1a94] sm:$0xf]  ;;  %v12147_v53 = vld [vmem:[#allocation7 + $0xf98] sm:$0xf0]  ;;  %v13374_v63 = vor.u32 %v15598_v46, %v13371_v47  ;;  %v15382_v0 = vld [vmem:[#allocation7 + $0x1224] sm:$0xf] }
 0x1e4   : > { %6255 = vmatpush.bf16.msrb.mxu1 %v13298_v5  ;;  %v13587_v5 = vld [vmem:[#allocation7 + $0x1ad8] sm:$0xf0]  ;;  %v12150_v34 = vor.u32 %v15292_v52, %v12147_v53  ;;  %v11865_v46 = vld [vmem:[#allocation7 + $0xd18] sm:$0xf] }
 0x1e5   : > { %6268 = vmatpush.bf16.msrb.mxu2 %v10422_v7  ;;  %v15202_v7 = vld [vmem:[#allocation7 + $0xc84] sm:$0xf]  ;;  %v13590_v22 = vor.u32 %v15652_v3, %v13587_v5  ;;  %v12723_v57 = vld [vmem:[#allocation7 + $0x1418] sm:$0xf0]  ;;  %v12075_v5 = vld [vmem:[#allocation7 + $0xf08] sm:$0xf0] }
 0x1e6   : > { %6281 = vmatpush.bf16.msrb.mxu3 %v10998_v19  ;;  %v15490_v19 = vld [vmem:[#allocation7 + $0x1584] sm:$0xf]  ;;  %v11790_v59 = vor.u32 %v15202_v7, %v11787_v9  ;;  %v12726_v33 = vor.u32 %v15436_v54, %v12723_v57  ;;  %v12003_v24 = vld [vmem:[#allocation7 + $0xe78] sm:$0xf0]  ;;  %v12441_v54 = vld [vmem:[#allocation7 + $0x1198] sm:$0xf] }
 0x1e7   : > { %6243 = vmatpush.bf16.msrb.mxu0 %v12650_v17  ;;  %v12942_v17 = vor.u32 %v15490_v19, %v12939_v21  ;;  %v15274_v3 = vld [vmem:[#allocation7 + $0xec4] sm:$0xf]  ;;  %v15374_v57 = vld [vmem:[#allocation7 + $0x11dc] sm:$0xf0] }
 0x1e8   : > { %6256 = vmatpush.bf16.msrb.mxu1 %v13226_v26  ;;  %v15184_v26 = vld [vmem:[#allocation7 + $0xbf4] sm:$0xf]  ;;  %v12078_v19 = vor.u32 %v15274_v3, %v12075_v5  ;;  %v12442_v3 = vor.u32 %v15374_v57, %v12441_v54  ;;  %v15068_v5 = vld [vmem:[#allocation7 + $0x84c] sm:$0xf0]  ;;  %v15302_v54 = vld [vmem:[#allocation7 + $0xf9c] sm:$0xf0] }
 0x1e9   : > { %6269 = vmatpush.bf16.msrb.mxu2 %v10350_v13  ;;  %v15472_v13 = vld [vmem:[#allocation7 + $0x14f4] sm:$0xf]  ;;  %v11718_v37 = vor.u32 %v15184_v26, %v11715_v27 }
 0x1ea   : > { %6282 = vmatpush.bf16.msrb.mxu3 %v10926_v41  ;;  %v12294_v41 = vor.u32 %v15328_v15, %v12291_v31  ;;  %v12870_v42 = vor.u32 %v15472_v13, %v12867_v35  ;;  %v15544_v31 = vld [vmem:[#allocation7 + $0x1734] sm:$0xf] }
 0x1eb   : > { %6244 = vmatpush.bf16.msrb.mxu0 %v12578_v45  ;;  %v12795_v45 = vld [vmem:[#allocation7 + $0x14a8] sm:$0xf0] }
 0x1ec   : > { %6257 = vmatpush.bf16.msrb.mxu1 %v13154_v48  ;;  %v13446_v48 = vor.u32 %v15616_v60, %v13443_v40  ;;  %v12798_v51 = vor.u32 %v15454_v44, %v12795_v45  ;;  %v11355_v60 = vld [vmem:[#allocation7 + $0x968] sm:$0xf0]  ;;  %v12006_v40 = vor.u32 %v15256_v23, %v12003_v24  ;;  %v14942_v44 = vld [vmem:[#allocation7 + $0x45c] sm:$0xf0] }
 0x1ed   : > { %6270 = vmatpush.bf16.msrb.mxu2 %v10278_v55  ;;  %v12222_v55 = vor.u32 %v15310_v28, %v12219_v43  ;;  %v12507_v28 = vld [vmem:[#allocation7 + $0x1268] sm:$0xf0]  ;;  %v10713_v43 = vld [vmem:[#allocation7 + $0x418] sm:$0xf]  ;;  %v15050_v24 = vld [vmem:[#allocation7 + $0x7bc] sm:$0xf0] }
 0x1ee   : > { %6283 = vmatpush.bf16.msrb.mxu3 %v10854_v11  ;;  %v11571_v11 = vld [vmem:[#allocation7 + $0xb18] sm:$0xf0]  ;;  %v12510_v53 = vor.u32 %v15382_v0, %v12507_v28  ;;  %v12225_v0 = vld [vmem:[#allocation7 + $0xfe8] sm:$0xf]  ;;  %v15320_v28 = vld [vmem:[#allocation7 + $0x102c] sm:$0xf0] }
 0x1ef   : > { %6245 = vmatpush.bf16.msrb.mxu0 %v12506_v36  ;;  %v16704_v18 = vpop.f32.mrf.mxu0  ;;  %v11574_v36 = vor.u32 %v15148_v56, %v11571_v11  ;;  %v15526_v56 = vld [vmem:[#allocation7 + $0x16a4] sm:$0xf]  ;;  %v13083_v11 = vld [vmem:[#allocation7 + $0x16e8] sm:$0xf0] }
 0x1f0   : > { %6258 = vmatpush.bf16.msrb.mxu1 %v13082_v61  ;;  %v16706_v58 = vpop.f32.mrf.mxu1  ;;  %v15580_v61 = vld [vmem:[#allocation7 + $0x1854] sm:$0xf] }
 0x1f1   : > { %6271 = vmatpush.bf16.msrb.mxu2 %v10206_v1  ;;  %v15130_v1 = vld [vmem:[#allocation7 + $0xa44] sm:$0xf]  ;;  %v13302_v7 = vor.u32 %v15580_v61, %v13299_v62  ;;  %v13086_v62 = vor.u32 %v15526_v56, %v13083_v11  ;;  %v15014_v56 = vld [vmem:[#allocation7 + $0x69c] sm:$0xf0]  ;;  %v11577_v11 = vld [vmem:[#allocation7 + $0xad8] sm:$0xf] }
 0x1f2   : > { %6284 = vmatpush.bf16.msrb.mxu3 %v10782_v14  ;;  %6246 = vmatmul.bf16.vlgmr.msrb.gmra.mxu0 %v16566_v30  ;;  %v15562_v14 = vld [vmem:[#allocation7 + $0x17c4] sm:$0xf] }
 0x1f3   : > { %6290 = vmatpush.bf16.msra.mxu0 %v11862_v2  ;;  %6259 = vmatmul.bf16.vlgmr.msrb.gmra.mxu1 %v16568_v32  ;;  %v11499_v2 = vld [vmem:[#allocation7 + $0xa88] sm:$0xf0]  ;;  %v13230_v15 = vor.u32 %v15562_v14, %v13227_v12 }
 0x1f4   : > { %6303 = vmatpush.bf16.msra.mxu1 %v12438_v49  ;;  %6272 = vmatmul.bf16.vlgmr.msrb.gmra.mxu2 %v16552_v10  ;;  %v15418_v49 = vld [vmem:[#allocation7 + $0x1344] sm:$0xf]  ;;  %v11502_v39 = vor.u32 %v15130_v1, %v11499_v2  ;;  %v11217_v1 = vld [vmem:[#allocation7 + $0x808] sm:$0xf] }
 0x1f5   : > { %6316 = vmatpush.bf16.msra.mxu2 %v13014_v6  ;;  %6285 = vmatmul.bf16.vlgmr.msrb.gmra.mxu3 %v16557_v20  ;;  %v12651_v6 = vld [vmem:[#allocation7 + $0x1388] sm:$0xf0]  ;;  %v11218_v12 = vor.u32 %v15068_v5, %v11217_v1  ;;  %v14996_v1 = vld [vmem:[#allocation7 + $0x60c] sm:$0xf0]  ;;  %v12081_v5 = vld [vmem:[#allocation7 + $0xec8] sm:$0xf] }
 0x1f6   : > { %6329 = vmatpush.bf16.msra.mxu3 %v13590_v22  ;;  %v12654_v21 = vor.u32 %v15418_v49, %v12651_v6  ;;  %v15112_v22 = vld [vmem:[#allocation7 + $0x9b4] sm:$0xf]  ;;  %v11793_v49 = vld [vmem:[#allocation7 + $0xc88] sm:$0xf]  ;;  %v15212_v6 = vld [vmem:[#allocation7 + $0xccc] sm:$0xf0] }
 0x1f7   : > { %6291 = vmatpush.bf16.msra.mxu0 %v11790_v59  ;;  %v16708_v9 = vpop.f32.mrf.mxu2  ;;  %v11427_v59 = vld [vmem:[#allocation7 + $0x9f8] sm:$0xf0]  ;;  %v6041_v26 = vpop.f32.mrf.mxu0 }
 0x1f8   : > { %6304 = vmatpush.bf16.msra.mxu1 %v12366_v25  ;;  %v15400_v25 = vld [vmem:[#allocation7 + $0x12b4] sm:$0xf]  ;;  %v6054_v27 = vpop.f32.mrf.mxu1  ;;  %v16710_v13 = vpop.f32.mrf.mxu3  ;;  %v11430_v35 = vor.u32 %v15112_v22, %v11427_v59  ;;  %v14906_v22 = vld [vmem:[#allocation7 + $0x33c] sm:$0xf0]  ;;  %v11145_v59 = vld [vmem:[#allocation7 + $0x778] sm:$0xf] }
 0x1f9   : > { %6317 = vmatpush.bf16.msra.mxu2 %v12942_v17  ;;  %v12579_v17 = vld [vmem:[#allocation7 + $0x12f8] sm:$0xf0]  ;;  %v12297_v26 = vld [vmem:[#allocation7 + $0x1078] sm:$0xf]  ;;  %v15338_v27 = vld [vmem:[#allocation7 + $0x10bc] sm:$0xf0] }
 0x1fa   : > { %6330 = vmatpush.bf16.msra.mxu3 %v13518_v50  ;;  %v13155_v50 = vld [vmem:[#allocation7 + $0x1778] sm:$0xf0] }
 0x1fb   : > { %6292 = vmatpush.bf16.msra.mxu0 %v11718_v37  ;;  %v15094_v37 = vld [vmem:[#allocation7 + $0x924] sm:$0xf]  ;;  %v13158_v45 = vor.u32 %v15544_v31, %v13155_v50  ;;  %v11146_v31 = vor.u32 %v15050_v24, %v11145_v59  ;;  %v10497_v50 = vld [vmem:[#allocation7 + $0x268] sm:$0xf]  ;;  %v14978_v24 = vld [vmem:[#allocation7 + $0x57c] sm:$0xf0] }
 0x1fc   : > { %6305 = vmatpush.bf16.msra.mxu1 %v12294_v41  ;;  %v12582_v41 = vor.u32 %v15400_v25, %v12579_v17  ;;  %v11721_v25 = vld [vmem:[#allocation7 + $0xbf8] sm:$0xf]  ;;  %v15194_v17 = vld [vmem:[#allocation7 + $0xc3c] sm:$0xf0] }
 0x1fd   : > { %6318 = vmatpush.bf16.msra.mxu2 %v12870_v42  ;;  %v15238_v42 = vld [vmem:[#allocation7 + $0xda4] sm:$0xf] }
 0x1fe   : > { %6331 = vmatpush.bf16.msra.mxu3 %v13446_v48  ;;  %v11289_v48 = vld [vmem:[#allocation7 + $0x898] sm:$0xf]  ;;  %v11934_v52 = vor.u32 %v15238_v42, %v11931_v8  ;;  %v11649_v42 = vld [vmem:[#allocation7 + $0xb68] sm:$0xf]  ;;  %v15176_v8 = vld [vmem:[#allocation7 + $0xbac] sm:$0xf0] }
 0x1ff   : > { %6293 = vmatpush.bf16.msra.mxu0 %v11646_v16  ;;  %v15086_v16 = vld [vmem:[#allocation7 + $0x8dc] sm:$0xf0]  ;;  %v6067_v47 = vpop.f32.mrf.mxu2 }
 0x200   : > { %6306 = vmatpush.bf16.msra.mxu1 %v12222_v55  ;;  %v11358_v55 = vor.u32 %v15094_v37, %v11355_v60  ;;  %v6080_v2 = vpop.f32.mrf.mxu3  ;;  %v14888_v37 = vld [vmem:[#allocation7 + $0x2ac] sm:$0xf0]  ;;  %v11073_v60 = vld [vmem:[#allocation7 + $0x6e8] sm:$0xf]  ;;  %v11001_v47 = vld [vmem:[#allocation7 + $0x658] sm:$0xf] }
 0x201   : > { %6319 = vmatpush.bf16.msra.mxu2 %v12798_v51  ;;  %v15230_v51 = vld [vmem:[#allocation7 + $0xd5c] sm:$0xf0]  ;;  %v11505_v2 = vld [vmem:[#allocation7 + $0xa48] sm:$0xf] }
 0x202   : > { %6332 = vmatpush.bf16.msra.mxu3 %v13374_v63  ;;  %v10714_v63 = vor.u32 %v14942_v44, %v10713_v43  ;;  %v11866_v61 = vor.u32 %v15230_v51, %v11865_v46  ;;  %v10498_v43 = vor.u32 %v14888_v37, %v10497_v50  ;;  %v14870_v46 = vld [vmem:[#allocation7 + $0x21c] sm:$0xf0]  ;;  %v12226_v51 = vor.u32 %v15320_v28, %v12225_v0  ;;  %v10209_v50 = vld [vmem:[#allocation7 + $0x28] sm:$0xf]  ;;  %v14816_v37 = vld [vmem:[#allocation7 + $0x6c] sm:$0xf0] }
 0x203   : > { %6294 = vmatpush.bf16.msra.mxu0 %v11574_v36  ;;  %v11290_v36 = vor.u32 %v15086_v16, %v11289_v48  ;;  %v11650_v48 = vor.u32 %v15176_v8, %v11649_v42  ;;  %v10425_v16 = vld [vmem:[#allocation7 + $0x1d8] sm:$0xf]  ;;  %v14960_v42 = vld [vmem:[#allocation7 + $0x4ec] sm:$0xf0]  ;;  %v11361_v8 = vld [vmem:[#allocation7 + $0x928] sm:$0xf] }
 0x204   : > { %6307 = vmatpush.bf16.msra.mxu1 %v12150_v34  ;;  %v10641_v34 = vld [vmem:[#allocation7 + $0x388] sm:$0xf]  ;;  %v10426_v57 = vor.u32 %v14870_v46, %v10425_v16  ;;  %v15104_v28 = vld [vmem:[#allocation7 + $0x96c] sm:$0xf0]  ;;  %v15662_v16 = vld [vmem:[#allocation7 + $0x1adc] sm:$0xf0] }
 0x205   : > { %6320 = vmatpush.bf16.msra.mxu2 %v12726_v33  ;;  %v14924_v33 = vld [vmem:[#allocation7 + $0x3cc] sm:$0xf0]  ;;  %v14933_v46 = vld [vmem:[#allocation7 + $0x41c] sm:$0xf] }
 0x206   : > { %6333 = vmatpush.bf16.msra.mxu3 %v13302_v7  ;;  %v12369_v7 = vld [vmem:[#allocation7 + $0x1108] sm:$0xf]  ;;  %v10642_v14 = vor.u32 %v14924_v33, %v10641_v34 }
 0x207   : > { %6295 = vmatpush.bf16.msra.mxu0 %v11502_v39  ;;  %v15356_v39 = vld [vmem:[#allocation7 + $0x114c] sm:$0xf0]  ;;  %v10929_v34 = vld [vmem:[#allocation7 + $0x5c8] sm:$0xf] }
 0x208   : > { %6308 = vmatpush.bf16.msra.mxu1 %v12078_v19  ;;  %v11794_v19 = vor.u32 %v15212_v6, %v11793_v49  ;;  %v12370_v23 = vor.u32 %v15356_v39, %v12369_v7  ;;  %v15284_v49 = vld [vmem:[#allocation7 + $0xf0c] sm:$0xf0] }
 0x209   : > { %6321 = vmatpush.bf16.msra.mxu2 %v12654_v21  ;;  %v10569_v21 = vld [vmem:[#allocation7 + $0x2f8] sm:$0xf] }
 0x20a   : > { %6334 = vmatpush.bf16.msra.mxu3 %v13230_v15  ;;  %v10570_v15 = vor.u32 %v14906_v22, %v10569_v21  ;;  %v14834_v21 = vld [vmem:[#allocation7 + $0xfc] sm:$0xf0]  ;;  %v10857_v22 = vld [vmem:[#allocation7 + $0x538] sm:$0xf] }
 0x20b   : > { %6296 = vmatpush.bf16.msra.mxu0 %v11430_v35  ;;  %v11722_v35 = vor.u32 %v15194_v17, %v11721_v25  ;;  %v11433_v25 = vld [vmem:[#allocation7 + $0x9b8] sm:$0xf]  ;;  %v15122_v17 = vld [vmem:[#allocation7 + $0x9fc] sm:$0xf0] }
 0x20c   : > { %6309 = vmatpush.bf16.msra.mxu1 %v12006_v40  ;;  %v12298_v40 = vor.u32 %v15338_v27, %v12297_v26  ;;  %v12009_v27 = vld [vmem:[#allocation7 + $0xe38] sm:$0xf] }
 0x20d   : > { %6322 = vmatpush.bf16.msra.mxu2 %v12582_v41  ;;  %v15032_v41 = vld [vmem:[#allocation7 + $0x72c] sm:$0xf0] }
 0x20e   : > { %6335 = vmatpush.bf16.msra.mxu3 %v13158_v45  ;;  %v11074_v45 = vor.u32 %v15032_v41, %v11073_v60  ;;  %v10858_v60 = vor.u32 %v14978_v24, %v10857_v22  ;;  %v10785_v41 = vld [vmem:[#allocation7 + $0x4a8] sm:$0xf] }
 0x20f   : > { %6297 = vmatpush.bf16.msra.mxu0 %v11358_v55  ;;  %v16716_v44 = vpop.f32.mrf.mxu0 }
 0x210   : > { %6310 = vmatpush.bf16.msra.mxu1 %v11934_v52  ;;  %v16718_v55 = vpop.f32.mrf.mxu1  ;;  %v15158_v52 = vld [vmem:[#allocation7 + $0xb1c] sm:$0xf0] }
 0x211   : > { %6323 = vmatpush.bf16.msra.mxu2 %v12510_v53  ;;  %v12153_v53 = vld [vmem:[#allocation7 + $0xf58] sm:$0xf] }
 0x212   : > { %6336 = vmatpush.bf16.msra.mxu3 %v13086_v62  ;;  %6298 = vmatmul.bf16.vlgmr.msra.gmra.mxu0 %v16549_v4  ;;  %v14852_v62 = vld [vmem:[#allocation7 + $0x18c] sm:$0xf0]  ;;  %v12154_v33 = vor.u32 %v15302_v54, %v12153_v53  ;;  %v10786_v53 = vor.u32 %v14960_v42, %v10785_v41  ;;  %v11362_v54 = vor.u32 %v15104_v28, %v11361_v8  ;;  %v13377_v8 = vld [vmem:[#allocation7 + $0x18e8] sm:$0xf] }
 0x213   : > { %6342 = vmatpush.bf16.msrb.mxu0 %v10714_v63  ;;  %6311 = vmatmul.bf16.vlgmr.msra.gmra.mxu1 %v16561_v38  ;;  %v11002_v63 = vor.u32 %v15014_v56, %v11001_v47  ;;  %v10210_v47 = vor.u32 %v14816_v37, %v10209_v50  ;;  %v11937_v56 = vld [vmem:[#allocation7 + $0xda8] sm:$0xf]  ;;  %v15041_v50 = vld [vmem:[#allocation7 + $0x77c] sm:$0xf]  ;;  %v11147_v37 = vld [vmem:[#allocation7 + $0x7c0] sm:$0xf0] }
 0x214   : > { %6355 = vmatpush.bf16.msrb.mxu1 %v11290_v36  ;;  %6324 = vmatmul.bf16.vlgmr.msra.gmra.mxu2 %v16566_v30  ;;  %v11578_v36 = vor.u32 %v15158_v52, %v11577_v11  ;;  %v15248_v11 = vld [vmem:[#allocation7 + $0xdec] sm:$0xf0] }
 0x215   : > { %6368 = vmatpush.bf16.msrb.mxu2 %v11866_v61  ;;  %6337 = vmatmul.bf16.vlgmr.msra.gmra.mxu3 %v16568_v32  ;;  %v10353_v61 = vld [vmem:[#allocation7 + $0x148] sm:$0xf]  ;;  %v15464_v42 = vld [vmem:[#allocation7 + $0x14ac] sm:$0xf0] }
 0x216   : > { %6381 = vmatpush.bf16.msrb.mxu3 %v12442_v3  ;;  %v15140_v3 = vld [vmem:[#allocation7 + $0xa8c] sm:$0xf0]  ;;  %v10354_v6 = vor.u32 %v14852_v62, %v10353_v61  ;;  %v12945_v62 = vld [vmem:[#allocation7 + $0x1588] sm:$0xf] }
 0x217   : > { %6343 = vmatpush.bf16.msrb.mxu0 %v10642_v14  ;;  %v16720_v7 = vpop.f32.mrf.mxu2  ;;  %v6093_v39 = vpop.f32.mrf.mxu0  ;;  %v10930_v14 = vor.u32 %v14996_v1, %v10929_v34 }
 0x218   : > { %6356 = vmatpush.bf16.msrb.mxu1 %v11218_v12  ;;  %v11506_v12 = vor.u32 %v15140_v3, %v11505_v2  ;;  %v6106_v59 = vpop.f32.mrf.mxu1  ;;  %v16722_v26 = vpop.f32.mrf.mxu3  ;;  %v11938_v2 = vor.u32 %v15248_v11, %v11937_v56  ;;  %v15500_v3 = vld [vmem:[#allocation7 + $0x15cc] sm:$0xf0] }
 0x219   : > { %6369 = vmatpush.bf16.msrb.mxu2 %v11794_v19  ;;  %v10281_v19 = vld [vmem:[#allocation7 + $0xb8] sm:$0xf]  ;;  %v12946_v22 = vor.u32 %v15500_v3, %v12945_v62  ;;  %v10427_v62 = vld [vmem:[#allocation7 + $0x220] sm:$0xf0] }
 0x21a   : > { %6382 = vmatpush.bf16.msrb.mxu3 %v12370_v23  ;;  %v12082_v23 = vor.u32 %v15284_v49, %v12081_v5  ;;  %v13521_v5 = vld [vmem:[#allocation7 + $0x1a08] sm:$0xf]  ;;  %v15644_v49 = vld [vmem:[#allocation7 + $0x1a4c] sm:$0xf0] }
 0x21b   : > { %6344 = vmatpush.bf16.msrb.mxu0 %v10570_v15  ;;  %v15266_v15 = vld [vmem:[#allocation7 + $0xe7c] sm:$0xf0]  ;;  %v13522_v59 = vor.u32 %v15644_v49, %v13521_v5 }
 0x21c   : > { %6357 = vmatpush.bf16.msrb.mxu1 %v11146_v31  ;;  %v1212_v31 = vperm.slane %v16684_v29, 6  ;;  %v12010_v0 = vor.u32 %v15266_v15, %v12009_v27 }
 0x21d   : > { %6370 = vmatpush.bf16.msrb.mxu2 %v11722_v35  ;;  %v10282_v35 = vor.u32 %v14834_v21, %v10281_v19  ;;  %v15059_v19 = vld [vmem:[#allocation7 + $0x80c] sm:$0xf]  ;;  %v11219_v21 = vld [vmem:[#allocation7 + $0x850] sm:$0xf0] }
 0x21e   : > { %6383 = vmatpush.bf16.msrb.mxu3 %v12298_v40  ;;  %v11434_v40 = vor.u32 %v15122_v17, %v11433_v25  ;;  %v15482_v25 = vld [vmem:[#allocation7 + $0x153c] sm:$0xf0]  ;;  %v13449_v17 = vld [vmem:[#allocation7 + $0x1978] sm:$0xf]  ;;  %v11222_v15 = vor.u32 %v15059_v19, %v11219_v21  ;;  %v14843_v21 = vld [vmem:[#allocation7 + $0x14c] sm:$0xf] }
 0x21f   : > { %6345 = vmatpush.bf16.msrb.mxu0 %v10498_v43  ;;  %v13017_v43 = vld [vmem:[#allocation7 + $0x1618] sm:$0xf]  ;;  %v6119_v52 = vpop.f32.mrf.mxu2 }
 0x220   : > { %6358 = vmatpush.bf16.msrb.mxu1 %v11074_v45  ;;  %v15518_v45 = vld [vmem:[#allocation7 + $0x165c] sm:$0xf0]  ;;  %v6132_v34 = vpop.f32.mrf.mxu3 }
 0x221   : > { %6371 = vmatpush.bf16.msrb.mxu2 %v11650_v48  ;;  %v13593_v48 = vld [vmem:[#allocation7 + $0x1a98] sm:$0xf]  ;;  %v15005_v34 = vld [vmem:[#allocation7 + $0x65c] sm:$0xf] }
 0x222   : > { %6384 = vmatpush.bf16.msrb.mxu3 %v12226_v51  ;;  %v10715_v51 = vld [vmem:[#allocation7 + $0x460] sm:$0xf0]  ;;  %v13594_v61 = vor.u32 %v15662_v16, %v13593_v48  ;;  %v10499_v48 = vld [vmem:[#allocation7 + $0x2b0] sm:$0xf0]  ;;  %v15023_v16 = vld [vmem:[#allocation7 + $0x6ec] sm:$0xf] }
 0x223   : > { %6346 = vmatpush.bf16.msrb.mxu0 %v10426_v57  ;;  %v15077_v57 = vld [vmem:[#allocation7 + $0x89c] sm:$0xf]  ;;  %v10718_v1 = vor.u32 %v14933_v46, %v10715_v51  ;;  %v11075_v46 = vld [vmem:[#allocation7 + $0x730] sm:$0xf0] }
 0x224   : > { %6359 = vmatpush.bf16.msrb.mxu1 %v11002_v63  ;;  %v11291_v63 = vld [vmem:[#allocation7 + $0x8e0] sm:$0xf0] }
 0x225   : > { %6372 = vmatpush.bf16.msrb.mxu2 %v11578_v36  ;;  %v13018_v36 = vor.u32 %v15518_v45, %v13017_v43  ;;  %v11294_v39 = vor.u32 %v15077_v57, %v11291_v63  ;;  %v11150_v43 = vor.u32 %v15041_v50, %v11147_v37  ;;  %v14879_v45 = vld [vmem:[#allocation7 + $0x26c] sm:$0xf]  ;;  %v13305_v57 = vld [vmem:[#allocation7 + $0x1858] sm:$0xf]  ;;  %v15554_v50 = vld [vmem:[#allocation7 + $0x177c] sm:$0xf0] }
 0x226   : > { %6385 = vmatpush.bf16.msrb.mxu3 %v12154_v33  ;;  %v6040_v33 = vadd.f32 %v16704_v18, %v1212_v31  ;;  %v12873_v18 = vld [vmem:[#allocation7 + $0x14f8] sm:$0xf]  ;;  %v14897_v31 = vld [vmem:[#allocation7 + $0x2fc] sm:$0xf]  ;;  %v10502_v11 = vor.u32 %v14879_v45, %v10499_v48  ;;  %v13089_v45 = vld [vmem:[#allocation7 + $0x16a8] sm:$0xf] }
 0x227   : > { %6347 = vmatpush.bf16.msrb.mxu0 %v10354_v6  ;;  %v1213_v6 = vperm.slane %v16684_v29, 7  ;;  %v15626_v29 = vld [vmem:[#allocation7 + $0x19bc] sm:$0xf0]  ;;  %v15536_v48 = vld [vmem:[#allocation7 + $0x16ec] sm:$0xf0] }
 0x228   : > { %6360 = vmatpush.bf16.msrb.mxu1 %v10930_v14  ;;  %v14915_v14 = vld [vmem:[#allocation7 + $0x38c] sm:$0xf] }
 0x229   : > { %6373 = vmatpush.bf16.msrb.mxu2 %v11506_v12  ;;  %v10643_v12 = vld [vmem:[#allocation7 + $0x3d0] sm:$0xf0]  ;;  %v6118_v27 = vadd.f32 %v16720_v7, %v1213_v6  ;;  %v15428_v6 = vld [vmem:[#allocation7 + $0x138c] sm:$0xf0] }
 0x22a   : > { %6386 = vmatpush.bf16.msrb.mxu3 %v12082_v23  ;;  %v6053_v23 = vadd.f32 %v16706_v58, %v6040_v33  ;;  %v10646_v24 = vor.u32 %v14915_v14, %v10643_v12  ;;  %v12874_v58 = vor.u32 %v15482_v25, %v12873_v18  ;;  %v11003_v33 = vld [vmem:[#allocation7 + $0x6a0] sm:$0xf0]  ;;  %v15572_v14 = vld [vmem:[#allocation7 + $0x180c] sm:$0xf0]  ;;  %v14987_v18 = vld [vmem:[#allocation7 + $0x5cc] sm:$0xf] }
 0x22b   : > { %6348 = vmatpush.bf16.msrb.mxu0 %v10282_v35  ;;  %v10571_v35 = vld [vmem:[#allocation7 + $0x340] sm:$0xf0]  ;;  %v6131_v28 = vadd.f32 %v16722_v26, %v6118_v27  ;;  %v15590_v26 = vld [vmem:[#allocation7 + $0x189c] sm:$0xf0]  ;;  %v11006_v19 = vor.u32 %v15005_v34, %v11003_v33 }
 0x22c   : > { %6361 = vmatpush.bf16.msrb.mxu1 %v10858_v60  ;;  %v13450_v60 = vor.u32 %v15626_v29, %v13449_v17  ;;  %v6066_v41 = vadd.f32 %v16708_v9, %v6053_v23  ;;  %v10574_v7 = vor.u32 %v14897_v31, %v10571_v35  ;;  %v12729_v9 = vld [vmem:[#allocation7 + $0x13d8] sm:$0xf]  ;;  %v13306_v3 = vor.u32 %v15590_v26, %v13305_v57  ;;  %v10931_v23 = vld [vmem:[#allocation7 + $0x610] sm:$0xf0]  ;;  %v15410_v31 = vld [vmem:[#allocation7 + $0x12fc] sm:$0xf0] }
 0x22d   : > { %6374 = vmatpush.bf16.msrb.mxu2 %v11434_v40  ;;  %v12801_v40 = vld [vmem:[#allocation7 + $0x1468] sm:$0xf]  ;;  %v12585_v29 = vld [vmem:[#allocation7 + $0x12b8] sm:$0xf]  ;;  %v13019_v57 = vld [vmem:[#allocation7 + $0x1660] sm:$0xf0] }
 0x22e   : > { %6387 = vmatpush.bf16.msrb.mxu3 %v12010_v0  ;;  %v15608_v0 = vld [vmem:[#allocation7 + $0x192c] sm:$0xf0]  ;;  %v6079_v56 = vadd.f32 %v16710_v13, %v6066_v41  ;;  %v12657_v13 = vld [vmem:[#allocation7 + $0x1348] sm:$0xf]  ;;  %v13161_v35 = vld [vmem:[#allocation7 + $0x1738] sm:$0xf] }
 0x22f   : > { %6349 = vmatpush.bf16.msrb.mxu0 %v10210_v47  ;;  %v12802_v47 = vor.u32 %v15464_v42, %v12801_v40  ;;  %v13378_v51 = vor.u32 %v15608_v0, %v13377_v8  ;;  %v6143_v52 = vpop.f32.mrf.mxu0  ;;  %v12658_v25 = vor.u32 %v15428_v6, %v12657_v13  ;;  %v14825_v40 = vld [vmem:[#allocation7 + $0xbc] sm:$0xf]  ;;  %v10283_v41 = vld [vmem:[#allocation7 + $0x100] sm:$0xf0]  ;;  %v12513_v0 = vld [vmem:[#allocation7 + $0x1228] sm:$0xf] }
 0x230   : > { %6362 = vmatpush.bf16.msrb.mxu1 %v10786_v53  ;;  %v6156_v53 = vpop.f32.mrf.mxu1  ;;  %v6144_v63 = vadd.f32 %v6143_v52, %v6131_v28  ;;  %v6092_v5 = vadd.f32 %v16716_v44, %v6079_v56  ;;  %v14969_v42 = vld [vmem:[#allocation7 + $0x53c] sm:$0xf]  ;;  %v10859_v8 = vld [vmem:[#allocation7 + $0x580] sm:$0xf0]  ;;  %v12586_v28 = vor.u32 %v15410_v31, %v12585_v29  ;;  %v15347_v6 = vld [vmem:[#allocation7 + $0x110c] sm:$0xf] }
 0x231   : > { %6375 = vmatpush.bf16.msrb.mxu2 %v11362_v54  ;;  %v15446_v54 = vld [vmem:[#allocation7 + $0x141c] sm:$0xf0]  ;;  %v11867_v56 = vld [vmem:[#allocation7 + $0xd60] sm:$0xf0]  ;;  %v15329_v31 = vld [vmem:[#allocation7 + $0x107c] sm:$0xf] }
 0x232   : > { %6388 = vmatpush.bf16.msrb.mxu3 %v11938_v2  ;;  %6350 = vmatmul.bf16.vlgmr.msrb.gmra.mxu0 %v16552_v10  ;;  %v12730_v2 = vor.u32 %v15446_v54, %v12729_v9  ;;  %v6105_v44 = vadd.f32 %v16718_v55, %v6092_v5  ;;  %v13162_v55 = vor.u32 %v15554_v50, %v13161_v35  ;;  %v15221_v9 = vld [vmem:[#allocation7 + $0xd1c] sm:$0xf]  ;;  %v15203_v5 = vld [vmem:[#allocation7 + $0xc8c] sm:$0xf] }
 0x233   : > { %6394 = vmatpush.bf16.msra.mxu0 %v13018_v36  ;;  %6363 = vmatmul.bf16.vlgmr.msrb.gmra.mxu1 %v16557_v20  ;;  %v11078_v36 = vor.u32 %v15023_v16, %v11075_v46  ;;  %v10286_v16 = vor.u32 %v14825_v40, %v10283_v41  ;;  %v14807_v46 = vld [vmem:[#allocation7 + $0x2c] sm:$0xf]  ;;  %v15509_v54 = vld [vmem:[#allocation7 + $0x161c] sm:$0xf]  ;;  %v11870_v33 = vor.u32 %v15221_v9, %v11867_v56  ;;  %v7123_v41 = vld [vmem:[#allocation2 + $0x4] sm:$0xf] }
 0x234   : > { %6407 = vmatpush.bf16.msra.mxu1 %v13594_v61  ;;  %6376 = vmatmul.bf16.vlgmr.msrb.gmra.mxu2 %v16549_v4  ;;  %v14861_v61 = vld [vmem:[#allocation7 + $0x1dc] sm:$0xf]  ;;  %v13022_v13 = vor.u32 %v15509_v54, %v13019_v57 }
 0x235   : > { %6420 = vmatpush.bf16.msra.mxu2 %v10718_v1  ;;  %6389 = vmatmul.bf16.vlgmr.msrb.gmra.mxu3 %v16561_v38  ;;  %v6157_v1 = vadd.f32 %v6156_v53, %v6144_v63  ;;  %v10430_v49 = vor.u32 %v14861_v61, %v10427_v62  ;;  %v12443_v53 = vld [vmem:[#allocation7 + $0x11e0] sm:$0xf0]  ;;  %v13090_v63 = vor.u32 %v15536_v48, %v13089_v45  ;;  %v10787_v61 = vld [vmem:[#allocation7 + $0x4f0] sm:$0xf0]  ;;  %v15311_v48 = vld [vmem:[#allocation7 + $0xfec] sm:$0xf] }
 0x236   : > { %6433 = vmatpush.bf16.msra.mxu3 %v11294_v39  ;;  %v13233_v39 = vld [vmem:[#allocation7 + $0x17c8] sm:$0xf]  ;;  %v11651_v45 = vld [vmem:[#allocation7 + $0xbb0] sm:$0xf0] }
 0x237   : > { %6395 = vmatpush.bf16.msra.mxu0 %v12946_v22  ;;  %v6169_v12 = vpop.f32.mrf.mxu2  ;;  %v10355_v22 = vld [vmem:[#allocation7 + $0x190] sm:$0xf0]  ;;  %v13234_v17 = vor.u32 %v15572_v14, %v13233_v39  ;;  %v6145_v37 = vpop.f32.mrf.mxu0 }
 0x238   : > { %6408 = vmatpush.bf16.msra.mxu1 %v13522_v59  ;;  %v6170_v59 = vadd.f32 %v6169_v12, %v6157_v1  ;;  %v15653_v1 = vld [vmem:[#allocation7 + $0x1a9c] sm:$0xf]  ;;  %v12371_v14 = vld [vmem:[#allocation7 + $0x1150] sm:$0xf0]  ;;  %v15491_v12 = vld [vmem:[#allocation7 + $0x158c] sm:$0xf] }
 0x239   : > { %6421 = vmatpush.bf16.msra.mxu2 %v10646_v24  ;;  %v6182_v24 = vpop.f32.mrf.mxu3  ;;  %v12374_v29 = vor.u32 %v15347_v6, %v12371_v14  ;;  %v12299_v37 = vld [vmem:[#allocation7 + $0x10c0] sm:$0xf0]  ;;  %v15581_v6 = vld [vmem:[#allocation7 + $0x185c] sm:$0xf] }
 0x23a   : > { %6434 = vmatpush.bf16.msra.mxu3 %v11222_v15  ;;  %v6183_v27 = vadd.f32 %v6182_v24, %v6170_v59  ;;  %v10358_v15 = vor.u32 %v14843_v21, %v10355_v22  ;;  %v13523_v24 = vld [vmem:[#allocation7 + $0x1a50] sm:$0xf0] }
 0x23b   : > { %6396 = vmatpush.bf16.msra.mxu0 %v12874_v58  ;;  %v6158_v58 = vpop.f32.mrf.mxu1 }
 0x23c   : > { %6409 = vmatpush.bf16.msra.mxu1 %v13450_v60  ;;  %v10934_v60 = vor.u32 %v14987_v18, %v10931_v23  ;;  %v15635_v23 = vld [vmem:[#allocation7 + $0x1a0c] sm:$0xf]  ;;  %v15473_v58 = vld [vmem:[#allocation7 + $0x14fc] sm:$0xf] }
 0x23d   : > { %6422 = vmatpush.bf16.msra.mxu2 %v10574_v7  ;;  %v6969_v7 = vpack.c.bf16 %v6183_v27, %v6105_v44  ;;  %v15185_v27 = vld [vmem:[#allocation7 + $0xbfc] sm:$0xf]  ;;  %v13526_v40 = vor.u32 %v15635_v23, %v13523_v24  ;;  %v12659_v23 = vld [vmem:[#allocation7 + $0x1390] sm:$0xf0] }
 0x23e   : > { %6435 = vmatpush.bf16.msra.mxu3 %v11150_v43  ;;  %v15392_v43 = vld [vmem:[#allocation7 + $0x126c] sm:$0xf0] }
 0x23f   : > { %6397 = vmatpush.bf16.msra.mxu0 %v12802_v47  ;;  %6978 = vst [vmem:[#allocation2 + $0x18] sm:$0xff] %v6969_v7  ;;  %v10211_v47 = vld [vmem:[#allocation7 + $0x70] sm:$0xf0]  ;;  %v6171_v52 = vpop.f32.mrf.mxu2  ;;  %v12514_v26 = vor.u32 %v15392_v43, %v12513_v0  ;;  %v6990_v0 = vld [vmem:[#allocation2] sm:$0xf] }
 0x240   : > { %6410 = vmatpush.bf16.msra.mxu1 %v13378_v51  ;;  %v10862_v51 = vor.u32 %v14969_v42, %v10859_v8  ;;  %v10214_v34 = vor.u32 %v14807_v46, %v10211_v47  ;;  %v15617_v42 = vld [vmem:[#allocation7 + $0x197c] sm:$0xf]  ;;  %v13451_v8 = vld [vmem:[#allocation7 + $0x19c0] sm:$0xf0]  ;;  %v15167_v43 = vld [vmem:[#allocation7 + $0xb6c] sm:$0xf] }
 0x241   : > { %6423 = vmatpush.bf16.msra.mxu2 %v10502_v11  ;;  %v15365_v11 = vld [vmem:[#allocation7 + $0x119c] sm:$0xf]  ;;  %v6184_v62 = vpop.f32.mrf.mxu3  ;;  %v15455_v46 = vld [vmem:[#allocation7 + $0x146c] sm:$0xf]  ;;  %v12803_v47 = vld [vmem:[#allocation7 + $0x14b0] sm:$0xf0]  ;;  %v13454_v9 = vor.u32 %v15617_v42, %v13451_v8  ;;  %v11654_v56 = vor.u32 %v15167_v43, %v11651_v45 }
 0x242   : > { %6436 = vmatpush.bf16.msra.mxu3 %v11078_v36  ;;  %v14951_v36 = vld [vmem:[#allocation7 + $0x4ac] sm:$0xf]  ;;  %v13379_v52 = vld [vmem:[#allocation7 + $0x1930] sm:$0xf0]  ;;  %v12806_v57 = vor.u32 %v15455_v46, %v12803_v47  ;;  %v12155_v62 = vld [vmem:[#allocation7 + $0xfa0] sm:$0xf0] }
 0x243   : > { %6398 = vmatpush.bf16.msra.mxu0 %v12730_v2  ;;  %v13595_v2 = vld [vmem:[#allocation7 + $0x1ae0] sm:$0xf0]  ;;  %v10790_v39 = vor.u32 %v14951_v36, %v10787_v61  ;;  %v15293_v36 = vld [vmem:[#allocation7 + $0xf5c] sm:$0xf]  ;;  %v15095_v45 = vld [vmem:[#allocation7 + $0x92c] sm:$0xf] }
 0x244   : > { %6411 = vmatpush.bf16.msra.mxu1 %v13306_v3  ;;  %v12446_v3 = vor.u32 %v15365_v11, %v12443_v53  ;;  %v13598_v21 = vor.u32 %v15653_v1, %v13595_v2  ;;  %v15599_v11 = vld [vmem:[#allocation7 + $0x18ec] sm:$0xf]  ;;  %v7048_v53 = vunpack.c.l.b16 %v6990_v0  ;;  %v12158_v14 = vor.u32 %v15293_v36, %v12155_v62  ;;  %v15545_v0 = vld [vmem:[#allocation7 + $0x173c] sm:$0xf]  ;;  %v13163_v43 = vld [vmem:[#allocation7 + $0x1780] sm:$0xf0] }
 0x245   : > { %6424 = vmatpush.bf16.msra.mxu2 %v10430_v49  ;;  %v11795_v49 = vld [vmem:[#allocation7 + $0xcd0] sm:$0xf0]  ;;  %v15239_v47 = vld [vmem:[#allocation7 + $0xdac] sm:$0xf] }
 0x246   : > { %6437 = vmatpush.bf16.msra.mxu3 %v11006_v19  ;;  %v12947_v19 = vld [vmem:[#allocation7 + $0x15d0] sm:$0xf0]  ;;  %v7124_v22 = vld [vmem:[#allocation2 + $0x1c] sm:$0xf]  ;;  %v6991_v59 = vld [vmem:[#allocation2 + $0x18] sm:$0xf]  ;;  %v11798_v18 = vor.u32 %v15203_v5, %v11795_v49  ;;  %v7049_v5 = vpack.c.b16 %v7048_v53, %v7048_v53  ;;  %v13166_v53 = vor.u32 %v15545_v0, %v13163_v43 }
 0x247   : > { %6399 = vmatpush.bf16.msra.mxu0 %v12658_v25  ;;  %v7183_v25 = vunpack.c.l.b16 %v7124_v22  ;;  %v12950_v44 = vor.u32 %v15491_v12, %v12947_v19  ;;  %v15131_v19 = vld [vmem:[#allocation7 + $0xa4c] sm:$0xf]  ;;  %v14889_v43 = vld [vmem:[#allocation7 + $0x2b4] sm:$0xf0] }
 0x248   : > { %6412 = vmatpush.bf16.msra.mxu1 %v13234_v17  ;;  %v7053_v17 = vunpack.c.l.b16 %v6991_v59  ;;  %v15275_v22 = vld [vmem:[#allocation7 + $0xecc] sm:$0xf]  ;;  %v12083_v59 = vld [vmem:[#allocation7 + $0xf10] sm:$0xf0] }
 0x249   : > { %6425 = vmatpush.bf16.msra.mxu2 %v10358_v15  ;;  %v11723_v15 = vld [vmem:[#allocation7 + $0xc40] sm:$0xf0]  ;;  %v7184_v35 = vpack.c.b16 %v7183_v25, %v7183_v25  ;;  %v15527_v62 = vld [vmem:[#allocation7 + $0x16ac] sm:$0xf] }
 0x24a   : > { %6438 = vmatpush.bf16.msra.mxu3 %v10934_v60  ;;  %v7054_v50 = vpack.c.b16 %v7053_v17, %v7053_v17  ;;  %v12875_v60 = vld [vmem:[#allocation7 + $0x1540] sm:$0xf0]  ;;  %v11726_v7 = vor.u32 %v15185_v27, %v11723_v15  ;;  %v13235_v27 = vld [vmem:[#allocation7 + $0x1810] sm:$0xf0]  ;;  %v12086_v15 = vor.u32 %v15275_v22, %v12083_v59 }
 0x24b   : > { %6400 = vmatpush.bf16.msra.mxu0 %v12586_v28  ;;  %7185 = vrot.lane.b32.xlu1 %v7184_v35, %s16379_s25  ;;  %v12302_v28 = vor.u32 %v15329_v31, %v12299_v37  ;;  %v15113_v35 = vld [vmem:[#allocation7 + $0x9bc] sm:$0xf] }
 0x24c   : > { %6413 = vmatpush.bf16.msra.mxu1 %v13162_v55  ;;  %v12878_v55 = vor.u32 %v15473_v58, %v12875_v60  ;;  %7055 = vrot.lane.b32.xlu0 %v7054_v50, %s16379_s25  ;;  %v11435_v50 = vld [vmem:[#allocation7 + $0xa00] sm:$0xf0]  ;;  %v15257_v37 = vld [vmem:[#allocation7 + $0xe3c] sm:$0xf] }
 0x24d   : > { %6426 = vmatpush.bf16.msra.mxu2 %v10286_v16  ;;  %v12227_v16 = vld [vmem:[#allocation7 + $0x1030] sm:$0xf0]  ;;  %v12011_v60 = vld [vmem:[#allocation7 + $0xe80] sm:$0xf0] }
 0x24e   : > { %6439 = vmatpush.bf16.msra.mxu3 %v10862_v51  ;;  %v7178_v51 = vunpack.c.l.b16 %v7123_v41  ;;  %v12230_v54 = vor.u32 %v15311_v48, %v12227_v16  ;;  %v12587_v41 = vld [vmem:[#allocation7 + $0x1300] sm:$0xf0]  ;;  %v11363_v48 = vld [vmem:[#allocation7 + $0x970] sm:$0xf0]  ;;  %v12014_v16 = vor.u32 %v15257_v37, %v12011_v60  ;;  %v11729_v60 = vld [vmem:[#allocation7 + $0xc00] sm:$0xf] }
 0x24f   : > { %6401 = vmatpush.bf16.msra.mxu0 %v12514_v26  ;;  %v15149_v26 = vld [vmem:[#allocation7 + $0xadc] sm:$0xf]  ;;  %v16744_v1 = vpop.f32.mrf.mxu0  ;;  %v11366_v36 = vor.u32 %v15095_v45, %v11363_v48  ;;  %v11081_v45 = vld [vmem:[#allocation7 + $0x6f0] sm:$0xf] }
 0x250   : > { %6414 = vmatpush.bf16.msra.mxu1 %v13090_v63  ;;  %v11579_v63 = vld [vmem:[#allocation7 + $0xb20] sm:$0xf0]  ;;  %v7179_v61 = vpack.c.b16 %v7178_v51, %v7178_v51  ;;  %v16746_v2 = vpop.f32.mrf.mxu1  ;;  %v11939_v51 = vld [vmem:[#allocation7 + $0xdf0] sm:$0xf0] }
 0x251   : > { %6427 = vmatpush.bf16.msra.mxu2 %v10214_v34  ;;  %v15437_v34 = vld [vmem:[#allocation7 + $0x13dc] sm:$0xf]  ;;  %v11582_v49 = vor.u32 %v15149_v26, %v11579_v63  ;;  %v11873_v26 = vld [vmem:[#allocation7 + $0xd20] sm:$0xf] }
 0x252   : > { %6440 = vmatpush.bf16.msra.mxu3 %v10790_v39  ;;  %6402 = vmatmul.bf16.vlgmr.msra.gmra.mxu0 %v16566_v30  ;;  %v13307_v39 = vld [vmem:[#allocation7 + $0x18a0] sm:$0xf0] }
 0x253   : > { %6446 = vmatpush.bf16.msrb.mxu0 %v11870_v33  ;;  %6415 = vmatmul.bf16.vlgmr.msra.gmra.mxu1 %v16568_v32  ;;  %v12731_v33 = vld [vmem:[#allocation7 + $0x1420] sm:$0xf0]  ;;  %v13310_v25 = vor.u32 %v15581_v6, %v13307_v39 }
 0x254   : > { %6459 = vmatpush.bf16.msrb.mxu1 %v12446_v3  ;;  %6428 = vmatmul.bf16.vlgmr.msra.gmra.mxu2 %v16552_v10  ;;  %v13382_v3 = vor.u32 %v15599_v11, %v13379_v52  ;;  %v12734_v12 = vor.u32 %v15437_v34, %v12731_v33  ;;  %v10721_v11 = vld [vmem:[#allocation7 + $0x420] sm:$0xf]  ;;  %v14943_v52 = vld [vmem:[#allocation7 + $0x464] sm:$0xf0]  ;;  %v13091_v34 = vld [vmem:[#allocation7 + $0x16f0] sm:$0xf0]  ;;  %v11942_v33 = vor.u32 %v15239_v47, %v11939_v51 }
 0x255   : > { %6472 = vmatpush.bf16.msrb.mxu2 %v13022_v13  ;;  %6441 = vmatmul.bf16.vlgmr.msra.gmra.mxu3 %v16557_v20  ;;  %v7383_v13 = vld [vmem:[#allocation2 + $0xc] sm:$0xf]  ;;  %v15177_v47 = vld [vmem:[#allocation7 + $0xbb4] sm:$0xf0]  ;;  %v12233_v51 = vld [vmem:[#allocation7 + $0xff0] sm:$0xf] }
 0x256   : > { %6485 = vmatpush.bf16.msrb.mxu3 %v13598_v21  ;;  %7180 = vrot.lane.b32.xlu1 %v7179_v61, %s16379_s25  ;;  %v11507_v21 = vld [vmem:[#allocation7 + $0xa90] sm:$0xf0]  ;;  %v7438_v24 = vunpack.c.l.b16 %v7383_v13  ;;  %v15231_v61 = vld [vmem:[#allocation7 + $0xd64] sm:$0xf0]  ;;  %v12449_v13 = vld [vmem:[#allocation7 + $0x11a0] sm:$0xf] }
 0x257   : > { %6447 = vmatpush.bf16.msrb.mxu0 %v11798_v18  ;;  %7050 = vrot.lane.b32.xlu0 %v7049_v5, %s16379_s25  ;;  %v15419_v18 = vld [vmem:[#allocation7 + $0x134c] sm:$0xf]  ;;  %v16750_v17 = vpop.f32.mrf.mxu2  ;;  %v15375_v5 = vld [vmem:[#allocation7 + $0x11e4] sm:$0xf0]  ;;  %v11874_v39 = vor.u32 %v15231_v61, %v11873_v26  ;;  %v11009_v26 = vld [vmem:[#allocation7 + $0x660] sm:$0xf] }
 0x258   : > { %6460 = vmatpush.bf16.msrb.mxu1 %v12374_v29  ;;  %v11510_v29 = vor.u32 %v15131_v19, %v11507_v21  ;;  %v12662_v31 = vor.u32 %v15419_v18, %v12659_v23  ;;  %v7439_v58 = vpack.c.b16 %v7438_v24, %v7438_v24  ;;  %v6210_v42 = vpop.f32.mrf.mxu1  ;;  %v14925_v19 = vld [vmem:[#allocation7 + $0x3d4] sm:$0xf0]  ;;  %v11225_v21 = vld [vmem:[#allocation7 + $0x810] sm:$0xf]  ;;  %v12450_v59 = vor.u32 %v15375_v5, %v12449_v13  ;;  %v15015_v61 = vld [vmem:[#allocation7 + $0x6a4] sm:$0xf0] }
 0x259   : > { %6473 = vmatpush.bf16.msrb.mxu2 %v12950_v44  ;;  %v15563_v44 = vld [vmem:[#allocation7 + $0x17cc] sm:$0xf]  ;;  %v15069_v18 = vld [vmem:[#allocation7 + $0x854] sm:$0xf0]  ;;  %v11801_v23 = vld [vmem:[#allocation7 + $0xc90] sm:$0xf]  ;;  %v11010_v5 = vor.u32 %v15015_v61, %v11009_v26 }
 0x25a   : > { %6486 = vmatpush.bf16.msrb.mxu3 %v13526_v40  ;;  %v15401_v40 = vld [vmem:[#allocation7 + $0x12bc] sm:$0xf]  ;;  %v13238_v8 = vor.u32 %v15563_v44, %v13235_v27  ;;  %v15213_v24 = vld [vmem:[#allocation7 + $0xcd4] sm:$0xf0]  ;;  %v11226_v27 = vor.u32 %v15069_v18, %v11225_v21  ;;  %v11513_v21 = vld [vmem:[#allocation7 + $0xa50] sm:$0xf] }
 0x25b   : > { %6448 = vmatpush.bf16.msrb.mxu0 %v11726_v7  ;;  %v6197_v7 = vpop.f32.mrf.mxu0  ;;  %v12590_v46 = vor.u32 %v15401_v40, %v12587_v41  ;;  %v15195_v40 = vld [vmem:[#allocation7 + $0xc44] sm:$0xf0]  ;;  %v12305_v41 = vld [vmem:[#allocation7 + $0x1080] sm:$0xf]  ;;  %v15285_v18 = vld [vmem:[#allocation7 + $0xf14] sm:$0xf0] }
 0x25c   : > { %6461 = vmatpush.bf16.msrb.mxu1 %v12302_v28  ;;  %v16752_v28 = vpop.f32.mrf.mxu3  ;;  %v15339_v7 = vld [vmem:[#allocation7 + $0x10c4] sm:$0xf0]  ;;  %v11730_v0 = vor.u32 %v15195_v40, %v11729_v60  ;;  %v11441_v60 = vld [vmem:[#allocation7 + $0x9c0] sm:$0xf]  ;;  %v11945_v61 = vld [vmem:[#allocation7 + $0xdb0] sm:$0xf] }
 0x25d   : > { %6474 = vmatpush.bf16.msrb.mxu2 %v12878_v55  ;;  %v11438_v55 = vor.u32 %v15113_v35, %v11435_v50  ;;  %v14907_v35 = vld [vmem:[#allocation7 + $0x344] sm:$0xf0]  ;;  %v11153_v50 = vld [vmem:[#allocation7 + $0x780] sm:$0xf]  ;;  %v12306_v48 = vor.u32 %v15339_v7, %v12305_v41 }
 0x25e   : > { %6487 = vmatpush.bf16.msrb.mxu3 %v13454_v9  ;;  %7440 = vrot.lane.b32.xlu1 %v7439_v58, %s16379_s25  ;;  %v15383_v9 = vld [vmem:[#allocation7 + $0x122c] sm:$0xf]  ;;  %v15051_v58 = vld [vmem:[#allocation7 + $0x7c4] sm:$0xf0]  ;;  %v12017_v7 = vld [vmem:[#allocation7 + $0xe40] sm:$0xf] }
 0x25f   : > { %6449 = vmatpush.bf16.msrb.mxu0 %v11654_v56  ;;  %v12515_v56 = vld [vmem:[#allocation7 + $0x1270] sm:$0xf0]  ;;  %v6223_v63 = vpop.f32.mrf.mxu2  ;;  %v15123_v40 = vld [vmem:[#allocation7 + $0xa04] sm:$0xf0] }
 0x260   : > { %6462 = vmatpush.bf16.msrb.mxu1 %v12230_v54  ;;  %v11297_v54 = vld [vmem:[#allocation7 + $0x8a0] sm:$0xf] }
 0x261   : > { %6475 = vmatpush.bf16.msrb.mxu2 %v12806_v57  ;;  %v15087_v57 = vld [vmem:[#allocation7 + $0x8e4] sm:$0xf0] }
 0x262   : > { %6488 = vmatpush.bf16.msrb.mxu3 %v13382_v3  ;;  %v12518_v3 = vor.u32 %v15383_v9, %v12515_v56  ;;  %v11298_v6 = vor.u32 %v15087_v57, %v11297_v54  ;;  %v15321_v9 = vld [vmem:[#allocation7 + $0x1034] sm:$0xf0]  ;;  %v10433_v54 = vld [vmem:[#allocation7 + $0x1e0] sm:$0xf]  ;;  %v14871_v57 = vld [vmem:[#allocation7 + $0x224] sm:$0xf0] }
 0x263   : > { %6450 = vmatpush.bf16.msrb.mxu0 %v11582_v49  ;;  %v10722_v49 = vor.u32 %v14943_v52, %v10721_v11  ;;  %v10434_v13 = vor.u32 %v14871_v57, %v10433_v54  ;;  %v15663_v54 = vld [vmem:[#allocation7 + $0x1ae4] sm:$0xf0]  ;;  %v14934_v57 = vld [vmem:[#allocation7 + $0x424] sm:$0xf] }
 0x264   : > { %6463 = vmatpush.bf16.msrb.mxu1 %v12158_v14  ;;  %v13094_v14 = vor.u32 %v15527_v62, %v13091_v34  ;;  %v6236_v22 = vpop.f32.mrf.mxu3  ;;  %v11585_v62 = vld [vmem:[#allocation7 + $0xae0] sm:$0xf]  ;;  %v15159_v34 = vld [vmem:[#allocation7 + $0xb24] sm:$0xf0] }
 0x265   : > { %6476 = vmatpush.bf16.msrb.mxu2 %v12734_v12  ;;  %v10649_v12 = vld [vmem:[#allocation7 + $0x390] sm:$0xf]  ;;  %v15141_v22 = vld [vmem:[#allocation7 + $0xa94] sm:$0xf0] }
 0x266   : > { %6489 = vmatpush.bf16.msrb.mxu3 %v13310_v25  ;;  %v12377_v25 = vld [vmem:[#allocation7 + $0x1110] sm:$0xf]  ;;  %v10650_v44 = vor.u32 %v14925_v19, %v10649_v12  ;;  %v14997_v19 = vld [vmem:[#allocation7 + $0x614] sm:$0xf0] }
 0x267   : > { %6451 = vmatpush.bf16.msrb.mxu0 %v11510_v29  ;;  %v15357_v29 = vld [vmem:[#allocation7 + $0x1154] sm:$0xf0] }
 0x268   : > { %6464 = vmatpush.bf16.msrb.mxu1 %v12086_v15  ;;  %v11802_v15 = vor.u32 %v15213_v24, %v11801_v23  ;;  %v12378_v37 = vor.u32 %v15357_v29, %v12377_v25  ;;  %v16763_v23 = vld [vmem:[#allocation9 + $0x8] sm:$0xff] }
 0x269   : > { %6477 = vmatpush.bf16.msrb.mxu2 %v12662_v31  ;;  %v10577_v31 = vld [vmem:[#allocation7 + $0x300] sm:$0xf] }
 0x26a   : > { %6490 = vmatpush.bf16.msrb.mxu3 %v13238_v8  ;;  %v10578_v42 = vor.u32 %v14907_v35, %v10577_v31  ;;  %v11154_v8 = vor.u32 %v15051_v58, %v11153_v50  ;;  %v14835_v31 = vld [vmem:[#allocation7 + $0x104] sm:$0xf0]  ;;  %v10865_v35 = vld [vmem:[#allocation7 + $0x540] sm:$0xf] }
 0x26b   : > { %6452 = vmatpush.bf16.msrb.mxu0 %v11438_v55  ;;  %v10505_v55 = vld [vmem:[#allocation7 + $0x270] sm:$0xf]  ;;  %v14979_v58 = vld [vmem:[#allocation7 + $0x584] sm:$0xf0] }
 0x26c   : > { %6465 = vmatpush.bf16.msrb.mxu1 %v12014_v16  ;;  %v15033_v16 = vld [vmem:[#allocation7 + $0x734] sm:$0xf0]  ;;  %v10506_v56 = vor.u32 %v14889_v43, %v10505_v55  ;;  %v10217_v55 = vld [vmem:[#allocation7 + $0x30] sm:$0xf] }
 0x26d   : > { %6478 = vmatpush.bf16.msrb.mxu2 %v12590_v46  ;;  %v11657_v46 = vld [vmem:[#allocation7 + $0xb70] sm:$0xf]  ;;  %v11082_v52 = vor.u32 %v15033_v16, %v11081_v45  ;;  %v14817_v43 = vld [vmem:[#allocation7 + $0x74] sm:$0xf0]  ;;  %v10866_v45 = vor.u32 %v14979_v58, %v10865_v35 }
 0x26e   : > { %6491 = vmatpush.bf16.msrb.mxu3 %v13166_v53  ;;  %v11658_v53 = vor.u32 %v15177_v47, %v11657_v46  ;;  %v10793_v16 = vld [vmem:[#allocation7 + $0x4b0] sm:$0xf]  ;;  %v14961_v46 = vld [vmem:[#allocation7 + $0x4f4] sm:$0xf0]  ;;  %v10218_v26 = vor.u32 %v14817_v43, %v10217_v55  ;;  %v10579_v55 = vld [vmem:[#allocation7 + $0x348] sm:$0xf0] }
 0x26f   : > { %6453 = vmatpush.bf16.msrb.mxu0 %v11366_v36  ;;  %v16759_v11 = vpop.f32.mrf.mxu0  ;;  %v12234_v36 = vor.u32 %v15321_v9, %v12233_v51  ;;  %v11369_v47 = vld [vmem:[#allocation7 + $0x930] sm:$0xf]  ;;  %v15105_v9 = vld [vmem:[#allocation7 + $0x974] sm:$0xf0]  ;;  %v15042_v43 = vld [vmem:[#allocation7 + $0x784] sm:$0xf] }
 0x270   : > { %6466 = vmatpush.bf16.msrb.mxu1 %v11942_v33  ;;  %v16761_v63 = vpop.f32.mrf.mxu1  ;;  %v12161_v33 = vld [vmem:[#allocation7 + $0xf60] sm:$0xf] }
 0x271   : > { %6479 = vmatpush.bf16.msrb.mxu2 %v12518_v3  ;;  %v15303_v3 = vld [vmem:[#allocation7 + $0xfa4] sm:$0xf0] }
 0x272   : > { %6492 = vmatpush.bf16.msrb.mxu3 %v13094_v14  ;;  %6454 = vmatmul.bf16.vlgmr.msrb.gmra.mxu0 %v16549_v4  ;;  %v10937_v14 = vld [vmem:[#allocation7 + $0x5d0] sm:$0xf]  ;;  %v12162_v12 = vor.u32 %v15303_v3, %v12161_v33  ;;  %v10794_v33 = vor.u32 %v14961_v46, %v10793_v16  ;;  %v11370_v3 = vor.u32 %v15105_v9, %v11369_v47  ;;  %v15465_v47 = vld [vmem:[#allocation7 + $0x14b4] sm:$0xf0] }
 0x273   : > { %6498 = vmatpush.bf16.msra.mxu0 %v10722_v49  ;;  %6467 = vmatmul.bf16.vlgmr.msrb.gmra.mxu1 %v16561_v38  ;;  %v11586_v49 = vor.u32 %v15159_v34, %v11585_v62  ;;  %v15249_v62 = vld [vmem:[#allocation7 + $0xdf4] sm:$0xf0]  ;;  %v12809_v16 = vld [vmem:[#allocation7 + $0x1470] sm:$0xf] }
 0x274   : > { %6511 = vmatpush.bf16.msra.mxu1 %v11298_v6  ;;  %6480 = vmatmul.bf16.vlgmr.msrb.gmra.mxu2 %v16566_v30  ;;  %v10361_v6 = vld [vmem:[#allocation7 + $0x150] sm:$0xf]  ;;  %v15609_v9 = vld [vmem:[#allocation7 + $0x1934] sm:$0xf0] }
 0x275   : > { %6524 = vmatpush.bf16.msra.mxu2 %v11874_v39  ;;  %6493 = vmatmul.bf16.vlgmr.msrb.gmra.mxu3 %v16568_v32  ;;  %v14853_v39 = vld [vmem:[#allocation7 + $0x194] sm:$0xf0] }
 0x276   : > { %6537 = vmatpush.bf16.msra.mxu3 %v12450_v59  ;;  %v12089_v59 = vld [vmem:[#allocation7 + $0xed0] sm:$0xf]  ;;  %v10362_v24 = vor.u32 %v14853_v39, %v10361_v6 }
 0x277   : > { %6499 = vmatpush.bf16.msra.mxu0 %v10650_v44  ;;  %v16765_v25 = vpop.f32.mrf.mxu2  ;;  %v6249_v29 = vpop.f32.mrf.mxu0  ;;  %v10938_v44 = vor.u32 %v14997_v19, %v10937_v14  ;;  %v12953_v39 = vld [vmem:[#allocation7 + $0x1590] sm:$0xf] }
 0x278   : > { %6512 = vmatpush.bf16.msra.mxu1 %v11226_v27  ;;  %v11514_v27 = vor.u32 %v15141_v22, %v11513_v21  ;;  %v6262_v50 = vpop.f32.mrf.mxu1  ;;  %v16767_v41 = vpop.f32.mrf.mxu3  ;;  %v11946_v21 = vor.u32 %v15249_v62, %v11945_v61  ;;  %v15501_v22 = vld [vmem:[#allocation7 + $0x15d4] sm:$0xf0] }
 0x279   : > { %6525 = vmatpush.bf16.msra.mxu2 %v11802_v15  ;;  %v10289_v15 = vld [vmem:[#allocation7 + $0xc0] sm:$0xf]  ;;  %v12954_v35 = vor.u32 %v15501_v22, %v12953_v39  ;;  %v14862_v39 = vld [vmem:[#allocation7 + $0x1e4] sm:$0xf] }
 0x27a   : > { %6538 = vmatpush.bf16.msra.mxu3 %v12378_v37  ;;  %v12090_v37 = vor.u32 %v15285_v18, %v12089_v59  ;;  %v13529_v59 = vld [vmem:[#allocation7 + $0x1a10] sm:$0xf]  ;;  %v15645_v18 = vld [vmem:[#allocation7 + $0x1a54] sm:$0xf0] }
 0x27b   : > { %6500 = vmatpush.bf16.msra.mxu0 %v10578_v42  ;;  %v15267_v42 = vld [vmem:[#allocation7 + $0xe84] sm:$0xf0]  ;;  %v13530_v50 = vor.u32 %v15645_v18, %v13529_v59 }
 0x27c   : > { %6513 = vmatpush.bf16.msra.mxu1 %v11154_v8  ;;  %v1214_v8 = vperm.slane %v16763_v23, 0  ;;  %v12018_v51 = vor.u32 %v15267_v42, %v12017_v7  ;;  %v15627_v7 = vld [vmem:[#allocation7 + $0x19c4] sm:$0xf0] }
 0x27d   : > { %6526 = vmatpush.bf16.msra.mxu2 %v11730_v0  ;;  %v10290_v0 = vor.u32 %v14835_v31, %v10289_v15  ;;  %v15060_v15 = vld [vmem:[#allocation7 + $0x814] sm:$0xf]  ;;  %v11227_v31 = vld [vmem:[#allocation7 + $0x858] sm:$0xf0] }
 0x27e   : > { %6539 = vmatpush.bf16.msra.mxu3 %v12306_v48  ;;  %v11442_v48 = vor.u32 %v15123_v40, %v11441_v60  ;;  %v15483_v60 = vld [vmem:[#allocation7 + $0x1544] sm:$0xf0]  ;;  %v13457_v40 = vld [vmem:[#allocation7 + $0x1980] sm:$0xf] }
 0x27f   : > { %6501 = vmatpush.bf16.msra.mxu0 %v10506_v56  ;;  %v13025_v56 = vld [vmem:[#allocation7 + $0x1620] sm:$0xf]  ;;  %v6275_v34 = vpop.f32.mrf.mxu2 }
 0x280   : > { %6514 = vmatpush.bf16.msra.mxu1 %v11082_v52  ;;  %v15519_v52 = vld [vmem:[#allocation7 + $0x1664] sm:$0xf0]  ;;  %v6288_v14 = vpop.f32.mrf.mxu3 }
 0x281   : > { %6527 = vmatpush.bf16.msra.mxu2 %v11658_v53  ;;  %v13601_v53 = vld [vmem:[#allocation7 + $0x1aa0] sm:$0xf]  ;;  %v10435_v14 = vld [vmem:[#allocation7 + $0x228] sm:$0xf0] }
 0x282   : > { %6540 = vmatpush.bf16.msra.mxu3 %v12234_v36  ;;  %v10723_v36 = vld [vmem:[#allocation7 + $0x468] sm:$0xf0]  ;;  %v13602_v6 = vor.u32 %v15663_v54, %v13601_v53  ;;  %v14880_v53 = vld [vmem:[#allocation7 + $0x274] sm:$0xf]  ;;  %v10507_v54 = vld [vmem:[#allocation7 + $0x2b8] sm:$0xf0] }
 0x283   : > { %6502 = vmatpush.bf16.msra.mxu0 %v10434_v13  ;;  %v15078_v13 = vld [vmem:[#allocation7 + $0x8a4] sm:$0xf]  ;;  %v10726_v19 = vor.u32 %v14934_v57, %v10723_v36  ;;  %v15024_v57 = vld [vmem:[#allocation7 + $0x6f4] sm:$0xf]  ;;  %v12810_v36 = vor.u32 %v15465_v47, %v12809_v16  ;;  %v10510_v34 = vor.u32 %v14880_v53, %v10507_v54  ;;  %v15393_v53 = vld [vmem:[#allocation7 + $0x1274] sm:$0xf0] }
 0x284   : > { %6515 = vmatpush.bf16.msra.mxu1 %v11010_v5  ;;  %v11299_v5 = vld [vmem:[#allocation7 + $0x8e8] sm:$0xf0]  ;;  %v13097_v54 = vld [vmem:[#allocation7 + $0x16b0] sm:$0xf] }
 0x285   : > { %6528 = vmatpush.bf16.msra.mxu2 %v11586_v49  ;;  %v13026_v49 = vor.u32 %v15519_v52, %v13025_v56  ;;  %v11302_v29 = vor.u32 %v15078_v13, %v11299_v5  ;;  %v15447_v13 = vld [vmem:[#allocation7 + $0x1424] sm:$0xf0]  ;;  %v13313_v5 = vld [vmem:[#allocation7 + $0x1860] sm:$0xf] }
 0x286   : > { %6541 = vmatpush.bf16.msra.mxu3 %v12162_v12  ;;  %v6196_v12 = vadd.f32 %v16744_v1, %v1214_v8  ;;  %v12881_v1 = vld [vmem:[#allocation7 + $0x1500] sm:$0xf]  ;;  %v11230_v8 = vor.u32 %v15060_v15, %v11227_v31 }
 0x287   : > { %6503 = vmatpush.bf16.msra.mxu0 %v10362_v24  ;;  %v1215_v24 = vperm.slane %v16763_v23, 1 }
 0x288   : > { %6516 = vmatpush.bf16.msra.mxu1 %v10938_v44  ;;  %v14916_v44 = vld [vmem:[#allocation7 + $0x394] sm:$0xf] }
 0x289   : > { %6529 = vmatpush.bf16.msra.mxu2 %v11514_v27  ;;  %v10651_v27 = vld [vmem:[#allocation7 + $0x3d8] sm:$0xf0]  ;;  %v6274_v42 = vadd.f32 %v16765_v25, %v1215_v24  ;;  %v10438_v24 = vor.u32 %v14862_v39, %v10435_v14  ;;  %v14952_v39 = vld [vmem:[#allocation7 + $0x4b4] sm:$0xf] }
 0x28a   : > { %6542 = vmatpush.bf16.msra.mxu3 %v12090_v37  ;;  %v6209_v37 = vadd.f32 %v16746_v2, %v6196_v12  ;;  %v10654_v58 = vor.u32 %v14916_v44, %v10651_v27  ;;  %v12882_v2 = vor.u32 %v15483_v60, %v12881_v1  ;;  %v15006_v12 = vld [vmem:[#allocation7 + $0x664] sm:$0xf]  ;;  %v13241_v44 = vld [vmem:[#allocation7 + $0x17d0] sm:$0xf]  ;;  %v15573_v27 = vld [vmem:[#allocation7 + $0x1814] sm:$0xf0] }
 0x28b   : > { %6504 = vmatpush.bf16.msra.mxu0 %v10290_v0  ;;  %v14898_v0 = vld [vmem:[#allocation7 + $0x304] sm:$0xf]  ;;  %v6287_v56 = vadd.f32 %v16767_v41, %v6274_v42  ;;  %v15591_v41 = vld [vmem:[#allocation7 + $0x18a4] sm:$0xf0]  ;;  %v12593_v42 = vld [vmem:[#allocation7 + $0x12c0] sm:$0xf] }
 0x28c   : > { %6517 = vmatpush.bf16.msra.mxu1 %v10866_v45  ;;  %v11155_v45 = vld [vmem:[#allocation7 + $0x7c8] sm:$0xf0]  ;;  %v6222_v46 = vadd.f32 %v16750_v17, %v6209_v37  ;;  %v10582_v25 = vor.u32 %v14898_v0, %v10579_v55  ;;  %v12737_v17 = vld [vmem:[#allocation7 + $0x13e0] sm:$0xf]  ;;  %v13314_v59 = vor.u32 %v15591_v41, %v13313_v5  ;;  %v14988_v37 = vld [vmem:[#allocation7 + $0x5d4] sm:$0xf] }
 0x28d   : > { %6530 = vmatpush.bf16.msra.mxu2 %v11442_v48  ;;  %v13458_v48 = vor.u32 %v15627_v7, %v13457_v40  ;;  %v11158_v52 = vor.u32 %v15042_v43, %v11155_v45  ;;  %v12738_v22 = vor.u32 %v15447_v13, %v12737_v17  ;;  %v13242_v7 = vor.u32 %v15573_v27, %v13241_v44  ;;  %v15411_v55 = vld [vmem:[#allocation7 + $0x1304] sm:$0xf0]  ;;  %v13169_v43 = vld [vmem:[#allocation7 + $0x1740] sm:$0xf]  ;;  %v12451_v13 = vld [vmem:[#allocation7 + $0x11e8] sm:$0xf0] }
 0x28e   : > { %6543 = vmatpush.bf16.msra.mxu3 %v12018_v51  ;;  %v13385_v51 = vld [vmem:[#allocation7 + $0x18f0] sm:$0xf]  ;;  %v6235_v62 = vadd.f32 %v16752_v28, %v6222_v46  ;;  %v15555_v45 = vld [vmem:[#allocation7 + $0x1784] sm:$0xf0]  ;;  %v14826_v46 = vld [vmem:[#allocation7 + $0xc4] sm:$0xf] }
 0x28f   : > { %6505 = vmatpush.bf16.msra.mxu0 %v10218_v26  ;;  %v11083_v26 = vld [vmem:[#allocation7 + $0x738] sm:$0xf0]  ;;  %v13386_v61 = vor.u32 %v15609_v9, %v13385_v51  ;;  %v12665_v28 = vld [vmem:[#allocation7 + $0x1350] sm:$0xf]  ;;  %v14970_v51 = vld [vmem:[#allocation7 + $0x544] sm:$0xf] }
 0x290   : > { %6518 = vmatpush.bf16.msra.mxu1 %v10794_v33  ;;  %v6299_v33 = vpop.f32.mrf.mxu0  ;;  %v6248_v18 = vadd.f32 %v16759_v11, %v6235_v62  ;;  %v10867_v9 = vld [vmem:[#allocation7 + $0x588] sm:$0xf0]  ;;  %v15222_v62 = vld [vmem:[#allocation7 + $0xd24] sm:$0xf]  ;;  %v10795_v14 = vld [vmem:[#allocation7 + $0x4f8] sm:$0xf0] }
 0x291   : > { %6531 = vmatpush.bf16.msra.mxu2 %v11370_v3  ;;  %v6312_v3 = vpop.f32.mrf.mxu1  ;;  %v10870_v17 = vor.u32 %v14970_v51, %v10867_v9  ;;  %v15510_v5 = vld [vmem:[#allocation7 + $0x1624] sm:$0xf]  ;;  %v13027_v41 = vld [vmem:[#allocation7 + $0x1668] sm:$0xf0]  ;;  %v15348_v44 = vld [vmem:[#allocation7 + $0x1114] sm:$0xf]  ;;  %v10798_v27 = vor.u32 %v14952_v39, %v10795_v14 }
 0x292   : > { %6544 = vmatpush.bf16.msra.mxu3 %v11946_v21  ;;  %6506 = vmatmul.bf16.vlgmr.msra.gmra.mxu0 %v16552_v10  ;;  %v6261_v11 = vadd.f32 %v16761_v63, %v6248_v18  ;;  %v13170_v63 = vor.u32 %v15555_v45, %v13169_v43  ;;  %v13030_v18 = vor.u32 %v15510_v5, %v13027_v41  ;;  %v15330_v43 = vld [vmem:[#allocation7 + $0x1084] sm:$0xf]  ;;  %v11587_v39 = vld [vmem:[#allocation7 + $0xb28] sm:$0xf0] }
 0x293   : > { %6550 = vmatpush.bf16.msrb.mxu0 %v13026_v49  ;;  %6519 = vmatmul.bf16.vlgmr.msra.gmra.mxu1 %v16557_v20  ;;  %v6300_v49 = vadd.f32 %v6299_v33, %v6287_v56  ;;  %v12521_v56 = vld [vmem:[#allocation7 + $0x1230] sm:$0xf]  ;;  %v15366_v33 = vld [vmem:[#allocation7 + $0x11a4] sm:$0xf] }
 0x294   : > { %6563 = vmatpush.bf16.msrb.mxu1 %v13602_v6  ;;  %6532 = vmatmul.bf16.vlgmr.msra.gmra.mxu2 %v16549_v4  ;;  %v11086_v6 = vor.u32 %v15024_v57, %v11083_v26  ;;  %v15537_v57 = vld [vmem:[#allocation7 + $0x16f4] sm:$0xf0]  ;;  %v15618_v9 = vld [vmem:[#allocation7 + $0x1984] sm:$0xf] }
 0x295   : > { %6576 = vmatpush.bf16.msrb.mxu2 %v10726_v19  ;;  %6545 = vmatmul.bf16.vlgmr.msra.gmra.mxu3 %v16561_v38  ;;  %v11011_v19 = vld [vmem:[#allocation7 + $0x6a8] sm:$0xf0]  ;;  %v6313_v21 = vadd.f32 %v6312_v3, %v6300_v49  ;;  %v12522_v49 = vor.u32 %v15393_v53, %v12521_v56  ;;  %v15294_v14 = vld [vmem:[#allocation7 + $0xf64] sm:$0xf] }
 0x296   : > { %6589 = vmatpush.bf16.msrb.mxu3 %v11302_v29  ;;  %v15429_v29 = vld [vmem:[#allocation7 + $0x1394] sm:$0xf0]  ;;  %v11014_v31 = vor.u32 %v15006_v12, %v11011_v19  ;;  %v13459_v56 = vld [vmem:[#allocation7 + $0x19c8] sm:$0xf0] }
 0x297   : > { %6551 = vmatpush.bf16.msrb.mxu0 %v12954_v35  ;;  %v6325_v15 = vpop.f32.mrf.mxu2  ;;  %v14844_v35 = vld [vmem:[#allocation7 + $0x154] sm:$0xf]  ;;  %v12666_v40 = vor.u32 %v15429_v29, %v12665_v28  ;;  %v12454_v28 = vor.u32 %v15366_v33, %v12451_v13  ;;  %v11803_v29 = vld [vmem:[#allocation7 + $0xcd8] sm:$0xf0] }
 0x298   : > { %6564 = vmatpush.bf16.msrb.mxu1 %v13530_v50  ;;  %v10363_v50 = vld [vmem:[#allocation7 + $0x198] sm:$0xf0]  ;;  %v6326_v1 = vadd.f32 %v6325_v15, %v6313_v21  ;;  %v6338_v60 = vpop.f32.mrf.mxu3 }
 0x299   : > { %6577 = vmatpush.bf16.msrb.mxu2 %v10654_v58  ;;  %v10939_v58 = vld [vmem:[#allocation7 + $0x618] sm:$0xf0]  ;;  %v10366_v0 = vor.u32 %v14844_v35, %v10363_v50 }
 0x29a   : > { %6590 = vmatpush.bf16.msrb.mxu3 %v11230_v8  ;;  %v6339_v8 = vadd.f32 %v6338_v60, %v6326_v1  ;;  %v10942_v16 = vor.u32 %v14988_v37, %v10939_v58  ;;  %v12379_v15 = vld [vmem:[#allocation7 + $0x1158] sm:$0xf0]  ;;  %v15636_v60 = vld [vmem:[#allocation7 + $0x1a14] sm:$0xf] }
 0x29b   : > { %6552 = vmatpush.bf16.msrb.mxu0 %v12882_v2  ;;  %v6301_v2 = vpop.f32.mrf.mxu0  ;;  %v12955_v35 = vld [vmem:[#allocation7 + $0x15d8] sm:$0xf0] }
 0x29c   : > { %6565 = vmatpush.bf16.msrb.mxu1 %v13458_v48  ;;  %v6314_v48 = vpop.f32.mrf.mxu1  ;;  %v6970_v47 = vpack.c.bf16 %v6339_v8, %v6261_v11  ;;  %v12382_v11 = vor.u32 %v15348_v44, %v12379_v15  ;;  %v13387_v13 = vld [vmem:[#allocation7 + $0x1938] sm:$0xf0]  ;;  %v15582_v44 = vld [vmem:[#allocation7 + $0x1864] sm:$0xf] }
 0x29d   : > { %6578 = vmatpush.bf16.msrb.mxu2 %v10582_v25  ;;  %v10291_v25 = vld [vmem:[#allocation7 + $0x108] sm:$0xf0] }
 0x29e   : > { %6591 = vmatpush.bf16.msrb.mxu3 %v11158_v52  ;;  %v12594_v52 = vor.u32 %v15411_v55, %v12593_v42  ;;  %6979 = vst [vmem:[#allocation2 + $0x20] sm:$0xff] %v6970_v47  ;;  %v10294_v26 = vor.u32 %v14826_v46, %v10291_v25  ;;  %v11731_v55 = vld [vmem:[#allocation7 + $0xc48] sm:$0xf0]  ;;  %v7253_v47 = vld [vmem:[#allocation2 + $0x8] sm:$0xf] }
 0x29f   : > { %6553 = vmatpush.bf16.msrb.mxu0 %v12810_v36  ;;  %v14808_v36 = vld [vmem:[#allocation7 + $0x34] sm:$0xf]  ;;  %v6327_v3 = vpop.f32.mrf.mxu2  ;;  %v12307_v48 = vld [vmem:[#allocation7 + $0x10c8] sm:$0xf0] }
 0x2a0   : > { %6566 = vmatpush.bf16.msrb.mxu1 %v13386_v61  ;;  %v10219_v61 = vld [vmem:[#allocation7 + $0x78] sm:$0xf0]  ;;  %v6340_v12 = vpop.f32.mrf.mxu3  ;;  %v12883_v46 = vld [vmem:[#allocation7 + $0x1548] sm:$0xf0]  ;;  %v15600_v3 = vld [vmem:[#allocation7 + $0x18f4] sm:$0xf] }
 0x2a1   : > { %6579 = vmatpush.bf16.msrb.mxu2 %v10510_v34  ;;  %v11875_v34 = vld [vmem:[#allocation7 + $0xd68] sm:$0xf0]  ;;  %v10222_v19 = vor.u32 %v14808_v36, %v10219_v61  ;;  %v12235_v36 = vld [vmem:[#allocation7 + $0x1038] sm:$0xf0]  ;;  %v15456_v61 = vld [vmem:[#allocation7 + $0x1474] sm:$0xf] }
 0x2a2   : > { %6592 = vmatpush.bf16.msrb.mxu3 %v11086_v6  ;;  %v13098_v6 = vor.u32 %v15537_v57, %v13097_v54  ;;  %v11878_v21 = vor.u32 %v15222_v62, %v11875_v34  ;;  %v15168_v54 = vld [vmem:[#allocation7 + $0xb74] sm:$0xf]  ;;  %v11659_v57 = vld [vmem:[#allocation7 + $0xbb8] sm:$0xf0]  ;;  %v7308_v62 = vunpack.c.l.b16 %v7253_v47  ;;  %v13462_v34 = vor.u32 %v15618_v9, %v13459_v56  ;;  %v15546_v9 = vld [vmem:[#allocation7 + $0x1744] sm:$0xf] }
 0x2a3   : > { %6554 = vmatpush.bf16.msrb.mxu0 %v12738_v22  ;;  %v15654_v22 = vld [vmem:[#allocation7 + $0x1aa4] sm:$0xf]  ;;  %v11662_v33 = vor.u32 %v15168_v54, %v11659_v57  ;;  %v11371_v54 = vld [vmem:[#allocation7 + $0x978] sm:$0xf0] }
 0x2a4   : > { %6567 = vmatpush.bf16.msrb.mxu1 %v13314_v59  ;;  %v13603_v59 = vld [vmem:[#allocation7 + $0x1ae8] sm:$0xf0]  ;;  %v7309_v12 = vpack.c.b16 %v7308_v62, %v7308_v62  ;;  %v12523_v62 = vld [vmem:[#allocation7 + $0x1278] sm:$0xf0] }
 0x2a5   : > { %6580 = vmatpush.bf16.msrb.mxu2 %v10438_v24  ;;  %v15204_v24 = vld [vmem:[#allocation7 + $0xc94] sm:$0xf]  ;;  %v13606_v50 = vor.u32 %v15654_v22, %v13603_v59  ;;  %v7254_v1 = vld [vmem:[#allocation2 + $0x20] sm:$0xf]  ;;  %v7384_v37 = vld [vmem:[#allocation2 + $0x24] sm:$0xf] }
 0x2a6   : > { %6593 = vmatpush.bf16.msrb.mxu3 %v11014_v31  ;;  %v15492_v31 = vld [vmem:[#allocation7 + $0x1594] sm:$0xf]  ;;  %v11806_v58 = vor.u32 %v15204_v24, %v11803_v29  ;;  %v7443_v42 = vunpack.c.l.b16 %v7384_v37  ;;  %v12739_v22 = vld [vmem:[#allocation7 + $0x1428] sm:$0xf0]  ;;  %v12091_v37 = vld [vmem:[#allocation7 + $0xf18] sm:$0xf0] }
 0x2a7   : > { %6555 = vmatpush.bf16.msrb.mxu0 %v12666_v40  ;;  %v13531_v40 = vld [vmem:[#allocation7 + $0x1a58] sm:$0xf0]  ;;  %v12958_v8 = vor.u32 %v15492_v31, %v12955_v35  ;;  %v15132_v35 = vld [vmem:[#allocation7 + $0xa54] sm:$0xf] }
 0x2a8   : > { %6568 = vmatpush.bf16.msrb.mxu1 %v13242_v7  ;;  %v7313_v7 = vunpack.c.l.b16 %v7254_v1  ;;  %v7444_v2 = vpack.c.b16 %v7443_v42, %v7443_v42  ;;  %v13534_v25 = vor.u32 %v15636_v60, %v13531_v40  ;;  %v15276_v1 = vld [vmem:[#allocation7 + $0xed4] sm:$0xf]  ;;  %v12667_v60 = vld [vmem:[#allocation7 + $0x1398] sm:$0xf0] }
 0x2a9   : > { %6581 = vmatpush.bf16.msrb.mxu2 %v10366_v0  ;;  %v15186_v0 = vld [vmem:[#allocation7 + $0xc04] sm:$0xf] }
 0x2aa   : > { %6594 = vmatpush.bf16.msrb.mxu3 %v10942_v16  ;;  %v7314_v45 = vpack.c.b16 %v7313_v7, %v7313_v7  ;;  %v15474_v16 = vld [vmem:[#allocation7 + $0x1504] sm:$0xf]  ;;  %v11734_v51 = vor.u32 %v15186_v0, %v11731_v55  ;;  %7445 = vrot.lane.b32.xlu0 %v7444_v2, %s16379_s25  ;;  %v12094_v0 = vor.u32 %v15276_v1, %v12091_v37  ;;  %v15070_v37 = vld [vmem:[#allocation7 + $0x85c] sm:$0xf0] }
 0x2ab   : > { %6556 = vmatpush.bf16.msrb.mxu0 %v12594_v52  ;;  %v7513_v52 = vld [vmem:[#allocation2 + $0x10] sm:$0xf]  ;;  %v12886_v53 = vor.u32 %v15474_v16, %v12883_v46  ;;  %v15258_v2 = vld [vmem:[#allocation7 + $0xe44] sm:$0xf]  ;;  %v12595_v46 = vld [vmem:[#allocation7 + $0x1308] sm:$0xf0] }
 0x2ac   : > { %6569 = vmatpush.bf16.msrb.mxu1 %v13170_v63  ;;  %7315 = vrot.lane.b32.xlu2 %v7314_v45, %s16379_s25  ;;  %v12310_v63 = vor.u32 %v15330_v43, %v12307_v48  ;;  %v7568_v5 = vunpack.c.l.b16 %v7513_v52  ;;  %v15114_v43 = vld [vmem:[#allocation7 + $0x9c4] sm:$0xf]  ;;  %v11443_v45 = vld [vmem:[#allocation7 + $0xa08] sm:$0xf0] }
 0x2ad   : > { %6582 = vmatpush.bf16.msrb.mxu2 %v10294_v26  ;;  %v15312_v26 = vld [vmem:[#allocation7 + $0xff4] sm:$0xf]  ;;  %v12019_v48 = vld [vmem:[#allocation7 + $0xe88] sm:$0xf0]  ;;  %v15402_v16 = vld [vmem:[#allocation7 + $0x12c4] sm:$0xf]  ;;  %v11446_v52 = vor.u32 %v15114_v43, %v11443_v45 }
 0x2ae   : > { %6595 = vmatpush.bf16.msrb.mxu3 %v10870_v17  ;;  %v12811_v17 = vld [vmem:[#allocation7 + $0x14b8] sm:$0xf0]  ;;  %v12238_v41 = vor.u32 %v15312_v26, %v12235_v36  ;;  %v7569_v24 = vpack.c.b16 %v7568_v5, %v7568_v5  ;;  %v12022_v57 = vor.u32 %v15258_v2, %v12019_v48  ;;  %v12598_v26 = vor.u32 %v15402_v16, %v12595_v46  ;;  %v15240_v36 = vld [vmem:[#allocation7 + $0xdb4] sm:$0xf]  ;;  %v15088_v5 = vld [vmem:[#allocation7 + $0x8ec] sm:$0xf0] }
 0x2af   : > { %6557 = vmatpush.bf16.msrb.mxu0 %v12522_v49  ;;  %v12814_v49 = vor.u32 %v15456_v61, %v12811_v17  ;;  %v16789_v59 = vpop.f32.mrf.mxu0  ;;  %v11947_v61 = vld [vmem:[#allocation7 + $0xdf8] sm:$0xf0]  ;;  %v15384_v17 = vld [vmem:[#allocation7 + $0x1234] sm:$0xf]  ;;  %v14908_v43 = vld [vmem:[#allocation7 + $0x34c] sm:$0xf0] }
 0x2b0   : > { %6570 = vmatpush.bf16.msrb.mxu1 %v13098_v6  ;;  %v15150_v6 = vld [vmem:[#allocation7 + $0xae4] sm:$0xf]  ;;  %v11161_v45 = vld [vmem:[#allocation7 + $0x788] sm:$0xf]  ;;  %v15052_v48 = vld [vmem:[#allocation7 + $0x7cc] sm:$0xf0] }
 0x2b1   : > { %6583 = vmatpush.bf16.msrb.mxu2 %v10222_v19  ;;  %v12163_v19 = vld [vmem:[#allocation7 + $0xfa8] sm:$0xf0]  ;;  %v11590_v29 = vor.u32 %v15150_v6, %v11587_v39  ;;  %v15232_v39 = vld [vmem:[#allocation7 + $0xd6c] sm:$0xf0]  ;;  %v11737_v16 = vld [vmem:[#allocation7 + $0xc08] sm:$0xf] }
 0x2b2   : > { %6596 = vmatpush.bf16.msrb.mxu3 %v10798_v27  ;;  %6558 = vmatmul.bf16.vlgmr.msrb.gmra.mxu0 %v16566_v30  ;;  %v13315_v27 = vld [vmem:[#allocation7 + $0x18a8] sm:$0xf0]  ;;  %v12166_v15 = vor.u32 %v15294_v14, %v12163_v19  ;;  %v15528_v14 = vld [vmem:[#allocation7 + $0x16b4] sm:$0xf]  ;;  %v11950_v19 = vor.u32 %v15240_v36, %v11947_v61  ;;  %v15196_v46 = vld [vmem:[#allocation7 + $0xc4c] sm:$0xf0] }
 0x2b3   : > { %6602 = vmatpush.bf16.msra.mxu0 %v11878_v21  ;;  %6571 = vmatmul.bf16.vlgmr.msrb.gmra.mxu1 %v16568_v32  ;;  %v15438_v21 = vld [vmem:[#allocation7 + $0x13e4] sm:$0xf]  ;;  %v13318_v40 = vor.u32 %v15582_v44, %v13315_v27  ;;  %v11665_v36 = vld [vmem:[#allocation7 + $0xb78] sm:$0xf]  ;;  %v15178_v61 = vld [vmem:[#allocation7 + $0xbbc] sm:$0xf0] }
 0x2b4   : > { %6615 = vmatpush.bf16.msra.mxu1 %v12454_v28  ;;  %6584 = vmatmul.bf16.vlgmr.msrb.gmra.mxu2 %v16552_v10  ;;  %v16791_v28 = vpop.f32.mrf.mxu1  ;;  %v12742_v31 = vor.u32 %v15438_v21, %v12739_v22  ;;  %v12526_v21 = vor.u32 %v15384_v17, %v12523_v62  ;;  %v12457_v22 = vld [vmem:[#allocation7 + $0x11a8] sm:$0xf]  ;;  %v12241_v17 = vld [vmem:[#allocation7 + $0xff8] sm:$0xf]  ;;  %v15322_v62 = vld [vmem:[#allocation7 + $0x103c] sm:$0xf0] }
 0x2b5   : > { %6628 = vmatpush.bf16.msra.mxu2 %v13030_v18  ;;  %6597 = vmatmul.bf16.vlgmr.msrb.gmra.mxu3 %v16557_v20  ;;  %v13390_v18 = vor.u32 %v15600_v3, %v13387_v13  ;;  %v11305_v13 = vld [vmem:[#allocation7 + $0x8a8] sm:$0xf] }
 0x2b6   : > { %6641 = vmatpush.bf16.msra.mxu3 %v13606_v50  ;;  %7310 = vrot.lane.b32.xlu2 %v7309_v12, %s16379_s25  ;;  %v11515_v50 = vld [vmem:[#allocation7 + $0xa98] sm:$0xf0] }
 0x2b7   : > { %6603 = vmatpush.bf16.msra.mxu0 %v11806_v58  ;;  %7570 = vrot.lane.b32.xlu0 %v7569_v24, %s16379_s25  ;;  %v15420_v58 = vld [vmem:[#allocation7 + $0x1354] sm:$0xf]  ;;  %v16795_v7 = vpop.f32.mrf.mxu2  ;;  %v11518_v42 = vor.u32 %v15132_v35, %v11515_v50  ;;  %v13099_v12 = vld [vmem:[#allocation7 + $0x16f8] sm:$0xf0]  ;;  %v11233_v35 = vld [vmem:[#allocation7 + $0x818] sm:$0xf] }
 0x2b8   : > { %6616 = vmatpush.bf16.msra.mxu1 %v12382_v11  ;;  %v15564_v11 = vld [vmem:[#allocation7 + $0x17d4] sm:$0xf]  ;;  %v12670_v55 = vor.u32 %v15420_v58, %v12667_v60  ;;  %v16797_v56 = vpop.f32.mrf.mxu3  ;;  %v13102_v27 = vor.u32 %v15528_v14, %v13099_v12  ;;  %v11809_v58 = vld [vmem:[#allocation7 + $0xc98] sm:$0xf]  ;;  %v15214_v60 = vld [vmem:[#allocation7 + $0xcdc] sm:$0xf0] }
 0x2b9   : > { %6629 = vmatpush.bf16.msra.mxu2 %v12958_v8  ;;  %v13243_v8 = vld [vmem:[#allocation7 + $0x1818] sm:$0xf0]  ;;  %v15016_v14 = vld [vmem:[#allocation7 + $0x6ac] sm:$0xf0]  ;;  %v11593_v12 = vld [vmem:[#allocation7 + $0xae8] sm:$0xf] }
 0x2ba   : > { %6642 = vmatpush.bf16.msra.mxu3 %v13534_v25  ;;  %v6353_v25 = vpop.f32.mrf.mxu0 }
 0x2bb   : > { %6604 = vmatpush.bf16.msra.mxu0 %v11734_v51  ;;  %v13246_v51 = vor.u32 %v15564_v11, %v13243_v8  ;;  %v11234_v8 = vor.u32 %v15070_v37, %v11233_v35  ;;  %v12313_v25 = vld [vmem:[#allocation7 + $0x1088] sm:$0xf]  ;;  %v14998_v35 = vld [vmem:[#allocation7 + $0x61c] sm:$0xf0]  ;;  %v12097_v37 = vld [vmem:[#allocation7 + $0xed8] sm:$0xf] }
 0x2bc   : > { %6617 = vmatpush.bf16.msra.mxu1 %v12310_v63  ;;  %v6366_v47 = vpop.f32.mrf.mxu1  ;;  %v13171_v63 = vld [vmem:[#allocation7 + $0x1788] sm:$0xf0] }
 0x2bd   : > { %6630 = vmatpush.bf16.msra.mxu2 %v12886_v53  ;;  %v15096_v53 = vld [vmem:[#allocation7 + $0x934] sm:$0xf]  ;;  %v13174_v3 = vor.u32 %v15546_v9, %v13171_v63  ;;  %v15340_v47 = vld [vmem:[#allocation7 + $0x10cc] sm:$0xf0]  ;;  %v11162_v9 = vor.u32 %v15052_v48, %v11161_v45  ;;  %v10513_v63 = vld [vmem:[#allocation7 + $0x278] sm:$0xf] }
 0x2be   : > { %6643 = vmatpush.bf16.msra.mxu3 %v13462_v34  ;;  %v10729_v34 = vld [vmem:[#allocation7 + $0x428] sm:$0xf]  ;;  %v11374_v6 = vor.u32 %v15096_v53, %v11371_v54  ;;  %v14890_v53 = vld [vmem:[#allocation7 + $0x2bc] sm:$0xf0]  ;;  %v11089_v54 = vld [vmem:[#allocation7 + $0x6f8] sm:$0xf] }
 0x2bf   : > { %6605 = vmatpush.bf16.msra.mxu0 %v11662_v33  ;;  %v14944_v33 = vld [vmem:[#allocation7 + $0x46c] sm:$0xf0]  ;;  %v11449_v48 = vld [vmem:[#allocation7 + $0x9c8] sm:$0xf] }
 0x2c0   : > { %6618 = vmatpush.bf16.msra.mxu1 %v12238_v41  ;;  %v11881_v41 = vld [vmem:[#allocation7 + $0xd28] sm:$0xf]  ;;  %v10730_v24 = vor.u32 %v14944_v33, %v10729_v34  ;;  %v6392_v50 = vpop.f32.mrf.mxu3  ;;  %v10514_v34 = vor.u32 %v14890_v53, %v10513_v63  ;;  %v14818_v63 = vld [vmem:[#allocation7 + $0x7c] sm:$0xf0] }
 0x2c1   : > { %6631 = vmatpush.bf16.msra.mxu2 %v12814_v49  ;;  %v6379_v49 = vpop.f32.mrf.mxu2  ;;  %v11882_v44 = vor.u32 %v15232_v39, %v11881_v41  ;;  %v14872_v41 = vld [vmem:[#allocation7 + $0x22c] sm:$0xf0]  ;;  %v12242_v39 = vor.u32 %v15322_v62, %v12241_v17  ;;  %v11521_v50 = vld [vmem:[#allocation7 + $0xa58] sm:$0xf]  ;;  %v15106_v62 = vld [vmem:[#allocation7 + $0x97c] sm:$0xf0] }
 0x2c2   : > { %6644 = vmatpush.bf16.msra.mxu3 %v13390_v18  ;;  %v15376_v18 = vld [vmem:[#allocation7 + $0x11ec] sm:$0xf0]  ;;  %v11017_v49 = vld [vmem:[#allocation7 + $0x668] sm:$0xf] }
 0x2c3   : > { %6606 = vmatpush.bf16.msra.mxu0 %v11590_v29  ;;  %v11306_v29 = vor.u32 %v15088_v5, %v11305_v13  ;;  %v12458_v1 = vor.u32 %v15376_v18, %v12457_v22  ;;  %v11666_v13 = vor.u32 %v15178_v61, %v11665_v36  ;;  %v10441_v5 = vld [vmem:[#allocation7 + $0x1e8] sm:$0xf]  ;;  %v15304_v22 = vld [vmem:[#allocation7 + $0xfac] sm:$0xf0]  ;;  %v14962_v36 = vld [vmem:[#allocation7 + $0x4fc] sm:$0xf0] }
 0x2c4   : > { %6619 = vmatpush.bf16.msra.mxu1 %v12166_v15  ;;  %v10657_v15 = vld [vmem:[#allocation7 + $0x398] sm:$0xf]  ;;  %v10442_v18 = vor.u32 %v14872_v41, %v10441_v5  ;;  %v14935_v5 = vld [vmem:[#allocation7 + $0x42c] sm:$0xf] }
 0x2c5   : > { %6632 = vmatpush.bf16.msra.mxu2 %v12742_v31  ;;  %v14926_v31 = vld [vmem:[#allocation7 + $0x3dc] sm:$0xf0]  ;;  %v11377_v61 = vld [vmem:[#allocation7 + $0x938] sm:$0xf] }
 0x2c6   : > { %6645 = vmatpush.bf16.msra.mxu3 %v13318_v40  ;;  %v12385_v40 = vld [vmem:[#allocation7 + $0x1118] sm:$0xf]  ;;  %v10658_v11 = vor.u32 %v14926_v31, %v10657_v15 }
 0x2c7   : > { %6607 = vmatpush.bf16.msra.mxu0 %v11518_v42  ;;  %v15358_v42 = vld [vmem:[#allocation7 + $0x115c] sm:$0xf0]  ;;  %v10945_v15 = vld [vmem:[#allocation7 + $0x5d8] sm:$0xf] }
 0x2c8   : > { %6620 = vmatpush.bf16.msra.mxu1 %v12094_v0  ;;  %v11810_v0 = vor.u32 %v15214_v60, %v11809_v58  ;;  %v12386_v2 = vor.u32 %v15358_v42, %v12385_v40  ;;  %v15286_v58 = vld [vmem:[#allocation7 + $0xf1c] sm:$0xf0]  ;;  %v10946_v42 = vor.u32 %v14998_v35, %v10945_v15 }
 0x2c9   : > { %6633 = vmatpush.bf16.msra.mxu2 %v12670_v55  ;;  %v10585_v55 = vld [vmem:[#allocation7 + $0x308] sm:$0xf]  ;;  %v12098_v45 = vor.u32 %v15286_v58, %v12097_v37  ;;  %v15502_v35 = vld [vmem:[#allocation7 + $0x15dc] sm:$0xf0] }
 0x2ca   : > { %6646 = vmatpush.bf16.msra.mxu3 %v13246_v51  ;;  %v10586_v51 = vor.u32 %v14908_v43, %v10585_v55  ;;  %v10873_v55 = vld [vmem:[#allocation7 + $0x548] sm:$0xf] }
 0x2cb   : > { %6608 = vmatpush.bf16.msra.mxu0 %v11446_v52  ;;  %v11738_v52 = vor.u32 %v15196_v46, %v11737_v16  ;;  %v15124_v16 = vld [vmem:[#allocation7 + $0xa0c] sm:$0xf0]  ;;  %v16813_v37 = vld [vmem:[#allocation9 + $0x8] sm:$0xff] }
 0x2cc   : > { %6621 = vmatpush.bf16.msra.mxu1 %v12022_v57  ;;  %v12314_v57 = vor.u32 %v15340_v47, %v12313_v25  ;;  %v12025_v25 = vld [vmem:[#allocation7 + $0xe48] sm:$0xf]  ;;  %v15268_v47 = vld [vmem:[#allocation7 + $0xe8c] sm:$0xf0]  ;;  %v1217_v58 = vperm.slane %v16813_v37, 3 }
 0x2cd   : > { %6634 = vmatpush.bf16.msra.mxu2 %v12598_v26  ;;  %v15034_v26 = vld [vmem:[#allocation7 + $0x73c] sm:$0xf0]  ;;  %v12026_v17 = vor.u32 %v15268_v47, %v12025_v25  ;;  %v15628_v25 = vld [vmem:[#allocation7 + $0x19cc] sm:$0xf0] }
 0x2ce   : > { %6647 = vmatpush.bf16.msra.mxu3 %v13174_v3  ;;  %v11090_v3 = vor.u32 %v15034_v26, %v11089_v54  ;;  %v10801_v26 = vld [vmem:[#allocation7 + $0x4b8] sm:$0xf] }
 0x2cf   : > { %6609 = vmatpush.bf16.msra.mxu0 %v11374_v6  ;;  %v16803_v33 = vpop.f32.mrf.mxu0 }
 0x2d0   : > { %6622 = vmatpush.bf16.msra.mxu1 %v11950_v19  ;;  %v16805_v6 = vpop.f32.mrf.mxu1  ;;  %v15160_v19 = vld [vmem:[#allocation7 + $0xb2c] sm:$0xf0] }
 0x2d1   : > { %6635 = vmatpush.bf16.msra.mxu2 %v12526_v21  ;;  %v12169_v21 = vld [vmem:[#allocation7 + $0xf68] sm:$0xf] }
 0x2d2   : > { %6648 = vmatpush.bf16.msra.mxu3 %v13102_v27  ;;  %6610 = vmatmul.bf16.vlgmr.msra.gmra.mxu0 %v16549_v4  ;;  %v14854_v27 = vld [vmem:[#allocation7 + $0x19c] sm:$0xf0]  ;;  %v12170_v31 = vor.u32 %v15304_v22, %v12169_v21  ;;  %v15079_v21 = vld [vmem:[#allocation7 + $0x8ac] sm:$0xf]  ;;  %v11307_v22 = vld [vmem:[#allocation7 + $0x8f0] sm:$0xf0] }
 0x2d3   : > { %6654 = vmatpush.bf16.msrb.mxu0 %v10730_v24  ;;  %6623 = vmatmul.bf16.vlgmr.msra.gmra.mxu1 %v16561_v38  ;;  %v11018_v24 = vor.u32 %v15016_v14, %v11017_v49  ;;  %v10731_v49 = vld [vmem:[#allocation7 + $0x470] sm:$0xf0]  ;;  %v15250_v14 = vld [vmem:[#allocation7 + $0xdfc] sm:$0xf0] }
 0x2d4   : > { %6667 = vmatpush.bf16.msrb.mxu1 %v11306_v29  ;;  %6636 = vmatmul.bf16.vlgmr.msra.gmra.mxu2 %v16566_v30  ;;  %v11594_v29 = vor.u32 %v15160_v19, %v11593_v12  ;;  %v10802_v12 = vor.u32 %v14962_v36, %v10801_v26  ;;  %v11378_v19 = vor.u32 %v15106_v62, %v11377_v61  ;;  %v12817_v26 = vld [vmem:[#allocation7 + $0x1478] sm:$0xf]  ;;  %v15466_v61 = vld [vmem:[#allocation7 + $0x14bc] sm:$0xf0] }
 0x2d5   : > { %6680 = vmatpush.bf16.msrb.mxu2 %v11882_v44  ;;  %6649 = vmatmul.bf16.vlgmr.msra.gmra.mxu3 %v16568_v32  ;;  %v10369_v44 = vld [vmem:[#allocation7 + $0x158] sm:$0xf]  ;;  %v10734_v15 = vor.u32 %v14935_v5, %v10731_v49  ;;  %v15610_v62 = vld [vmem:[#allocation7 + $0x193c] sm:$0xf0]  ;;  %v15025_v5 = vld [vmem:[#allocation7 + $0x6fc] sm:$0xf]  ;;  %v12818_v49 = vor.u32 %v15466_v61, %v12817_v26 }
 0x2d6   : > { %6693 = vmatpush.bf16.msrb.mxu3 %v12458_v1  ;;  %v15142_v1 = vld [vmem:[#allocation7 + $0xa9c] sm:$0xf0]  ;;  %v10370_v60 = vor.u32 %v14854_v27, %v10369_v44 }
 0x2d7   : > { %6655 = vmatpush.bf16.msrb.mxu0 %v10658_v11  ;;  %v6405_v40 = vpop.f32.mrf.mxu0  ;;  %v11522_v11 = vor.u32 %v15142_v1, %v11521_v50  ;;  %v16807_v46 = vpop.f32.mrf.mxu2  ;;  %v13537_v50 = vld [vmem:[#allocation7 + $0x1a18] sm:$0xf]  ;;  %v15646_v1 = vld [vmem:[#allocation7 + $0x1a5c] sm:$0xf0] }
 0x2d8   : > { %6668 = vmatpush.bf16.msrb.mxu1 %v11234_v8  ;;  %v10297_v8 = vld [vmem:[#allocation7 + $0xc8] sm:$0xf]  ;;  %v6418_v43 = vpop.f32.mrf.mxu1  ;;  %v16810_v53 = vpop.f32.mrf.mxu3  ;;  %v14917_v40 = vld [vmem:[#allocation7 + $0x39c] sm:$0xf]  ;;  %v6430_v47 = vadd.f32 %v16807_v46, %v1217_v58 }
 0x2d9   : > { %6681 = vmatpush.bf16.msrb.mxu2 %v11810_v0  ;;  %v14836_v0 = vld [vmem:[#allocation7 + $0x10c] sm:$0xf0]  ;;  %v12889_v43 = vld [vmem:[#allocation7 + $0x1508] sm:$0xf] }
 0x2da   : > { %6694 = vmatpush.bf16.msrb.mxu3 %v12386_v2  ;;  %v14980_v2 = vld [vmem:[#allocation7 + $0x58c] sm:$0xf0] }
 0x2db   : > { %6656 = vmatpush.bf16.msrb.mxu0 %v10586_v51  ;;  %v1216_v51 = vperm.slane %v16763_v23, 2  ;;  %v10874_v54 = vor.u32 %v14980_v2, %v10873_v55  ;;  %v15664_v23 = vld [vmem:[#allocation7 + $0x1aec] sm:$0xf0]  ;;  %v13538_v55 = vor.u32 %v15646_v1, %v13537_v50 }
 0x2dc   : > { %6669 = vmatpush.bf16.msrb.mxu1 %v11162_v9  ;;  %v10298_v9 = vor.u32 %v14836_v0, %v10297_v8  ;;  %v15061_v8 = vld [vmem:[#allocation7 + $0x81c] sm:$0xf]  ;;  %v11235_v0 = vld [vmem:[#allocation7 + $0x860] sm:$0xf0] }
 0x2dd   : > { %6682 = vmatpush.bf16.msrb.mxu2 %v11738_v52  ;;  %v10225_v52 = vld [vmem:[#allocation7 + $0x38] sm:$0xf]  ;;  %v6352_v27 = vadd.f32 %v16789_v59, %v1216_v51  ;;  %v11238_v51 = vor.u32 %v15061_v8, %v11235_v0 }
 0x2de   : > { %6695 = vmatpush.bf16.msrb.mxu3 %v12314_v57  ;;  %v11450_v57 = vor.u32 %v15124_v16, %v11449_v48  ;;  %v10226_v41 = vor.u32 %v14818_v63, %v10225_v52  ;;  %v15484_v48 = vld [vmem:[#allocation7 + $0x154c] sm:$0xf0]  ;;  %v13465_v16 = vld [vmem:[#allocation7 + $0x1988] sm:$0xf]  ;;  %v10587_v52 = vld [vmem:[#allocation7 + $0x350] sm:$0xf0] }
 0x2df   : > { %6657 = vmatpush.bf16.msrb.mxu0 %v10514_v34  ;;  %v13033_v34 = vld [vmem:[#allocation7 + $0x1628] sm:$0xf]  ;;  %v6431_v44 = vpop.f32.mrf.mxu2  ;;  %v15043_v63 = vld [vmem:[#allocation7 + $0x78c] sm:$0xf] }
 0x2e0   : > { %6670 = vmatpush.bf16.msrb.mxu1 %v11090_v3  ;;  %v15520_v3 = vld [vmem:[#allocation7 + $0x166c] sm:$0xf0]  ;;  %v14863_v44 = vld [vmem:[#allocation7 + $0x1ec] sm:$0xf] }
 0x2e1   : > { %6683 = vmatpush.bf16.msrb.mxu2 %v11666_v13  ;;  %v13609_v13 = vld [vmem:[#allocation7 + $0x1aa8] sm:$0xf] }
 0x2e2   : > { %6696 = vmatpush.bf16.msrb.mxu3 %v12242_v39  ;;  %v11953_v39 = vld [vmem:[#allocation7 + $0xdb8] sm:$0xf] }
 0x2e3   : > { %6658 = vmatpush.bf16.msrb.mxu0 %v10442_v18  ;;  %v13034_v18 = vor.u32 %v15520_v3, %v13033_v34  ;;  %v6443_v34 = vadd.f32 %v16810_v53, %v6430_v47  ;;  %v15592_v53 = vld [vmem:[#allocation7 + $0x18ac] sm:$0xf0]  ;;  %v12601_v47 = vld [vmem:[#allocation7 + $0x12c8] sm:$0xf] }
 0x2e4   : > { %6671 = vmatpush.bf16.msrb.mxu1 %v11018_v24  ;;  %v13610_v24 = vor.u32 %v15664_v23, %v13609_v13  ;;  %v14881_v13 = vld [vmem:[#allocation7 + $0x27c] sm:$0xf]  ;;  %v10515_v23 = vld [vmem:[#allocation7 + $0x2c0] sm:$0xf0] }
 0x2e5   : > { %6684 = vmatpush.bf16.msrb.mxu2 %v11594_v29  ;;  %v12961_v29 = vld [vmem:[#allocation7 + $0x1598] sm:$0xf] }
 0x2e6   : > { %6697 = vmatpush.bf16.msrb.mxu3 %v12170_v31  ;;  %v11954_v31 = vor.u32 %v15250_v14, %v11953_v39  ;;  %v12962_v59 = vor.u32 %v15502_v35, %v12961_v29 }
 0x2e7   : > { %6659 = vmatpush.bf16.msrb.mxu0 %v10370_v60  ;;  %v11310_v60 = vor.u32 %v15079_v21, %v11307_v22  ;;  %v15448_v22 = vld [vmem:[#allocation7 + $0x142c] sm:$0xf0] }
 0x2e8   : > { %6672 = vmatpush.bf16.msrb.mxu1 %v10946_v42  ;;  %v10659_v42 = vld [vmem:[#allocation7 + $0x3e0] sm:$0xf0] }
 0x2e9   : > { %6685 = vmatpush.bf16.msrb.mxu2 %v11522_v11  ;;  %v6444_v11 = vpop.f32.mrf.mxu3  ;;  %v10662_v2 = vor.u32 %v14917_v40, %v10659_v42  ;;  %v15430_v40 = vld [vmem:[#allocation7 + $0x139c] sm:$0xf0]  ;;  %v13249_v42 = vld [vmem:[#allocation7 + $0x17d8] sm:$0xf] }
 0x2ea   : > { %6698 = vmatpush.bf16.msrb.mxu3 %v12098_v45  ;;  %v6365_v45 = vadd.f32 %v16791_v28, %v6352_v27  ;;  %v12890_v28 = vor.u32 %v15484_v48, %v12889_v43  ;;  %v10443_v27 = vld [vmem:[#allocation7 + $0x230] sm:$0xf0]  ;;  %v15574_v11 = vld [vmem:[#allocation7 + $0x181c] sm:$0xf0] }
 0x2eb   : > { %6660 = vmatpush.bf16.msrb.mxu0 %v10298_v9  ;;  %v14899_v9 = vld [vmem:[#allocation7 + $0x30c] sm:$0xf] }
 0x2ec   : > { %6673 = vmatpush.bf16.msrb.mxu1 %v10874_v54  ;;  %v11163_v54 = vld [vmem:[#allocation7 + $0x7d0] sm:$0xf0]  ;;  %v6378_v36 = vadd.f32 %v16795_v7, %v6365_v45  ;;  %v10590_v46 = vor.u32 %v14899_v9, %v10587_v52  ;;  %v12745_v7 = vld [vmem:[#allocation7 + $0x13e8] sm:$0xf]  ;;  %v14989_v45 = vld [vmem:[#allocation7 + $0x5dc] sm:$0xf] }
 0x2ed   : > { %6686 = vmatpush.bf16.msrb.mxu2 %v11450_v57  ;;  %v13466_v57 = vor.u32 %v15628_v25, %v13465_v16  ;;  %v11166_v3 = vor.u32 %v15043_v63, %v11163_v54  ;;  %v12746_v50 = vor.u32 %v15448_v22, %v12745_v7  ;;  %v13250_v25 = vor.u32 %v15574_v11, %v13249_v42  ;;  %v15412_v52 = vld [vmem:[#allocation7 + $0x130c] sm:$0xf0]  ;;  %v13177_v63 = vld [vmem:[#allocation7 + $0x1748] sm:$0xf]  ;;  %v12459_v22 = vld [vmem:[#allocation7 + $0x11f0] sm:$0xf0] }
 0x2ee   : > { %6699 = vmatpush.bf16.msrb.mxu3 %v12026_v17  ;;  %v13393_v17 = vld [vmem:[#allocation7 + $0x18f8] sm:$0xf]  ;;  %v6391_v14 = vadd.f32 %v16797_v56, %v6378_v36  ;;  %v15556_v54 = vld [vmem:[#allocation7 + $0x178c] sm:$0xf0]  ;;  %v14827_v36 = vld [vmem:[#allocation7 + $0xcc] sm:$0xf] }
 0x2ef   : > { %6661 = vmatpush.bf16.msrb.mxu0 %v10226_v41  ;;  %v11091_v41 = vld [vmem:[#allocation7 + $0x740] sm:$0xf0]  ;;  %v13394_v39 = vor.u32 %v15610_v62, %v13393_v17  ;;  %v12673_v56 = vld [vmem:[#allocation7 + $0x1358] sm:$0xf]  ;;  %v14971_v17 = vld [vmem:[#allocation7 + $0x54c] sm:$0xf] }
 0x2f0   : > { %6674 = vmatpush.bf16.msrb.mxu1 %v10802_v12  ;;  %v10518_v12 = vor.u32 %v14881_v13, %v10515_v23  ;;  %v6468_v21 = vpop.f32.mrf.mxu1  ;;  %v11094_v29 = vor.u32 %v15025_v5, %v11091_v41  ;;  %v6404_v58 = vadd.f32 %v16803_v33, %v6391_v14  ;;  %v12674_v16 = vor.u32 %v15430_v40, %v12673_v56  ;;  %v10875_v62 = vld [vmem:[#allocation7 + $0x590] sm:$0xf0]  ;;  %v15394_v13 = vld [vmem:[#allocation7 + $0x127c] sm:$0xf0]  ;;  %v13105_v23 = vld [vmem:[#allocation7 + $0x16b8] sm:$0xf] }
 0x2f1   : > { %6687 = vmatpush.bf16.msrb.mxu2 %v11378_v19  ;;  %v6455_v19 = vpop.f32.mrf.mxu0  ;;  %v15538_v5 = vld [vmem:[#allocation7 + $0x16fc] sm:$0xf0]  ;;  %v10878_v7 = vor.u32 %v14971_v17, %v10875_v62  ;;  %v15223_v14 = vld [vmem:[#allocation7 + $0xd2c] sm:$0xf]  ;;  %v11811_v40 = vld [vmem:[#allocation7 + $0xce0] sm:$0xf0] }
 0x2f2   : > { %6700 = vmatpush.bf16.msrb.mxu3 %v11954_v31  ;;  %6662 = vmatmul.bf16.vlgmr.msrb.gmra.mxu0 %v16552_v10  ;;  %v11019_v31 = vld [vmem:[#allocation7 + $0x6b0] sm:$0xf0]  ;;  %v6417_v33 = vadd.f32 %v16805_v6, %v6404_v58  ;;  %v13178_v6 = vor.u32 %v15556_v54, %v13177_v63  ;;  %v15349_v42 = vld [vmem:[#allocation7 + $0x111c] sm:$0xf]  ;;  %v15331_v63 = vld [vmem:[#allocation7 + $0x108c] sm:$0xf] }
 0x2f3   : > { %6706 = vmatpush.bf16.msra.mxu0 %v13034_v18  ;;  %6675 = vmatmul.bf16.vlgmr.msrb.gmra.mxu1 %v16557_v20  ;;  %v13321_v18 = vld [vmem:[#allocation7 + $0x1868] sm:$0xf]  ;;  %v15619_v62 = vld [vmem:[#allocation7 + $0x198c] sm:$0xf] }
 0x2f4   : > { %6719 = vmatpush.bf16.msra.mxu1 %v13610_v24  ;;  %6688 = vmatmul.bf16.vlgmr.msrb.gmra.mxu2 %v16549_v4  ;;  %v6456_v24 = vadd.f32 %v6455_v19, %v6443_v34  ;;  %v13322_v1 = vor.u32 %v15592_v53, %v13321_v18  ;;  %v12529_v34 = vld [vmem:[#allocation7 + $0x1238] sm:$0xf]  ;;  %v15367_v19 = vld [vmem:[#allocation7 + $0x11ac] sm:$0xf]  ;;  %v13035_v53 = vld [vmem:[#allocation7 + $0x1670] sm:$0xf0] }
 0x2f5   : > { %6732 = vmatpush.bf16.msra.mxu2 %v10734_v15  ;;  %6701 = vmatmul.bf16.vlgmr.msrb.gmra.mxu3 %v16561_v38  ;;  %v15007_v15 = vld [vmem:[#allocation7 + $0x66c] sm:$0xf]  ;;  %v12462_v56 = vor.u32 %v15367_v19, %v12459_v22  ;;  %v15601_v19 = vld [vmem:[#allocation7 + $0x18fc] sm:$0xf] }
 0x2f6   : > { %6745 = vmatpush.bf16.msra.mxu3 %v11310_v60  ;;  %v6469_v35 = vadd.f32 %v6468_v21, %v6456_v24  ;;  %v10446_v60 = vor.u32 %v14863_v44, %v10443_v27  ;;  %v11022_v0 = vor.u32 %v15007_v15, %v11019_v31  ;;  %v15511_v18 = vld [vmem:[#allocation7 + $0x162c] sm:$0xf]  ;;  %v12530_v24 = vor.u32 %v15394_v13, %v12529_v34  ;;  %v14953_v44 = vld [vmem:[#allocation7 + $0x4bc] sm:$0xf]  ;;  %v10803_v27 = vld [vmem:[#allocation7 + $0x500] sm:$0xf0] }
 0x2f7   : > { %6707 = vmatpush.bf16.msra.mxu0 %v12962_v59  ;;  %v6481_v8 = vpop.f32.mrf.mxu2  ;;  %v14845_v59 = vld [vmem:[#allocation7 + $0x15c] sm:$0xf]  ;;  %v13038_v58 = vor.u32 %v15511_v18, %v13035_v53  ;;  %v10806_v11 = vor.u32 %v14953_v44, %v10803_v27  ;;  %v13467_v34 = vld [vmem:[#allocation7 + $0x19d0] sm:$0xf0]  ;;  %v15151_v53 = vld [vmem:[#allocation7 + $0xaec] sm:$0xf] }
 0x2f8   : > { %6720 = vmatpush.bf16.msra.mxu1 %v13538_v55  ;;  %v10371_v55 = vld [vmem:[#allocation7 + $0x1a0] sm:$0xf0]  ;;  %v6482_v43 = vadd.f32 %v6481_v8, %v6469_v35  ;;  %v6494_v48 = vpop.f32.mrf.mxu3  ;;  %v15169_v13 = vld [vmem:[#allocation7 + $0xb7c] sm:$0xf]  ;;  %v12171_v27 = vld [vmem:[#allocation7 + $0xfb0] sm:$0xf0] }
 0x2f9   : > { %6733 = vmatpush.bf16.msra.mxu2 %v10662_v2  ;;  %v10947_v2 = vld [vmem:[#allocation7 + $0x620] sm:$0xf0]  ;;  %v10374_v9 = vor.u32 %v14845_v59, %v10371_v55 }
 0x2fa   : > { %6746 = vmatpush.bf16.msra.mxu3 %v11238_v51  ;;  %v6495_v51 = vadd.f32 %v6494_v48, %v6482_v43  ;;  %v10950_v26 = vor.u32 %v14989_v45, %v10947_v2  ;;  %v12387_v8 = vld [vmem:[#allocation7 + $0x1160] sm:$0xf0]  ;;  %v15637_v48 = vld [vmem:[#allocation7 + $0x1a1c] sm:$0xf] }
 0x2fb   : > { %6708 = vmatpush.bf16.msra.mxu0 %v12890_v28  ;;  %v6457_v28 = vpop.f32.mrf.mxu0  ;;  %v12963_v59 = vld [vmem:[#allocation7 + $0x15e0] sm:$0xf0] }
 0x2fc   : > { %6721 = vmatpush.bf16.msra.mxu1 %v13466_v57  ;;  %v6470_v57 = vpop.f32.mrf.mxu1  ;;  %v6971_v61 = vpack.c.bf16 %v6495_v51, %v6417_v33  ;;  %v12390_v33 = vor.u32 %v15349_v42, %v12387_v8  ;;  %v11523_v8 = vld [vmem:[#allocation7 + $0xaa0] sm:$0xf0] }
 0x2fd   : > { %6734 = vmatpush.bf16.msra.mxu2 %v10590_v46  ;;  %v10299_v46 = vld [vmem:[#allocation7 + $0x110] sm:$0xf0] }
 0x2fe   : > { %6747 = vmatpush.bf16.msra.mxu3 %v11166_v3  ;;  %v12602_v3 = vor.u32 %v15412_v52, %v12601_v47  ;;  %6980 = vst [vmem:[#allocation2 + $0x28] sm:$0xff] %v6971_v61  ;;  %v10302_v41 = vor.u32 %v14827_v36, %v10299_v46  ;;  %v11739_v52 = vld [vmem:[#allocation7 + $0xc50] sm:$0xf0] }
 0x2ff   : > { %6709 = vmatpush.bf16.msra.mxu0 %v12818_v49  ;;  %v14809_v49 = vld [vmem:[#allocation7 + $0x3c] sm:$0xf]  ;;  %v6483_v21 = vpop.f32.mrf.mxu2  ;;  %v12315_v57 = vld [vmem:[#allocation7 + $0x10d0] sm:$0xf0] }
 0x300   : > { %6722 = vmatpush.bf16.msra.mxu1 %v13394_v39  ;;  %v10227_v39 = vld [vmem:[#allocation7 + $0x80] sm:$0xf0]  ;;  %v6496_v15 = vpop.f32.mrf.mxu3  ;;  %v12891_v36 = vld [vmem:[#allocation7 + $0x1550] sm:$0xf0] }
 0x301   : > { %6735 = vmatpush.bf16.msra.mxu2 %v10518_v12  ;;  %v11883_v12 = vld [vmem:[#allocation7 + $0xd70] sm:$0xf0]  ;;  %v10230_v31 = vor.u32 %v14809_v49, %v10227_v39  ;;  %v15457_v49 = vld [vmem:[#allocation7 + $0x147c] sm:$0xf]  ;;  %v12819_v39 = vld [vmem:[#allocation7 + $0x14c0] sm:$0xf0] }
 0x302   : > { %6748 = vmatpush.bf16.msra.mxu3 %v11094_v29  ;;  %v13106_v29 = vor.u32 %v15538_v5, %v13105_v23  ;;  %v11886_v35 = vor.u32 %v15223_v14, %v11883_v12  ;;  %v7643_v61 = vld [vmem:[#allocation2 + $0x14] sm:$0xf]  ;;  %v11667_v23 = vld [vmem:[#allocation7 + $0xbc0] sm:$0xf0]  ;;  %v15313_v5 = vld [vmem:[#allocation7 + $0xffc] sm:$0xf]  ;;  %v13470_v14 = vor.u32 %v15619_v62, %v13467_v34  ;;  %v12822_v18 = vor.u32 %v15457_v49, %v12819_v39 }
 0x303   : > { %6710 = vmatpush.bf16.msra.mxu0 %v12746_v50  ;;  %v15655_v50 = vld [vmem:[#allocation7 + $0x1aac] sm:$0xf]  ;;  %v11670_v12 = vor.u32 %v15169_v13, %v11667_v23  ;;  %v13395_v21 = vld [vmem:[#allocation7 + $0x1940] sm:$0xf0]  ;;  %v13179_v62 = vld [vmem:[#allocation7 + $0x1790] sm:$0xf0] }
 0x304   : > { %6723 = vmatpush.bf16.msra.mxu1 %v13322_v1  ;;  %v13611_v1 = vld [vmem:[#allocation7 + $0x1af0] sm:$0xf0]  ;;  %v15439_v15 = vld [vmem:[#allocation7 + $0x13ec] sm:$0xf]  ;;  %v15097_v34 = vld [vmem:[#allocation7 + $0x93c] sm:$0xf] }
 0x305   : > { %6736 = vmatpush.bf16.msra.mxu2 %v10446_v60  ;;  %v15205_v60 = vld [vmem:[#allocation7 + $0xc9c] sm:$0xf]  ;;  %v13614_v55 = vor.u32 %v15655_v50, %v13611_v1  ;;  %v7514_v43 = vld [vmem:[#allocation2 + $0x28] sm:$0xf]  ;;  %v7644_v45 = vld [vmem:[#allocation2 + $0x2c] sm:$0xf]  ;;  %v13398_v1 = vor.u32 %v15601_v19, %v13395_v21 }
 0x306   : > { %6749 = vmatpush.bf16.msra.mxu3 %v11022_v0  ;;  %v15493_v0 = vld [vmem:[#allocation7 + $0x159c] sm:$0xf]  ;;  %v11814_v2 = vor.u32 %v15205_v60, %v11811_v40  ;;  %v7703_v47 = vunpack.c.l.b16 %v7644_v45  ;;  %v13323_v60 = vld [vmem:[#allocation7 + $0x18b0] sm:$0xf0]  ;;  %v12531_v49 = vld [vmem:[#allocation7 + $0x1280] sm:$0xf0] }
 0x307   : > { %6711 = vmatpush.bf16.msra.mxu0 %v12674_v16  ;;  %v13539_v16 = vld [vmem:[#allocation7 + $0x1a60] sm:$0xf0]  ;;  %v12966_v51 = vor.u32 %v15493_v0, %v12963_v59  ;;  %v15277_v0 = vld [vmem:[#allocation7 + $0xedc] sm:$0xf]  ;;  %v10737_v39 = vld [vmem:[#allocation7 + $0x430] sm:$0xf] }
 0x308   : > { %6724 = vmatpush.bf16.msra.mxu1 %v13250_v25  ;;  %v7573_v25 = vunpack.c.l.b16 %v7514_v43  ;;  %v7704_v28 = vpack.c.b16 %v7703_v47, %v7703_v47  ;;  %v13542_v46 = vor.u32 %v15637_v48, %v13539_v16  ;;  %v12099_v59 = vld [vmem:[#allocation7 + $0xf20] sm:$0xf0]  ;;  %v15565_v16 = vld [vmem:[#allocation7 + $0x17dc] sm:$0xf]  ;;  %v15089_v19 = vld [vmem:[#allocation7 + $0x8f4] sm:$0xf0] }
 0x309   : > { %6737 = vmatpush.bf16.msra.mxu2 %v10374_v9  ;;  %v15187_v9 = vld [vmem:[#allocation7 + $0xc0c] sm:$0xf]  ;;  %v12675_v43 = vld [vmem:[#allocation7 + $0x13a0] sm:$0xf0]  ;;  %v12102_v47 = vor.u32 %v15277_v0, %v12099_v59  ;;  %v15241_v23 = vld [vmem:[#allocation7 + $0xdbc] sm:$0xf] }
 0x30a   : > { %6750 = vmatpush.bf16.msra.mxu3 %v10950_v26  ;;  %v7574_v54 = vpack.c.b16 %v7573_v25, %v7573_v25  ;;  %v15475_v26 = vld [vmem:[#allocation7 + $0x150c] sm:$0xf]  ;;  %v11742_v17 = vor.u32 %v15187_v9, %v11739_v52  ;;  %7705 = vrot.lane.b32.xlu1 %v7704_v28, %s16379_s25  ;;  %v13251_v25 = vld [vmem:[#allocation7 + $0x1820] sm:$0xf0]  ;;  %v11451_v9 = vld [vmem:[#allocation7 + $0xa10] sm:$0xf0] }
 0x30b   : > { %6712 = vmatpush.bf16.msra.mxu0 %v12602_v3  ;;  %v12318_v3 = vor.u32 %v15331_v63, %v12315_v57  ;;  %v15259_v52 = vld [vmem:[#allocation7 + $0xe4c] sm:$0xf]  ;;  %v12027_v63 = vld [vmem:[#allocation7 + $0xe90] sm:$0xf0]  ;;  %v11889_v21 = vld [vmem:[#allocation7 + $0xd30] sm:$0xf] }
 0x30c   : > { %6725 = vmatpush.bf16.msra.mxu1 %v13178_v6  ;;  %7575 = vrot.lane.b32.xlu2 %v7574_v54, %s16379_s25  ;;  %v12894_v6 = vor.u32 %v15475_v26, %v12891_v36  ;;  %v15403_v54 = vld [vmem:[#allocation7 + $0x12cc] sm:$0xf]  ;;  %v12603_v28 = vld [vmem:[#allocation7 + $0x1310] sm:$0xf0]  ;;  %v13254_v36 = vor.u32 %v15565_v16, %v13251_v25  ;;  %v15071_v59 = vld [vmem:[#allocation7 + $0x864] sm:$0xf0] }
 0x30d   : > { %6738 = vmatpush.bf16.msra.mxu2 %v10302_v41  ;;  %v12243_v41 = vld [vmem:[#allocation7 + $0x1040] sm:$0xf0]  ;;  %v12606_v13 = vor.u32 %v15403_v54, %v12603_v28  ;;  %v11745_v54 = vld [vmem:[#allocation7 + $0xc10] sm:$0xf]  ;;  %v15197_v28 = vld [vmem:[#allocation7 + $0xc54] sm:$0xf0] }
 0x30e   : > { %6751 = vmatpush.bf16.msra.mxu3 %v10878_v7  ;;  %v7698_v7 = vunpack.c.l.b16 %v7643_v61  ;;  %v12246_v22 = vor.u32 %v15313_v5, %v12243_v41  ;;  %v11955_v5 = vld [vmem:[#allocation7 + $0xe00] sm:$0xf0]  ;;  %v15385_v41 = vld [vmem:[#allocation7 + $0x123c] sm:$0xf] }
 0x30f   : > { %6713 = vmatpush.bf16.msra.mxu0 %v12530_v24  ;;  %v11595_v24 = vld [vmem:[#allocation7 + $0xb30] sm:$0xf0] }
 0x310   : > { %6726 = vmatpush.bf16.msra.mxu1 %v13106_v29  ;;  %v15295_v29 = vld [vmem:[#allocation7 + $0xf6c] sm:$0xf]  ;;  %v7699_v44 = vpack.c.b16 %v7698_v7, %v7698_v7  ;;  %v16835_v50 = vpop.f32.mrf.mxu1  ;;  %v14945_v7 = vld [vmem:[#allocation7 + $0x474] sm:$0xf0] }
 0x311   : > { %6739 = vmatpush.bf16.msra.mxu2 %v10230_v31  ;;  %v12747_v31 = vld [vmem:[#allocation7 + $0x1430] sm:$0xf0]  ;;  %v12174_v40 = vor.u32 %v15295_v29, %v12171_v27  ;;  %v13107_v29 = vld [vmem:[#allocation7 + $0x1700] sm:$0xf0]  ;;  %v12534_v27 = vor.u32 %v15385_v41, %v12531_v49  ;;  %v12249_v41 = vld [vmem:[#allocation7 + $0x1000] sm:$0xf] }
 0x312   : > { %6752 = vmatpush.bf16.msra.mxu3 %v10806_v11  ;;  %6714 = vmatmul.bf16.vlgmr.msra.gmra.mxu0 %v16566_v30  ;;  %v12750_v42 = vor.u32 %v15439_v15, %v12747_v31  ;;  %v15133_v11 = vld [vmem:[#allocation7 + $0xa5c] sm:$0xf]  ;;  %v12465_v15 = vld [vmem:[#allocation7 + $0x11b0] sm:$0xf]  ;;  %v15377_v31 = vld [vmem:[#allocation7 + $0x11f4] sm:$0xf0] }
 0x313   : > { %6758 = vmatpush.bf16.msrb.mxu0 %v11886_v35  ;;  %6727 = vmatmul.bf16.vlgmr.msra.gmra.mxu1 %v16568_v32  ;;  %v16833_v35 = vpop.f32.mrf.mxu0  ;;  %v11526_v48 = vor.u32 %v15133_v11, %v11523_v8  ;;  %v11241_v11 = vld [vmem:[#allocation7 + $0x820] sm:$0xf]  ;;  %v12466_v0 = vor.u32 %v15377_v31, %v12465_v15  ;;  %v15323_v49 = vld [vmem:[#allocation7 + $0x1044] sm:$0xf0]  ;;  %v15305_v15 = vld [vmem:[#allocation7 + $0xfb4] sm:$0xf0] }
 0x314   : > { %6771 = vmatpush.bf16.msrb.mxu1 %v12462_v56  ;;  %6740 = vmatmul.bf16.vlgmr.msra.gmra.mxu2 %v16552_v10  ;;  %v11598_v56 = vor.u32 %v15151_v53, %v11595_v24  ;;  %v15233_v53 = vld [vmem:[#allocation7 + $0xd74] sm:$0xf0]  ;;  %v15529_v24 = vld [vmem:[#allocation7 + $0x16bc] sm:$0xf]  ;;  %v11242_v25 = vor.u32 %v15071_v59, %v11241_v11  ;;  %v14999_v11 = vld [vmem:[#allocation7 + $0x624] sm:$0xf0] }
 0x315   : > { %6784 = vmatpush.bf16.msrb.mxu2 %v13038_v58  ;;  %6753 = vmatmul.bf16.vlgmr.msra.gmra.mxu3 %v16557_v20  ;;  %v15583_v58 = vld [vmem:[#allocation7 + $0x186c] sm:$0xf]  ;;  %v12105_v59 = vld [vmem:[#allocation7 + $0xee0] sm:$0xf] }
 0x316   : > { %6797 = vmatpush.bf16.msrb.mxu3 %v13614_v55  ;;  %7700 = vrot.lane.b32.xlu2 %v7699_v44, %s16379_s25  ;;  %v15421_v55 = vld [vmem:[#allocation7 + $0x135c] sm:$0xf]  ;;  %v13326_v45 = vor.u32 %v15583_v58, %v13323_v60  ;;  %v11958_v44 = vor.u32 %v15241_v23, %v11955_v5  ;;  %v11890_v58 = vor.u32 %v15233_v53, %v11889_v21  ;;  %v11673_v23 = vld [vmem:[#allocation7 + $0xb80] sm:$0xf]  ;;  %v15179_v5 = vld [vmem:[#allocation7 + $0xbc4] sm:$0xf0] }
 0x317   : > { %6759 = vmatpush.bf16.msrb.mxu0 %v11814_v2  ;;  %v16838_v2 = vpop.f32.mrf.mxu2  ;;  %v13110_v60 = vor.u32 %v15529_v24, %v13107_v29  ;;  %v14873_v21 = vld [vmem:[#allocation7 + $0x234] sm:$0xf0]  ;;  %v12250_v53 = vor.u32 %v15323_v49, %v12249_v41  ;;  %v11601_v29 = vld [vmem:[#allocation7 + $0xaf0] sm:$0xf]  ;;  %v15107_v49 = vld [vmem:[#allocation7 + $0x984] sm:$0xf0] }
 0x318   : > { %6772 = vmatpush.bf16.msrb.mxu1 %v12390_v33  ;;  %v12678_v33 = vor.u32 %v15421_v55, %v12675_v43  ;;  %v6522_v26 = vpop.f32.mrf.mxu1  ;;  %v16840_v61 = vpop.f32.mrf.mxu3  ;;  %v11817_v55 = vld [vmem:[#allocation7 + $0xca0] sm:$0xf]  ;;  %v15215_v43 = vld [vmem:[#allocation7 + $0xce4] sm:$0xf0]  ;;  %v15017_v24 = vld [vmem:[#allocation7 + $0x6b4] sm:$0xf0] }
 0x319   : > { %6785 = vmatpush.bf16.msrb.mxu2 %v12966_v51  ;;  %v15115_v51 = vld [vmem:[#allocation7 + $0x9cc] sm:$0xf]  ;;  %v15341_v26 = vld [vmem:[#allocation7 + $0x10d4] sm:$0xf0] }
 0x31a   : > { %6798 = vmatpush.bf16.msrb.mxu3 %v13542_v46  ;;  %v15547_v46 = vld [vmem:[#allocation7 + $0x174c] sm:$0xf] }
 0x31b   : > { %6760 = vmatpush.bf16.msrb.mxu0 %v11742_v17  ;;  %v6509_v57 = vpop.f32.mrf.mxu0  ;;  %v11454_v17 = vor.u32 %v15115_v51, %v11451_v9  ;;  %v14909_v51 = vld [vmem:[#allocation7 + $0x354] sm:$0xf0]  ;;  %v11169_v9 = vld [vmem:[#allocation7 + $0x790] sm:$0xf] }
 0x31c   : > { %6773 = vmatpush.bf16.msrb.mxu1 %v12318_v3  ;;  %v11379_v3 = vld [vmem:[#allocation7 + $0x980] sm:$0xf0]  ;;  %v12321_v57 = vld [vmem:[#allocation7 + $0x1090] sm:$0xf] }
 0x31d   : > { %6786 = vmatpush.bf16.msrb.mxu2 %v12894_v6  ;;  %v12030_v6 = vor.u32 %v15259_v52, %v12027_v63  ;;  %v15053_v63 = vld [vmem:[#allocation7 + $0x7d4] sm:$0xf0] }
 0x31e   : > { %6799 = vmatpush.bf16.msrb.mxu3 %v13470_v14  ;;  %v13182_v14 = vor.u32 %v15547_v46, %v13179_v62  ;;  %v11170_v46 = vor.u32 %v15053_v63, %v11169_v9  ;;  %v10521_v62 = vld [vmem:[#allocation7 + $0x280] sm:$0xf]  ;;  %v11457_v63 = vld [vmem:[#allocation7 + $0x9d0] sm:$0xf] }
 0x31f   : > { %6761 = vmatpush.bf16.msrb.mxu0 %v11670_v12  ;;  %v11313_v12 = vld [vmem:[#allocation7 + $0x8b0] sm:$0xf] }
 0x320   : > { %6774 = vmatpush.bf16.msrb.mxu1 %v12246_v22  ;;  %v6535_v22 = vpop.f32.mrf.mxu2  ;;  %v6548_v8 = vpop.f32.mrf.mxu3 }
 0x321   : > { %6787 = vmatpush.bf16.msrb.mxu2 %v12822_v18  ;;  %v11382_v18 = vor.u32 %v15097_v34, %v11379_v3  ;;  %v14891_v34 = vld [vmem:[#allocation7 + $0x2c4] sm:$0xf0]  ;;  %v11097_v3 = vld [vmem:[#allocation7 + $0x700] sm:$0xf]  ;;  %v11025_v22 = vld [vmem:[#allocation7 + $0x670] sm:$0xf] }
 0x322   : > { %6800 = vmatpush.bf16.msrb.mxu3 %v13398_v1  ;;  %v10738_v1 = vor.u32 %v14945_v7, %v10737_v39  ;;  %v10522_v39 = vor.u32 %v14891_v34, %v10521_v62  ;;  %v11529_v8 = vld [vmem:[#allocation7 + $0xa60] sm:$0xf]  ;;  %v14819_v62 = vld [vmem:[#allocation7 + $0x84] sm:$0xf0] }
 0x323   : > { %6762 = vmatpush.bf16.msrb.mxu0 %v11598_v56  ;;  %v11314_v56 = vor.u32 %v15089_v19, %v11313_v12  ;;  %v11674_v12 = vor.u32 %v15179_v5, %v11673_v23  ;;  %v10449_v19 = vld [vmem:[#allocation7 + $0x1f0] sm:$0xf]  ;;  %v14963_v23 = vld [vmem:[#allocation7 + $0x504] sm:$0xf0]  ;;  %v11385_v5 = vld [vmem:[#allocation7 + $0x940] sm:$0xf] }
 0x324   : > { %6775 = vmatpush.bf16.msrb.mxu1 %v12174_v40  ;;  %v10665_v40 = vld [vmem:[#allocation7 + $0x3a0] sm:$0xf]  ;;  %v10450_v31 = vor.u32 %v14873_v21, %v10449_v19  ;;  %v15665_v19 = vld [vmem:[#allocation7 + $0x1af4] sm:$0xf0]  ;;  %v14936_v21 = vld [vmem:[#allocation7 + $0x434] sm:$0xf] }
 0x325   : > { %6788 = vmatpush.bf16.msrb.mxu2 %v12750_v42  ;;  %v14927_v42 = vld [vmem:[#allocation7 + $0x3e4] sm:$0xf0] }
 0x326   : > { %6801 = vmatpush.bf16.msrb.mxu3 %v13326_v45  ;;  %v12393_v45 = vld [vmem:[#allocation7 + $0x1120] sm:$0xf]  ;;  %v10666_v16 = vor.u32 %v14927_v42, %v10665_v40 }
 0x327   : > { %6763 = vmatpush.bf16.msrb.mxu0 %v11526_v48  ;;  %v15359_v48 = vld [vmem:[#allocation7 + $0x1164] sm:$0xf0]  ;;  %v10953_v40 = vld [vmem:[#allocation7 + $0x5e0] sm:$0xf] }
 0x328   : > { %6776 = vmatpush.bf16.msrb.mxu1 %v12102_v47  ;;  %v11818_v47 = vor.u32 %v15215_v43, %v11817_v55  ;;  %v12394_v52 = vor.u32 %v15359_v48, %v12393_v45  ;;  %v15287_v55 = vld [vmem:[#allocation7 + $0xf24] sm:$0xf0]  ;;  %v10954_v48 = vor.u32 %v14999_v11, %v10953_v40 }
 0x329   : > { %6789 = vmatpush.bf16.msrb.mxu2 %v12678_v33  ;;  %v10593_v33 = vld [vmem:[#allocation7 + $0x310] sm:$0xf]  ;;  %v12106_v9 = vor.u32 %v15287_v55, %v12105_v59  ;;  %v15647_v59 = vld [vmem:[#allocation7 + $0x1a64] sm:$0xf0]  ;;  %v1219_v55 = vperm.slane %v16813_v37, 5 }
 0x32a   : > { %6802 = vmatpush.bf16.msrb.mxu3 %v13254_v36  ;;  %v10594_v36 = vor.u32 %v14909_v51, %v10593_v33  ;;  %v10881_v33 = vld [vmem:[#allocation7 + $0x550] sm:$0xf] }
 0x32b   : > { %6764 = vmatpush.bf16.msrb.mxu0 %v11454_v17  ;;  %v11746_v17 = vor.u32 %v15197_v28, %v11745_v54  ;;  %v15125_v54 = vld [vmem:[#allocation7 + $0xa14] sm:$0xf0] }
 0x32c   : > { %6777 = vmatpush.bf16.msrb.mxu1 %v12030_v6  ;;  %v12322_v6 = vor.u32 %v15341_v26, %v12321_v57  ;;  %v12033_v57 = vld [vmem:[#allocation7 + $0xe50] sm:$0xf]  ;;  %v15269_v26 = vld [vmem:[#allocation7 + $0xe94] sm:$0xf0] }
 0x32d   : > { %6790 = vmatpush.bf16.msrb.mxu2 %v12606_v13  ;;  %v15035_v13 = vld [vmem:[#allocation7 + $0x744] sm:$0xf0]  ;;  %v12034_v41 = vor.u32 %v15269_v26, %v12033_v57 }
 0x32e   : > { %6803 = vmatpush.bf16.msrb.mxu3 %v13182_v14  ;;  %v11098_v14 = vor.u32 %v15035_v13, %v11097_v3  ;;  %v10809_v13 = vld [vmem:[#allocation7 + $0x4c0] sm:$0xf] }
 0x32f   : > { %6765 = vmatpush.bf16.msrb.mxu0 %v11382_v18  ;;  %v16846_v7 = vpop.f32.mrf.mxu0 }
 0x330   : > { %6778 = vmatpush.bf16.msrb.mxu1 %v11958_v44  ;;  %v16848_v18 = vpop.f32.mrf.mxu1  ;;  %v15161_v44 = vld [vmem:[#allocation7 + $0xb34] sm:$0xf0] }
 0x331   : > { %6791 = vmatpush.bf16.msrb.mxu2 %v12534_v27  ;;  %v12177_v27 = vld [vmem:[#allocation7 + $0xf70] sm:$0xf] }
 0x332   : > { %6804 = vmatpush.bf16.msrb.mxu3 %v13110_v60  ;;  %6766 = vmatmul.bf16.vlgmr.msrb.gmra.mxu0 %v16549_v4  ;;  %v14855_v60 = vld [vmem:[#allocation7 + $0x1a4] sm:$0xf0]  ;;  %v12178_v42 = vor.u32 %v15305_v15, %v12177_v27  ;;  %v11386_v27 = vor.u32 %v15107_v49, %v11385_v5  ;;  %v15080_v15 = vld [vmem:[#allocation7 + $0x8b4] sm:$0xf]  ;;  %v13401_v5 = vld [vmem:[#allocation7 + $0x1900] sm:$0xf] }
 0x333   : > { %6810 = vmatpush.bf16.msra.mxu0 %v10738_v1  ;;  %6779 = vmatmul.bf16.vlgmr.msrb.gmra.mxu1 %v16561_v38  ;;  %v11026_v1 = vor.u32 %v15017_v24, %v11025_v22  ;;  %v11961_v24 = vld [vmem:[#allocation7 + $0xdc0] sm:$0xf] }
 0x334   : > { %6823 = vmatpush.bf16.msra.mxu1 %v11314_v56  ;;  %6792 = vmatmul.bf16.vlgmr.msrb.gmra.mxu2 %v16566_v30  ;;  %v11602_v56 = vor.u32 %v15161_v44, %v11601_v29  ;;  %v15251_v29 = vld [vmem:[#allocation7 + $0xe04] sm:$0xf0]  ;;  %v10810_v44 = vor.u32 %v14963_v23, %v10809_v13 }
 0x335   : > { %6836 = vmatpush.bf16.msra.mxu2 %v11890_v58  ;;  %6805 = vmatmul.bf16.vlgmr.msrb.gmra.mxu3 %v16568_v32  ;;  %v10377_v58 = vld [vmem:[#allocation7 + $0x160] sm:$0xf]  ;;  %v11962_v11 = vor.u32 %v15251_v29, %v11961_v24  ;;  %v15467_v23 = vld [vmem:[#allocation7 + $0x14c4] sm:$0xf0] }
 0x336   : > { %6849 = vmatpush.bf16.msra.mxu3 %v12466_v0  ;;  %v15143_v0 = vld [vmem:[#allocation7 + $0xaa4] sm:$0xf0]  ;;  %v10378_v43 = vor.u32 %v14855_v60, %v10377_v58  ;;  %v12969_v58 = vld [vmem:[#allocation7 + $0x15a0] sm:$0xf] }
 0x337   : > { %6811 = vmatpush.bf16.msra.mxu0 %v10666_v16  ;;  %v6561_v45 = vpop.f32.mrf.mxu0  ;;  %v11530_v16 = vor.u32 %v15143_v0, %v11529_v8  ;;  %v16850_v28 = vpop.f32.mrf.mxu2  ;;  %v15503_v8 = vld [vmem:[#allocation7 + $0x15e4] sm:$0xf0]  ;;  %v13545_v0 = vld [vmem:[#allocation7 + $0x1a20] sm:$0xf] }
 0x338   : > { %6824 = vmatpush.bf16.msra.mxu1 %v11242_v25  ;;  %v10305_v25 = vld [vmem:[#allocation7 + $0xd0] sm:$0xf]  ;;  %v6574_v51 = vpop.f32.mrf.mxu1  ;;  %v16853_v34 = vpop.f32.mrf.mxu3  ;;  %v14918_v45 = vld [vmem:[#allocation7 + $0x3a4] sm:$0xf]  ;;  %v6586_v57 = vadd.f32 %v16850_v28, %v1219_v55 }
 0x339   : > { %6837 = vmatpush.bf16.msra.mxu2 %v11818_v47  ;;  %v14837_v47 = vld [vmem:[#allocation7 + $0x114] sm:$0xf0]  ;;  %v12897_v51 = vld [vmem:[#allocation7 + $0x1510] sm:$0xf] }
 0x33a   : > { %6850 = vmatpush.bf16.msra.mxu3 %v12394_v52  ;;  %v14981_v52 = vld [vmem:[#allocation7 + $0x594] sm:$0xf0]  ;;  %v6599_v49 = vadd.f32 %v16853_v34, %v6586_v57 }
 0x33b   : > { %6812 = vmatpush.bf16.msra.mxu0 %v10594_v36  ;;  %v1218_v36 = vperm.slane %v16813_v37, 4  ;;  %v10882_v3 = vor.u32 %v14981_v52, %v10881_v33  ;;  %v12970_v33 = vor.u32 %v15503_v8, %v12969_v58  ;;  %v13473_v37 = vld [vmem:[#allocation7 + $0x1990] sm:$0xf]  ;;  %v15593_v34 = vld [vmem:[#allocation7 + $0x18b4] sm:$0xf0] }
 0x33c   : > { %6825 = vmatpush.bf16.msra.mxu1 %v11170_v46  ;;  %v10306_v46 = vor.u32 %v14837_v47, %v10305_v25  ;;  %v15062_v25 = vld [vmem:[#allocation7 + $0x824] sm:$0xf]  ;;  %v11243_v47 = vld [vmem:[#allocation7 + $0x868] sm:$0xf0]  ;;  %v14864_v58 = vld [vmem:[#allocation7 + $0x1f4] sm:$0xf] }
 0x33d   : > { %6838 = vmatpush.bf16.msra.mxu2 %v11746_v17  ;;  %v10233_v17 = vld [vmem:[#allocation7 + $0x40] sm:$0xf]  ;;  %v6508_v40 = vadd.f32 %v16833_v35, %v1218_v36  ;;  %v13546_v35 = vor.u32 %v15647_v59, %v13545_v0  ;;  %v11246_v26 = vor.u32 %v15062_v25, %v11243_v47  ;;  %v14900_v36 = vld [vmem:[#allocation7 + $0x314] sm:$0xf]  ;;  %v14846_v47 = vld [vmem:[#allocation7 + $0x164] sm:$0xf] }
 0x33e   : > { %6851 = vmatpush.bf16.msra.mxu3 %v12322_v6  ;;  %v11458_v6 = vor.u32 %v15125_v54, %v11457_v63  ;;  %v10234_v22 = vor.u32 %v14819_v62, %v10233_v17  ;;  %v15485_v63 = vld [vmem:[#allocation7 + $0x1554] sm:$0xf0]  ;;  %v15044_v17 = vld [vmem:[#allocation7 + $0x794] sm:$0xf]  ;;  %v11171_v62 = vld [vmem:[#allocation7 + $0x7d8] sm:$0xf0] }
 0x33f   : > { %6813 = vmatpush.bf16.msra.mxu0 %v10522_v39  ;;  %v13041_v39 = vld [vmem:[#allocation7 + $0x1630] sm:$0xf]  ;;  %v6587_v60 = vpop.f32.mrf.mxu2  ;;  %v15629_v54 = vld [vmem:[#allocation7 + $0x19d4] sm:$0xf0] }
 0x340   : > { %6826 = vmatpush.bf16.msra.mxu1 %v11098_v14  ;;  %v15521_v14 = vld [vmem:[#allocation7 + $0x1674] sm:$0xf0]  ;;  %v10451_v60 = vld [vmem:[#allocation7 + $0x238] sm:$0xf0] }
 0x341   : > { %6839 = vmatpush.bf16.msra.mxu2 %v11674_v12  ;;  %v13617_v12 = vld [vmem:[#allocation7 + $0x1ab0] sm:$0xf]  ;;  %v10454_v55 = vor.u32 %v14864_v58, %v10451_v60  ;;  %v10811_v58 = vld [vmem:[#allocation7 + $0x508] sm:$0xf0] }
 0x342   : > { %6852 = vmatpush.bf16.msra.mxu3 %v12250_v53  ;;  %v10739_v53 = vld [vmem:[#allocation7 + $0x478] sm:$0xf0] }
 0x343   : > { %6814 = vmatpush.bf16.msra.mxu0 %v10450_v31  ;;  %v11315_v31 = vld [vmem:[#allocation7 + $0x8f8] sm:$0xf0] }
 0x344   : > { %6827 = vmatpush.bf16.msra.mxu1 %v11026_v1  ;;  %v13042_v1 = vor.u32 %v15521_v14, %v13041_v39  ;;  %v11174_v39 = vor.u32 %v15044_v17, %v11171_v62  ;;  %v14882_v14 = vld [vmem:[#allocation7 + $0x284] sm:$0xf]  ;;  %v15557_v17 = vld [vmem:[#allocation7 + $0x1794] sm:$0xf0] }
 0x345   : > { %6840 = vmatpush.bf16.msra.mxu2 %v11602_v56  ;;  %v13618_v56 = vor.u32 %v15665_v19, %v13617_v12  ;;  %v10523_v12 = vld [vmem:[#allocation7 + $0x2c8] sm:$0xf0]  ;;  %v15026_v19 = vld [vmem:[#allocation7 + $0x704] sm:$0xf] }
 0x346   : > { %6853 = vmatpush.bf16.msra.mxu3 %v12178_v42  ;;  %v10742_v42 = vor.u32 %v14936_v21, %v10739_v53  ;;  %v11099_v21 = vld [vmem:[#allocation7 + $0x748] sm:$0xf0]  ;;  %v10526_v29 = vor.u32 %v14882_v14, %v10523_v12  ;;  %v13113_v14 = vld [vmem:[#allocation7 + $0x16c0] sm:$0xf]  ;;  %v15539_v12 = vld [vmem:[#allocation7 + $0x1704] sm:$0xf0] }
 0x347   : > { %6815 = vmatpush.bf16.msra.mxu0 %v10378_v43  ;;  %v11318_v43 = vor.u32 %v15080_v15, %v11315_v31  ;;  %v15449_v15 = vld [vmem:[#allocation7 + $0x1434] sm:$0xf0]  ;;  %v13329_v31 = vld [vmem:[#allocation7 + $0x1870] sm:$0xf] }
 0x348   : > { %6828 = vmatpush.bf16.msra.mxu1 %v10954_v48  ;;  %v10667_v48 = vld [vmem:[#allocation7 + $0x3e8] sm:$0xf0]  ;;  %v13330_v0 = vor.u32 %v15593_v34, %v13329_v31  ;;  %v13043_v31 = vld [vmem:[#allocation7 + $0x1678] sm:$0xf0] }
 0x349   : > { %6841 = vmatpush.bf16.msra.mxu2 %v11530_v16  ;;  %v6600_v16 = vpop.f32.mrf.mxu3  ;;  %v10670_v52 = vor.u32 %v14918_v45, %v10667_v48  ;;  %v13257_v45 = vld [vmem:[#allocation7 + $0x17e0] sm:$0xf]  ;;  %v15575_v48 = vld [vmem:[#allocation7 + $0x1824] sm:$0xf0] }
 0x34a   : > { %6854 = vmatpush.bf16.msra.mxu3 %v12106_v9  ;;  %v6521_v9 = vadd.f32 %v16835_v50, %v6508_v40  ;;  %v12898_v50 = vor.u32 %v15485_v63, %v12897_v51  ;;  %v15008_v40 = vld [vmem:[#allocation7 + $0x674] sm:$0xf]  ;;  %v14990_v51 = vld [vmem:[#allocation7 + $0x5e4] sm:$0xf] }
 0x34b   : > { %6816 = vmatpush.bf16.msra.mxu0 %v10306_v46  ;;  %v10595_v46 = vld [vmem:[#allocation7 + $0x358] sm:$0xf0] }
 0x34c   : > { %6829 = vmatpush.bf16.msra.mxu1 %v10882_v3  ;;  %v13474_v3 = vor.u32 %v15629_v54, %v13473_v37  ;;  %v6534_v13 = vadd.f32 %v16838_v2, %v6521_v9  ;;  %v10598_v28 = vor.u32 %v14900_v36, %v10595_v46  ;;  %v12753_v2 = vld [vmem:[#allocation7 + $0x13f0] sm:$0xf]  ;;  %v10955_v9 = vld [vmem:[#allocation7 + $0x628] sm:$0xf0]  ;;  %v13258_v37 = vor.u32 %v15575_v48, %v13257_v45  ;;  %v15413_v36 = vld [vmem:[#allocation7 + $0x1314] sm:$0xf0] }
 0x34d   : > { %6842 = vmatpush.bf16.msra.mxu2 %v11458_v6  ;;  %v12825_v6 = vld [vmem:[#allocation7 + $0x1480] sm:$0xf]  ;;  %v12754_v8 = vor.u32 %v15449_v15, %v12753_v2  ;;  %v12609_v54 = vld [vmem:[#allocation7 + $0x12d0] sm:$0xf]  ;;  %v15224_v2 = vld [vmem:[#allocation7 + $0xd34] sm:$0xf] }
 0x34e   : > { %6855 = vmatpush.bf16.msra.mxu3 %v12034_v41  ;;  %v15611_v41 = vld [vmem:[#allocation7 + $0x1944] sm:$0xf0]  ;;  %v6547_v24 = vadd.f32 %v16840_v61, %v6534_v13  ;;  %v12681_v61 = vld [vmem:[#allocation7 + $0x1360] sm:$0xf]  ;;  %v13185_v46 = vld [vmem:[#allocation7 + $0x1750] sm:$0xf] }
 0x34f   : > { %6817 = vmatpush.bf16.msra.mxu0 %v10234_v22  ;;  %v12826_v22 = vor.u32 %v15467_v23, %v12825_v6  ;;  %v13402_v53 = vor.u32 %v15611_v41, %v13401_v5  ;;  %v14828_v6 = vld [vmem:[#allocation7 + $0xd4] sm:$0xf]  ;;  %v10307_v13 = vld [vmem:[#allocation7 + $0x118] sm:$0xf0]  ;;  %v12537_v41 = vld [vmem:[#allocation7 + $0x1240] sm:$0xf] }
 0x350   : > { %6830 = vmatpush.bf16.msra.mxu1 %v10810_v44  ;;  %v6611_v44 = vpop.f32.mrf.mxu0  ;;  %v6560_v59 = vadd.f32 %v16846_v7, %v6547_v24  ;;  %v14972_v23 = vld [vmem:[#allocation7 + $0x554] sm:$0xf]  ;;  %v10883_v5 = vld [vmem:[#allocation7 + $0x598] sm:$0xf0]  ;;  %v12395_v48 = vld [vmem:[#allocation7 + $0x1168] sm:$0xf0] }
 0x351   : > { %6843 = vmatpush.bf16.msra.mxu2 %v11386_v27  ;;  %v6624_v27 = vpop.f32.mrf.mxu1  ;;  %v11891_v24 = vld [vmem:[#allocation7 + $0xd78] sm:$0xf0]  ;;  %v15512_v15 = vld [vmem:[#allocation7 + $0x1634] sm:$0xf] }
 0x352   : > { %6856 = vmatpush.bf16.msra.mxu3 %v11962_v11  ;;  %6818 = vmatmul.bf16.vlgmr.msra.gmra.mxu0 %v16552_v10  ;;  %v6573_v7 = vadd.f32 %v16848_v18, %v6560_v59  ;;  %v13186_v18 = vor.u32 %v15557_v17, %v13185_v46  ;;  %v15206_v59 = vld [vmem:[#allocation7 + $0xca4] sm:$0xf]  ;;  %v15620_v17 = vld [vmem:[#allocation7 + $0x1994] sm:$0xf] }
 0x353   : > { %6862 = vmatpush.bf16.msrb.mxu0 %v13042_v1  ;;  %6831 = vmatmul.bf16.vlgmr.msra.gmra.mxu1 %v16557_v20  ;;  %v6612_v1 = vadd.f32 %v6611_v44, %v6599_v49  ;;  %v12610_v49 = vor.u32 %v15413_v36, %v12609_v54  ;;  %v15332_v54 = vld [vmem:[#allocation7 + $0x1094] sm:$0xf] }
 0x354   : > { %6875 = vmatpush.bf16.msrb.mxu1 %v13618_v56  ;;  %6844 = vmatmul.bf16.vlgmr.msra.gmra.mxu2 %v16549_v4  ;;  %v11102_v56 = vor.u32 %v15026_v19, %v11099_v21  ;;  %v10310_v19 = vor.u32 %v14828_v6, %v10307_v13  ;;  %v14810_v21 = vld [vmem:[#allocation7 + $0x44] sm:$0xf]  ;;  %v11675_v13 = vld [vmem:[#allocation7 + $0xbc8] sm:$0xf0] }
 0x355   : > { %6888 = vmatpush.bf16.msrb.mxu2 %v10742_v42  ;;  %6857 = vmatmul.bf16.vlgmr.msra.gmra.mxu3 %v16561_v38  ;;  %v11027_v42 = vld [vmem:[#allocation7 + $0x6b8] sm:$0xf0]  ;;  %v6625_v11 = vadd.f32 %v6624_v27, %v6612_v1  ;;  %v13114_v1 = vor.u32 %v15539_v12, %v13113_v14  ;;  %v15170_v6 = vld [vmem:[#allocation7 + $0xb84] sm:$0xf] }
 0x356   : > { %6901 = vmatpush.bf16.msrb.mxu3 %v11318_v43  ;;  %v15431_v43 = vld [vmem:[#allocation7 + $0x13a4] sm:$0xf0]  ;;  %v11030_v25 = vor.u32 %v15008_v40, %v11027_v42  ;;  %v12467_v27 = vld [vmem:[#allocation7 + $0x11f8] sm:$0xf0]  ;;  %v11894_v42 = vor.u32 %v15224_v2, %v11891_v24  ;;  %v15440_v2 = vld [vmem:[#allocation7 + $0x13f4] sm:$0xf] }
 0x357   : > { %6863 = vmatpush.bf16.msrb.mxu0 %v12970_v33  ;;  %v6637_v16 = vpop.f32.mrf.mxu2  ;;  %v10379_v33 = vld [vmem:[#allocation7 + $0x1a8] sm:$0xf0]  ;;  %v12682_v63 = vor.u32 %v15431_v43, %v12681_v61  ;;  %v13046_v61 = vor.u32 %v15512_v15, %v13043_v31  ;;  %v15350_v43 = vld [vmem:[#allocation7 + $0x1124] sm:$0xf]  ;;  %v12755_v24 = vld [vmem:[#allocation7 + $0x1438] sm:$0xf0] }
 0x358   : > { %6876 = vmatpush.bf16.msrb.mxu1 %v13546_v35  ;;  %v6638_v35 = vadd.f32 %v6637_v16, %v6625_v11  ;;  %v6613_v62 = vpop.f32.mrf.mxu0  ;;  %v15656_v11 = vld [vmem:[#allocation7 + $0x1ab4] sm:$0xf]  ;;  %v15494_v16 = vld [vmem:[#allocation7 + $0x15a4] sm:$0xf]  ;;  %v13331_v31 = vld [vmem:[#allocation7 + $0x18b8] sm:$0xf0] }
 0x359   : > { %6889 = vmatpush.bf16.msrb.mxu2 %v10670_v52  ;;  %v6650_v52 = vpop.f32.mrf.mxu3  ;;  %v13475_v62 = vld [vmem:[#allocation7 + $0x19d8] sm:$0xf0]  ;;  %v15584_v15 = vld [vmem:[#allocation7 + $0x1874] sm:$0xf] }
 0x35a   : > { %6902 = vmatpush.bf16.msrb.mxu3 %v11246_v26  ;;  %v6651_v57 = vadd.f32 %v6650_v52, %v6638_v35  ;;  %v10382_v26 = vor.u32 %v14846_v47, %v10379_v33  ;;  %v15638_v35 = vld [vmem:[#allocation7 + $0x1a24] sm:$0xf] }
 0x35b   : > { %6864 = vmatpush.bf16.msrb.mxu0 %v12898_v50  ;;  %v6626_v50 = vpop.f32.mrf.mxu1 }
 0x35c   : > { %6877 = vmatpush.bf16.msrb.mxu1 %v13474_v3  ;;  %v10958_v3 = vor.u32 %v14990_v51, %v10955_v9  ;;  %v13547_v51 = vld [vmem:[#allocation7 + $0x1a68] sm:$0xf0]  ;;  %v12398_v9 = vor.u32 %v15350_v43, %v12395_v48  ;;  %v15116_v48 = vld [vmem:[#allocation7 + $0x9d4] sm:$0xf] }
 0x35d   : > { %6890 = vmatpush.bf16.msrb.mxu2 %v10598_v28  ;;  %v6972_v28 = vpack.c.bf16 %v6651_v57, %v6573_v7  ;;  %v12323_v7 = vld [vmem:[#allocation7 + $0x10d8] sm:$0xf0]  ;;  %v15476_v57 = vld [vmem:[#allocation7 + $0x1514] sm:$0xf]  ;;  %v13550_v36 = vor.u32 %v15638_v35, %v13547_v51 }
 0x35e   : > { %6903 = vmatpush.bf16.msrb.mxu3 %v11174_v39  ;;  %v15395_v39 = vld [vmem:[#allocation7 + $0x1284] sm:$0xf0]  ;;  %v12326_v50 = vor.u32 %v15332_v54, %v12323_v7  ;;  %v12611_v35 = vld [vmem:[#allocation7 + $0x1318] sm:$0xf0]  ;;  %v15548_v54 = vld [vmem:[#allocation7 + $0x1754] sm:$0xf] }
 0x35f   : > { %6865 = vmatpush.bf16.msrb.mxu0 %v12826_v22  ;;  %6981 = vst [vmem:[#allocation2 + $0x30] sm:$0xff] %v6972_v28  ;;  %v10235_v22 = vld [vmem:[#allocation7 + $0x88] sm:$0xf0]  ;;  %v6639_v44 = vpop.f32.mrf.mxu2  ;;  %v12538_v34 = vor.u32 %v15395_v39, %v12537_v41  ;;  %v15314_v28 = vld [vmem:[#allocation7 + $0x1004] sm:$0xf] }
 0x360   : > { %6878 = vmatpush.bf16.msrb.mxu1 %v13402_v53  ;;  %v10886_v53 = vor.u32 %v14972_v23, %v10883_v5  ;;  %v10238_v40 = vor.u32 %v14810_v21, %v10235_v22  ;;  %v12251_v23 = vld [vmem:[#allocation7 + $0x1048] sm:$0xf0]  ;;  %v15458_v5 = vld [vmem:[#allocation7 + $0x1484] sm:$0xf]  ;;  %v11603_v21 = vld [vmem:[#allocation7 + $0xb38] sm:$0xf0] }
 0x361   : > { %6891 = vmatpush.bf16.msrb.mxu2 %v10526_v29  ;;  %v15368_v29 = vld [vmem:[#allocation7 + $0x11b4] sm:$0xf]  ;;  %v6652_v60 = vpop.f32.mrf.mxu3  ;;  %v12827_v41 = vld [vmem:[#allocation7 + $0x14c8] sm:$0xf0]  ;;  %v12254_v14 = vor.u32 %v15314_v28, %v12251_v23  ;;  %v13187_v7 = vld [vmem:[#allocation7 + $0x1798] sm:$0xf0] }
 0x362   : > { %6904 = vmatpush.bf16.msrb.mxu3 %v11102_v56  ;;  %v14954_v56 = vld [vmem:[#allocation7 + $0x4c4] sm:$0xf]  ;;  %v13403_v39 = vld [vmem:[#allocation7 + $0x1948] sm:$0xf0]  ;;  %v12830_v12 = vor.u32 %v15458_v5, %v12827_v41  ;;  %v15296_v22 = vld [vmem:[#allocation7 + $0xf74] sm:$0xf] }
 0x363   : > { %6866 = vmatpush.bf16.msrb.mxu0 %v12754_v8  ;;  %v13619_v8 = vld [vmem:[#allocation7 + $0x1af8] sm:$0xf0]  ;;  %v10814_v45 = vor.u32 %v14954_v56, %v10811_v58  ;;  %v15134_v56 = vld [vmem:[#allocation7 + $0xa64] sm:$0xf]  ;;  %v11531_v58 = vld [vmem:[#allocation7 + $0xaa8] sm:$0xf0] }
 0x364   : > { %6879 = vmatpush.bf16.msrb.mxu1 %v13330_v0  ;;  %v12470_v0 = vor.u32 %v15368_v29, %v12467_v27  ;;  %v13622_v47 = vor.u32 %v15656_v11, %v13619_v8  ;;  %v15278_v60 = vld [vmem:[#allocation7 + $0xee4] sm:$0xf]  ;;  %v12683_v11 = vld [vmem:[#allocation7 + $0x13a8] sm:$0xf0]  ;;  %v13334_v8 = vor.u32 %v15584_v15, %v13331_v31 }
 0x365   : > { %6892 = vmatpush.bf16.msrb.mxu2 %v10454_v55  ;;  %v11819_v55 = vld [vmem:[#allocation7 + $0xce8] sm:$0xf0]  ;;  %v15530_v23 = vld [vmem:[#allocation7 + $0x16c4] sm:$0xf] }
 0x366   : > { %6905 = vmatpush.bf16.msrb.mxu3 %v11030_v25  ;;  %v12971_v25 = vld [vmem:[#allocation7 + $0x15e8] sm:$0xf0]  ;;  %v11822_v33 = vor.u32 %v15206_v59, %v11819_v55  ;;  %v15566_v59 = vld [vmem:[#allocation7 + $0x17e4] sm:$0xf] }
 0x367   : > { %6867 = vmatpush.bf16.msrb.mxu0 %v12682_v63  ;;  %v12974_v52 = vor.u32 %v15494_v16, %v12971_v25  ;;  %v15188_v63 = vld [vmem:[#allocation7 + $0xc14] sm:$0xf]  ;;  %v13259_v55 = vld [vmem:[#allocation7 + $0x1828] sm:$0xf0]  ;;  %v11459_v16 = vld [vmem:[#allocation7 + $0xa18] sm:$0xf0] }
 0x368   : > { %6880 = vmatpush.bf16.msrb.mxu1 %v13258_v37  ;;  %v11747_v37 = vld [vmem:[#allocation7 + $0xc58] sm:$0xf0]  ;;  %v15260_v25 = vld [vmem:[#allocation7 + $0xe54] sm:$0xf]  ;;  %v13115_v5 = vld [vmem:[#allocation7 + $0x1708] sm:$0xf0] }
 0x369   : > { %6893 = vmatpush.bf16.msrb.mxu2 %v10382_v26  ;;  %v12899_v26 = vld [vmem:[#allocation7 + $0x1558] sm:$0xf0]  ;;  %v11750_v46 = vor.u32 %v15188_v63, %v11747_v37  ;;  %v11462_v37 = vor.u32 %v15116_v48, %v11459_v16 }
 0x36a   : > { %6906 = vmatpush.bf16.msrb.mxu3 %v10958_v3  ;;  %v12902_v3 = vor.u32 %v15476_v57, %v12899_v26 }
 0x36b   : > { %6868 = vmatpush.bf16.msrb.mxu0 %v12610_v49  ;;  %v11678_v49 = vor.u32 %v15170_v6, %v11675_v13  ;;  %v13190_v6 = vor.u32 %v15548_v54, %v13187_v7 }
 0x36c   : > { %6881 = vmatpush.bf16.msrb.mxu1 %v13186_v18  ;;  %v15602_v18 = vld [vmem:[#allocation7 + $0x1904] sm:$0xf] }
 0x36d   : > { %6894 = vmatpush.bf16.msrb.mxu2 %v10310_v19  ;;  %v15152_v19 = vld [vmem:[#allocation7 + $0xaf4] sm:$0xf] }
 0x36e   : > { %6907 = vmatpush.bf16.msrb.mxu3 %v10886_v53  ;;  %v12179_v53 = vld [vmem:[#allocation7 + $0xfb8] sm:$0xf0]  ;;  %v11606_v27 = vor.u32 %v15152_v19, %v11603_v21 }
 0x36f   : > { %6869 = vmatpush.bf16.msrb.mxu0 %v12538_v34  ;;  %v16872_v29 = vpop.f32.mrf.mxu0  ;;  %v12182_v34 = vor.u32 %v15296_v22, %v12179_v53  ;;  %v7186_v22 = vpop.permute.xlu1 %7185 }
 0x370   : > { %6882 = vmatpush.bf16.msrb.mxu1 %v13114_v1  ;;  %v16874_v44 = vpop.f32.mrf.mxu1  ;;  %v12758_v1 = vor.u32 %v15440_v2, %v12755_v24  ;;  %v16886_v2 = vld [vmem:[#allocation2 + $0x34] sm:$0xf]  ;;  %v16117_v24 = vld [vmem:[#allocation2 + $0x1c] sm:$0xf] }
 0x371   : > { %6895 = vmatpush.bf16.msrb.mxu2 %v10238_v40  ;;  %v12107_v40 = vld [vmem:[#allocation7 + $0xf28] sm:$0xf0]  ;;  %v7161_v15 = vsel %vm7029_vm1, %v16886_v2, 0 }
 0x372   : > { %6908 = vmatpush.bf16.msrb.mxu3 %v10814_v45  ;;  %6870 = vmatmul.bf16.vlgmr.msrb.gmra.mxu0 %v16566_v30  ;;  %v12110_v43 = vor.u32 %v15278_v60, %v12107_v40  ;;  %v16118_v60 = vld [vmem:[#allocation2] sm:$0xf] }
 0x373   : > { %6914 = vmatpush.bf16.msra.mxu0 %v11894_v42  ;;  %6883 = vmatmul.bf16.vlgmr.msrb.gmra.mxu1 %v16568_v32  ;;  %v15422_v42 = vld [vmem:[#allocation7 + $0x1364] sm:$0xf] }
 0x374   : > { %6927 = vmatpush.bf16.msra.mxu1 %v12470_v0  ;;  %6896 = vmatmul.bf16.vlgmr.msrb.gmra.mxu2 %v16552_v10  ;;  %v13478_v10 = vor.u32 %v15620_v17, %v13475_v62  ;;  %v12686_v45 = vor.u32 %v15422_v42, %v12683_v11  ;;  %v15242_v17 = vld [vmem:[#allocation7 + $0xdc4] sm:$0xf]  ;;  %v11963_v62 = vld [vmem:[#allocation7 + $0xe08] sm:$0xf0] }
 0x375   : > { %6940 = vmatpush.bf16.msra.mxu2 %v13046_v61  ;;  %6909 = vmatmul.bf16.vlgmr.msrb.gmra.mxu3 %v16557_v20  ;;  %v13406_v20 = vor.u32 %v15602_v18, %v13403_v39  ;;  %v11534_v61 = vor.u32 %v15134_v56, %v11531_v58  ;;  %v11966_v41 = vor.u32 %v15242_v17, %v11963_v62  ;;  %v7056_v18 = vpop.permute.xlu0 %7055  ;;  %v16120_v11 = vld [vmem:[#allocation9 + $0x8] sm:$0xff] }
 0x376   : > { %6953 = vmatpush.bf16.msra.mxu3 %v13622_v47  ;;  %v12035_v47 = vld [vmem:[#allocation7 + $0xe98] sm:$0xf0]  ;;  %v13118_v39 = vor.u32 %v15530_v23, %v13115_v5  ;;  %v7061_v53 = vsel %vm6993_vm0, %v7056_v18, 0  ;;  %v16123_v23 = vld [vmem:[#allocation2 + $0x8] sm:$0xf] }
 0x377   : > { %6915 = vmatpush.bf16.msra.mxu0 %v11822_v33  ;;  %v16876_v0 = vpop.f32.mrf.mxu2  ;;  %v15404_v33 = vld [vmem:[#allocation7 + $0x12d4] sm:$0xf]  ;;  %v6665_v51 = vpop.f32.mrf.mxu0  ;;  %v12038_v57 = vor.u32 %v15260_v25, %v12035_v47 }
 0x378   : > { %6928 = vmatpush.bf16.msra.mxu1 %v12398_v9  ;;  %v6678_v9 = vpop.f32.mrf.mxu1  ;;  %v16878_v63 = vpop.f32.mrf.mxu3  ;;  %v12614_v26 = vor.u32 %v15404_v33, %v12611_v35  ;;  %v16121_v33 = vld [vmem:[#allocation2 + $0x4] sm:$0xf] }
 0x379   : > { %6941 = vmatpush.bf16.msra.mxu2 %v12974_v52  ;;  %v13262_v52 = vor.u32 %v15566_v59, %v13259_v55  ;;  %v1221_v55 = vperm.slane %v16120_v11, 7  ;;  %v7181_v25 = vpop.permute.xlu1 %7180  ;;  %v16122_v35 = vld [vmem:[#allocation2 + $0x24] sm:$0xf] }
 0x37a   : > { %6954 = vmatpush.bf16.msra.mxu3 %v13550_v36  ;;  %v15098_v36 = vld [vmem:[#allocation7 + $0x944] sm:$0xf]  ;;  %v7390_v51 = vsel %vm6993_vm0, %v16122_v35, 0 }
 0x37b   : > { %6916 = vmatpush.bf16.msra.mxu0 %v11750_v46  ;;  %v11387_v46 = vld [vmem:[#allocation7 + $0x988] sm:$0xf0] }
 0x37c   : > { %6929 = vmatpush.bf16.msra.mxu1 %v12326_v50  ;;  %v15386_v50 = vld [vmem:[#allocation7 + $0x1244] sm:$0xf]  ;;  %v11390_v28 = vor.u32 %v15098_v36, %v11387_v46 }
 0x37d   : > { %6942 = vmatpush.bf16.msra.mxu2 %v12902_v3  ;;  %v12539_v3 = vld [vmem:[#allocation7 + $0x1288] sm:$0xf0] }
 0x37e   : > { %6955 = vmatpush.bf16.msra.mxu3 %v13478_v10  ;;  %v12542_v10 = vor.u32 %v15386_v50, %v12539_v3 }
 0x37f   : > { %6917 = vmatpush.bf16.msra.mxu0 %v11678_v49  ;;  %v6691_v13 = vpop.f32.mrf.mxu2  ;;  %v16880_v49 = vld [vmem:[#allocation2 + $0x30] sm:$0xf] }
 0x380   : > { %6930 = vmatpush.bf16.msra.mxu1 %v12254_v14  ;;  %v6704_v14 = vpop.f32.mrf.mxu3  ;;  %v7031_v21 = vsel %vm7029_vm1, %v16880_v49, 0 }
 0x381   : > { %6943 = vmatpush.bf16.msra.mxu2 %v12830_v12  ;;  %v16116_v12 = vld [vmem:[#allocation2 + $0x18] sm:$0xf]  ;;  %v7441_v18 = vpop.permute.xlu1 %7440 }
 0x382   : > { %6956 = vmatpush.bf16.msra.mxu3 %v13406_v20  ;;  %v6998_v19 = vsel %vm6993_vm0, %v16116_v12, 0  ;;  %v7130_v20 = vsel %vm6993_vm0, %v16117_v24, 0  ;;  %v16125_v12 = vld [vmem:[#allocation2 + $0xc] sm:$0xf] }
 0x383   : > { %6918 = vmatpush.bf16.msra.mxu0 %v11606_v27  ;;  %v7191_v27 = vsel %vm6993_vm0, %v7186_v22, 0 }
 0x384   : > { %6931 = vmatpush.bf16.msra.mxu1 %v12182_v34 }
 0x385   : > { %6944 = vmatpush.bf16.msra.mxu2 %v12758_v1 }
 0x386   : > { %6957 = vmatpush.bf16.msra.mxu3 %v13334_v8  ;;  %v1220_v8 = vperm.slane %v16120_v11, 6  ;;  %v1202_v11 = vld [vmem:[#allocation9 + $0x10] sm:$0x3] }
 0x387   : > { %6919 = vmatpush.bf16.msra.mxu0 %v11534_v61 }
 0x388   : > { %6932 = vmatpush.bf16.msra.mxu1 %v12110_v43  ;;  %v6664_v59 = vadd.f32 %v16872_v29, %v1220_v8 }
 0x389   : > { %6945 = vmatpush.bf16.msra.mxu2 %v12686_v45 }
 0x38a   : > { %6958 = vmatpush.bf16.msra.mxu3 %v13262_v52  ;;  %v6677_v48 = vadd.f32 %v16874_v44, %v6664_v59 }
 0x38b   : > { %6920 = vmatpush.bf16.msra.mxu0 %v11462_v37 }
 0x38c   : > { %6933 = vmatpush.bf16.msra.mxu1 %v12038_v57  ;;  %v6690_v9 = vadd.f32 %v16876_v0, %v6677_v48 }
 0x38d   : > { %6946 = vmatpush.bf16.msra.mxu2 %v12614_v26 }
 0x38e   : > { %6959 = vmatpush.bf16.msra.mxu3 %v13190_v6  ;;  %v6703_v44 = vadd.f32 %v16878_v63, %v6690_v9  ;;  %v16124_v63 = vld [vmem:[#allocation2 + $0x28] sm:$0xf] }
 0x38f   : > { %6921 = vmatpush.bf16.msra.mxu0 %v11390_v28  ;;  %v6715_v31 = vpop.f32.mrf.mxu0  ;;  %v7520_v5 = vsel %vm6993_vm0, %v16124_v63, 0 }
 0x390   : > { %6934 = vmatpush.bf16.msra.mxu1 %v11966_v41  ;;  %v6728_v34 = vpop.f32.mrf.mxu1  ;;  %v6716_v26 = vadd.f32 %v6715_v31, %v6703_v44 }
 0x391   : > { %6947 = vmatpush.bf16.msra.mxu2 %v12542_v10 }
 0x392   : > { %6960 = vmatpush.bf16.msra.mxu3 %v13118_v39  ;;  %6922 = vmatmul.bf16.vlgmr.msra.gmra.mxu0 %v16549_v4  ;;  %v7316_v4 = vpop.permute.xlu2 %7315  ;;  %v6729_v50 = vadd.f32 %v6728_v34, %v6716_v26  ;;  %v7706_v39 = vpop.permute.xlu1 %7705  ;;  %v16127_v34 = vld [vmem:[#allocation2 + $0x10] sm:$0xf] }
 0x393   : > { %7007 = vmatpush.bf16.xpose.msrb.mxu0 %v6998_v19  ;;  %6935 = vmatmul.bf16.vlgmr.msra.gmra.mxu1 %v16561_v38  ;;  %v7321_v58 = vsel %vm6993_vm0, %v7316_v4, 0  ;;  %v16119_v38 = vld [vmem:[#allocation2 + $0x20] sm:$0xf]  ;;  %v7711_v14 = vsel %vm6993_vm0, %v7706_v39, 0  ;;  %v16126_v19 = vld [vmem:[#allocation2 + $0x2c] sm:$0xf] }
 0x394   : > { %7040 = vmatpush.bf16.msrb.mxu1 %v7031_v21  ;;  %6948 = vmatmul.bf16.vlgmr.msra.gmra.mxu2 %v16566_v30  ;;  %v7051_v30 = vpop.permute.xlu0 %7050  ;;  %v7260_v40 = vsel %vm6993_vm0, %v16119_v38, 0  ;;  %v7650_v21 = vsel %vm6993_vm0, %v16126_v19, 0 }
 0x395   : > { %7070 = vmatpush.bf16.xpose.msrb.mxu2 %v7061_v53  ;;  %6961 = vmatmul.bf16.vlgmr.msra.gmra.mxu3 %v16568_v32 }
 0x397   : > { %v6717_v1 = vpop.f32.mrf.mxu0  ;;  %v6741_v42 = vpop.f32.mrf.mxu2 }
 0x398   : > { %7170 = vmatpush.bf16.msra.mxu1 %v7161_v15  ;;  %v6730_v56 = vpop.f32.mrf.mxu1  ;;  %v6754_v32 = vpop.f32.mrf.mxu3  ;;  %v6742_v16 = vadd.f32 %v6741_v42, %v1221_v55 }
 0x39a   : > { %v6755_v29 = vadd.f32 %v6754_v32, %v6742_v16  ;;  %v7311_v52 = vpop.permute.xlu2 %7310 }
 0x39b   : > { %7139 = vmatpush.bf16.xpose.msra.mxu0 %v7130_v20 }
 0x39c   : > { %v7446_v45 = vpop.permute.xlu0 %7445 }
 0x39d   : > { %7200 = vmatpush.bf16.xpose.msra.mxu2 %v7191_v27  ;;  %v7451_v47 = vsel %vm6993_vm0, %v7446_v45, 0 }
 0x39f   : > { %v6743_v61 = vpop.f32.mrf.mxu2 }
 0x3a0   : > { %v6756_v43 = vpop.f32.mrf.mxu3  ;;  %v1222_v61 = vperm.slane %v1202_v11, 0 }
 0x3a1   : > { %v1223_v43 = vperm.slane %v1202_v11, 1 }
 0x3a2   : > { %13623 = vmatmul.msk.bf16.vlgmr.msrb.gmra.mxu0 %vm6993_vm0, %v16118_v60  ;;  %v7576_v17 = vpop.permute.xlu2 %7575 }
 0x3a3   : > { %7269 = vmatpush.bf16.xpose.msrb.mxu0 %v7260_v40  ;;  %v7581_v28 = vsel %vm6993_vm0, %v7576_v17, 0 }
 0x3a4   : > { %13625 = vmatmul.msk.bf16.vlgmr.msrb.gmra.mxu2 %vm6993_vm0, %v7051_v30  ;;  %v7571_v31 = vpop.permute.xlu0 %7570 }
 0x3a5   : > { %7330 = vmatpush.bf16.xpose.msrb.mxu2 %v7321_v58  ;;  %v16128_v58 = vld [vmem:[#allocation2 + $0x14] sm:$0xf] }
 0x3aa   : > { %v7701_v30 = vpop.permute.xlu2 %7700 }
 0x3af   : > { %v6767_v37 = vpop.f32.mrf.mxu0 }
 0x3b0   : > { %v6780_v54 = vpop.f32.mrf.mxu1  ;;  %v6768_v7 = vadd.f32 %v6767_v37, %v6755_v29 }
 0x3b2   : > { %13627 = vmatmul.msk.bf16.vlgmr.msra.gmra.mxu0 %vm6993_vm0, %v16121_v33  ;;  %v6781_v57 = vadd.f32 %v6780_v54, %v6768_v7 }
 0x3b3   : > { %7399 = vmatpush.bf16.xpose.msra.mxu0 %v7390_v51 }
 0x3b4   : > { %13629 = vmatmul.msk.bf16.vlgmr.msra.gmra.mxu2 %vm6993_vm0, %v7181_v25 }
 0x3b5   : > { %7460 = vmatpush.bf16.xpose.msra.mxu2 %v7451_v47 }
 0x3b7   : > { %v6793_v36 = vpop.f32.mrf.mxu2  ;;  %v6769_v6 = vpop.f32.mrf.mxu0 }
 0x3b8   : > { %v6794_v46 = vadd.f32 %v6793_v36, %v6781_v57  ;;  %v6806_v62 = vpop.f32.mrf.mxu3  ;;  %v6782_v13 = vpop.f32.mrf.mxu1 }
 0x3ba   : > { %v6807_v3 = vadd.f32 %v6806_v62, %v6794_v46 }
 0x3bc   : > { %v6973_v0 = vpack.c.bf16 %v6807_v3, %v6729_v50 }
 0x3be   : > { %6982 = vst [vmem:[#allocation2 + $0x38] sm:$0xff] %v6973_v0 }
 0x3bf   : > { %v6795_v41 = vpop.f32.mrf.mxu2 }
 0x3c0   : > { %v6808_v10 = vpop.f32.mrf.mxu3 }
 0x3c2   : > { %13631 = vmatmul.msk.bf16.vlgmr.msrb.gmra.mxu0 %vm6993_vm0, %v16123_v23 }
 0x3c3   : > { %7529 = vmatpush.bf16.xpose.msrb.mxu0 %v7520_v5 }
 0x3c4   : > { %13633 = vmatmul.msk.bf16.vlgmr.msrb.gmra.mxu2 %vm6993_vm0, %v7311_v52 }
 0x3c5   : > { %7590 = vmatpush.bf16.xpose.msrb.mxu2 %v7581_v28 }
 0x3cf   : > { %v6819_v22 = vpop.f32.mrf.mxu0 }
 0x3d0   : > { %v6832_v53 = vpop.f32.mrf.mxu1  ;;  %v6820_v55 = vadd.f32 %v6819_v22, %v1222_v61 }
 0x3d2   : > { %13635 = vmatmul.msk.bf16.vlgmr.msra.gmra.mxu0 %vm6993_vm0, %v16125_v12  ;;  %v6833_v45 = vadd.f32 %v6832_v53, %v6820_v55 }
 0x3d3   : > { %7659 = vmatpush.bf16.xpose.msra.mxu0 %v7650_v21 }
 0x3d4   : > { %13637 = vmatmul.msk.bf16.vlgmr.msra.gmra.mxu2 %vm6993_vm0, %v7441_v18 }
 0x3d5   : > { %7720 = vmatpush.bf16.xpose.msra.mxu2 %v7711_v14 }
 0x3d7   : > { %v6845_v24 = vpop.f32.mrf.mxu2  ;;  %v6821_v20 = vpop.f32.mrf.mxu0 }
 0x3d8   : > { %v6834_v27 = vpop.f32.mrf.mxu1  ;;  %v6858_v15 = vpop.f32.mrf.mxu3  ;;  %v6846_v16 = vadd.f32 %v6845_v24, %v6833_v45  ;;  %v7089_v24 = vunpack.c.l.b16 %v16880_v49 }
 0x3da   : > { %v6859_v51 = vadd.f32 %v6858_v15, %v6846_v16  ;;  %v7090_v27 = vpack.c.b16 %v7089_v24, %v7089_v24 }
 0x3df   : > { %v6847_v4 = vpop.f32.mrf.mxu2 }
 0x3e0   : > { %v6860_v1 = vpop.f32.mrf.mxu3 }
 0x3e2   : > { %13639 = vmatmul.msk.bf16.vlgmr.msrb.gmra.mxu0 %vm6993_vm0, %v16127_v34 }
 0x3e4   : > { %13641 = vmatmul.msk.bf16.vlgmr.msrb.gmra.mxu2 %vm6993_vm0, %v7571_v31 }
 0x3ef   : > { %v6871_v56 = vpop.f32.mrf.mxu0 }
 0x3f0   : > { %v6884_v60 = vpop.f32.mrf.mxu1  ;;  %v6872_v29 = vadd.f32 %v6871_v56, %v6859_v51 }
 0x3f2   : > { %13643 = vmatmul.msk.bf16.vlgmr.msra.gmra.mxu0 %vm6993_vm0, %v16128_v58  ;;  %v6885_v57 = vadd.f32 %v6884_v60, %v6872_v29 }
 0x3f4   : > { %13645 = vmatmul.msk.bf16.vlgmr.msra.gmra.mxu2 %vm6993_vm0, %v7701_v30 }
 0x3f7   : > { %v6897_v38 = vpop.f32.mrf.mxu2  ;;  %v6873_v40 = vpop.f32.mrf.mxu0 }
 0x3f8   : > { %v6910_v42 = vpop.f32.mrf.mxu3  ;;  %v6886_v32 = vpop.f32.mrf.mxu1  ;;  %v6898_v48 = vadd.f32 %v6897_v38, %v1223_v43  ;;  %v16948_v38 = vld [vmem:[#allocation2 + $0x38] sm:$0xf] }
 0x3f9   : > { %v7349_v40 = vunpack.c.l.b16 %v16948_v38 }
 0x3fa   : > { %v6911_v25 = vadd.f32 %v6910_v42, %v6898_v48 }
 0x3fb   : > { %v7350_v32 = vpack.c.b16 %v7349_v40, %v7349_v40 }
 0x3ff   : > { %v6899_v8 = vpop.f32.mrf.mxu2 }
 0x400   : > { %v6912_v59 = vpop.f32.mrf.mxu3 }
 0x40f   : > { %v6923_v47 = vpop.f32.mrf.mxu0 }
 0x410   : > { %v6924_v33 = vadd.f32 %v6923_v47, %v6911_v25  ;;  %v6936_v35 = vpop.f32.mrf.mxu1 }
 0x412   : > { %v6937_v9 = vadd.f32 %v6936_v35, %v6924_v33 }
 0x417   : > { %v6949_v52 = vpop.f32.mrf.mxu2  ;;  %v6925_v37 = vpop.f32.mrf.mxu0 }
 0x418   : > { %v6950_v44 = vadd.f32 %v6949_v52, %v6937_v9  ;;  %v6962_v54 = vpop.f32.mrf.mxu3  ;;  %v6938_v7 = vpop.f32.mrf.mxu1  ;;  %v16964_v9 = vld [vmem:[#allocation2 + $0x3c] sm:$0xf] }
 0x419   : > { %v7479_v29 = vunpack.c.l.b16 %v16964_v9 }
 0x41a   : > { %v6963_v26 = vadd.f32 %v6962_v54, %v6950_v44 }
 0x41b   : > { %v7480_v37 = vpack.c.b16 %v7479_v29, %v7479_v29 }
 0x41c   : > { %v6974_v36 = vpack.c.bf16 %v6963_v26, %v6885_v57  ;;  %v7219_v57 = vunpack.c.l.b16 %v16886_v2 }
 0x41e   : > { %6983 = vst [vmem:[#allocation2 + $0x40] sm:$0xff] %v6974_v36  ;;  %v7220_v36 = vpack.c.b16 %v7219_v57, %v7219_v57 }
 0x41f   : > { %v6951_v46 = vpop.f32.mrf.mxu2  ;;  %v7009_v17 = vpop.f32.mrf.mxu0 }
 0x420   : > { %v7014_v62 = vsel %vm7013_vm2, %v7009_v17, -inf  ;;  %v6964_v50 = vpop.f32.mrf.mxu3 }
 0x421   : > { %7015 = vmax.xlane.f32.xlu0 %v7014_v62 }
 0x427   : > { %v7072_v3 = vpop.f32.mrf.mxu2  ;;  %v7011_v6 = vpop.f32.mrf.mxu0 }
 0x428   : > { %v7076_v13 = vsel %vm7013_vm2, %v7072_v3, -inf }
 0x429   : > { %7077 = vmax.xlane.f32.xlu0 %v7076_v13 }
 0x42f   : > { %v7074_v0 = vpop.f32.mrf.mxu2  ;;  %v16922_v28 = vpop.f32.mrf.mxu0 }
 0x430   : > { %v7145_v10 = vsel %vm7013_vm2, %v16922_v28, -inf }
 0x437   : > { %v7202_v23 = vpop.f32.mrf.mxu2  ;;  %v7143_v5 = vpop.f32.mrf.mxu0 }
 0x438   : > { %v7206_v63 = vsel %vm7013_vm2, %v7202_v23, -inf }
 0x439   : > { %7207 = vmax.xlane.f32.xlu1 %v7206_v63 }
 0x43f   : > { %v7204_v41 = vpop.f32.mrf.mxu2  ;;  %v16927_v18 = vpop.f32.mrf.mxu0 }
 0x440   : > { %v7275_v11 = vsel %vm7013_vm2, %v16927_v18, -inf }
 0x441   : > { %7146 = vmax.xlane.f32.xlu1 %v7145_v10 }
 0x447   : > { %v7332_v39 = vpop.f32.mrf.mxu2  ;;  %v7273_v12 = vpop.f32.mrf.mxu0 }
 0x448   : > { %v7336_v14 = vsel %vm7013_vm2, %v7332_v39, -inf }
 0x449   : > { %7337 = vmax.xlane.f32.xlu2 %v7336_v14 }
 0x44f   : > { %v7334_v19 = vpop.f32.mrf.mxu2  ;;  %v16930_v21 = vpop.f32.mrf.mxu0 }
 0x450   : > { %v7405_v13 = vsel %vm7013_vm2, %v16930_v21, -inf }
 0x457   : > { %v16932_v22 = vpop.f32.mrf.mxu2  ;;  %v7403_v53 = vpop.f32.mrf.mxu0 }
 0x458   : > { %v7466_v42 = vsel %vm7013_vm2, %v16932_v22, -inf }
 0x45f   : > { %v7464_v20 = vpop.f32.mrf.mxu2  ;;  %v16936_v15 = vpop.f32.mrf.mxu0 }
 0x460   : > { %v7535_v5 = vsel %vm7013_vm2, %v16936_v15, -inf }
 0x461   : > { %7091 = vrot.lane.b32.xlu2 %v7090_v27, %s16379_s25 }
 0x467   : > { %v16938_v31 = vpop.f32.mrf.mxu2  ;;  %v7533_v4 = vpop.f32.mrf.mxu0 }
 0x468   : > { %v7596_v34 = vsel %vm7013_vm2, %v16938_v31, -inf }
 0x469   : > { %7597 = vmax.xlane.f32.xlu0 %v7596_v34 }
 0x46f   : > { %v7594_v1 = vpop.f32.mrf.mxu2  ;;  %v16942_v30 = vpop.f32.mrf.mxu0 }
 0x477   : > { %v16944_v56 = vpop.f32.mrf.mxu2  ;;  %v7663_v58 = vpop.f32.mrf.mxu0 }
 0x478   : > { %v7726_v49 = vsel %vm7013_vm2, %v16944_v56, -inf }
 0x479   : > { %7727 = vmax.xlane.f32.xlu0 %v7726_v49 }
 0x47f   : > { %v7724_v60 = vpop.f32.mrf.mxu2 }
 0x480   : > { %v17010_v60 = vld [vmem:[#allocation2 + $0x40] sm:$0xf] }
 0x48a   : > { %7467 = vmax.xlane.f32.xlu2 %v7466_v42  ;;  %v7609_v42 = vunpack.c.l.b16 %v17010_v60 }
 0x48d   : > { %7351 = vrot.lane.b32.xlu0 %v7350_v32, %s16379_s25  ;;  %v7610_v32 = vpack.c.b16 %v7609_v42, %v7609_v42 }
 0x492   : > { %7276 = vmax.xlane.f32.xlu2 %v7275_v11 }
 0x494   : > { %v7016_v8 = vpop.xlane.xlu0 %7015 }
 0x495   : > { %v7017_v61 = vsub.f32 %v7009_v17, %v7016_v8  ;;  %v17013_v8 = vld [vmem:[#allocation2 + $0x44] sm:$0xf] }
 0x497   : > { %v7018_v59 = vmul.f32 1.442695, %v7017_v61 }
 0x499   : > { %16066 = vpow2.f32 %v7018_v59 }
 0x49c   : > { %v7078_v55 = vpop.xlane.xlu0 %7077 }
 0x49d   : > { %v7079_v43 = vsub.f32 %v7072_v3, %v7078_v55  ;;  %v7665_v3 = vsel %vm7013_vm2, %v16942_v30, -inf }
 0x49f   : > { %v16956_v45 = vpop.eup %16066  ;;  %v7080_v48 = vmul.f32 1.442695, %v7079_v43  ;;  %v7739_v43 = vunpack.c.l.b16 %v17013_v8 }
 0x4a0   : > { %v7020_v16 = vsel %vm7013_vm2, %v16956_v45, 0.0 }
 0x4a1   : > { %16068 = vpow2.f32 %v7080_v48  ;;  %7021 = vadd.xlane.f32.xlu2 %v7020_v16  ;;  %v7291_v48 = vsel %vm7029_vm1, %v16948_v38, 0 }
 0x4a7   : > { %v16960_v25 = vpop.eup %16068 }
 0x4a8   : > { %v7082_v47 = vsel %vm7013_vm2, %v16960_v25, 0.0 }
 0x4a9   : > { %7083 = vadd.xlane.f32.xlu1 %v7082_v47  ;;  %v7740_v47 = vpack.c.b16 %v7739_v43, %v7739_v43 }
 0x4ac   : > { %v7208_v33 = vpop.xlane.xlu1 %7207 }
 0x4ad   : > { %v7209_v35 = vsub.f32 %v7202_v23, %v7208_v33 }
 0x4af   : > { %v7210_v51 = vmul.f32 1.442695, %v7209_v35 }
 0x4b1   : > { %16070 = vpow2.f32 %v7210_v51 }
 0x4b4   : > { %v7147_v23 = vpop.xlane.xlu1 %7146 }
 0x4b5   : > { %v7148_v63 = vsub.f32 %v16922_v28, %v7147_v23 }
 0x4b7   : > { %v16967_v52 = vpop.eup %16070  ;;  %v7149_v41 = vmul.f32 1.442695, %v7148_v63 }
 0x4b8   : > { %v7212_v44 = vsel %vm7013_vm2, %v16967_v52, 0.0 }
 0x4b9   : > { %7213 = vadd.xlane.f32.xlu0 %v7212_v44  ;;  %7481 = vrot.lane.b32.xlu2 %v7480_v37, %s16379_s25 }
 0x4bc   : > { %v7338_v54 = vpop.xlane.xlu2 %7337 }
 0x4bd   : > { %v7339_v7 = vsub.f32 %v7332_v39, %v7338_v54 }
 0x4bf   : > { %v7340_v26 = vmul.f32 1.442695, %v7339_v7 }
 0x4c1   : > { %16072 = vpow2.f32 %v7340_v26 }
 0x4c2   : > { %7221 = vrot.lane.b32.xlu1 %v7220_v36, %s16379_s25 }
 0x4c4   : > { %v7092_v46 = vpop.permute.xlu2 %7091 }
 0x4c5   : > { %v7097_v17 = vsel %vm7029_vm1, %v7092_v46, 0 }
 0x4c6   : > { %7106 = vmatpush.bf16.msrb.mxu3 %v7097_v17 }
 0x4c7   : > { %v16975_v62 = vpop.eup %16072 }
 0x4c8   : > { %v7342_v50 = vsel %vm7013_vm2, %v16975_v62, 0.0 }
 0x4c9   : > { %7343 = vadd.xlane.f32.xlu0 %v7342_v50 }
 0x4dc   : > { %v7598_v2 = vpop.xlane.xlu0 %7597 }
 0x4dd   : > { %v7599_v6 = vsub.f32 %v16938_v31, %v7598_v2 }
 0x4df   : > { %v7600_v0 = vmul.f32 1.442695, %v7599_v6 }
 0x4e1   : > { %16074 = vpow2.f32 %v7600_v0 }
 0x4e2   : > { %7666 = vmax.xlane.f32.xlu2 %v7665_v3  ;;  %16076 = vpow2.f32 %v7149_v41 }
 0x4e7   : > { %v16987_v39 = vpop.eup %16074 }
 0x4e8   : > { %v7602_v19 = vsel %vm7013_vm2, %v16987_v39, 0.0  ;;  %v16993_v20 = vpop.eup %16076 }
 0x4e9   : > { %v7151_v31 = vsel %vm7013_vm2, %v16993_v20, 0.0 }
 0x4ec   : > { %7406 = vmax.xlane.f32.xlu1 %v7405_v13  ;;  %v7728_v10 = vpop.xlane.xlu0 %7727 }
 0x4ed   : > { %v7729_v14 = vsub.f32 %v16944_v56, %v7728_v10 }
 0x4ef   : > { %v7730_v28 = vmul.f32 1.442695, %v7729_v14 }
 0x4f4   : > { %7536 = vmax.xlane.f32.xlu1 %v7535_v5 }
 0x4fc   : > { %7603 = vadd.xlane.f32.xlu1 %v7602_v19 }
 0x4fd   : > { %v7468_v12 = vpop.xlane.xlu2 %7467 }
 0x4fe   : > { %v7469_v53 = vsub.f32 %v16932_v22, %v7468_v12 }
 0x4ff   : > { %v7352_v16 = vpop.permute.xlu0 %7351 }
 0x500   : > { %v7470_v24 = vmul.f32 1.442695, %v7469_v53  ;;  %v7357_v38 = vsel %vm7029_vm1, %v7352_v16, 0 }
 0x502   : > { %16078 = vpow2.f32 %v7470_v24 }
 0x503   : > { %16080 = vpow2.f32 %v7730_v28 }
 0x504   : > { %7152 = vadd.xlane.f32.xlu1 %v7151_v31 }
 0x505   : > { %v7277_v27 = vpop.xlane.xlu2 %7276 }
 0x506   : > { %v7278_v34 = vsub.f32 %v16927_v18, %v7277_v27 }
 0x508   : > { %v16998_v4 = vpop.eup %16078  ;;  %v7279_v1 = vmul.f32 1.442695, %v7278_v34  ;;  %v7421_v34 = vsel %vm7029_vm1, %v16964_v9, 0  ;;  %v7551_v9 = vsel %vm7029_vm1, %v17010_v60, 0 }
 0x509   : > { %v7472_v22 = vsel %vm7013_vm2, %v16998_v4, 0.0  ;;  %v17002_v56 = vpop.eup %16080 }
 0x50a   : > { %7473 = vadd.xlane.f32.xlu0 %v7472_v22  ;;  %16082 = vpow2.f32 %v7279_v1  ;;  %v7732_v49 = vsel %vm7013_vm2, %v17002_v56, 0.0 }
 0x50c   : > { %7733 = vadd.xlane.f32.xlu1 %v7732_v49 }
 0x510   : > { %v17006_v58 = vpop.eup %16082 }
 0x511   : > { %v7281_v18 = vsel %vm7013_vm2, %v17006_v58, 0.0 }
 0x514   : > { %v7022_v40 = vpop.xlane.xlu2 %7021  ;;  %7282 = vadd.xlane.f32.xlu1 %v7281_v18 }
 0x515   : > { %16084 = vrcp.f32 %v7022_v40 }
 0x51b   : > { %v16085_v11 = vpop.eup %16084 }
 0x51c   : > { %v7024_v61 = vmul.f32 %v16085_v11, %v16956_v45  ;;  %v7084_v59 = vpop.xlane.xlu1 %7083  ;;  %v7482_v7 = vpop.permute.xlu2 %7481 }
 0x51d   : > { %16086 = vrcp.f32 %v7084_v59 }
 0x51e   : > { %7611 = vrot.lane.b32.xlu0 %v7610_v32, %s16379_s25  ;;  %v7025_v55 = vpack.c.bf16 %v7024_v61, %v7024_v61 }
 0x520   : > { %13624 = vmatmul.msk.bf16.vlgmr.msrb.gmra.mxu1 %vm7013_vm2, %v7025_v55 }
 0x521   : > { %7300 = vmatpush.bf16.msrb.mxu1 %v7291_v48 }
 0x523   : > { %v16087_v33 = vpop.eup %16086 }
 0x524   : > { %v7086_v35 = vmul.f32 %v16087_v33, %v16960_v25  ;;  %v7487_v25 = vsel %vm7029_vm1, %v7482_v7, 0 }
 0x526   : > { %7741 = vrot.lane.b32.xlu0 %v7740_v47, %s16379_s25  ;;  %v7087_v45 = vpack.c.bf16 %v7086_v35, %v7086_v35 }
 0x528   : > { %13626 = vmatmul.msk.bf16.vlgmr.msrb.gmra.mxu3 %vm7013_vm2, %v7087_v45 }
 0x52c   : > { %v7214_v51 = vpop.xlane.xlu0 %7213 }
 0x52d   : > { %16088 = vrcp.f32 %v7214_v51 }
 0x533   : > { %v16089_v29 = vpop.eup %16088 }
 0x534   : > { %v7216_v44 = vmul.f32 %v16089_v29, %v16967_v52  ;;  %v7222_v37 = vpop.permute.xlu1 %7221 }
 0x535   : > { %v7227_v54 = vsel %vm7029_vm1, %v7222_v37, 0 }
 0x536   : > { %7236 = vmatpush.bf16.msra.mxu3 %v7227_v54  ;;  %v7217_v57 = vpack.c.bf16 %v7216_v44, %v7216_v44 }
 0x539   : > { %13630 = vmatmul.msk.bf16.vlgmr.msra.gmra.mxu3 %vm7013_vm2, %v7217_v57 }
 0x53a   : > { %7366 = vmatpush.bf16.msrb.mxu3 %v7357_v38 }
 0x53c   : > { %v7344_v26 = vpop.xlane.xlu0 %7343 }
 0x53d   : > { %16090 = vrcp.f32 %v7344_v26 }
 0x53e   : > { %7496 = vmatpush.bf16.msra.mxu3 %v7487_v25 }
 0x543   : > { %v16091_v36 = vpop.eup %16090 }
 0x544   : > { %v7346_v46 = vmul.f32 %v16091_v36, %v16975_v62  ;;  %v7681_v36 = vsel %vm7029_vm1, %v17013_v8, 0 }
 0x546   : > { %v7347_v52 = vpack.c.bf16 %v7346_v46, %v7346_v46 }
 0x549   : > { %13634 = vmatmul.msk.bf16.vlgmr.msrb.gmra.mxu3 %vm7013_vm2, %v7347_v52 }
 0x555   : > { %v7667_v17 = vpop.xlane.xlu2 %7666 }
 0x556   : > { %v7668_v2 = vsub.f32 %v16942_v30, %v7667_v17 }
 0x558   : > { %v7669_v13 = vmul.f32 1.442695, %v7668_v2 }
 0x55f   : > { %v7407_v50 = vpop.xlane.xlu1 %7406 }
 0x560   : > { %v7408_v3 = vsub.f32 %v16930_v21, %v7407_v50 }
 0x562   : > { %v7409_v6 = vmul.f32 1.442695, %v7408_v3 }
 0x564   : > { %16092 = vpow2.f32 %v7409_v6 }
 0x565   : > { %16094 = vpow2.f32 %v7669_v13 }
 0x567   : > { %v7537_v0 = vpop.xlane.xlu1 %7536 }
 0x568   : > { %v7538_v23 = vsub.f32 %v16936_v15, %v7537_v0 }
 0x56a   : > { %v17034_v63 = vpop.eup %16092  ;;  %v7539_v5 = vmul.f32 1.442695, %v7538_v23 }
 0x56b   : > { %v7411_v62 = vsel %vm7013_vm2, %v17034_v63, 0.0  ;;  %v17038_v10 = vpop.eup %16094 }
 0x56c   : > { %16096 = vpow2.f32 %v7539_v5  ;;  %7412 = vadd.xlane.f32.xlu1 %v7411_v62  ;;  %v7671_v15 = vsel %vm7013_vm2, %v17038_v10, 0.0 }
 0x56f   : > { %v7604_v41 = vpop.xlane.xlu1 %7603 }
 0x572   : > { %v17040_v21 = vpop.eup %16096 }
 0x573   : > { %v7541_v30 = vsel %vm7013_vm2, %v17040_v21, 0.0 }
 0x574   : > { %7542 = vadd.xlane.f32.xlu0 %v7541_v30  ;;  %7672 = vadd.xlane.f32.xlu1 %v7671_v15  ;;  %v14201_v30 = vld [vmem:[#allocation10 + $0x450] sm:$0xf]  ;;  %v15807_v15 = vld [vmem:[#allocation10 + $0x464] sm:$0xf0] }
 0x577   : > { %v7153_v14 = vpop.xlane.xlu1 %7152 }
 0x578   : > { %16098 = vrcp.f32 %v7153_v14  ;;  %v14393_v14 = vld [vmem:[#allocation10 + $0x5d0] sm:$0xf] }
 0x57d   : > { %v7474_v12 = vpop.xlane.xlu0 %7473 }
 0x57e   : > { %16100 = vrcp.f32 %v7474_v12  ;;  %v16099_v19 = vpop.eup %16098 }
 0x57f   : > { %v7155_v53 = vmul.f32 %v16099_v19, %v16993_v20  ;;  %v7734_v28 = vpop.xlane.xlu1 %7733  ;;  %16102 = vrcp.f32 %v7604_v41  ;;  %v14202_v19 = vor.u32 %v15807_v15, %v14201_v30  ;;  %v15765_v30 = vld [vmem:[#allocation10 + $0x314] sm:$0xf0]  ;;  %v14225_v15 = vld [vmem:[#allocation10 + $0x480] sm:$0xf] }
 0x581   : > { %v7156_v24 = vpack.c.bf16 %v7155_v53, %v7155_v53  ;;  %v14177_v53 = vld [vmem:[#allocation10 + $0x420] sm:$0xf]  ;;  %9565 = vmatpush.bf16.msrb.mxu2 %v14202_v19  ;;  %v15708_v19 = vld [vmem:[#allocation10 + $0x154] sm:$0xf] }
 0x583   : > { %13628 = vmatmul.msk.bf16.vlgmr.msra.gmra.mxu1 %vm7013_vm2, %v7156_v24 }
 0x584   : > { %v16101_v27 = vpop.eup %16100  ;;  %7430 = vmatpush.bf16.msra.mxu1 %v7421_v34 }
 0x585   : > { %v7476_v31 = vmul.f32 %v16101_v27, %v16998_v4  ;;  %v16103_v49 = vpop.eup %16102  ;;  %v14369_v27 = vld [vmem:[#allocation10 + $0x5a0] sm:$0xf] }
 0x586   : > { %v7606_v4 = vmul.f32 %v16103_v49, %v16987_v39 }
 0x587   : > { %v7477_v1 = vpack.c.bf16 %v7476_v31, %v7476_v31  ;;  %v7283_v22 = vpop.xlane.xlu1 %7282  ;;  %v15849_v31 = vld [vmem:[#allocation10 + $0x5b4] sm:$0xf0] }
 0x588   : > { %16104 = vrcp.f32 %v7283_v22  ;;  %v7607_v11 = vpack.c.bf16 %v7606_v4, %v7606_v4 }
 0x589   : > { %13638 = vmatmul.msk.bf16.vlgmr.msra.gmra.mxu3 %vm7013_vm2, %v7477_v1  ;;  %16106 = vrcp.f32 %v7734_v28  ;;  %v15801_v28 = vld [vmem:[#allocation10 + $0x434] sm:$0xf0]  ;;  %v14370_v1 = vor.u32 %v15849_v31, %v14369_v27  ;;  %v15756_v31 = vld [vmem:[#allocation10 + $0x2d4] sm:$0xf] }
 0x58a   : > { %v14178_v34 = vor.u32 %v15801_v28, %v14177_v53  ;;  %v13793_v53 = vld [vmem:[#allocation10 + $0x120] sm:$0xf]  ;;  %v15705_v28 = vld [vmem:[#allocation10 + $0x134] sm:$0xf0] }
 0x58b   : > { %v15753_v27 = vld [vmem:[#allocation10 + $0x2b4] sm:$0xf0] }
 0x58c   : > { %9566 = vmatpush.bf16.msrb.mxu2 %v14178_v34  ;;  %v14011_v34 = vld [vmem:[#allocation10 + $0x2e8] sm:$0xf0] }
 0x58e   : > { %v16105_v18 = vpop.eup %16104 }
 0x58f   : > { %v7285_v40 = vmul.f32 %v16105_v18, %v17006_v58  ;;  %v16107_v55 = vpop.eup %16106 }
 0x590   : > { %v7612_v20 = vpop.permute.xlu0 %7611  ;;  %v7736_v39 = vmul.f32 %v16107_v55, %v17002_v56 }
 0x591   : > { %v7617_v42 = vsel %vm7029_vm1, %v7612_v20, 0  ;;  %v7286_v32 = vpack.c.bf16 %v7285_v40, %v7285_v40 }
 0x592   : > { %7626 = vmatpush.bf16.msrb.mxu3 %v7617_v42  ;;  %v7737_v43 = vpack.c.bf16 %v7736_v39, %v7736_v39  ;;  %v14129_v39 = vld [vmem:[#allocation10 + $0x3c0] sm:$0xf] }
 0x593   : > { %13632 = vmatmul.msk.bf16.vlgmr.msrb.gmra.mxu1 %vm7013_vm2, %v7286_v32  ;;  %v14153_v32 = vld [vmem:[#allocation10 + $0x3f0] sm:$0xf] }
 0x594   : > { %7560 = vmatpush.bf16.msrb.mxu1 %v7551_v9  ;;  %v15795_v9 = vld [vmem:[#allocation10 + $0x404] sm:$0xf0] }
 0x598   : > { %v7742_v61 = vpop.permute.xlu0 %7741 }
 0x599   : > { %v7747_v59 = vsel %vm7029_vm1, %v7742_v61, 0  ;;  %13642 = vmatmul.msk.bf16.vlgmr.msrb.gmra.mxu3 %vm7013_vm2, %v7607_v11  ;;  %v14345_v11 = vld [vmem:[#allocation10 + $0x570] sm:$0xf]  ;;  %v14154_v61 = vor.u32 %v15795_v9, %v14153_v32  ;;  %v15747_v32 = vld [vmem:[#allocation10 + $0x284] sm:$0xf0]  ;;  %v14014_v9 = vor.u32 %v15756_v31, %v14011_v34 }
 0x59a   : > { %7756 = vmatpush.bf16.msra.mxu3 %v7747_v59  ;;  %v15843_v59 = vld [vmem:[#allocation10 + $0x584] sm:$0xf0]  ;;  %v15678_v31 = vld [vmem:[#allocation10 + $0x64] sm:$0xf]  ;;  %v13699_v34 = vld [vmem:[#allocation10 + $0x78] sm:$0xf0] }
 0x59b   : > { %v14346_v55 = vor.u32 %v15843_v59, %v14345_v11  ;;  %9567 = vmatpush.bf16.msrb.mxu2 %v14154_v61  ;;  %v15702_v11 = vld [vmem:[#allocation10 + $0x124] sm:$0xf]  ;;  %v13795_v61 = vld [vmem:[#allocation10 + $0x138] sm:$0xf0] }
 0x59c   : > { %v15750_v59 = vld [vmem:[#allocation10 + $0x2a4] sm:$0xf] }
 0x59d   : > { %v17060_v58 = vpop.f32.mrf.mxu1 }
 0x5a5   : > { %v7044_v48 = vpop.f32.mrf.mxu1 }
 0x5a6   : > { %v14321_v48 = vld [vmem:[#allocation10 + $0x540] sm:$0xf] }
 0x5a9   : > { %13646 = vmatmul.msk.bf16.vlgmr.msra.gmra.mxu3 %vm7013_vm2, %v7737_v43  ;;  %v15789_v43 = vld [vmem:[#allocation10 + $0x3d4] sm:$0xf0] }
 0x5ab   : > { %v7108_v16 = vpop.f32.mrf.mxu3 }
 0x5ac   : > { %v7112_v29 = vpack.c.bf16 %v7108_v16, %v7108_v16  ;;  %v14130_v16 = vor.u32 %v15789_v43, %v14129_v39  ;;  %v13987_v39 = vld [vmem:[#allocation10 + $0x2b8] sm:$0xf0] }
 0x5ae   : > { %v7114_v54 = vunpack.c.l.b16 %v7112_v29  ;;  %9568 = vmatpush.bf16.msrb.mxu2 %v14130_v16  ;;  %v15783_v29 = vld [vmem:[#allocation10 + $0x3a4] sm:$0xf0]  ;;  %v15693_v16 = vld [vmem:[#allocation10 + $0xd4] sm:$0xf0] }
 0x5b0   : > { %v7115_v38 = vpack.c.b16 %v7114_v54, %v7114_v54  ;;  %v15831_v54 = vld [vmem:[#allocation10 + $0x524] sm:$0xf0] }
 0x5b3   : > { %v7110_v60 = vpop.f32.mrf.mxu3 }
 0x5b4   : > { %v15837_v60 = vld [vmem:[#allocation10 + $0x554] sm:$0xf0] }
 0x5bc   : > { %v7238_v47 = vpop.f32.mrf.mxu3 }
 0x5bd   : > { %v7242_v5 = vpack.c.bf16 %v7238_v47, %v7238_v47  ;;  %v14322_v47 = vor.u32 %v15837_v60, %v14321_v48  ;;  %v13745_v48 = vld [vmem:[#allocation10 + $0xc0] sm:$0xf] }
 0x5be   : > { %v13937_v60 = vld [vmem:[#allocation10 + $0x240] sm:$0xf] }
 0x5bf   : > { %v7244_v12 = vunpack.c.l.b16 %v7242_v5 }
 0x5c1   : > { %v7245_v22 = vpack.c.b16 %v7244_v12, %v7244_v12 }
 0x5c4   : > { %v7240_v33 = vpop.f32.mrf.mxu3 }
 0x5cc   : > { %v7368_v35 = vpop.f32.mrf.mxu3 }
 0x5cd   : > { %v7372_v45 = vpack.c.bf16 %v7368_v35, %v7368_v35 }
 0x5cf   : > { %v7374_v51 = vunpack.c.l.b16 %v7372_v45 }
 0x5d1   : > { %v7375_v44 = vpack.c.b16 %v7374_v51, %v7374_v51  ;;  %v14105_v51 = vld [vmem:[#allocation10 + $0x390] sm:$0xf] }
 0x5d3   : > { %7376 = vrot.lane.b32.xlu1 %v7375_v44, %s16379_s25  ;;  %v14297_v44 = vld [vmem:[#allocation10 + $0x510] sm:$0xf] }
 0x5d4   : > { %v7370_v37 = vpop.f32.mrf.mxu3 }
 0x5d5   : > { %v14106_v37 = vor.u32 %v15783_v29, %v14105_v51  ;;  %v13771_v51 = vld [vmem:[#allocation10 + $0x108] sm:$0xf0]  ;;  %v13746_v29 = vor.u32 %v15693_v16, %v13745_v48  ;;  %v15669_v48 = vld [vmem:[#allocation10 + $0x14] sm:$0xf0]  ;;  %v13841_v16 = vld [vmem:[#allocation10 + $0x180] sm:$0xf] }
 0x5d7   : > { %9569 = vmatpush.bf16.msrb.mxu2 %v14106_v37  ;;  %v13963_v37 = vld [vmem:[#allocation10 + $0x288] sm:$0xf0] }
 0x5db   : > { %7116 = vrot.lane.b32.xlu1 %v7115_v38, %s16379_s25 }
 0x5df   : > { %v7413_v56 = vpop.xlane.xlu1 %7412 }
 0x5e0   : > { %16108 = vrcp.f32 %v7413_v56  ;;  %v14298_v56 = vor.u32 %v15831_v54, %v14297_v44  ;;  %v15744_v44 = vld [vmem:[#allocation10 + $0x274] sm:$0xf] }
 0x5e6   : > { %v16109_v7 = vpop.eup %16108 }
 0x5e7   : > { %v7415_v57 = vmul.f32 %v16109_v7, %v17034_v63  ;;  %v7543_v26 = vpop.xlane.xlu0 %7542  ;;  %v7673_v50 = vpop.xlane.xlu1 %7672  ;;  %v14081_v7 = vld [vmem:[#allocation10 + $0x360] sm:$0xf] }
 0x5e8   : > { %16110 = vrcp.f32 %v7543_v26 }
 0x5e9   : > { %v7416_v25 = vpack.c.bf16 %v7415_v57, %v7415_v57  ;;  %16112 = vrcp.f32 %v7673_v50  ;;  %v15777_v57 = vld [vmem:[#allocation10 + $0x374] sm:$0xf0]  ;;  %v14249_v50 = vld [vmem:[#allocation10 + $0x4b0] sm:$0xf] }
 0x5ea   : > { %v14082_v26 = vor.u32 %v15777_v57, %v14081_v7 }
 0x5eb   : > { %13636 = vmatmul.msk.bf16.vlgmr.msra.gmra.mxu1 %vm7013_vm2, %v7416_v25  ;;  %v14273_v25 = vld [vmem:[#allocation10 + $0x4e0] sm:$0xf] }
 0x5ec   : > { %7690 = vmatpush.bf16.msra.mxu1 %v7681_v36  ;;  %v15825_v36 = vld [vmem:[#allocation10 + $0x4f4] sm:$0xf0]  ;;  %9570 = vmatpush.bf16.msrb.mxu2 %v14082_v26  ;;  %v15690_v26 = vld [vmem:[#allocation10 + $0xc4] sm:$0xf] }
 0x5ee   : > { %v16111_v46 = vpop.eup %16110 }
 0x5ef   : > { %v7545_v52 = vmul.f32 %v16111_v46, %v17040_v21  ;;  %v16113_v2 = vpop.eup %16112  ;;  %v14057_v46 = vld [vmem:[#allocation10 + $0x330] sm:$0xf] }
 0x5f0   : > { %v7675_v6 = vmul.f32 %v16113_v2, %v17038_v10  ;;  %v15855_v10 = vld [vmem:[#allocation10 + $0x5e4] sm:$0xf0] }
 0x5f1   : > { %v7546_v17 = vpack.c.bf16 %v7545_v52, %v7545_v52  ;;  %v14394_v24 = vor.u32 %v15855_v10, %v14393_v14  ;;  %v15771_v52 = vld [vmem:[#allocation10 + $0x344] sm:$0xf0]  ;;  %v15813_v14 = vld [vmem:[#allocation10 + $0x494] sm:$0xf0]  ;;  %v13819_v10 = vld [vmem:[#allocation10 + $0x168] sm:$0xf0] }
 0x5f2   : > { %v7676_v0 = vpack.c.bf16 %v7675_v6, %v7675_v6  ;;  %v15819_v2 = vld [vmem:[#allocation10 + $0x4c4] sm:$0xf0]  ;;  %v13817_v6 = vld [vmem:[#allocation10 + $0x150] sm:$0xf] }
 0x5f3   : > { %9578 = vmatpush.bf16.msrb.mxu3 %v14394_v24  ;;  %v14250_v12 = vor.u32 %v15819_v2, %v14249_v50  ;;  %v13985_v24 = vld [vmem:[#allocation10 + $0x2a0] sm:$0xf]  ;;  %v13721_v2 = vld [vmem:[#allocation10 + $0x90] sm:$0xf] }
 0x5f7   : > { %9579 = vmatpush.bf16.msrb.mxu3 %v14370_v1  ;;  %v13794_v1 = vor.u32 %v15705_v28, %v13793_v53  ;;  %v15729_v28 = vld [vmem:[#allocation10 + $0x1f4] sm:$0xf0] }
 0x5fb   : > { %13640 = vmatmul.msk.bf16.vlgmr.msrb.gmra.mxu1 %vm7013_vm2, %v7546_v17  ;;  %9580 = vmatpush.bf16.msrb.mxu3 %v14346_v55  ;;  %v14274_v17 = vor.u32 %v15825_v36, %v14273_v25  ;;  %v13747_v36 = vld [vmem:[#allocation10 + $0xd8] sm:$0xf0] }
 0x5ff   : > { %9581 = vmatpush.bf16.msrb.mxu3 %v14322_v47  ;;  %v15741_v47 = vld [vmem:[#allocation10 + $0x254] sm:$0xf0] }
 0x600   : > { %v17072_v3 = vpop.f32.mrf.mxu1  ;;  %v13938_v54 = vor.u32 %v15741_v47, %v13937_v60  ;;  %v15717_v47 = vld [vmem:[#allocation10 + $0x194] sm:$0xf0] }
 0x603   : > { %9582 = vmatpush.bf16.msrb.mxu3 %v14298_v56  ;;  %v13966_v56 = vor.u32 %v15744_v44, %v13963_v37  ;;  %v15951_v44 = vld [vmem:[#allocation10 + $0x8e4] sm:$0xf0]  ;;  %v15666_v37 = vld [vmem:[#allocation10 + $0x4] sm:$0xf] }
 0x607   : > { %9583 = vmatpush.bf16.msrb.mxu3 %v14274_v17  ;;  %v13939_v17 = vld [vmem:[#allocation10 + $0x258] sm:$0xf0] }
 0x608   : > { %v7174_v13 = vpop.f32.mrf.mxu1 }
 0x60b   : > { %13644 = vmatmul.msk.bf16.vlgmr.msra.gmra.mxu1 %vm7013_vm2, %v7676_v0  ;;  %v15711_v0 = vld [vmem:[#allocation10 + $0x164] sm:$0xf0]  ;;  %9584 = vmatpush.bf16.msrb.mxu3 %v14250_v12  ;;  %v15681_v12 = vld [vmem:[#allocation10 + $0x74] sm:$0xf0] }
 0x60c   : > { %v7498_v23 = vpop.f32.mrf.mxu3 }
 0x60d   : > { %v7502_v63 = vpack.c.bf16 %v7498_v23, %v7498_v23  ;;  %v14009_v23 = vld [vmem:[#allocation10 + $0x2d0] sm:$0xf] }
 0x60f   : > { %v7504_v8 = vunpack.c.l.b16 %v7502_v63  ;;  %v15759_v63 = vld [vmem:[#allocation10 + $0x2e4] sm:$0xf0] }
 0x610   : > { %v17076_v41 = vpop.f32.mrf.mxu1  ;;  %v14010_v5 = vor.u32 %v15759_v63, %v14009_v23  ;;  %v15735_v23 = vld [vmem:[#allocation10 + $0x224] sm:$0xf0]  ;;  %v15684_v63 = vld [vmem:[#allocation10 + $0x94] sm:$0xf] }
 0x611   : > { %v7505_v62 = vpack.c.b16 %v7504_v8, %v7504_v8  ;;  %v13818_v8 = vor.u32 %v15711_v0, %v13817_v6  ;;  %v7306_v7 = vpack.c.bf16 %v17076_v41, %v17076_v41  ;;  %v15687_v6 = vld [vmem:[#allocation10 + $0xa4] sm:$0xf0] }
 0x612   : > { %9552 = vmatpush.bf16.msrb.mxu1 %v14010_v5  ;;  %v13722_v0 = vor.u32 %v15687_v6, %v13721_v2  ;;  %v15732_v5 = vld [vmem:[#allocation10 + $0x214] sm:$0xf]  ;;  %v14537_v2 = vld [vmem:[#allocation10 + $0x6f0] sm:$0xf]  ;;  %v15891_v6 = vld [vmem:[#allocation10 + $0x704] sm:$0xf0] }
 0x613   : > { %7506 = vrot.lane.b32.xlu2 %v7505_v62, %s16379_s25  ;;  %v14033_v62 = vld [vmem:[#allocation10 + $0x300] sm:$0xf]  ;;  %9539 = vmatpush.bf16.msrb.mxu0 %v13818_v8  ;;  %v13723_v8 = vld [vmem:[#allocation10 + $0xa8] sm:$0xf0] }
 0x614   : > { %v7500_v21 = vpop.f32.mrf.mxu3 }
 0x615   : > { %v14058_v21 = vor.u32 %v15771_v52, %v14057_v46  ;;  %v15738_v46 = vld [vmem:[#allocation10 + $0x244] sm:$0xf]  ;;  %v13750_v52 = vor.u32 %v15690_v26, %v13747_v36  ;;  %v14561_v26 = vld [vmem:[#allocation10 + $0x720] sm:$0xf]  ;;  %v15897_v36 = vld [vmem:[#allocation10 + $0x734] sm:$0xf0] }
 0x616   : > { %v13942_v50 = vor.u32 %v15738_v46, %v13939_v17  ;;  %v14562_v46 = vor.u32 %v15897_v36, %v14561_v26  ;;  %v15945_v17 = vld [vmem:[#allocation10 + $0x8b4] sm:$0xf0]  ;;  %v14755_v26 = vld [vmem:[#allocation10 + $0x8b8] sm:$0xf0] }
 0x617   : > { %9571 = vmatpush.bf16.msrb.mxu2 %v14058_v21  ;;  %9540 = vmatpush.bf16.msrb.mxu0 %v13794_v1  ;;  %v13915_v21 = vld [vmem:[#allocation10 + $0x228] sm:$0xf0]  ;;  %v15726_v1 = vld [vmem:[#allocation10 + $0x1e4] sm:$0xf] }
 0x618   : > { %v7304_v49 = vpop.f32.mrf.mxu1 }
 0x619   : > { %v14034_v49 = vor.u32 %v15765_v30, %v14033_v62  ;;  %v13726_v62 = vor.u32 %v15684_v63, %v13723_v8  ;;  %v7046_v30 = vpack.c.bf16 %v17060_v58, %v17060_v58  ;;  %v13891_v58 = vld [vmem:[#allocation10 + $0x1f8] sm:$0xf0]  ;;  %v14513_v63 = vld [vmem:[#allocation10 + $0x6c0] sm:$0xf]  ;;  %v15885_v8 = vld [vmem:[#allocation10 + $0x6d4] sm:$0xf0] }
 0x61b   : > { %7246 = vrot.lane.b32.xlu2 %v7245_v22, %s16379_s25  ;;  %v13986_v22 = vor.u32 %v15753_v27, %v13985_v24  ;;  %9572 = vmatpush.bf16.msrb.mxu2 %v14034_v49  ;;  %v13894_v49 = vor.u32 %v15726_v1, %v13891_v58 }
 0x61c   : > { %v7628_v18 = vpop.f32.mrf.mxu3 }
 0x61d   : > { %v7632_v20 = vpack.c.bf16 %v7628_v18, %v7628_v18  ;;  %v13769_v18 = vld [vmem:[#allocation10 + $0xf0] sm:$0xf]  ;;  %9553 = vmatpush.bf16.msrb.mxu1 %v13986_v22  ;;  %v13702_v22 = vor.u32 %v15678_v31, %v13699_v34  ;;  %v15873_v31 = vld [vmem:[#allocation10 + $0x674] sm:$0xf0]  ;;  %v14657_v34 = vld [vmem:[#allocation10 + $0x7e0] sm:$0xf] }
 0x61f   : > { %v7634_v40 = vunpack.c.l.b16 %v7632_v20  ;;  %v15699_v20 = vld [vmem:[#allocation10 + $0x104] sm:$0xf0] }
 0x620   : > { %v13770_v55 = vor.u32 %v15699_v20, %v13769_v18  ;;  %v13673_v18 = vld [vmem:[#allocation10 + $0x30] sm:$0xf]  ;;  %v15675_v20 = vld [vmem:[#allocation10 + $0x44] sm:$0xf0] }
 0x621   : > { %v7635_v42 = vpack.c.b16 %v7634_v40, %v7634_v40  ;;  %v14226_v40 = vor.u32 %v15813_v14, %v14225_v15  ;;  %v13918_v15 = vor.u32 %v15732_v5, %v13915_v21  ;;  %v13697_v14 = vld [vmem:[#allocation10 + $0x60] sm:$0xf]  ;;  %v15933_v21 = vld [vmem:[#allocation10 + $0x854] sm:$0xf0] }
 0x622   : > { %9541 = vmatpush.bf16.msrb.mxu0 %v13770_v55  ;;  %v13698_v53 = vor.u32 %v15681_v12, %v13697_v14  ;;  %v13867_v55 = vld [vmem:[#allocation10 + $0x1c8] sm:$0xf0]  ;;  %v14705_v5 = vld [vmem:[#allocation10 + $0x840] sm:$0xf]  ;;  %v15879_v14 = vld [vmem:[#allocation10 + $0x6a4] sm:$0xf0] }
 0x623   : > { %7636 = vrot.lane.b32.xlu0 %v7635_v42, %s16379_s25  ;;  %v13822_v42 = vor.u32 %v15708_v19, %v13819_v10  ;;  %9585 = vmatpush.bf16.msrb.mxu3 %v14226_v40  ;;  %v13889_v19 = vld [vmem:[#allocation10 + $0x1e0] sm:$0xf]  ;;  %v13865_v40 = vld [vmem:[#allocation10 + $0x1b0] sm:$0xf] }
 0x624   : > { %v7630_v4 = vpop.f32.mrf.mxu3  ;;  %v13890_v27 = vor.u32 %v15729_v28, %v13889_v19  ;;  %v14681_v12 = vld [vmem:[#allocation10 + $0x810] sm:$0xf] }
 0x625   : > { %v13961_v4 = vld [vmem:[#allocation10 + $0x270] sm:$0xf]  ;;  %9617 = vmatpush.bf16.msra.mxu2 %v13822_v42  ;;  %v13674_v42 = vor.u32 %v15675_v20, %v13673_v18 }
 0x626   : > { %v13962_v43 = vor.u32 %v15747_v32, %v13961_v4  ;;  %9542 = vmatpush.bf16.msrb.mxu0 %v13746_v29  ;;  %v15723_v4 = vld [vmem:[#allocation10 + $0x1c4] sm:$0xf0]  ;;  %v14777_v29 = vld [vmem:[#allocation10 + $0x8d0] sm:$0xf] }
 0x627   : > { %9630 = vmatpush.bf16.msra.mxu3 %v14014_v9  ;;  %v13866_v32 = vor.u32 %v15723_v4, %v13865_v40  ;;  %v15672_v9 = vld [vmem:[#allocation10 + $0x34] sm:$0xf]  ;;  %v14441_v20 = vld [vmem:[#allocation10 + $0x630] sm:$0xf]  ;;  %v15867_v40 = vld [vmem:[#allocation10 + $0x644] sm:$0xf0] }
 0x628   : > { %9554 = vmatpush.bf16.msrb.mxu1 %v13962_v43  ;;  %v13649_v43 = vld [vmem:[#allocation10] sm:$0xf]  ;;  %v14633_v4 = vld [vmem:[#allocation10 + $0x7b0] sm:$0xf] }
 0x629   : > { %v13650_v60 = vor.u32 %v15669_v48, %v13649_v43  ;;  %v15900_v43 = vld [vmem:[#allocation10 + $0x754] sm:$0xf] }
 0x62a   : > { %9543 = vmatpush.bf16.msrb.mxu0 %v13722_v0  ;;  %v14538_v0 = vor.u32 %v15891_v6, %v14537_v2  ;;  %v15936_v2 = vld [vmem:[#allocation10 + $0x874] sm:$0xf]  ;;  %v14731_v6 = vld [vmem:[#allocation10 + $0x888] sm:$0xf0] }
 0x62c   : > { %v7758_v33 = vpop.f32.mrf.mxu3  ;;  %9555 = vmatpush.bf16.msrb.mxu1 %v13938_v54  ;;  %v14778_v54 = vor.u32 %v15951_v44, %v14777_v29 }
 0x62d   : > { %v7762_v35 = vpack.c.bf16 %v7758_v33, %v7758_v33  ;;  %v13798_v33 = vor.u32 %v15702_v11, %v13795_v61  ;;  %v13675_v11 = vld [vmem:[#allocation10 + $0x48] sm:$0xf0]  ;;  %v15720_v61 = vld [vmem:[#allocation10 + $0x1b4] sm:$0xf] }
 0x62e   : > { %9544 = vmatpush.bf16.msrb.mxu0 %v13698_v53 }
 0x62f   : > { %v7764_v45 = vunpack.c.l.b16 %v7762_v35  ;;  %v13990_v35 = vor.u32 %v15750_v59, %v13987_v39  ;;  %9618 = vmatpush.bf16.msra.mxu2 %v13798_v33  ;;  %v13678_v59 = vor.u32 %v15672_v9, %v13675_v11  ;;  %v13870_v39 = vor.u32 %v15720_v61, %v13867_v55  ;;  %v14585_v33 = vld [vmem:[#allocation10 + $0x750] sm:$0xf]  ;;  %v14417_v61 = vld [vmem:[#allocation10 + $0x600] sm:$0xf] }
 0x630   : > { %v14609_v55 = vld [vmem:[#allocation10 + $0x780] sm:$0xf] }
 0x631   : > { %v7765_v38 = vpack.c.b16 %v7764_v45, %v7764_v45  ;;  %v15696_v45 = vld [vmem:[#allocation10 + $0xf4] sm:$0xf]  ;;  %9631 = vmatpush.bf16.msra.mxu3 %v13990_v35  ;;  %v15903_v35 = vld [vmem:[#allocation10 + $0x764] sm:$0xf0] }
 0x632   : > { %9545 = vmatpush.bf16.msrb.mxu0 %v13674_v42  ;;  %v14442_v42 = vor.u32 %v15867_v40, %v14441_v20  ;;  %v15924_v20 = vld [vmem:[#allocation10 + $0x814] sm:$0xf]  ;;  %v14683_v40 = vld [vmem:[#allocation10 + $0x828] sm:$0xf0] }
 0x633   : > { %7766 = vrot.lane.b32.xlu1 %v7765_v38, %s16379_s25  ;;  %v13774_v38 = vor.u32 %v15696_v45, %v13771_v51  ;;  %v13842_v45 = vor.u32 %v15717_v47, %v13841_v16  ;;  %v14586_v51 = vor.u32 %v15903_v35, %v14585_v33  ;;  %v15909_v16 = vld [vmem:[#allocation10 + $0x794] sm:$0xf0]  ;;  %v14587_v47 = vld [vmem:[#allocation10 + $0x768] sm:$0xf0]  ;;  %v15948_v33 = vld [vmem:[#allocation10 + $0x8d4] sm:$0xf] }
 0x634   : > { %v7760_v13 = vpop.f32.mrf.mxu3  ;;  %v14779_v35 = vld [vmem:[#allocation10 + $0x8e8] sm:$0xf0] }
 0x635   : > { %9619 = vmatpush.bf16.msra.mxu2 %v13774_v38  ;;  %9632 = vmatpush.bf16.msra.mxu3 %v13966_v56  ;;  %v13913_v13 = vld [vmem:[#allocation10 + $0x210] sm:$0xf]  ;;  %v13651_v38 = vld [vmem:[#allocation10 + $0x18] sm:$0xf0]  ;;  %v15714_v56 = vld [vmem:[#allocation10 + $0x184] sm:$0xf] }
 0x636   : > { %v13914_v41 = vor.u32 %v15735_v23, %v13913_v13  ;;  %9546 = vmatpush.bf16.msrb.mxu0 %v13650_v60  ;;  %v14729_v13 = vld [vmem:[#allocation10 + $0x870] sm:$0xf]  ;;  %v15939_v23 = vld [vmem:[#allocation10 + $0x884] sm:$0xf0] }
 0x638   : > { %9556 = vmatpush.bf16.msrb.mxu1 %v13914_v41  ;;  %v14730_v41 = vor.u32 %v15939_v23, %v14729_v13  ;;  %v15804_v13 = vld [vmem:[#allocation10 + $0x454] sm:$0xf] }
 0x639   : > { %9620 = vmatpush.bf16.msra.mxu2 %v13750_v52  ;;  %9633 = vmatpush.bf16.msra.mxu3 %v13942_v50  ;;  %v14753_v52 = vld [vmem:[#allocation10 + $0x8a0] sm:$0xf] }
 0x63a   : > { %9591 = vmatpush.bf16.msra.mxu0 %v14586_v51  ;;  %v14754_v50 = vor.u32 %v15945_v17, %v14753_v52  ;;  %v15888_v17 = vld [vmem:[#allocation10 + $0x6f4] sm:$0xf] }
 0x63c   : > { %9557 = vmatpush.bf16.msrb.mxu1 %v13890_v27  ;;  %v14465_v27 = vld [vmem:[#allocation10 + $0x660] sm:$0xf] }
 0x63d   : > { %9621 = vmatpush.bf16.msra.mxu2 %v13726_v62  ;;  %9634 = vmatpush.bf16.msra.mxu3 %v13918_v15  ;;  %v14514_v62 = vor.u32 %v15885_v8, %v14513_v63  ;;  %v14489_v15 = vld [vmem:[#allocation10 + $0x690] sm:$0xf]  ;;  %v14466_v1 = vor.u32 %v15873_v31, %v14465_v27  ;;  %v14395_v63 = vld [vmem:[#allocation10 + $0x5e8] sm:$0xf0]  ;;  %v14179_v31 = vld [vmem:[#allocation10 + $0x438] sm:$0xf0] }
 0x63e   : > { %9592 = vmatpush.bf16.msra.mxu0 %v14562_v46  ;;  %v14490_v19 = vor.u32 %v15879_v14, %v14489_v15  ;;  %v14515_v15 = vld [vmem:[#allocation10 + $0x6d8] sm:$0xf0] }
 0x640   : > { %9558 = vmatpush.bf16.msrb.mxu1 %v13866_v32  ;;  %v15915_v32 = vld [vmem:[#allocation10 + $0x7c4] sm:$0xf0] }
 0x641   : > { %9622 = vmatpush.bf16.msra.mxu2 %v13702_v22  ;;  %9635 = vmatpush.bf16.msra.mxu3 %v13894_v49  ;;  %v15921_v22 = vld [vmem:[#allocation10 + $0x7f4] sm:$0xf0]  ;;  %v14634_v9 = vor.u32 %v15915_v32, %v14633_v4  ;;  %v15792_v32 = vld [vmem:[#allocation10 + $0x3f4] sm:$0xf] }
 0x642   : > { %9593 = vmatpush.bf16.msra.mxu0 %v14538_v0  ;;  %v14658_v49 = vor.u32 %v15921_v22, %v14657_v34  ;;  %v14203_v0 = vld [vmem:[#allocation10 + $0x468] sm:$0xf0]  ;;  %v15846_v34 = vld [vmem:[#allocation10 + $0x5a4] sm:$0xf] }
 0x644   : > { %9559 = vmatpush.bf16.msrb.mxu1 %v13842_v45  ;;  %v14610_v45 = vor.u32 %v15909_v16, %v14609_v55  ;;  %v14686_v55 = vor.u32 %v15924_v20, %v14683_v40  ;;  %v14659_v16 = vld [vmem:[#allocation10 + $0x7f8] sm:$0xf0]  ;;  %v15850_v40 = vld [vmem:[#allocation10 + $0x5bc] sm:$0xf0] }
 0x645   : > { %v7377_v57 = vpop.permute.xlu1 %7376  ;;  %9623 = vmatpush.bf16.msra.mxu2 %v13678_v59  ;;  %9636 = vmatpush.bf16.msra.mxu3 %v13870_v39  ;;  %v15861_v59 = vld [vmem:[#allocation10 + $0x614] sm:$0xf0]  ;;  %v7176_v39 = vpack.c.bf16 %v17072_v3, %v17072_v3 }
 0x646   : > { %v7380_v25 = vsel %vm6993_vm0, %v7306_v7, %v7377_v57  ;;  %v13843_v7 = vld [vmem:[#allocation10 + $0x198] sm:$0xf0]  ;;  %v13654_v57 = vor.u32 %v15666_v37, %v13651_v38  ;;  %9594 = vmatpush.bf16.msra.mxu0 %v14514_v62  ;;  %v14418_v48 = vor.u32 %v15861_v59, %v14417_v61  ;;  %v14782_v38 = vor.u32 %v15948_v33, %v14779_v35  ;;  %v14347_v61 = vld [vmem:[#allocation10 + $0x588] sm:$0xf0]  ;;  %v15786_v33 = vld [vmem:[#allocation10 + $0x3c4] sm:$0xf] }
 0x647   : > { %7382 = vst [vmem:[#allocation3 + $0x8] sm:$0xf] %v7380_v25  ;;  %v13846_v25 = vor.u32 %v15714_v56, %v13843_v7  ;;  %v15894_v56 = vld [vmem:[#allocation10 + $0x724] sm:$0xf] }
 0x648   : > { %9604 = vmatpush.bf16.msra.mxu1 %v14778_v54  ;;  %v14590_v54 = vor.u32 %v15900_v43, %v14587_v47  ;;  %v14467_v43 = vld [vmem:[#allocation10 + $0x678] sm:$0xf0] }
 0x649   : > { %9624 = vmatpush.bf16.msra.mxu2 %v13654_v57  ;;  %9637 = vmatpush.bf16.msra.mxu3 %v13846_v25  ;;  %v14563_v57 = vld [vmem:[#allocation10 + $0x738] sm:$0xf0]  ;;  %v15942_v25 = vld [vmem:[#allocation10 + $0x8a4] sm:$0xf] }
 0x64a   : > { %9595 = vmatpush.bf16.msra.mxu0 %v14490_v19  ;;  %v14566_v46 = vor.u32 %v15894_v56, %v14563_v57  ;;  %v14758_v52 = vor.u32 %v15942_v25, %v14755_v26  ;;  %v15930_v19 = vld [vmem:[#allocation10 + $0x844] sm:$0xf]  ;;  %v15912_v56 = vld [vmem:[#allocation10 + $0x7b4] sm:$0xf]  ;;  %v14635_v57 = vld [vmem:[#allocation10 + $0x7c8] sm:$0xf0] }
 0x64c   : > { %9605 = vmatpush.bf16.msra.mxu1 %v14754_v50  ;;  %v14539_v50 = vld [vmem:[#allocation10 + $0x708] sm:$0xf0] }
 0x64d   : > { %v7117_v10 = vpop.permute.xlu1 %7116  ;;  %v14542_v62 = vor.u32 %v15888_v17, %v14539_v50  ;;  %v15828_v17 = vld [vmem:[#allocation10 + $0x514] sm:$0xf]  ;;  %v14299_v50 = vld [vmem:[#allocation10 + $0x528] sm:$0xf0] }
 0x64e   : > { %v7120_v24 = vsel %vm6993_vm0, %v7046_v30, %v7117_v10  ;;  %v14706_v30 = vor.u32 %v15933_v21, %v14705_v5  ;;  %v15927_v10 = vld [vmem:[#allocation10 + $0x824] sm:$0xf0]  ;;  %9596 = vmatpush.bf16.msra.mxu0 %v14466_v1  ;;  %v14734_v21 = vor.u32 %v15936_v2, %v14731_v6  ;;  %v14371_v1 = vld [vmem:[#allocation10 + $0x5b8] sm:$0xf0]  ;;  %v14638_v6 = vor.u32 %v15912_v56, %v14635_v57  ;;  %v15838_v56 = vld [vmem:[#allocation10 + $0x55c] sm:$0xf0] }
 0x64f   : > { %7122 = vst [vmem:[#allocation3] sm:$0xf] %v7120_v24  ;;  %v14682_v53 = vor.u32 %v15927_v10, %v14681_v12  ;;  %v14707_v10 = vld [vmem:[#allocation10 + $0x858] sm:$0xf0]  ;;  %v14374_v4 = vor.u32 %v15846_v34, %v14371_v1 }
 0x650   : > { %9606 = vmatpush.bf16.msra.mxu1 %v14730_v41  ;;  %v15852_v41 = vld [vmem:[#allocation10 + $0x5d4] sm:$0xf] }
 0x652   : > { %9597 = vmatpush.bf16.msra.mxu0 %v14442_v42 }
 0x654   : > { %9607 = vmatpush.bf16.msra.mxu1 %v14706_v30  ;;  %v15882_v30 = vld [vmem:[#allocation10 + $0x6c4] sm:$0xf] }
 0x655   : > { %v14518_v22 = vor.u32 %v15882_v30, %v14515_v15  ;;  %v14401_v30 = vld [vmem:[#allocation10 + $0x5d8] sm:$0xf]  ;;  %v15856_v15 = vld [vmem:[#allocation10 + $0x5ec] sm:$0xf0] }
 0x656   : > { %9598 = vmatpush.bf16.msra.mxu0 %v14418_v48  ;;  %v15918_v48 = vld [vmem:[#allocation10 + $0x7e4] sm:$0xf] }
 0x658   : > { %9608 = vmatpush.bf16.msra.mxu1 %v14682_v53  ;;  %v14206_v53 = vor.u32 %v15804_v13, %v14203_v0  ;;  %v15858_v13 = vld [vmem:[#allocation10 + $0x604] sm:$0xf]  ;;  %v14419_v0 = vld [vmem:[#allocation10 + $0x618] sm:$0xf0] }
 0x65c   : > { %9609 = vmatpush.bf16.msra.mxu1 %v14658_v49  ;;  %v15876_v49 = vld [vmem:[#allocation10 + $0x694] sm:$0xf] }
 0x660   : > { %9610 = vmatpush.bf16.msra.mxu1 %v14634_v9  ;;  %v14155_v9 = vld [vmem:[#allocation10 + $0x408] sm:$0xf0] }
 0x664   : > { %9611 = vmatpush.bf16.msra.mxu1 %v14610_v45  ;;  %v14131_v45 = vld [vmem:[#allocation10 + $0x3d8] sm:$0xf0] }
 0x665   : > { %v14134_v25 = vor.u32 %v15786_v33, %v14131_v45  ;;  %v14035_v33 = vld [vmem:[#allocation10 + $0x318] sm:$0xf0]  ;;  %v15810_v45 = vld [vmem:[#allocation10 + $0x484] sm:$0xf] }
 0x668   : > { %v7432_v28 = vpop.f32.mrf.mxu1 }
 0x669   : > { %v7436_v24 = vpack.c.bf16 %v7432_v28, %v7432_v28  ;;  %v14398_v28 = vor.u32 %v15852_v41, %v14395_v63  ;;  %v14611_v41 = vld [vmem:[#allocation10 + $0x798] sm:$0xf0]  ;;  %v14209_v63 = vld [vmem:[#allocation10 + $0x458] sm:$0xf] }
 0x66d   : > { %v7507_v58 = vpop.permute.xlu2 %7506 }
 0x66e   : > { %v7510_v18 = vsel %vm6993_vm0, %v7436_v24, %v7507_v58  ;;  %v15798_v24 = vld [vmem:[#allocation10 + $0x424] sm:$0xf]  ;;  %v14710_v58 = vor.u32 %v15930_v19, %v14707_v10  ;;  %v14083_v10 = vld [vmem:[#allocation10 + $0x378] sm:$0xf0] }
 0x66f   : > { %7512 = vst [vmem:[#allocation3 + $0xc] sm:$0xf] %v7510_v18  ;;  %v14491_v18 = vld [vmem:[#allocation10 + $0x6a8] sm:$0xf0]  ;;  %v14182_v42 = vor.u32 %v15798_v24, %v14179_v31  ;;  %v15774_v19 = vld [vmem:[#allocation10 + $0x364] sm:$0xf] }
 0x670   : > { %v7434_v11 = vpop.f32.mrf.mxu1  ;;  %v14494_v59 = vor.u32 %v15876_v49, %v14491_v18  ;;  %v15802_v49 = vld [vmem:[#allocation10 + $0x43c] sm:$0xf0]  ;;  %v14377_v18 = vld [vmem:[#allocation10 + $0x5a8] sm:$0xf] }
 0x671   : > { %v15840_v11 = vld [vmem:[#allocation10 + $0x574] sm:$0xf] }
 0x672   : > { %v14350_v47 = vor.u32 %v15840_v11, %v14347_v61  ;;  %v14251_v11 = vld [vmem:[#allocation10 + $0x4c8] sm:$0xf0] }
 0x675   : > { %v7247_v60 = vpop.permute.xlu2 %7246 }
 0x676   : > { %v7250_v51 = vsel %vm6993_vm0, %v7176_v39, %v7247_v60  ;;  %v7774_v29 = vld [vmem:[#allocation3 + $0x8] sm:$0xff]  ;;  %v14158_v60 = vor.u32 %v15792_v32, %v14155_v9  ;;  %v15768_v32 = vld [vmem:[#allocation10 + $0x334] sm:$0xf]  ;;  %v14059_v9 = vld [vmem:[#allocation10 + $0x348] sm:$0xf0] }
 0x677   : > { %7252 = vst [vmem:[#allocation3 + $0x4] sm:$0xf] %v7250_v51  ;;  %v8083_v44 = vunpack.c.l.b16 %v7774_v29  ;;  %v8084_v37 = vunpack.c.h.b16 %v7774_v29  ;;  %v15870_v39 = vld [vmem:[#allocation10 + $0x664] sm:$0xf]  ;;  %v14323_v29 = vld [vmem:[#allocation10 + $0x558] sm:$0xf0] }
 0x678   : > { %v17096_v36 = vpop.f32.mrf.mxu1  ;;  %v15834_v51 = vld [vmem:[#allocation10 + $0x544] sm:$0xf] }
 0x679   : > { %v17092_v3 = vpack.c.b16 %v8083_v44, %v8083_v44  ;;  %v17094_v7 = vpack.c.b16 %v8084_v37, %v8084_v37  ;;  %v14470_v44 = vor.u32 %v15870_v39, %v14467_v43  ;;  %v14662_v37 = vor.u32 %v15918_v48, %v14659_v16  ;;  %v15796_v39 = vld [vmem:[#allocation10 + $0x40c] sm:$0xf0]  ;;  %v14353_v43 = vld [vmem:[#allocation10 + $0x578] sm:$0xf] }
 0x67a   : > { %v14326_v26 = vor.u32 %v15834_v51, %v14323_v29  ;;  %v7566_v24 = vpack.c.bf16 %v17096_v36, %v17096_v36  ;;  %v15816_v36 = vld [vmem:[#allocation10 + $0x4b4] sm:$0xf]  ;;  %v15844_v48 = vld [vmem:[#allocation10 + $0x58c] sm:$0xf0]  ;;  %v14062_v16 = vor.u32 %v15768_v32, %v14059_v9  ;;  %v14227_v51 = vld [vmem:[#allocation10 + $0x498] sm:$0xf0] }
 0x67b   : > { %9573 = vmatmul.bf16.vlgmr.msrb.gmra.mxu2 %v17092_v3  ;;  %9586 = vmatmul.bf16.vlgmr.msrb.gmra.mxu3 %v17094_v7  ;;  %v13827_v32 = vld [vmem:[#allocation10 + $0x170] sm:$0xf0]  ;;  %v15757_v9 = vld [vmem:[#allocation10 + $0x2dc] sm:$0xf] }
 0x67c   : > { %9669 = vmatpush.bf16.msrb.mxu2 %v14590_v54  ;;  %9682 = vmatpush.bf16.msrb.mxu3 %v14782_v38  ;;  %v15864_v54 = vld [vmem:[#allocation10 + $0x634] sm:$0xf]  ;;  %v14443_v38 = vld [vmem:[#allocation10 + $0x648] sm:$0xf0] }
 0x67d   : > { %v14446_v2 = vor.u32 %v15864_v54, %v14443_v38  ;;  %v15790_v54 = vld [vmem:[#allocation10 + $0x3dc] sm:$0xf0]  ;;  %v14329_v38 = vld [vmem:[#allocation10 + $0x548] sm:$0xf] }
 0x67e   : > { %v7773_v23 = vld [vmem:[#allocation3] sm:$0xff] }
 0x67f   : > { %v8081_v8 = vunpack.c.l.b16 %v7773_v23  ;;  %v8082_v5 = vunpack.c.h.b16 %v7773_v23  ;;  %v15906_v23 = vld [vmem:[#allocation10 + $0x784] sm:$0xf] }
 0x680   : > { %9670 = vmatpush.bf16.msrb.mxu2 %v14566_v46  ;;  %9683 = vmatpush.bf16.msrb.mxu3 %v14758_v52  ;;  %v7564_v27 = vpop.f32.mrf.mxu1  ;;  %v15780_v46 = vld [vmem:[#allocation10 + $0x394] sm:$0xf]  ;;  %v14107_v52 = vld [vmem:[#allocation10 + $0x3a8] sm:$0xf0]  ;;  %v14614_v31 = vor.u32 %v15906_v23, %v14611_v41  ;;  %v14089_v41 = vld [vmem:[#allocation10 + $0x368] sm:$0xf] }
 0x681   : > { %v17100_v14 = vpack.c.b16 %v8081_v8, %v8081_v8  ;;  %v17102_v12 = vpack.c.b16 %v8082_v5, %v8082_v5  ;;  %v15808_v8 = vld [vmem:[#allocation10 + $0x46c] sm:$0xf0]  ;;  %v14110_v5 = vor.u32 %v15780_v46, %v14107_v52  ;;  %v14422_v27 = vor.u32 %v15858_v13, %v14419_v0  ;;  %v14113_v52 = vld [vmem:[#allocation10 + $0x398] sm:$0xf] }
 0x682   : > { %v14210_v1 = vor.u32 %v15808_v8, %v14209_v63  ;;  %v14330_v46 = vor.u32 %v15838_v56, %v14329_v38  ;;  %v15778_v8 = vld [vmem:[#allocation10 + $0x37c] sm:$0xf0]  ;;  %v13777_v38 = vld [vmem:[#allocation10 + $0xf8] sm:$0xf]  ;;  %v15700_v56 = vld [vmem:[#allocation10 + $0x10c] sm:$0xf0] }
 0x683   : > { %9547 = vmatmul.bf16.vlgmr.msrb.gmra.mxu0 %v17100_v14  ;;  %9560 = vmatmul.bf16.vlgmr.msrb.gmra.mxu1 %v17102_v12 }
 0x684   : > { %9671 = vmatpush.bf16.msrb.mxu2 %v14542_v62  ;;  %9684 = vmatpush.bf16.msrb.mxu3 %v14734_v21  ;;  %v14302_v62 = vor.u32 %v15828_v17, %v14299_v50  ;;  %v15784_v17 = vld [vmem:[#allocation10 + $0x3ac] sm:$0xf0]  ;;  %v14305_v50 = vld [vmem:[#allocation10 + $0x518] sm:$0xf] }
 0x685   : > { %9643 = vmatpush.bf16.msrb.mxu0 %v14206_v53  ;;  %9656 = vmatpush.bf16.msrb.mxu1 %v14398_v28  ;;  %v15822_v53 = vld [vmem:[#allocation10 + $0x4e4] sm:$0xf]  ;;  %v14275_v28 = vld [vmem:[#allocation10 + $0x4f8] sm:$0xf0]  ;;  %v14114_v0 = vor.u32 %v15784_v17, %v14113_v52  ;;  %v13779_v17 = vld [vmem:[#allocation10 + $0x110] sm:$0xf0] }
 0x686   : > { %v15697_v52 = vld [vmem:[#allocation10 + $0xfc] sm:$0xf] }
 0x688   : > { %9672 = vmatpush.bf16.msrb.mxu2 %v14518_v22  ;;  %9685 = vmatpush.bf16.msrb.mxu3 %v14710_v58  ;;  %v17106_v35 = vpop.f32.mrf.mxu1  ;;  %v14402_v22 = vor.u32 %v15856_v15, %v14401_v30  ;;  %v14185_v58 = vld [vmem:[#allocation10 + $0x428] sm:$0xf]  ;;  %v14065_v15 = vld [vmem:[#allocation10 + $0x338] sm:$0xf] }
 0x689   : > { %9644 = vmatpush.bf16.msrb.mxu0 %v14182_v42  ;;  %9657 = vmatpush.bf16.msrb.mxu1 %v14374_v4  ;;  %v14086_v42 = vor.u32 %v15774_v19, %v14083_v10  ;;  %v14278_v4 = vor.u32 %v15822_v53, %v14275_v28  ;;  %v14186_v61 = vor.u32 %v15802_v49, %v14185_v58  ;;  %v15772_v19 = vld [vmem:[#allocation10 + $0x34c] sm:$0xf0]  ;;  %v14257_v10 = vld [vmem:[#allocation10 + $0x4b8] sm:$0xf]  ;;  %v15766_v58 = vld [vmem:[#allocation10 + $0x31c] sm:$0xf0] }
 0x68a   : > { %v13825_v53 = vld [vmem:[#allocation10 + $0x158] sm:$0xf]  ;;  %v14066_v28 = vor.u32 %v15772_v19, %v14065_v15  ;;  %v13947_v15 = vld [vmem:[#allocation10 + $0x260] sm:$0xf0] }
 0x68b   : > { %9625 = vmatmul.bf16.vlgmr.msra.gmra.mxu2 %v17100_v14  ;;  %9638 = vmatmul.bf16.vlgmr.msra.gmra.mxu3 %v17102_v12 }
 0x68c   : > { %9673 = vmatpush.bf16.msrb.mxu2 %v14494_v59  ;;  %9686 = vmatpush.bf16.msrb.mxu3 %v14686_v55  ;;  %v14378_v59 = vor.u32 %v15850_v40, %v14377_v18  ;;  %v14161_v55 = vld [vmem:[#allocation10 + $0x3f8] sm:$0xf]  ;;  %v15814_v40 = vld [vmem:[#allocation10 + $0x49c] sm:$0xf0] }
 0x68d   : > { %9645 = vmatpush.bf16.msrb.mxu0 %v14158_v60  ;;  %9658 = vmatpush.bf16.msrb.mxu1 %v14350_v47  ;;  %v14254_v60 = vor.u32 %v15816_v36, %v14251_v11  ;;  %v15762_v47 = vld [vmem:[#allocation10 + $0x304] sm:$0xf]  ;;  %v14162_v29 = vor.u32 %v15796_v39, %v14161_v55  ;;  %v14019_v36 = vld [vmem:[#allocation10 + $0x2f0] sm:$0xf0]  ;;  %v13801_v55 = vld [vmem:[#allocation10 + $0x128] sm:$0xf] }
 0x68e   : > { %v14038_v57 = vor.u32 %v15762_v47, %v14035_v33  ;;  %v14022_v33 = vor.u32 %v15757_v9, %v14019_v36  ;;  %v15679_v36 = vld [vmem:[#allocation10 + $0x6c] sm:$0xf] }
 0x690   : > { %9674 = vmatpush.bf16.msrb.mxu2 %v14470_v44  ;;  %9687 = vmatpush.bf16.msrb.mxu3 %v14662_v37  ;;  %v7694_v21 = vpop.f32.mrf.mxu1  ;;  %v14354_v44 = vor.u32 %v15844_v48, %v14353_v43  ;;  %v14137_v37 = vld [vmem:[#allocation10 + $0x3c8] sm:$0xf]  ;;  %v15706_v48 = vld [vmem:[#allocation10 + $0x13c] sm:$0xf0] }
 0x691   : > { %9646 = vmatpush.bf16.msrb.mxu0 %v14134_v25  ;;  %9659 = vmatpush.bf16.msrb.mxu1 %v14326_v26  ;;  %v14230_v25 = vor.u32 %v15810_v45, %v14227_v51  ;;  %v14138_v26 = vor.u32 %v15790_v54, %v14137_v37  ;;  %v14090_v21 = vor.u32 %v15778_v8, %v14089_v41  ;;  %v15703_v45 = vld [vmem:[#allocation10 + $0x12c] sm:$0xf]  ;;  %v13803_v51 = vld [vmem:[#allocation10 + $0x140] sm:$0xf0]  ;;  %v13945_v41 = vld [vmem:[#allocation10 + $0x248] sm:$0xf] }
 0x692   : > { %v13802_v37 = vor.u32 %v15706_v48, %v13801_v55  ;;  %v13782_v8 = vor.u32 %v15697_v52, %v13779_v17  ;;  %v15727_v55 = vld [vmem:[#allocation10 + $0x1ec] sm:$0xf]  ;;  %v14593_v52 = vld [vmem:[#allocation10 + $0x758] sm:$0xf]  ;;  %v15904_v17 = vld [vmem:[#allocation10 + $0x76c] sm:$0xf0] }
 0x694   : > { %9675 = vmatpush.bf16.msrb.mxu2 %v14446_v2  ;;  %9688 = vmatpush.bf16.msrb.mxu3 %v14638_v6  ;;  %v15832_v2 = vld [vmem:[#allocation10 + $0x52c] sm:$0xf0]  ;;  %v7696_v6 = vpack.c.bf16 %v17106_v35, %v17106_v35 }
 0x695   : > { %v7637_v34 = vpop.permute.xlu0 %7636  ;;  %9647 = vmatpush.bf16.msrb.mxu0 %v14110_v5  ;;  %9660 = vmatpush.bf16.msrb.mxu1 %v14302_v62  ;;  %v14306_v23 = vor.u32 %v15832_v2, %v14305_v50  ;;  %v14281_v5 = vld [vmem:[#allocation10 + $0x4e8] sm:$0xf]  ;;  %v15826_v62 = vld [vmem:[#allocation10 + $0x4fc] sm:$0xf0]  ;;  %v15820_v35 = vld [vmem:[#allocation10 + $0x4cc] sm:$0xf0] }
 0x696   : > { %v7640_v20 = vsel %vm6993_vm0, %v7566_v24, %v7637_v34  ;;  %v14282_v30 = vor.u32 %v15826_v62, %v14281_v5  ;;  %v14258_v24 = vor.u32 %v15820_v35, %v14257_v10  ;;  %v15760_v34 = vld [vmem:[#allocation10 + $0x2ec] sm:$0xf0]  ;;  %v15745_v50 = vld [vmem:[#allocation10 + $0x27c] sm:$0xf]  ;;  %v13971_v2 = vld [vmem:[#allocation10 + $0x290] sm:$0xf0] }
 0x697   : > { %7642 = vst [vmem:[#allocation3 + $0x10] sm:$0xf] %v7640_v20  ;;  %v14233_v20 = vld [vmem:[#allocation10 + $0x488] sm:$0xf]  ;;  %v13974_v5 = vor.u32 %v15745_v50, %v13971_v2  ;;  %v15691_v62 = vld [vmem:[#allocation10 + $0xcc] sm:$0xf] }
 0x698   : > { %9676 = vmatpush.bf16.msrb.mxu2 %v14422_v27  ;;  %9689 = vmatpush.bf16.msrb.mxu3 %v14614_v31  ;;  %v15712_v27 = vld [vmem:[#allocation10 + $0x16c] sm:$0xf0]  ;;  %v14017_v31 = vld [vmem:[#allocation10 + $0x2d8] sm:$0xf]  ;;  %v14234_v43 = vor.u32 %v15814_v40, %v14233_v20  ;;  %v13705_v20 = vld [vmem:[#allocation10 + $0x68] sm:$0xf] }
 0x699   : > { %9648 = vmatpush.bf16.msrb.mxu0 %v14086_v42  ;;  %9661 = vmatpush.bf16.msrb.mxu1 %v14278_v4  ;;  %v15709_v42 = vld [vmem:[#allocation10 + $0x15c] sm:$0xf]  ;;  %v13826_v4 = vor.u32 %v15712_v27, %v13825_v53  ;;  %v13729_v35 = vld [vmem:[#allocation10 + $0x98] sm:$0xf]  ;;  %v15688_v53 = vld [vmem:[#allocation10 + $0xac] sm:$0xf0] }
 0x69a   : > { %v13830_v47 = vor.u32 %v15709_v42, %v13827_v32  ;;  %v15682_v40 = vld [vmem:[#allocation10 + $0x7c] sm:$0xf0]  ;;  %v13897_v42 = vld [vmem:[#allocation10 + $0x1e8] sm:$0xf]  ;;  %v14785_v50 = vld [vmem:[#allocation10 + $0x8d8] sm:$0xf] }
 0x69c   : > { %9721 = vmatpush.bf16.msra.mxu2 %v14210_v1  ;;  %9734 = vmatpush.bf16.msra.mxu3 %v14402_v22  ;;  %v14041_v22 = vld [vmem:[#allocation10 + $0x308] sm:$0xf] }
 0x69d   : > { %9649 = vmatpush.bf16.msrb.mxu0 %v14062_v16  ;;  %9662 = vmatpush.bf16.msrb.mxu1 %v14254_v60  ;;  %v14042_v39 = vor.u32 %v15766_v58, %v14041_v22  ;;  %v13993_v16 = vld [vmem:[#allocation10 + $0x2a8] sm:$0xf]  ;;  %v15754_v60 = vld [vmem:[#allocation10 + $0x2bc] sm:$0xf0]  ;;  %v15733_v22 = vld [vmem:[#allocation10 + $0x21c] sm:$0xf] }
 0x69e   : > { %v13994_v54 = vor.u32 %v15754_v60, %v13993_v16  ;;  %v13923_v58 = vld [vmem:[#allocation10 + $0x230] sm:$0xf0]  ;;  %v13681_v16 = vld [vmem:[#allocation10 + $0x38] sm:$0xf]  ;;  %v15676_v60 = vld [vmem:[#allocation10 + $0x4c] sm:$0xf0] }
 0x69f   : > { %v13926_v9 = vor.u32 %v15733_v22, %v13923_v58  ;;  %v15895_v22 = vld [vmem:[#allocation10 + $0x72c] sm:$0xf]  ;;  %v14571_v58 = vld [vmem:[#allocation10 + $0x740] sm:$0xf0] }
 0x6a0   : > { %9722 = vmatpush.bf16.msra.mxu2 %v14186_v61  ;;  %9735 = vmatpush.bf16.msra.mxu3 %v14378_v59  ;;  %v14018_v59 = vor.u32 %v15760_v34, %v14017_v31  ;;  %v15685_v34 = vld [vmem:[#allocation10 + $0x9c] sm:$0xf] }
 0x6a1   : > { %9650 = vmatpush.bf16.msrb.mxu0 %v14038_v57  ;;  %9663 = vmatpush.bf16.msrb.mxu1 %v14230_v25  ;;  %v13969_v57 = vld [vmem:[#allocation10 + $0x278] sm:$0xf]  ;;  %v15748_v25 = vld [vmem:[#allocation10 + $0x28c] sm:$0xf0] }
 0x6a4   : > { %9723 = vmatpush.bf16.msra.mxu2 %v14162_v29  ;;  %9736 = vmatpush.bf16.msra.mxu3 %v14354_v44  ;;  %v15751_v29 = vld [vmem:[#allocation10 + $0x2ac] sm:$0xf]  ;;  %v13995_v44 = vld [vmem:[#allocation10 + $0x2c0] sm:$0xf0] }
 0x6a5   : > { %v7767_v13 = vpop.permute.xlu1 %7766 }
 0x6a6   : > { %v7770_v63 = vsel %vm6993_vm0, %v7696_v6, %v7767_v13  ;;  %v13778_v6 = vor.u32 %v15700_v56, %v13777_v38  ;;  %v13970_v13 = vor.u32 %v15748_v25, %v13969_v57  ;;  %v13657_v38 = vld [vmem:[#allocation10 + $0x8] sm:$0xf]  ;;  %v13682_v56 = vor.u32 %v15676_v60, %v13681_v16  ;;  %v15670_v25 = vld [vmem:[#allocation10 + $0x1c] sm:$0xf0] }
 0x6a7   : > { %7772 = vst [vmem:[#allocation3 + $0x14] sm:$0xf] %v7770_v63  ;;  %v15742_v63 = vld [vmem:[#allocation10 + $0x25c] sm:$0xf0] }
 0x6a8   : > { %9724 = vmatpush.bf16.msra.mxu2 %v14138_v26  ;;  %9737 = vmatpush.bf16.msra.mxu3 %v14330_v46  ;;  %v13806_v26 = vor.u32 %v15703_v45, %v13803_v51  ;;  %v13998_v46 = vor.u32 %v15751_v29, %v13995_v44  ;;  %v13946_v10 = vor.u32 %v15742_v63, %v13945_v41  ;;  %v15673_v29 = vld [vmem:[#allocation10 + $0x3c] sm:$0xf]  ;;  %v13683_v44 = vld [vmem:[#allocation10 + $0x50] sm:$0xf0]  ;;  %v15715_v41 = vld [vmem:[#allocation10 + $0x18c] sm:$0xf] }
 0x6a9   : > { %v13686_v2 = vor.u32 %v15673_v29, %v13683_v44  ;;  %v13851_v63 = vld [vmem:[#allocation10 + $0x1a0] sm:$0xf0] }
 0x6ac   : > { %9725 = vmatpush.bf16.msra.mxu2 %v14114_v0  ;;  %9738 = vmatpush.bf16.msra.mxu3 %v14306_v23  ;;  %v13753_v0 = vld [vmem:[#allocation10 + $0xc8] sm:$0xf]  ;;  %v15694_v23 = vld [vmem:[#allocation10 + $0xdc] sm:$0xf0] }
 0x6ad   : > { %v13754_v19 = vor.u32 %v15694_v23, %v13753_v0  ;;  %v15667_v0 = vld [vmem:[#allocation10 + $0xc] sm:$0xf]  ;;  %v13659_v23 = vld [vmem:[#allocation10 + $0x20] sm:$0xf0] }
 0x6ae   : > { %v7775_v1 = vld [vmem:[#allocation3 + $0x10] sm:$0xff] }
 0x6af   : > { %v8085_v49 = vunpack.c.l.b16 %v7775_v1  ;;  %v8086_v18 = vunpack.c.h.b16 %v7775_v1  ;;  %v13731_v1 = vld [vmem:[#allocation10 + $0xb0] sm:$0xf0] }
 0x6b0   : > { %9726 = vmatpush.bf16.msra.mxu2 %v14090_v21  ;;  %9739 = vmatpush.bf16.msra.mxu3 %v14282_v30  ;;  %v13755_v21 = vld [vmem:[#allocation10 + $0xe0] sm:$0xf0]  ;;  %v15739_v30 = vld [vmem:[#allocation10 + $0x24c] sm:$0xf]  ;;  %v13734_v32 = vor.u32 %v15685_v34, %v13731_v1 }
 0x6b1   : > { %v17116_v11 = vpack.c.b16 %v8085_v49, %v8085_v49  ;;  %v17118_v61 = vpack.c.b16 %v8086_v18, %v8086_v18  ;;  %v13758_v27 = vor.u32 %v15691_v62, %v13755_v21  ;;  %v13950_v31 = vor.u32 %v15739_v30, %v13947_v15  ;;  %v14595_v21 = vld [vmem:[#allocation10 + $0x770] sm:$0xf0]  ;;  %v15949_v30 = vld [vmem:[#allocation10 + $0x8dc] sm:$0xf] }
 0x6b2   : > { %v13730_v49 = vor.u32 %v15688_v53, %v13729_v35  ;;  %v14787_v15 = vld [vmem:[#allocation10 + $0x8f0] sm:$0xf0]  ;;  %v14569_v35 = vld [vmem:[#allocation10 + $0x728] sm:$0xf]  ;;  %v13662_v53 = vor.u32 %v15667_v0, %v13659_v23  ;;  %v15925_v0 = vld [vmem:[#allocation10 + $0x81c] sm:$0xf] }
 0x6b3   : > { %9599 = vmatmul.bf16.vlgmr.msra.gmra.mxu0 %v17116_v11  ;;  %9612 = vmatmul.bf16.vlgmr.msra.gmra.mxu1 %v17118_v61  ;;  %v14790_v1 = vor.u32 %v15949_v30, %v14787_v15  ;;  %v14691_v23 = vld [vmem:[#allocation10 + $0x830] sm:$0xf0] }
 0x6b4   : > { %9727 = vmatpush.bf16.msra.mxu2 %v14066_v28  ;;  %9740 = vmatpush.bf16.msra.mxu3 %v14258_v24  ;;  %v13921_v28 = vld [vmem:[#allocation10 + $0x218] sm:$0xf]  ;;  %v15736_v24 = vld [vmem:[#allocation10 + $0x22c] sm:$0xf0]  ;;  %v14694_v15 = vor.u32 %v15925_v0, %v14691_v23  ;;  %v15803_v23 = vld [vmem:[#allocation10 + $0x444] sm:$0xf0] }
 0x6b5   : > { %9677 = vmatmul.bf16.vlgmr.msrb.gmra.mxu2 %v17116_v11  ;;  %9690 = vmatmul.bf16.vlgmr.msrb.gmra.mxu3 %v17118_v61  ;;  %v13922_v18 = vor.u32 %v15736_v24, %v13921_v28  ;;  %v13854_v28 = vor.u32 %v15715_v41, %v13851_v63  ;;  %v15898_v24 = vld [vmem:[#allocation10 + $0x73c] sm:$0xf0]  ;;  %v14193_v0 = vld [vmem:[#allocation10 + $0x430] sm:$0xf] }
 0x6b6   : > { %9695 = vmatpush.bf16.msra.mxu0 %v13826_v4  ;;  %9708 = vmatpush.bf16.msra.mxu1 %v14018_v59  ;;  %v15730_v4 = vld [vmem:[#allocation10 + $0x1fc] sm:$0xf0]  ;;  %v13707_v59 = vld [vmem:[#allocation10 + $0x80] sm:$0xf0] }
 0x6b7   : > { %v13898_v48 = vor.u32 %v15730_v4, %v13897_v42  ;;  %v13710_v45 = vor.u32 %v15679_v36, %v13707_v59  ;;  %v14545_v42 = vld [vmem:[#allocation10 + $0x6f8] sm:$0xf]  ;;  %v15892_v4 = vld [vmem:[#allocation10 + $0x70c] sm:$0xf0]  ;;  %v14574_v36 = vor.u32 %v15895_v22, %v14571_v58 }
 0x6b8   : > { %9728 = vmatpush.bf16.msra.mxu2 %v14042_v39  ;;  %9741 = vmatpush.bf16.msra.mxu3 %v14234_v43  ;;  %v13899_v39 = vld [vmem:[#allocation10 + $0x200] sm:$0xf0]  ;;  %v13706_v43 = vor.u32 %v15682_v40, %v13705_v20  ;;  %v14570_v20 = vor.u32 %v15898_v24, %v14569_v35  ;;  %v14546_v16 = vor.u32 %v15892_v4, %v14545_v42  ;;  %v15919_v35 = vld [vmem:[#allocation10 + $0x7ec] sm:$0xf] }
 0x6b9   : > { %v13902_v51 = vor.u32 %v15727_v55, %v13899_v39  ;;  %v15889_v55 = vld [vmem:[#allocation10 + $0x6fc] sm:$0xf]  ;;  %v14547_v39 = vld [vmem:[#allocation10 + $0x710] sm:$0xf0] }
 0x6ba   : > { %9696 = vmatpush.bf16.msra.mxu0 %v13802_v37  ;;  %9709 = vmatpush.bf16.msra.mxu1 %v13994_v54  ;;  %v15721_v37 = vld [vmem:[#allocation10 + $0x1bc] sm:$0xf]  ;;  %v13875_v54 = vld [vmem:[#allocation10 + $0x1d0] sm:$0xf0]  ;;  %v14550_v29 = vor.u32 %v15889_v55, %v14547_v39 }
 0x6bb   : > { %v15805_v55 = vld [vmem:[#allocation10 + $0x45c] sm:$0xf]  ;;  %v14211_v39 = vld [vmem:[#allocation10 + $0x470] sm:$0xf0] }
 0x6bc   : > { %9773 = vmatpush.bf16.msrb.mxu2 %v13830_v47  ;;  %9786 = vmatpush.bf16.msrb.mxu3 %v14022_v33  ;;  %v13873_v47 = vld [vmem:[#allocation10 + $0x1b8] sm:$0xf]  ;;  %v15724_v33 = vld [vmem:[#allocation10 + $0x1cc] sm:$0xf0] }
 0x6bd   : > { %v13874_v57 = vor.u32 %v15724_v33, %v13873_v47  ;;  %v14521_v47 = vld [vmem:[#allocation10 + $0x6c8] sm:$0xf]  ;;  %v15886_v33 = vld [vmem:[#allocation10 + $0x6dc] sm:$0xf0] }
 0x6be   : > { %9697 = vmatpush.bf16.msra.mxu0 %v13778_v6  ;;  %9710 = vmatpush.bf16.msra.mxu1 %v13970_v13  ;;  %v13878_v6 = vor.u32 %v15721_v37, %v13875_v54  ;;  %v15952_v13 = vld [vmem:[#allocation10 + $0x8ec] sm:$0xf0]  ;;  %v15883_v37 = vld [vmem:[#allocation10 + $0x6cc] sm:$0xf]  ;;  %v14523_v54 = vld [vmem:[#allocation10 + $0x6e0] sm:$0xf0] }
 0x6c0   : > { %9774 = vmatpush.bf16.msrb.mxu2 %v13806_v26  ;;  %9787 = vmatpush.bf16.msrb.mxu3 %v13998_v46  ;;  %v13849_v26 = vld [vmem:[#allocation10 + $0x188] sm:$0xf]  ;;  %v15718_v46 = vld [vmem:[#allocation10 + $0x19c] sm:$0xf0] }
 0x6c1   : > { %v13850_v62 = vor.u32 %v15718_v46, %v13849_v26  ;;  %v14497_v26 = vld [vmem:[#allocation10 + $0x698] sm:$0xf]  ;;  %v15880_v46 = vld [vmem:[#allocation10 + $0x6ac] sm:$0xf0] }
 0x6c2   : > { %9698 = vmatpush.bf16.msra.mxu0 %v13754_v19  ;;  %9711 = vmatpush.bf16.msra.mxu1 %v13946_v10  ;;  %v14594_v19 = vor.u32 %v15904_v17, %v14593_v52  ;;  %v14786_v10 = vor.u32 %v15952_v13, %v14785_v50  ;;  %v14689_v52 = vld [vmem:[#allocation10 + $0x818] sm:$0xf]  ;;  %v15928_v17 = vld [vmem:[#allocation10 + $0x82c] sm:$0xf0]  ;;  %v14526_v50 = vor.u32 %v15883_v37, %v14523_v54  ;;  %v14499_v13 = vld [vmem:[#allocation10 + $0x6b0] sm:$0xf0] }
 0x6c3   : > { %9651 = vmatmul.bf16.vlgmr.msrb.gmra.mxu0 %v17092_v3  ;;  %9664 = vmatmul.bf16.vlgmr.msrb.gmra.mxu1 %v17094_v7  ;;  %v14498_v41 = vor.u32 %v15880_v46, %v14497_v26  ;;  %v14690_v63 = vor.u32 %v15928_v17, %v14689_v52  ;;  %v14217_v37 = vld [vmem:[#allocation10 + $0x460] sm:$0xf]  ;;  %v15809_v54 = vld [vmem:[#allocation10 + $0x474] sm:$0xf0]  ;;  %v15799_v26 = vld [vmem:[#allocation10 + $0x42c] sm:$0xf] }
 0x6c4   : > { %9775 = vmatpush.bf16.msrb.mxu2 %v13782_v8  ;;  %9788 = vmatpush.bf16.msrb.mxu3 %v13974_v5  ;;  %v15901_v8 = vld [vmem:[#allocation10 + $0x75c] sm:$0xf]  ;;  %v13658_v5 = vor.u32 %v15670_v25, %v13657_v38  ;;  %v15931_v38 = vld [vmem:[#allocation10 + $0x84c] sm:$0xf]  ;;  %v14187_v17 = vld [vmem:[#allocation10 + $0x440] sm:$0xf0] }
 0x6c5   : > { %9729 = vmatmul.bf16.vlgmr.msra.gmra.mxu2 %v17092_v3  ;;  %9742 = vmatmul.bf16.vlgmr.msra.gmra.mxu3 %v17094_v7  ;;  %v14598_v34 = vor.u32 %v15901_v8, %v14595_v21  ;;  %v14473_v8 = vld [vmem:[#allocation10 + $0x668] sm:$0xf]  ;;  %v15922_v21 = vld [vmem:[#allocation10 + $0x7fc] sm:$0xf0] }
 0x6c6   : > { %9699 = vmatpush.bf16.msra.mxu0 %v13730_v49  ;;  %9712 = vmatpush.bf16.msra.mxu1 %v13922_v18  ;;  %v15943_v49 = vld [vmem:[#allocation10 + $0x8ac] sm:$0xf]  ;;  %v14763_v18 = vld [vmem:[#allocation10 + $0x8c0] sm:$0xf0] }
 0x6c7   : > { %v14766_v59 = vor.u32 %v15943_v49, %v14763_v18  ;;  %v15865_v49 = vld [vmem:[#allocation10 + $0x63c] sm:$0xf]  ;;  %v14451_v18 = vld [vmem:[#allocation10 + $0x650] sm:$0xf0] }
 0x6c8   : > { %9776 = vmatpush.bf16.msrb.mxu2 %v13758_v27  ;;  %9789 = vmatpush.bf16.msrb.mxu3 %v13950_v31  ;;  %v14761_v27 = vld [vmem:[#allocation10 + $0x8a8] sm:$0xf]  ;;  %v15946_v31 = vld [vmem:[#allocation10 + $0x8bc] sm:$0xf0] }
 0x6c9   : > { %v14762_v40 = vor.u32 %v15946_v31, %v14761_v27  ;;  %v14449_v27 = vld [vmem:[#allocation10 + $0x638] sm:$0xf]  ;;  %v15868_v31 = vld [vmem:[#allocation10 + $0x64c] sm:$0xf0] }
 0x6ca   : > { %9700 = vmatpush.bf16.msra.mxu0 %v13706_v43  ;;  %9713 = vmatpush.bf16.msra.mxu1 %v13898_v48  ;;  %v15937_v43 = vld [vmem:[#allocation10 + $0x87c] sm:$0xf]  ;;  %v14739_v48 = vld [vmem:[#allocation10 + $0x890] sm:$0xf0]  ;;  %v14450_v42 = vor.u32 %v15868_v31, %v14449_v27  ;;  %v14361_v27 = vld [vmem:[#allocation10 + $0x580] sm:$0xf] }
 0x6cb   : > { %v14742_v44 = vor.u32 %v15937_v43, %v14739_v48  ;;  %v14454_v43 = vor.u32 %v15865_v49, %v14451_v18  ;;  %v15845_v31 = vld [vmem:[#allocation10 + $0x594] sm:$0xf0] }
 0x6cc   : > { %9777 = vmatpush.bf16.msrb.mxu2 %v13734_v32  ;;  %9790 = vmatpush.bf16.msrb.mxu3 %v13926_v9  ;;  %v14737_v32 = vld [vmem:[#allocation10 + $0x878] sm:$0xf]  ;;  %v15940_v9 = vld [vmem:[#allocation10 + $0x88c] sm:$0xf0]  ;;  %v14362_v18 = vor.u32 %v15845_v31, %v14361_v27  ;;  %v13833_v27 = vld [vmem:[#allocation10 + $0x160] sm:$0xf] }
 0x6cd   : > { %v14738_v60 = vor.u32 %v15940_v9, %v14737_v32  ;;  %v14425_v32 = vld [vmem:[#allocation10 + $0x608] sm:$0xf]  ;;  %v15862_v9 = vld [vmem:[#allocation10 + $0x61c] sm:$0xf0]  ;;  %v15713_v31 = vld [vmem:[#allocation10 + $0x174] sm:$0xf0] }
 0x6ce   : > { %9701 = vmatpush.bf16.msra.mxu0 %v13682_v56  ;;  %9714 = vmatpush.bf16.msra.mxu1 %v13874_v57  ;;  %v14715_v56 = vld [vmem:[#allocation10 + $0x860] sm:$0xf0]  ;;  %v14522_v57 = vor.u32 %v15886_v33, %v14521_v47  ;;  %v15859_v47 = vld [vmem:[#allocation10 + $0x60c] sm:$0xf] }
 0x6cf   : > { %v14427_v33 = vld [vmem:[#allocation10 + $0x620] sm:$0xf0] }
 0x6d0   : > { %9778 = vmatpush.bf16.msrb.mxu2 %v13710_v45  ;;  %9791 = vmatpush.bf16.msrb.mxu3 %v13902_v51  ;;  %v14713_v45 = vld [vmem:[#allocation10 + $0x848] sm:$0xf]  ;;  %v15934_v51 = vld [vmem:[#allocation10 + $0x85c] sm:$0xf0]  ;;  %v14430_v46 = vor.u32 %v15859_v47, %v14427_v33 }
 0x6d1   : > { %v14714_v25 = vor.u32 %v15934_v51, %v14713_v45  ;;  %v15907_v45 = vld [vmem:[#allocation10 + $0x78c] sm:$0xf]  ;;  %v14619_v51 = vld [vmem:[#allocation10 + $0x7a0] sm:$0xf0] }
 0x6d2   : > { %9702 = vmatpush.bf16.msra.mxu0 %v13658_v5  ;;  %9715 = vmatpush.bf16.msra.mxu1 %v13850_v62  ;;  %v15874_v5 = vld [vmem:[#allocation10 + $0x67c] sm:$0xf0]  ;;  %v14665_v62 = vld [vmem:[#allocation10 + $0x7e8] sm:$0xf]  ;;  %v14622_v52 = vor.u32 %v15907_v45, %v14619_v51  ;;  %v15833_v51 = vld [vmem:[#allocation10 + $0x534] sm:$0xf0] }
 0x6d3   : > { %v14666_v24 = vor.u32 %v15922_v21, %v14665_v62  ;;  %v15793_v62 = vld [vmem:[#allocation10 + $0x3fc] sm:$0xf]  ;;  %v14163_v21 = vld [vmem:[#allocation10 + $0x410] sm:$0xf0]  ;;  %v14313_v45 = vld [vmem:[#allocation10 + $0x520] sm:$0xf] }
 0x6d4   : > { %9779 = vmatpush.bf16.msrb.mxu2 %v13686_v2  ;;  %9792 = vmatpush.bf16.msrb.mxu3 %v13878_v6  ;;  %v14718_v2 = vor.u32 %v15931_v38, %v14715_v56  ;;  %v15877_v6 = vld [vmem:[#allocation10 + $0x69c] sm:$0xf]  ;;  %v14214_v38 = vor.u32 %v15805_v55, %v14211_v39  ;;  %v14307_v39 = vld [vmem:[#allocation10 + $0x530] sm:$0xf0] }
 0x6d5   : > { %9703 = vmatmul.bf16.vlgmr.msra.gmra.mxu0 %v17100_v14  ;;  %9716 = vmatmul.bf16.vlgmr.msra.gmra.mxu1 %v17102_v12  ;;  %v14502_v30 = vor.u32 %v15877_v6, %v14499_v13  ;;  %v14218_v6 = vor.u32 %v15809_v54, %v14217_v37  ;;  %v15829_v55 = vld [vmem:[#allocation10 + $0x51c] sm:$0xf]  ;;  %v15823_v37 = vld [vmem:[#allocation10 + $0x4ec] sm:$0xf]  ;;  %v14283_v54 = vld [vmem:[#allocation10 + $0x500] sm:$0xf0] }
 0x6d6   : > { %9747 = vmatpush.bf16.msrb.mxu0 %v14594_v19  ;;  %9760 = vmatpush.bf16.msrb.mxu1 %v14786_v10  ;;  %v15871_v19 = vld [vmem:[#allocation10 + $0x66c] sm:$0xf]  ;;  %v14475_v10 = vld [vmem:[#allocation10 + $0x680] sm:$0xf0]  ;;  %v14310_v33 = vor.u32 %v15829_v55, %v14307_v39  ;;  %v13834_v55 = vor.u32 %v15713_v31, %v13833_v27 }
 0x6d7   : > { %v14478_v22 = vor.u32 %v15871_v19, %v14475_v10  ;;  %v14194_v19 = vor.u32 %v15803_v23, %v14193_v0  ;;  %v14067_v23 = vld [vmem:[#allocation10 + $0x350] sm:$0xf0] }
 0x6d8   : > { %9780 = vmatpush.bf16.msrb.mxu2 %v13662_v53  ;;  %9793 = vmatpush.bf16.msrb.mxu3 %v13854_v28  ;;  %v14667_v53 = vld [vmem:[#allocation10 + $0x800] sm:$0xf0]  ;;  %v14474_v28 = vor.u32 %v15874_v5, %v14473_v8  ;;  %v14385_v8 = vld [vmem:[#allocation10 + $0x5b0] sm:$0xf]  ;;  %v15851_v5 = vld [vmem:[#allocation10 + $0x5c4] sm:$0xf0] }
 0x6d9   : > { %v14670_v58 = vor.u32 %v15919_v35, %v14667_v53  ;;  %v14386_v10 = vor.u32 %v15851_v5, %v14385_v8  ;;  %v14169_v35 = vld [vmem:[#allocation10 + $0x400] sm:$0xf]  ;;  %v15797_v53 = vld [vmem:[#allocation10 + $0x414] sm:$0xf0] }
 0x6da   : > { %9748 = vmatpush.bf16.msrb.mxu0 %v14570_v20  ;;  %9761 = vmatpush.bf16.msrb.mxu1 %v14762_v40  ;;  %v15913_v20 = vld [vmem:[#allocation10 + $0x7bc] sm:$0xf]  ;;  %v14643_v40 = vld [vmem:[#allocation10 + $0x7d0] sm:$0xf0]  ;;  %v14170_v49 = vor.u32 %v15797_v53, %v14169_v35  ;;  %v15763_v35 = vld [vmem:[#allocation10 + $0x30c] sm:$0xf] }
 0x6db   : > { %9781 = vmatmul.bf16.vlgmr.msrb.gmra.mxu2 %v17100_v14  ;;  %9794 = vmatmul.bf16.vlgmr.msrb.gmra.mxu3 %v17102_v12  ;;  %v14646_v48 = vor.u32 %v15913_v20, %v14643_v40  ;;  %v14145_v20 = vld [vmem:[#allocation10 + $0x3d0] sm:$0xf]  ;;  %v15791_v40 = vld [vmem:[#allocation10 + $0x3e4] sm:$0xf0]  ;;  %v14043_v53 = vld [vmem:[#allocation10 + $0x320] sm:$0xf0] }
 0x6dc   : > { %9825 = vmatpush.bf16.msra.mxu2 %v14598_v34  ;;  %9838 = vmatpush.bf16.msra.mxu3 %v14790_v1  ;;  %v14641_v34 = vld [vmem:[#allocation10 + $0x7b8] sm:$0xf]  ;;  %v15916_v1 = vld [vmem:[#allocation10 + $0x7cc] sm:$0xf0] }
 0x6dd   : > { %v14642_v4 = vor.u32 %v15916_v1, %v14641_v34  ;;  %v15787_v34 = vld [vmem:[#allocation10 + $0x3cc] sm:$0xf]  ;;  %v14139_v1 = vld [vmem:[#allocation10 + $0x3e0] sm:$0xf0] }
 0x6de   : > { %9749 = vmatpush.bf16.msrb.mxu0 %v14546_v16  ;;  %9762 = vmatpush.bf16.msrb.mxu1 %v14738_v60  ;;  %v15853_v16 = vld [vmem:[#allocation10 + $0x5dc] sm:$0xf]  ;;  %v14403_v60 = vld [vmem:[#allocation10 + $0x5f0] sm:$0xf0] }
 0x6df   : > { %v14406_v56 = vor.u32 %v15853_v16, %v14403_v60  ;;  %v14121_v16 = vld [vmem:[#allocation10 + $0x3a0] sm:$0xf]  ;;  %v15785_v60 = vld [vmem:[#allocation10 + $0x3b4] sm:$0xf0] }
 0x6e0   : > { %9826 = vmatpush.bf16.msra.mxu2 %v14574_v36  ;;  %9839 = vmatpush.bf16.msra.mxu3 %v14766_v59  ;;  %v14617_v36 = vld [vmem:[#allocation10 + $0x788] sm:$0xf]  ;;  %v15910_v59 = vld [vmem:[#allocation10 + $0x79c] sm:$0xf0] }
 0x6e2   : > { %9750 = vmatpush.bf16.msrb.mxu0 %v14522_v57  ;;  %9763 = vmatpush.bf16.msrb.mxu1 %v14714_v25  ;;  %v14409_v57 = vld [vmem:[#allocation10 + $0x5e0] sm:$0xf]  ;;  %v15857_v25 = vld [vmem:[#allocation10 + $0x5f4] sm:$0xf0] }
 0x6e3   : > { %v14410_v13 = vor.u32 %v15857_v25, %v14409_v57  ;;  %v14122_v57 = vor.u32 %v15785_v60, %v14121_v16  ;;  %v14314_v25 = vor.u32 %v15833_v51, %v14313_v45  ;;  %v15758_v16 = vld [vmem:[#allocation10 + $0x2e4] sm:$0xf]  ;;  %v14027_v60 = vld [vmem:[#allocation10 + $0x2f8] sm:$0xf0]  ;;  %v15707_v51 = vld [vmem:[#allocation10 + $0x144] sm:$0xf0] }
 0x6e4   : > { %9827 = vmatpush.bf16.msra.mxu2 %v14550_v29  ;;  %9840 = vmatpush.bf16.msra.mxu3 %v14742_v44  ;;  %v14426_v29 = vor.u32 %v15862_v9, %v14425_v32  ;;  %v14618_v44 = vor.u32 %v15910_v59, %v14617_v36  ;;  %v14337_v32 = vld [vmem:[#allocation10 + $0x550] sm:$0xf]  ;;  %v15839_v9 = vld [vmem:[#allocation10 + $0x564] sm:$0xf0]  ;;  %v15781_v36 = vld [vmem:[#allocation10 + $0x39c] sm:$0xf] }
 0x6e5   : > { %v14115_v59 = vld [vmem:[#allocation10 + $0x3b0] sm:$0xf0] }
 0x6e6   : > { %9751 = vmatpush.bf16.msrb.mxu0 %v14498_v41  ;;  %9764 = vmatpush.bf16.msrb.mxu1 %v14690_v63  ;;  %v14190_v41 = vor.u32 %v15799_v26, %v14187_v17  ;;  %v14118_v47 = vor.u32 %v15781_v36, %v14115_v59  ;;  %v14097_v26 = vld [vmem:[#allocation10 + $0x370] sm:$0xf]  ;;  %v14286_v17 = vor.u32 %v15823_v37, %v14283_v54 }
 0x6e7   : > { %v14030_v54 = vor.u32 %v15758_v16, %v14027_v60  ;;  %v15734_v16 = vld [vmem:[#allocation10 + $0x224] sm:$0xf]  ;;  %v13931_v60 = vld [vmem:[#allocation10 + $0x238] sm:$0xf0] }
 0x6e8   : > { %9828 = vmatpush.bf16.msra.mxu2 %v14526_v50  ;;  %9841 = vmatpush.bf16.msra.mxu3 %v14718_v2  ;;  %v15847_v50 = vld [vmem:[#allocation10 + $0x5ac] sm:$0xf]  ;;  %v14379_v2 = vld [vmem:[#allocation10 + $0x5c0] sm:$0xf0] }
 0x6e9   : > { %v14382_v63 = vor.u32 %v15847_v50, %v14379_v2  ;;  %v14289_v50 = vld [vmem:[#allocation10 + $0x4f0] sm:$0xf]  ;;  %v15827_v2 = vld [vmem:[#allocation10 + $0x504] sm:$0xf0] }
 0x6ea   : > { %9752 = vmatpush.bf16.msrb.mxu0 %v14474_v28  ;;  %9765 = vmatpush.bf16.msrb.mxu1 %v14666_v24  ;;  %v14166_v28 = vor.u32 %v15793_v62, %v14163_v21  ;;  %v14290_v5 = vor.u32 %v15827_v2, %v14289_v50  ;;  %v14073_v62 = vld [vmem:[#allocation10 + $0x340] sm:$0xf]  ;;  %v15773_v21 = vld [vmem:[#allocation10 + $0x354] sm:$0xf0] }
 0x6eb   : > { %v13785_v50 = vld [vmem:[#allocation10 + $0x100] sm:$0xf] }
 0x6ec   : > { %9829 = vmatpush.bf16.msra.mxu2 %v14502_v30  ;;  %9842 = vmatpush.bf16.msra.mxu3 %v14694_v15  ;;  %v15841_v30 = vld [vmem:[#allocation10 + $0x57c] sm:$0xf]  ;;  %v14355_v15 = vld [vmem:[#allocation10 + $0x590] sm:$0xf0] }
 0x6ed   : > { %v14358_v24 = vor.u32 %v15841_v30, %v14355_v15  ;;  %v14265_v30 = vld [vmem:[#allocation10 + $0x4c0] sm:$0xf] }
 0x6ee   : > { %9753 = vmatpush.bf16.msrb.mxu0 %v14450_v42  ;;  %9766 = vmatpush.bf16.msrb.mxu1 %v14642_v4  ;;  %v14142_v42 = vor.u32 %v15787_v34, %v14139_v1  ;;  %v14025_v34 = vld [vmem:[#allocation10 + $0x2e0] sm:$0xf]  ;;  %v15761_v1 = vld [vmem:[#allocation10 + $0x2f4] sm:$0xf0] }
 0x6ef   : > { %v14026_v39 = vor.u32 %v15761_v1, %v14025_v34  ;;  %v15692_v34 = vld [vmem:[#allocation10 + $0xd4] sm:$0xf]  ;;  %v13763_v1 = vld [vmem:[#allocation10 + $0xe8] sm:$0xf0] }
 0x6f0   : > { %9830 = vmatpush.bf16.msra.mxu2 %v14478_v22  ;;  %9843 = vmatpush.bf16.msra.mxu3 %v14670_v58  ;;  %v15835_v22 = vld [vmem:[#allocation10 + $0x54c] sm:$0xf]  ;;  %v14331_v58 = vld [vmem:[#allocation10 + $0x560] sm:$0xf0] }
 0x6f1   : > { %v14334_v4 = vor.u32 %v15835_v22, %v14331_v58 }
 0x6f2   : > { %9754 = vmatpush.bf16.msrb.mxu0 %v14426_v29  ;;  %9767 = vmatpush.bf16.msrb.mxu1 %v14618_v44  ;;  %v15775_v29 = vld [vmem:[#allocation10 + $0x36c] sm:$0xf]  ;;  %v14091_v44 = vld [vmem:[#allocation10 + $0x380] sm:$0xf0] }
 0x6f4   : > { %9831 = vmatpush.bf16.msra.mxu2 %v14454_v43  ;;  %9844 = vmatpush.bf16.msra.mxu3 %v14646_v48  ;;  %v14146_v43 = vor.u32 %v15791_v40, %v14145_v20  ;;  %v14338_v48 = vor.u32 %v15839_v9, %v14337_v32  ;;  %v14049_v20 = vld [vmem:[#allocation10 + $0x310] sm:$0xf]  ;;  %v14046_v40 = vor.u32 %v15763_v35, %v14043_v53  ;;  %v15815_v9 = vld [vmem:[#allocation10 + $0x4a4] sm:$0xf0] }
 0x6f5   : > { %9755 = vmatmul.bf16.vlgmr.msrb.gmra.mxu0 %v17116_v11  ;;  %9768 = vmatmul.bf16.vlgmr.msrb.gmra.mxu1 %v17118_v61  ;;  %v14241_v32 = vld [vmem:[#allocation10 + $0x490] sm:$0xf]  ;;  %v15695_v53 = vld [vmem:[#allocation10 + $0xe4] sm:$0xf0] }
 0x6f6   : > { %9799 = vmatpush.bf16.msra.mxu0 %v14214_v38  ;;  %9812 = vmatpush.bf16.msra.mxu1 %v14406_v56  ;;  %v14242_v45 = vor.u32 %v15815_v9, %v14241_v32  ;;  %v13761_v35 = vld [vmem:[#allocation10 + $0xd0] sm:$0xf]  ;;  %v13929_v32 = vld [vmem:[#allocation10 + $0x220] sm:$0xf]  ;;  %v15737_v9 = vld [vmem:[#allocation10 + $0x234] sm:$0xf0] }
 0x6f8   : > { %9832 = vmatpush.bf16.msra.mxu2 %v14430_v46  ;;  %9845 = vmatpush.bf16.msra.mxu3 %v14622_v52  ;;  %v15779_v46 = vld [vmem:[#allocation10 + $0x384] sm:$0xf0]  ;;  %v14094_v52 = vor.u32 %v15775_v29, %v14091_v44  ;;  %v14001_v29 = vld [vmem:[#allocation10 + $0x2b0] sm:$0xf] }
 0x6f9   : > { %v14098_v8 = vor.u32 %v15779_v46, %v14097_v26  ;;  %v15755_v44 = vld [vmem:[#allocation10 + $0x2c4] sm:$0xf0] }
 0x6fa   : > { %9800 = vmatpush.bf16.msra.mxu0 %v14190_v41  ;;  %9813 = vmatpush.bf16.msra.mxu1 %v14382_v63  ;;  %v15817_v41 = vld [vmem:[#allocation10 + $0x4bc] sm:$0xf]  ;;  %v14259_v63 = vld [vmem:[#allocation10 + $0x4d0] sm:$0xf0]  ;;  %v14002_v46 = vor.u32 %v15755_v44, %v14001_v29  ;;  %v17152_v29 = vld [vmem:[#allocation12] sm:$0x3f] }
 0x6fb   : > { %9833 = vmatmul.bf16.vlgmr.msra.gmra.mxu2 %v17116_v11  ;;  %9846 = vmatmul.bf16.vlgmr.msra.gmra.mxu3 %v17118_v61 }
 0x6fc   : > { %9877 = vmatpush.bf16.msrb.mxu2 %v14218_v6  ;;  %9890 = vmatpush.bf16.msrb.mxu3 %v14410_v13  ;;  %v15769_v6 = vld [vmem:[#allocation10 + $0x33c] sm:$0xf] }
 0x6fd   : > { %v14070_v15 = vor.u32 %v15769_v6, %v14067_v23  ;;  %v15701_v23 = vld [vmem:[#allocation10 + $0x114] sm:$0xf0] }
 0x6fe   : > { %9801 = vmatpush.bf16.msra.mxu0 %v14166_v28  ;;  %9814 = vmatpush.bf16.msra.mxu1 %v14358_v24  ;;  %v17136_v38 = vpop.f32.mrf.mxu2  ;;  %v17138_v56 = vpop.f32.mrf.mxu3  ;;  %v15811_v28 = vld [vmem:[#allocation10 + $0x48c] sm:$0xf]  ;;  %v14235_v24 = vld [vmem:[#allocation10 + $0x4a0] sm:$0xf0] }
 0x700   : > { %9878 = vmatpush.bf16.msrb.mxu2 %v14194_v19  ;;  %9891 = vmatpush.bf16.msrb.mxu3 %v14386_v10  ;;  %v17140_v13 = vpop.f32.mrf.mxu0  ;;  %v17142_v0 = vpop.f32.mrf.mxu1  ;;  %v14262_v19 = vor.u32 %v15817_v41, %v14259_v63  ;;  %v15821_v10 = vld [vmem:[#allocation10 + $0x4d4] sm:$0xf0]  ;;  %v13977_v41 = vld [vmem:[#allocation10 + $0x280] sm:$0xf] }
 0x701   : > { %v15749_v63 = vld [vmem:[#allocation10 + $0x294] sm:$0xf0] }
 0x702   : > { %9802 = vmatpush.bf16.msra.mxu0 %v14142_v42  ;;  %9815 = vmatpush.bf16.msra.mxu1 %v14334_v4  ;;  %v14238_v42 = vor.u32 %v15811_v28, %v14235_v24  ;;  %v15767_v4 = vld [vmem:[#allocation10 + $0x324] sm:$0xf0]  ;;  %v13953_v28 = vld [vmem:[#allocation10 + $0x250] sm:$0xf] }
 0x703   : > { %v15743_v24 = vld [vmem:[#allocation10 + $0x264] sm:$0xf0] }
 0x704   : > { %9879 = vmatpush.bf16.msrb.mxu2 %v14170_v49  ;;  %9892 = vmatpush.bf16.msrb.mxu3 %v14362_v18  ;;  %v14074_v49 = vor.u32 %v15773_v21, %v14073_v62  ;;  %v14266_v18 = vor.u32 %v15821_v10, %v14265_v30  ;;  %v15698_v62 = vld [vmem:[#allocation10 + $0x104] sm:$0xf]  ;;  %v13787_v21 = vld [vmem:[#allocation10 + $0x118] sm:$0xf0]  ;;  %v13786_v30 = vor.u32 %v15701_v23, %v13785_v50  ;;  %v15677_v50 = vld [vmem:[#allocation10 + $0x54] sm:$0xf0] }
 0x705   : > { %v13979_v10 = vld [vmem:[#allocation10 + $0x298] sm:$0xf0]  ;;  %v13790_v27 = vor.u32 %v15698_v62, %v13787_v21  ;;  %v13881_v23 = vld [vmem:[#allocation10 + $0x1c0] sm:$0xf]  ;;  %v15674_v62 = vld [vmem:[#allocation10 + $0x44] sm:$0xf] }
 0x706   : > { %9803 = vmatpush.bf16.msra.mxu0 %v14118_v47  ;;  %9816 = vmatpush.bf16.msra.mxu1 %v14310_v33  ;;  %v9576_v22 = vpop.f32.mrf.mxu2  ;;  %v9589_v58 = vpop.f32.mrf.mxu3  ;;  %v13809_v47 = vld [vmem:[#allocation10 + $0x130] sm:$0xf]  ;;  %v14050_v33 = vor.u32 %v15767_v4, %v14049_v20  ;;  %v13737_v20 = vld [vmem:[#allocation10 + $0xa0] sm:$0xf]  ;;  %v15689_v4 = vld [vmem:[#allocation10 + $0xb4] sm:$0xf0] }
 0x707   : > { %v13810_v26 = vor.u32 %v15707_v51, %v13809_v47  ;;  %v13762_v22 = vor.u32 %v15695_v53, %v13761_v35  ;;  %v13954_v58 = vor.u32 %v15743_v24, %v13953_v28  ;;  %v13713_v47 = vld [vmem:[#allocation10 + $0x70] sm:$0xf]  ;;  %v15731_v51 = vld [vmem:[#allocation10 + $0x204] sm:$0xf0]  ;;  %v13691_v21 = vld [vmem:[#allocation10 + $0x58] sm:$0xf0] }
 0x708   : > { %9880 = vmatpush.bf16.msrb.mxu2 %v14146_v43  ;;  %9893 = vmatpush.bf16.msrb.mxu3 %v14338_v48  ;;  %v9550_v36 = vpop.f32.mrf.mxu0  ;;  %v9563_v59 = vpop.f32.mrf.mxu1  ;;  %v15710_v43 = vld [vmem:[#allocation10 + $0x164] sm:$0xf]  ;;  %v13835_v48 = vld [vmem:[#allocation10 + $0x178] sm:$0xf0]  ;;  %v13665_v35 = vld [vmem:[#allocation10 + $0x10] sm:$0xf] }
 0x709   : > { %v13838_v37 = vor.u32 %v15710_v43, %v13835_v48  ;;  %v13766_v36 = vor.u32 %v15692_v34, %v13763_v1  ;;  %v13738_v43 = vor.u32 %v15689_v4, %v13737_v20  ;;  %v13930_v48 = vor.u32 %v15737_v9, %v13929_v32  ;;  %v15671_v53 = vld [vmem:[#allocation10 + $0x24] sm:$0xf0]  ;;  %v13857_v28 = vld [vmem:[#allocation10 + $0x190] sm:$0xf]  ;;  %v15905_v34 = vld [vmem:[#allocation10 + $0x774] sm:$0xf0] }
 0x70a   : > { %9804 = vmatpush.bf16.msra.mxu0 %v14094_v52  ;;  %9817 = vmatpush.bf16.msra.mxu1 %v14286_v17  ;;  %v15752_v52 = vld [vmem:[#allocation10 + $0x2b4] sm:$0xf]  ;;  %v14003_v17 = vld [vmem:[#allocation10 + $0x2c8] sm:$0xf0]  ;;  %v15719_v24 = vld [vmem:[#allocation10 + $0x1a4] sm:$0xf0]  ;;  %v13666_v20 = vor.u32 %v15671_v53, %v13665_v35 }
 0x70b   : > { %v14793_v1 = vld [vmem:[#allocation10 + $0x8e0] sm:$0xf]  ;;  %v15716_v4 = vld [vmem:[#allocation10 + $0x194] sm:$0xf]  ;;  %v13859_v32 = vld [vmem:[#allocation10 + $0x1a8] sm:$0xf0] }
 0x70c   : > { %9881 = vmatpush.bf16.msrb.mxu2 %v14122_v57  ;;  %9894 = vmatpush.bf16.msrb.mxu3 %v14314_v25  ;;  %v15704_v57 = vld [vmem:[#allocation10 + $0x134] sm:$0xf]  ;;  %v13811_v25 = vld [vmem:[#allocation10 + $0x148] sm:$0xf0]  ;;  %v15887_v53 = vld [vmem:[#allocation10 + $0x6e4] sm:$0xf0] }
 0x70e   : > { %9805 = vmatpush.bf16.msra.mxu0 %v14070_v15  ;;  %9818 = vmatpush.bf16.msra.mxu1 %v14262_v19  ;;  %v17144_v2 = vpop.f32.mrf.mxu2  ;;  %v17146_v6 = vpop.f32.mrf.mxu3  ;;  %v13978_v15 = vor.u32 %v15749_v63, %v13977_v41  ;;  %v15746_v19 = vld [vmem:[#allocation10 + $0x284] sm:$0xf]  ;;  %v15725_v41 = vld [vmem:[#allocation10 + $0x1d4] sm:$0xf0]  ;;  %v8066_v63 = vperm.slane %v17152_v29, 0 }
 0x70f   : > { %v13982_v31 = vor.u32 %v15746_v19, %v13979_v10  ;;  %v13882_v19 = vor.u32 %v15725_v41, %v13881_v23  ;;  %v13883_v10 = vld [vmem:[#allocation10 + $0x1d8] sm:$0xf0]  ;;  %v15941_v23 = vld [vmem:[#allocation10 + $0x894] sm:$0xf0] }
 0x710   : > { %9882 = vmatpush.bf16.msrb.mxu2 %v14098_v8  ;;  %9895 = vmatpush.bf16.msrb.mxu3 %v14290_v5  ;;  %v13814_v8 = vor.u32 %v15704_v57, %v13811_v25  ;;  %v14006_v5 = vor.u32 %v15752_v52, %v14003_v17  ;;  %v13715_v57 = vld [vmem:[#allocation10 + $0x88] sm:$0xf0]  ;;  %v13689_v17 = vld [vmem:[#allocation10 + $0x40] sm:$0xf] }
 0x711   : > { %v13907_v52 = vld [vmem:[#allocation10 + $0x208] sm:$0xf0] }
 0x712   : > { %9806 = vmatpush.bf16.msra.mxu0 %v14046_v40  ;;  %9819 = vmatpush.bf16.msra.mxu1 %v14238_v42 }
 0x714   : > { %9883 = vmatpush.bf16.msrb.mxu2 %v14074_v49  ;;  %9896 = vmatpush.bf16.msrb.mxu3 %v14266_v18  ;;  %v15740_v49 = vld [vmem:[#allocation10 + $0x254] sm:$0xf]  ;;  %v13955_v18 = vld [vmem:[#allocation10 + $0x268] sm:$0xf0] }
 0x715   : > { %9807 = vmatmul.bf16.vlgmr.msra.gmra.mxu0 %v17092_v3  ;;  %9820 = vmatmul.bf16.vlgmr.msra.gmra.mxu1 %v17094_v7  ;;  %v13958_v59 = vor.u32 %v15740_v49, %v13955_v18  ;;  %v15668_v18 = vld [vmem:[#allocation10 + $0x14] sm:$0xf] }
 0x716   : > { %9851 = vmatpush.bf16.msrb.mxu0 %v13834_v55  ;;  %9864 = vmatpush.bf16.msrb.mxu1 %v14026_v39  ;;  %v9628_v40 = vpop.f32.mrf.mxu2  ;;  %v9641_v42 = vpop.f32.mrf.mxu3  ;;  %v15686_v55 = vld [vmem:[#allocation10 + $0xa4] sm:$0xf]  ;;  %v13739_v39 = vld [vmem:[#allocation10 + $0xb8] sm:$0xf0] }
 0x717   : > { %v13742_v44 = vor.u32 %v15686_v55, %v13739_v39  ;;  %v13858_v40 = vor.u32 %v15719_v24, %v13857_v28  ;;  %v13667_v42 = vld [vmem:[#allocation10 + $0x28] sm:$0xf0]  ;;  %v14603_v55 = vld [vmem:[#allocation10 + $0x778] sm:$0xf0]  ;;  %v15950_v39 = vld [vmem:[#allocation10 + $0x8e4] sm:$0xf] }
 0x718   : > { %9884 = vmatpush.bf16.msrb.mxu2 %v14050_v33  ;;  %9897 = vmatpush.bf16.msrb.mxu3 %v14242_v45  ;;  %v15683_v33 = vld [vmem:[#allocation10 + $0x84] sm:$0xf0]  ;;  %v13905_v45 = vld [vmem:[#allocation10 + $0x1f0] sm:$0xf] }
 0x719   : > { %v13714_v25 = vor.u32 %v15683_v33, %v13713_v47  ;;  %v15899_v47 = vld [vmem:[#allocation10 + $0x744] sm:$0xf0]  ;;  %v14769_v33 = vld [vmem:[#allocation10 + $0x8b0] sm:$0xf] }
 0x71a   : > { %9852 = vmatpush.bf16.msrb.mxu0 %v13810_v26  ;;  %9865 = vmatpush.bf16.msrb.mxu1 %v14002_v46  ;;  %v13906_v26 = vor.u32 %v15731_v51, %v13905_v45  ;;  %v15728_v46 = vld [vmem:[#allocation10 + $0x1f4] sm:$0xf]  ;;  %v15947_v45 = vld [vmem:[#allocation10 + $0x8c4] sm:$0xf0]  ;;  %v14721_v28 = vld [vmem:[#allocation10 + $0x850] sm:$0xf] }
 0x71b   : > { %9885 = vmatmul.bf16.vlgmr.msrb.gmra.mxu2 %v17092_v3  ;;  %9898 = vmatmul.bf16.vlgmr.msrb.gmra.mxu3 %v17094_v7  ;;  %v15935_v24 = vld [vmem:[#allocation10 + $0x864] sm:$0xf0] }
 0x71c   : > { %9929 = vmatpush.bf16.msra.mxu2 %v13838_v37  ;;  %9942 = vmatpush.bf16.msra.mxu3 %v14030_v54  ;;  %v13934_v37 = vor.u32 %v15734_v16, %v13931_v60  ;;  %v15680_v54 = vld [vmem:[#allocation10 + $0x74] sm:$0xf]  ;;  %v13670_v16 = vor.u32 %v15668_v18, %v13667_v42  ;;  %v13862_v60 = vor.u32 %v15716_v4, %v13859_v32  ;;  %v14505_v18 = vld [vmem:[#allocation10 + $0x6a0] sm:$0xf]  ;;  %v15929_v42 = vld [vmem:[#allocation10 + $0x834] sm:$0xf0] }
 0x71d   : > { %v8067_v4 = vperm.slane %v17152_v29, 1 }
 0x71e   : > { %9853 = vmatpush.bf16.msrb.mxu0 %v13786_v30  ;;  %9866 = vmatpush.bf16.msrb.mxu1 %v13978_v15  ;;  %v15722_v30 = vld [vmem:[#allocation10 + $0x1c4] sm:$0xf]  ;;  %v13690_v15 = vor.u32 %v15677_v50, %v13689_v17  ;;  %v15893_v17 = vld [vmem:[#allocation10 + $0x714] sm:$0xf0]  ;;  %v14745_v50 = vld [vmem:[#allocation10 + $0x880] sm:$0xf] }
 0x71f   : > { %v13886_v49 = vor.u32 %v15722_v30, %v13883_v10  ;;  %v15938_v30 = vld [vmem:[#allocation10 + $0x884] sm:$0xf] }
 0x720   : > { %9930 = vmatpush.bf16.msra.mxu2 %v13814_v8  ;;  %9943 = vmatpush.bf16.msra.mxu3 %v14006_v5  ;;  %v13718_v8 = vor.u32 %v15680_v54, %v13715_v57  ;;  %v13910_v5 = vor.u32 %v15728_v46, %v13907_v52  ;;  %v14579_v54 = vld [vmem:[#allocation10 + $0x748] sm:$0xf0]  ;;  %v14553_v52 = vld [vmem:[#allocation10 + $0x700] sm:$0xf] }
 0x721   : > { %v14771_v46 = vld [vmem:[#allocation10 + $0x8c8] sm:$0xf0] }
 0x722   : > { %9854 = vmatpush.bf16.msrb.mxu0 %v13762_v22  ;;  %9867 = vmatpush.bf16.msrb.mxu1 %v13954_v58  ;;  %v15953_v22 = vld [vmem:[#allocation10 + $0x8f4] sm:$0xf0]  ;;  %v13694_v58 = vor.u32 %v15674_v62, %v13691_v21  ;;  %v14746_v62 = vor.u32 %v15941_v23, %v14745_v50  ;;  %v9627_v50 = vadd.f32 %v17144_v2, %v8067_v4  ;;  %v14627_v4 = vld [vmem:[#allocation10 + $0x7a8] sm:$0xf0] }
 0x723   : > { %v15869_v23 = vld [vmem:[#allocation10 + $0x654] sm:$0xf0] }
 0x724   : > { %9931 = vmatpush.bf16.msra.mxu2 %v13790_v27  ;;  %9944 = vmatpush.bf16.msra.mxu3 %v13982_v31  ;;  %v14601_v27 = vld [vmem:[#allocation10 + $0x760] sm:$0xf]  ;;  %v9549_v31 = vadd.f32 %v17140_v13, %v8066_v63  ;;  %v9640_v2 = vadd.f32 %v17146_v6, %v9627_v50  ;;  %v15908_v6 = vld [vmem:[#allocation10 + $0x794] sm:$0xf] }
 0x725   : > { %v14602_v9 = vor.u32 %v15905_v34, %v14601_v27  ;;  %v15836_v50 = vld [vmem:[#allocation10 + $0x554] sm:$0xf] }
 0x726   : > { %9855 = vmatpush.bf16.msrb.mxu0 %v13738_v43  ;;  %9868 = vmatpush.bf16.msrb.mxu1 %v13930_v48  ;;  %v9562_v13 = vadd.f32 %v17142_v0, %v9549_v31  ;;  %v14795_v43 = vld [vmem:[#allocation10 + $0x8f8] sm:$0xf0]  ;;  %v14577_v48 = vld [vmem:[#allocation10 + $0x730] sm:$0xf] }
 0x727   : > { %v14578_v57 = vor.u32 %v15899_v47, %v14577_v48  ;;  %v15926_v48 = vld [vmem:[#allocation10 + $0x824] sm:$0xf] }
 0x728   : > { %9932 = vmatpush.bf16.msra.mxu2 %v13766_v36  ;;  %9945 = vmatpush.bf16.msra.mxu3 %v13958_v59  ;;  %v14794_v36 = vor.u32 %v15953_v22, %v14793_v1  ;;  %v15902_v59 = vld [vmem:[#allocation10 + $0x764] sm:$0xf]  ;;  %v9575_v0 = vadd.f32 %v17136_v38, %v9562_v13  ;;  %v14555_v38 = vld [vmem:[#allocation10 + $0x718] sm:$0xf0]  ;;  %v15884_v1 = vld [vmem:[#allocation10 + $0x6d4] sm:$0xf] }
 0x729   : > { %v14606_v51 = vor.u32 %v15902_v59, %v14603_v55  ;;  %v14507_v59 = vld [vmem:[#allocation10 + $0x6b8] sm:$0xf0] }
 0x72a   : > { %9856 = vmatpush.bf16.msrb.mxu0 %v13714_v25  ;;  %9869 = vmatpush.bf16.msrb.mxu1 %v13906_v26  ;;  %v14770_v25 = vor.u32 %v15947_v45, %v14769_v33  ;;  %v15944_v26 = vld [vmem:[#allocation10 + $0x8b4] sm:$0xf]  ;;  %v9588_v21 = vadd.f32 %v17138_v56, %v9575_v0  ;;  %v14531_v56 = vld [vmem:[#allocation10 + $0x6e8] sm:$0xf0]  ;;  %v15875_v45 = vld [vmem:[#allocation10 + $0x684] sm:$0xf0] }
 0x72b   : > { %v14774_v63 = vor.u32 %v15944_v26, %v14771_v46  ;;  %v14534_v32 = vor.u32 %v15884_v1, %v14531_v56  ;;  %v15872_v0 = vld [vmem:[#allocation10 + $0x674] sm:$0xf]  ;;  %v14219_v56 = vld [vmem:[#allocation10 + $0x478] sm:$0xf0] }
 0x72c   : > { %9933 = vmatpush.bf16.msra.mxu2 %v13742_v44  ;;  %9946 = vmatpush.bf16.msra.mxu3 %v13934_v37  ;;  %v14798_v44 = vor.u32 %v15950_v39, %v14795_v43  ;;  %v15896_v37 = vld [vmem:[#allocation10 + $0x734] sm:$0xf] }
 0x72d   : > { %v14582_v41 = vor.u32 %v15896_v37, %v14579_v54  ;;  %v15920_v46 = vld [vmem:[#allocation10 + $0x7f4] sm:$0xf] }
 0x72e   : > { %9857 = vmatpush.bf16.msrb.mxu0 %v13690_v15  ;;  %9870 = vmatpush.bf16.msrb.mxu1 %v13882_v19  ;;  %v14747_v15 = vld [vmem:[#allocation10 + $0x898] sm:$0xf0]  ;;  %v14529_v19 = vld [vmem:[#allocation10 + $0x6d0] sm:$0xf] }
 0x72f   : > { %v14750_v34 = vor.u32 %v15938_v30, %v14747_v15 }
 0x730   : > { %9934 = vmatpush.bf16.msra.mxu2 %v13718_v8  ;;  %9947 = vmatpush.bf16.msra.mxu3 %v13910_v5  ;;  %v15890_v8 = vld [vmem:[#allocation10 + $0x704] sm:$0xf]  ;;  %v14554_v5 = vor.u32 %v15893_v17, %v14553_v52  ;;  %v9600_v10 = vpop.f32.mrf.mxu0  ;;  %v9613_v35 = vpop.f32.mrf.mxu1  ;;  %v14675_v52 = vld [vmem:[#allocation10 + $0x808] sm:$0xf0]  ;;  %v14457_v17 = vld [vmem:[#allocation10 + $0x640] sm:$0xf] }
 0x731   : > { %v9601_v27 = vadd.f32 %v9600_v10, %v9588_v21  ;;  %v14558_v31 = vor.u32 %v15890_v8, %v14555_v38  ;;  %v14678_v38 = vor.u32 %v15920_v46, %v14675_v52  ;;  %v15914_v21 = vld [vmem:[#allocation10 + $0x7c4] sm:$0xf]  ;;  %v15788_v52 = vld [vmem:[#allocation10 + $0x3d4] sm:$0xf] }
 0x732   : > { %9858 = vmatpush.bf16.msrb.mxu0 %v13666_v20  ;;  %9871 = vmatpush.bf16.msrb.mxu1 %v13858_v40  ;;  %v15881_v20 = vld [vmem:[#allocation10 + $0x6b4] sm:$0xf0]  ;;  %v14697_v40 = vld [vmem:[#allocation10 + $0x820] sm:$0xf] }
 0x733   : > { %v9614_v22 = vadd.f32 %v9613_v35, %v9601_v27  ;;  %v14506_v39 = vor.u32 %v15881_v20, %v14505_v18  ;;  %v14698_v43 = vor.u32 %v15929_v42, %v14697_v40  ;;  %v14651_v35 = vld [vmem:[#allocation10 + $0x7d8] sm:$0xf0]  ;;  %v15911_v27 = vld [vmem:[#allocation10 + $0x7a4] sm:$0xf0]  ;;  %v15860_v18 = vld [vmem:[#allocation10 + $0x614] sm:$0xf] }
 0x734   : > { %9935 = vmatpush.bf16.msra.mxu2 %v13694_v58  ;;  %9948 = vmatpush.bf16.msra.mxu3 %v13886_v49  ;;  %v14530_v58 = vor.u32 %v15887_v53, %v14529_v19  ;;  %v15932_v49 = vld [vmem:[#allocation10 + $0x854] sm:$0xf]  ;;  %v14458_v19 = vor.u32 %v15869_v23, %v14457_v17  ;;  %v14433_v53 = vld [vmem:[#allocation10 + $0x610] sm:$0xf]  ;;  %v14435_v42 = vld [vmem:[#allocation10 + $0x628] sm:$0xf0] }
 0x735   : > { %9859 = vmatmul.bf16.vlgmr.msrb.gmra.mxu0 %v17100_v14  ;;  %9872 = vmatmul.bf16.vlgmr.msrb.gmra.mxu1 %v17102_v12  ;;  %10007 = vst [vmem:[%s17165_s29] sm:$0xff] %v9614_v22  ;;  %v15854_v22 = vld [vmem:[#allocation10 + $0x5e4] sm:$0xf]  ;;  %v14147_v17 = vld [vmem:[#allocation10 + $0x3e8] sm:$0xf0] }
 0x736   : > { %9903 = vmatpush.bf16.msra.mxu0 %v14602_v9  ;;  %9916 = vmatpush.bf16.msra.mxu1 %v14794_v36  ;;  %v15878_v36 = vld [vmem:[#allocation10 + $0x6a4] sm:$0xf]  ;;  %v14339_v23 = vld [vmem:[#allocation10 + $0x568] sm:$0xf0] }
 0x737   : > { %v14510_v37 = vor.u32 %v15878_v36, %v14507_v59  ;;  %v15800_v59 = vld [vmem:[#allocation10 + $0x434] sm:$0xf] }
 0x738   : > { %9936 = vmatpush.bf16.msra.mxu2 %v13670_v16  ;;  %9949 = vmatpush.bf16.msra.mxu3 %v13862_v60  ;;  %v17169_v55 = vpop.f32.mrf.mxu2  ;;  %v17171_v13 = vpop.f32.mrf.mxu3  ;;  %v14699_v16 = vld [vmem:[#allocation10 + $0x838] sm:$0xf0]  ;;  %v14481_v60 = vld [vmem:[#allocation10 + $0x670] sm:$0xf] }
 0x739   : > { %v9602_v47 = vpop.f32.mrf.mxu0  ;;  %v9615_v33 = vpop.f32.mrf.mxu1  ;;  %v14702_v54 = vor.u32 %v15926_v48, %v14699_v16  ;;  %v14387_v48 = vld [vmem:[#allocation10 + $0x5c8] sm:$0xf0] }
 0x73a   : > { %9904 = vmatpush.bf16.msra.mxu0 %v14578_v57  ;;  %9917 = vmatpush.bf16.msra.mxu1 %v14770_v25  ;;  %v14483_v57 = vld [vmem:[#allocation10 + $0x688] sm:$0xf0]  ;;  %v14482_v25 = vor.u32 %v15875_v45, %v14481_v60  ;;  %v14438_v60 = vor.u32 %v15860_v18, %v14435_v42  ;;  %v14630_v47 = vor.u32 %v15908_v6, %v14627_v4  ;;  %v15812_v42 = vld [vmem:[#allocation10 + $0x494] sm:$0xf] }
 0x73b   : > { %9937 = vmatmul.bf16.vlgmr.msra.gmra.mxu2 %v17100_v14  ;;  %9950 = vmatmul.bf16.vlgmr.msra.gmra.mxu3 %v17102_v12  ;;  %v14722_v14 = vor.u32 %v15935_v24, %v14721_v28  ;;  %v14723_v12 = vld [vmem:[#allocation10 + $0x868] sm:$0xf0]  ;;  %v14486_v8 = vor.u32 %v15872_v0, %v14483_v57  ;;  %v15863_v28 = vld [vmem:[#allocation10 + $0x624] sm:$0xf0]  ;;  %v14625_v24 = vld [vmem:[#allocation10 + $0x790] sm:$0xf] }
 0x73c   : > { %9981 = vmatpush.bf16.msrb.mxu2 %v14606_v51  ;;  %9994 = vmatpush.bf16.msrb.mxu3 %v14798_v44  ;;  %v14726_v9 = vor.u32 %v15932_v49, %v14723_v12  ;;  %v14673_v51 = vld [vmem:[#allocation10 + $0x7f0] sm:$0xf]  ;;  %v15923_v44 = vld [vmem:[#allocation10 + $0x804] sm:$0xf0]  ;;  %v14654_v12 = vor.u32 %v15914_v21, %v14651_v35  ;;  %v14434_v20 = vor.u32 %v15863_v28, %v14433_v53  ;;  %v14171_v0 = vld [vmem:[#allocation10 + $0x418] sm:$0xf0] }
 0x73d   : > { %v14674_v26 = vor.u32 %v15923_v44, %v14673_v51  ;;  %v14626_v40 = vor.u32 %v15911_v27, %v14625_v24  ;;  %v15794_v44 = vld [vmem:[#allocation10 + $0x404] sm:$0xf]  ;;  %v14363_v57 = vld [vmem:[#allocation10 + $0x598] sm:$0xf0]  ;;  %v14099_v35 = vld [vmem:[#allocation10 + $0x388] sm:$0xf0] }
 0x73e   : > { %9905 = vmatpush.bf16.msra.mxu0 %v14554_v5  ;;  %9918 = vmatpush.bf16.msra.mxu1 %v14746_v62  ;;  %v15866_v5 = vld [vmem:[#allocation10 + $0x644] sm:$0xf]  ;;  %v14459_v62 = vld [vmem:[#allocation10 + $0x658] sm:$0xf0]  ;;  %v15824_v53 = vld [vmem:[#allocation10 + $0x4f4] sm:$0xf] }
 0x73f   : > { %v14462_v49 = vor.u32 %v15866_v5, %v14459_v62  ;;  %v14123_v62 = vld [vmem:[#allocation10 + $0x3b8] sm:$0xf0]  ;;  %v15830_v21 = vld [vmem:[#allocation10 + $0x524] sm:$0xf]  ;;  %v14291_v28 = vld [vmem:[#allocation10 + $0x508] sm:$0xf0] }
 0x740   : > { %9982 = vmatpush.bf16.msrb.mxu2 %v14582_v41  ;;  %9995 = vmatpush.bf16.msrb.mxu3 %v14774_v63  ;;  %v14649_v41 = vld [vmem:[#allocation10 + $0x7c0] sm:$0xf]  ;;  %v15917_v63 = vld [vmem:[#allocation10 + $0x7d4] sm:$0xf0]  ;;  %v9680_v30 = vpop.f32.mrf.mxu2  ;;  %v9693_v15 = vpop.f32.mrf.mxu3  ;;  %v14294_v24 = vor.u32 %v15824_v53, %v14291_v28  ;;  %v15770_v27 = vld [vmem:[#allocation10 + $0x344] sm:$0xf] }
 0x741   : > { %v14650_v10 = vor.u32 %v15917_v63, %v14649_v41  ;;  %v9665_v1 = vpop.f32.mrf.mxu1  ;;  %v14150_v41 = vor.u32 %v15788_v52, %v14147_v17  ;;  %v14342_v63 = vor.u32 %v15836_v50, %v14339_v23  ;;  %v14315_v30 = vld [vmem:[#allocation10 + $0x538] sm:$0xf0]  ;;  %v14243_v6 = vld [vmem:[#allocation10 + $0x4a8] sm:$0xf0] }
 0x742   : > { %9906 = vmatpush.bf16.msra.mxu0 %v14530_v58  ;;  %9919 = vmatpush.bf16.msra.mxu1 %v14722_v14  ;;  %v14411_v58 = vld [vmem:[#allocation10 + $0x5f8] sm:$0xf0] }
 0x743   : > { %v14414_v36 = vor.u32 %v15854_v22, %v14411_v58 }
 0x744   : > { %9983 = vmatpush.bf16.msrb.mxu2 %v14558_v31  ;;  %9996 = vmatpush.bf16.msrb.mxu3 %v14750_v34  ;;  %v15806_v31 = vld [vmem:[#allocation10 + $0x464] sm:$0xf]  ;;  %v9652_v34 = vpop.f32.mrf.mxu0 }
 0x745   : > { %v9653_v14 = vadd.f32 %v9652_v34, %v9640_v2  ;;  %v15818_v34 = vld [vmem:[#allocation10 + $0x4c4] sm:$0xf] }
 0x746   : > { %9907 = vmatpush.bf16.msra.mxu0 %v14506_v39  ;;  %9920 = vmatpush.bf16.msra.mxu1 %v14698_v43  ;;  %v14195_v39 = vld [vmem:[#allocation10 + $0x448] sm:$0xf0]  ;;  %v15848_v43 = vld [vmem:[#allocation10 + $0x5b4] sm:$0xf] }
 0x747   : > { %v14198_v45 = vor.u32 %v15800_v59, %v14195_v39  ;;  %v14390_v51 = vor.u32 %v15848_v43, %v14387_v48 }
 0x748   : > { %9984 = vmatpush.bf16.msrb.mxu2 %v14534_v32  ;;  %9997 = vmatpush.bf16.msrb.mxu3 %v14726_v9  ;;  %v9666_v32 = vadd.f32 %v9665_v1, %v9653_v14  ;;  %v14222_v9 = vor.u32 %v15806_v31, %v14219_v56  ;;  %v14075_v31 = vld [vmem:[#allocation10 + $0x358] sm:$0xf0] }
 0x749   : > { %v14267_v1 = vld [vmem:[#allocation10 + $0x4d8] sm:$0xf0] }
 0x74a   : > { %9908 = vmatpush.bf16.msra.mxu0 %v14482_v25  ;;  %9921 = vmatpush.bf16.msra.mxu1 %v14674_v26  ;;  %v9679_v16 = vadd.f32 %v17169_v55, %v9666_v32  ;;  %v15842_v55 = vld [vmem:[#allocation10 + $0x584] sm:$0xf]  ;;  %v9667_v26 = vpop.f32.mrf.mxu1  ;;  %v14270_v18 = vor.u32 %v15818_v34, %v14267_v1  ;;  %v14246_v32 = vor.u32 %v15812_v42, %v14243_v6 }
 0x74b   : > { %v14366_v46 = vor.u32 %v15842_v55, %v14363_v57 }
 0x74c   : > { %9985 = vmatpush.bf16.msrb.mxu2 %v14510_v37  ;;  %9998 = vmatpush.bf16.msrb.mxu3 %v14702_v54  ;;  %v9692_v33 = vadd.f32 %v17171_v13, %v9679_v16  ;;  %v17177_v37 = vpop.f32.mrf.mxu2  ;;  %v17179_v54 = vpop.f32.mrf.mxu3  ;;  %v14174_v13 = vor.u32 %v15794_v44, %v14171_v0 }
 0x74d   : > { %v9654_v25 = vpop.f32.mrf.mxu0 }
 0x74e   : > { %9909 = vmatpush.bf16.msra.mxu0 %v14458_v19  ;;  %9922 = vmatpush.bf16.msra.mxu1 %v14650_v10  ;;  %10008 = vst [vmem:[%s17165_s29 + $0x8] sm:$0xff] %v9692_v33  ;;  %v14318_v10 = vor.u32 %v15830_v21, %v14315_v30 }
 0x750   : > { %9986 = vmatpush.bf16.msrb.mxu2 %v14486_v8  ;;  %9999 = vmatpush.bf16.msrb.mxu3 %v14678_v38  ;;  %v15782_v8 = vld [vmem:[#allocation10 + $0x3a4] sm:$0xf] }
 0x752   : > { %9910 = vmatpush.bf16.msra.mxu0 %v14434_v20  ;;  %9923 = vmatpush.bf16.msra.mxu1 %v14626_v40  ;;  %v9717_v19 = vpop.f32.mrf.mxu1  ;;  %v15764_v20 = vld [vmem:[#allocation10 + $0x314] sm:$0xf]  ;;  %v14051_v40 = vld [vmem:[#allocation10 + $0x328] sm:$0xf0] }
 0x753   : > { %v14054_v4 = vor.u32 %v15764_v20, %v14051_v40 }
 0x754   : > { %9987 = vmatpush.bf16.msrb.mxu2 %v14462_v49  ;;  %10000 = vmatpush.bf16.msrb.mxu3 %v14654_v12  ;;  %v9732_v38 = vpop.f32.mrf.mxu2  ;;  %v9745_v5 = vpop.f32.mrf.mxu3  ;;  %v8068_v49 = vperm.slane %v17152_v29, 2  ;;  %v14078_v12 = vor.u32 %v15770_v27, %v14075_v31 }
 0x755   : > { %9911 = vmatmul.bf16.vlgmr.msra.gmra.mxu0 %v17116_v11  ;;  %9924 = vmatmul.bf16.vlgmr.msra.gmra.mxu1 %v17118_v61  ;;  %v9704_v15 = vpop.f32.mrf.mxu0 }
 0x756   : > { %9955 = vmatpush.bf16.msrb.mxu0 %v14222_v9  ;;  %9968 = vmatpush.bf16.msrb.mxu1 %v14414_v36  ;;  %v9705_v9 = vadd.f32 %v9704_v15, %v8068_v49  ;;  %v8071_v49 = vperm.slane %v17152_v29, 5 }
 0x758   : > { %9988 = vmatpush.bf16.msrb.mxu2 %v14438_v60  ;;  %10001 = vmatpush.bf16.msrb.mxu3 %v14630_v47  ;;  %v9718_v39 = vadd.f32 %v9717_v19, %v9705_v9  ;;  %v8070_v19 = vperm.slane %v17152_v29, 4 }
 0x75a   : > { %9956 = vmatpush.bf16.msrb.mxu0 %v14198_v45  ;;  %9969 = vmatpush.bf16.msrb.mxu1 %v14390_v51  ;;  %v9719_v14 = vpop.f32.mrf.mxu1  ;;  %v9731_v43 = vadd.f32 %v17177_v37, %v9718_v39 }
 0x75b   : > { %9989 = vmatmul.bf16.vlgmr.msrb.gmra.mxu2 %v17116_v11  ;;  %10002 = vmatmul.bf16.vlgmr.msrb.gmra.mxu3 %v17118_v61  ;;  %v14126_v11 = vor.u32 %v15782_v8, %v14123_v62  ;;  %v15776_v61 = vld [vmem:[#allocation10 + $0x374] sm:$0xf] }
 0x75c   : > { %v14102_v2 = vor.u32 %v15776_v61, %v14099_v35  ;;  %v9744_v48 = vadd.f32 %v17179_v54, %v9731_v43 }
 0x75d   : > { %v9706_v58 = vpop.f32.mrf.mxu0 }
 0x75e   : > { %9957 = vmatpush.bf16.msrb.mxu0 %v14174_v13  ;;  %9970 = vmatpush.bf16.msrb.mxu1 %v14366_v46  ;;  %v9782_v56 = vpop.f32.mrf.mxu2  ;;  %v9795_v22 = vpop.f32.mrf.mxu3 }
 0x762   : > { %9958 = vmatpush.bf16.msrb.mxu0 %v14150_v41  ;;  %9971 = vmatpush.bf16.msrb.mxu1 %v14342_v63 }
 0x766   : > { %9959 = vmatpush.bf16.msrb.mxu0 %v14126_v11  ;;  %9972 = vmatpush.bf16.msrb.mxu1 %v14318_v10  ;;  %v9784_v36 = vpop.f32.mrf.mxu2  ;;  %v9797_v59 = vpop.f32.mrf.mxu3 }
 0x76a   : > { %9960 = vmatpush.bf16.msrb.mxu0 %v14102_v2  ;;  %9973 = vmatpush.bf16.msrb.mxu1 %v14294_v24 }
 0x76e   : > { %9961 = vmatpush.bf16.msrb.mxu0 %v14078_v12  ;;  %9974 = vmatpush.bf16.msrb.mxu1 %v14270_v18 }
 0x772   : > { %9962 = vmatpush.bf16.msrb.mxu0 %v14054_v4  ;;  %9975 = vmatpush.bf16.msrb.mxu1 %v14246_v32  ;;  %v9756_v16 = vpop.f32.mrf.mxu0  ;;  %v9769_v60 = vpop.f32.mrf.mxu1 }
 0x773   : > { %v9757_v47 = vadd.f32 %v9756_v16, %v9744_v48 }
 0x775   : > { %9963 = vmatmul.bf16.vlgmr.msrb.gmra.mxu0 %v17092_v3  ;;  %9976 = vmatmul.bf16.vlgmr.msrb.gmra.mxu1 %v17094_v7  ;;  %v9770_v33 = vadd.f32 %v9769_v60, %v9757_v47  ;;  %v8069_v3 = vperm.slane %v17152_v29, 3 }
 0x777   : > { %10009 = vst [vmem:[%s17165_s29 + $0x10] sm:$0xff] %v9770_v33  ;;  %v9783_v25 = vadd.f32 %v9782_v56, %v8069_v3 }
 0x779   : > { %v9796_v7 = vadd.f32 %v9795_v22, %v9783_v25 }
 0x77a   : > { %v9758_v45 = vpop.f32.mrf.mxu0  ;;  %v9771_v51 = vpop.f32.mrf.mxu1 }
 0x77e   : > { %v9834_v44 = vpop.f32.mrf.mxu2  ;;  %v9847_v0 = vpop.f32.mrf.mxu3 }
 0x786   : > { %v9836_v55 = vpop.f32.mrf.mxu2  ;;  %v9849_v57 = vpop.f32.mrf.mxu3 }
 0x792   : > { %v9808_v26 = vpop.f32.mrf.mxu0  ;;  %v9821_v37 = vpop.f32.mrf.mxu1 }
 0x793   : > { %v9809_v13 = vadd.f32 %v9808_v26, %v9796_v7 }
 0x795   : > { %v9822_v54 = vadd.f32 %v9821_v37, %v9809_v13 }
 0x797   : > { %v9835_v46 = vadd.f32 %v9834_v44, %v9822_v54 }
 0x799   : > { %v9848_v52 = vadd.f32 %v9847_v0, %v9835_v46 }
 0x79a   : > { %v9810_v17 = vpop.f32.mrf.mxu0  ;;  %v9823_v50 = vpop.f32.mrf.mxu1 }
 0x79b   : > { %10010 = vst [vmem:[%s17165_s29 + $0x18] sm:$0xff] %v9848_v52 }
 0x79e   : > { %v9886_v23 = vpop.f32.mrf.mxu2  ;;  %v9899_v41 = vpop.f32.mrf.mxu3 }
 0x7a6   : > { %v9888_v63 = vpop.f32.mrf.mxu2  ;;  %v9901_v8 = vpop.f32.mrf.mxu3 }
 0x7b2   : > { %v9860_v38 = vpop.f32.mrf.mxu0  ;;  %v9873_v5 = vpop.f32.mrf.mxu1 }
 0x7b3   : > { %v9861_v11 = vadd.f32 %v9860_v38, %v8070_v19 }
 0x7b5   : > { %v9874_v35 = vadd.f32 %v9873_v5, %v9861_v11 }
 0x7b7   : > { %v9887_v53 = vadd.f32 %v9886_v23, %v9874_v35 }
 0x7b9   : > { %v9900_v28 = vadd.f32 %v9899_v41, %v9887_v53 }
 0x7ba   : > { %v9862_v62 = vpop.f32.mrf.mxu0  ;;  %v9875_v21 = vpop.f32.mrf.mxu1 }
 0x7be   : > { %v9938_v30 = vpop.f32.mrf.mxu2  ;;  %v9951_v15 = vpop.f32.mrf.mxu3 }
 0x7bf   : > { %v9939_v12 = vadd.f32 %v9938_v30, %v8071_v49 }
 0x7c1   : > { %v9952_v18 = vadd.f32 %v9951_v15, %v9939_v12 }
 0x7c6   : > { %v9940_v10 = vpop.f32.mrf.mxu2  ;;  %v9953_v61 = vpop.f32.mrf.mxu3 }
 0x7d2   : > { %v9912_v2 = vpop.f32.mrf.mxu0  ;;  %v9925_v24 = vpop.f32.mrf.mxu1 }
 0x7d3   : > { %v9913_v27 = vadd.f32 %v9912_v2, %v9900_v28 }
 0x7d5   : > { %v9926_v31 = vadd.f32 %v9925_v24, %v9913_v27 }
 0x7d7   : > { %10011 = vst [vmem:[%s17165_s29 + $0x20] sm:$0xff] %v9926_v31 }
 0x7da   : > { %v9914_v34 = vpop.f32.mrf.mxu0  ;;  %v9927_v1 = vpop.f32.mrf.mxu1 }
 0x7de   : > { %v9990_v56 = vpop.f32.mrf.mxu2  ;;  %v10003_v22 = vpop.f32.mrf.mxu3 }
 0x7e6   : > { %v9992_v58 = vpop.f32.mrf.mxu2  ;;  %v10005_v14 = vpop.f32.mrf.mxu3 }
 0x7f2   : > { %v9964_v20 = vpop.f32.mrf.mxu0  ;;  %v9977_v40 = vpop.f32.mrf.mxu1 }
 0x7f3   : > { %v9965_v42 = vadd.f32 %v9964_v20, %v9952_v18 }
 0x7f5   : > { %v9978_v6 = vadd.f32 %v9977_v40, %v9965_v42 }
 0x7f7   : > { %v9991_v4 = vadd.f32 %v9990_v56, %v9978_v6 }
 0x7f9   : > { %v10004_v32 = vadd.f32 %v10003_v22, %v9991_v4 }
 0x7fa   : > { %v9966_v29 = vpop.f32.mrf.mxu0  ;;  %v9979_v9 = vpop.f32.mrf.mxu1 }
 0x7fb   : > { %10012 = vst [vmem:[%s17165_s29 + $0x28] sm:$0xff] %v10004_v32 }
 0x7fc   : > { %16306 = shalt.err (!%p16303_p13)
}
 0x7fd   : > { %15976 = dma.vmem_to_hbm [thread:$0]  (%p16506_p2), %s10030_s9, 768, %s10032_s10, %s10014_s21  }
 0x7fe PF: > { %s10043_s7 = sand.u32 1, %s16349_s18   ;;  %p15996_p0 = pnand %p10160_p6, %p16513_p5 }
 0x7ff   : > { %s10044_s29 = scalar_lea.sflag [#allocation6], %s10043_s7 }
 0x800   : > { %p15997_p4 = pneg %p15996_p0 }
 0x802   : > { %16344 = dma.done.wait (%p15997_p4), %s10044_s29, 768  }
 0x803   : > { %16346 = vsyncadd (%p15997_p4), %s10044_s29, 4294966528  ;;  %s23_s23 = sadd.s32 1, %s16369_s23   ;;  %s17250_s18 = smov %s16353_s19 }
 0x804   : > { %p20_p7 = scmp.ge.s32.totalorder %s23_s23, 4   ;;  %s17251_s19 = smov %s16357_s20 }
 0x805   : > { %s17252_s20 = smov %s16511_s26  ;;  %s17253_s21 = smov %s16365_s22 }
 0x806   : > { %s17254_s22 = smov %s17256_s13  ;;  %22 = sbr.rel (!%p20_p7) target bundleno = 8 (0x8), region = 106 }
 0x80b   :  { %10050 = vsyncpa [#allocation5], 1 }
 0x80c   :  { %10052 = vsyncpa [#allocation5 + $0x1], 1 }
 0x80d   :  { %10053 = vsyncpa [#allocation8], 1 }
 0x80e   :  { %10054 = vsyncpa [#allocation11], 1 }
 0x80f   :  { %10055 = vsyncpa [#allocation6], 1 }
 0x810   :  { %10057 = vsyncpa [#allocation6 + $0x1], 1 }

</bundles_post_ra>
